<compile_context>
chip_gen: v7x
topology: tpu7x:2x2x1
jax: 0.10.0
libtpu: 0.0.40
codegen_flags: <defaults>
</compile_context>

<pallas_src>
import numpy as np

import jax
import jax.numpy as jnp
from jax import lax
from jax.experimental import pallas as pl
from jax.experimental.pallas import tpu as pltpu


# ----------------------------------------------------------------------------
# Fixed small geometry consistent with the reference module
# ----------------------------------------------------------------------------
B = 2
SEQ = 4            # seq_len == conv3d channel dim after the reference view()
IN_CH = 4          # input_channels == conv3d depth dim after the view()
HID = 8            # PixelCNN hidden channels
NUM_LAYERS = 4     # < 5  -> no attention / batchnorm blocks
H, W = 16, 16
D = IN_CH
H2, W2, D2 = 2 * H, 2 * W, 2 * D
T = SEQ            # ConvLSTM time dim (= PyTorch dim 1 of the conv output)
LSTM_HID = 2 * IN_CH          # 8

CPACK = 8                      # channels packed per w position (lane axis)
GUARD1 = 24                    # sublane guard for 3x3x3 row shifts (|s|<=17)
GUARD2 = 8                     # sublane guard for 3x3 row shifts (|s|<=1)

ROWS1 = D * H                  # 64 rows per batch in kernel 1: (d, h)
LANES1 = W * CPACK             # 128 lanes: (w, c)
ROWS2 = H2                     # 32 rows per (batch) in kernel 2: h2
LANES2 = W2 * CPACK            # 256 lanes: (w2, c)
GLANES = 4 * LANES2            # 1024 gate lanes: (gate, w2, c)


# ----------------------------------------------------------------------------
# Kernel 1: fused masked-PixelCNN stack + conv_out
# ----------------------------------------------------------------------------
def _pixelcnn_kernel(x_ref, mconv_ref, bconv_ref, mout_ref, bout_ref,
                     out_ref, scr_ref):
    # x_ref:     (1, 64, 128)  one batch, rows=(d,h), lanes=(w,c)
    # mconv_ref: (L, 9, 128, 128) bf16 band matrices per layer / (kd,kh)
    # bconv_ref: (L, 1, 128) f32, lane-tiled biases
    # mout_ref:  (128, 128) bf16; bout_ref: (1, 128) f32
    # out_ref:   (1, 64, 128) f32
    # scr_ref:   (112, 128) f32 guarded activation scratch
    scr_ref[...] = jnp.zeros_like(scr_ref)
    scr_ref[pl.ds(GUARD1, ROWS1), :] = x_ref[0]

    row = lax.broadcasted_iota(jnp.int32, (ROWS1, 1), 0)
    d_idx = row >> 4
    h_idx = row & 15
    masks = []
    shifts = []
    for kd in range(3):
        for kh in range(3):
            dd, dh = kd - 1, kh - 1
            md = (d_idx + dd >= 0) & (d_idx + dd <= D - 1)
            mh = (h_idx + dh >= 0) & (h_idx + dh <= H - 1)
            masks.append(md & mh)
            shifts.append(dd * H + dh)

    cur = None
    for layer in range(NUM_LAYERS):
        acc = jnp.zeros((ROWS1, LANES1), jnp.float32)
        for j in range(9):
            xs = scr_ref[pl.ds(GUARD1 + shifts[j], ROWS1), :]
            xs = jnp.where(masks[j], xs, 0.0)
            acc = acc + jnp.dot(xs.astype(jnp.bfloat16), mconv_ref[layer, j],
                                preferred_element_type=jnp.float32)
        cur = jnp.maximum(acc + bconv_ref[layer], 0.0)
        if layer + 1 < NUM_LAYERS:
            scr_ref[pl.ds(GUARD1, ROWS1), :] = cur

    y = jnp.dot(cur.astype(jnp.bfloat16), mout_ref[...],
                preferred_element_type=jnp.float32) + bout_ref[...]
    out_ref[0] = y


def pixelcnn_forward(x0, m_conv, b_conv, m_out, b_out):
    return pl.pallas_call(
        _pixelcnn_kernel,
        out_shape=jax.ShapeDtypeStruct((B, ROWS1, LANES1), jnp.float32),
        grid_spec=pltpu.PrefetchScalarGridSpec(
            num_scalar_prefetch=0,
            grid=(B,),
            in_specs=[
                pl.BlockSpec((1, ROWS1, LANES1), lambda b: (b, 0, 0)),
                pl.BlockSpec((NUM_LAYERS, 9, LANES1, LANES1),
                             lambda b: (0, 0, 0, 0)),
                pl.BlockSpec((NUM_LAYERS, 1, LANES1), lambda b: (0, 0, 0)),
                pl.BlockSpec((LANES1, LANES1), lambda b: (0, 0)),
                pl.BlockSpec((1, LANES1), lambda b: (0, 0)),
            ],
            out_specs=pl.BlockSpec((1, ROWS1, LANES1), lambda b: (b, 0, 0)),
            scratch_shapes=[
                pltpu.VMEM((GUARD1 + ROWS1 + GUARD1, LANES1), jnp.float32)],
        ),
        compiler_params=pltpu.CompilerParams(
            dimension_semantics=("parallel",)),
    )(x0, m_conv, b_conv, m_out, b_out)


# ----------------------------------------------------------------------------
# Kernel 2: fused ConvLSTM (gate conv + nonlinearities + state update, all T)
# ----------------------------------------------------------------------------
def _convlstm_kernel(x_ref, mx_ref, mh_ref, bg_ref, out_ref,
                     xg_ref, hg_ref, c_ref):
    # x_ref:   (1, 1, 32, 256) one (batch,time) frame, rows=h2, lanes=(w2,c)
    # mx/mh:   (3, 256, 1024) bf16 band matrices per kh (x / h paths)
    # bg_ref:  (1, 1024) f32
    # out_ref: (1, 1, 32, 256) f32
    # xg/hg:   (48, 256) f32 guarded frames; c_ref: (32, 256) f32
    t = pl.program_id(1)

    @pl.when(t == 0)
    def _init():
        xg_ref[...] = jnp.zeros_like(xg_ref)
        hg_ref[...] = jnp.zeros_like(hg_ref)
        c_ref[...] = jnp.zeros_like(c_ref)

    xg_ref[pl.ds(GUARD2, ROWS2), :] = x_ref[0, 0]

    row = lax.broadcasted_iota(jnp.int32, (ROWS2, 1), 0)
    gacc = jnp.zeros((ROWS2, GLANES), jnp.float32)
    for kh in range(3):
        dh = kh - 1
        xs = xg_ref[pl.ds(GUARD2 + dh, ROWS2), :]
        hs = hg_ref[pl.ds(GUARD2 + dh, ROWS2), :]
        if dh != 0:
            m = (row + dh >= 0) & (row + dh <= H2 - 1)
            xs = jnp.where(m, xs, 0.0)
            hs = jnp.where(m, hs, 0.0)
        gacc = gacc + jnp.dot(xs.astype(jnp.bfloat16), mx_ref[kh],
                              preferred_element_type=jnp.float32)
        gacc = gacc + jnp.dot(hs.astype(jnp.bfloat16), mh_ref[kh],
                              preferred_element_type=jnp.float32)
    g = gacc + bg_ref[...]

    i_g = jax.nn.sigmoid(g[:, 0:LANES2])
    f_g = jax.nn.sigmoid(g[:, LANES2:2 * LANES2])
    o_g = jax.nn.sigmoid(g[:, 2 * LANES2:3 * LANES2])
    g_g = jnp.tanh(g[:, 3 * LANES2:4 * LANES2])

    c_new = f_g * c_ref[...] + i_g * g_g
    h_new = o_g * jnp.tanh(c_new)
    c_ref[...] = c_new
    hg_ref[pl.ds(GUARD2, ROWS2), :] = h_new
    out_ref[0, 0] = h_new


def convlstm_forward(x_lstm, mx, mh, bg):
    return pl.pallas_call(
        _convlstm_kernel,
        out_shape=jax.ShapeDtypeStruct((B, T, ROWS2, LANES2), jnp.float32),
        grid_spec=pltpu.PrefetchScalarGridSpec(
            num_scalar_prefetch=0,
            grid=(B, T),
            in_specs=[
                pl.BlockSpec((1, 1, ROWS2, LANES2), lambda b, t: (b, t, 0, 0)),
                pl.BlockSpec((3, LANES2, GLANES), lambda b, t: (0, 0, 0)),
                pl.BlockSpec((3, LANES2, GLANES), lambda b, t: (0, 0, 0)),
                pl.BlockSpec((1, GLANES), lambda b, t: (0, 0)),
            ],
            out_specs=pl.BlockSpec((1, 1, ROWS2, LANES2),
                                   lambda b, t: (b, t, 0, 0)),
            scratch_shapes=[
                pltpu.VMEM((GUARD2 + ROWS2 + GUARD2, LANES2), jnp.float32),
                pltpu.VMEM((GUARD2 + ROWS2 + GUARD2, LANES2), jnp.float32),
                pltpu.VMEM((ROWS2, LANES2), jnp.float32),
            ],
        ),
        compiler_params=pltpu.CompilerParams(
            dimension_semantics=("parallel", "arbitrary")),
    )(x_lstm, mx, mh, bg)


# ----------------------------------------------------------------------------
# Forward pass (XLA glue kept to a few tiny reshapes/repeats between kernels)
# ----------------------------------------------------------------------------
def spa_temp_pixelcnn_vp_forward(x, params):
    # x: (B, seq, in_ch, H, W).  Reference view(): conv channels = seq,
    # depth = in_ch (only valid because seq_len == input_channels).
    xt = jnp.transpose(x, (0, 2, 3, 4, 1))                       # (B,d,h,w,c)
    xt = jnp.pad(xt, ((0, 0), (0, 0), (0, 0), (0, 0), (0, CPACK - SEQ)))
    x0 = xt.reshape(B, ROWS1, LANES1)

    y = pixelcnn_forward(x0, params["m_conv"], params["b_conv"],
                         params["m_out"], params["b_out"])        # (B,64,128)

    # nn.Upsample(scale_factor=2, mode='nearest') over (D, H, W) + repack
    y = y.reshape(B, D, H, W, CPACK)[..., :IN_CH]                 # (B,d,h,w,t)
    y = jnp.repeat(y, 2, axis=1)
    y = jnp.repeat(y, 2, axis=2)
    y = jnp.repeat(y, 2, axis=3)                                  # (B,D2,H2,W2,T)
    x_lstm = jnp.transpose(y, (0, 4, 2, 3, 1))                    # (B,T,H2,W2,D2)
    x_lstm = x_lstm.reshape(B, T, ROWS2, LANES2)

    h_seq = convlstm_forward(x_lstm, params["mx"], params["mh"], params["bg"])
    out = h_seq.reshape(B, T, H2, W2, LSTM_HID)
    out = jnp.transpose(out, (0, 1, 4, 2, 3))                     # (B,T,hid,H2,W2)
    return out


# ----------------------------------------------------------------------------
# Parameter construction (masked PyTorch-layout weights -> band matrices)
# ----------------------------------------------------------------------------
def mask_A(k=3):
    m = np.zeros((k, k, k), np.float32)
    m[:k // 2, :, :] = 1
    m[k // 2, :k // 2, :] = 1
    m[k // 2, k // 2, :k // 2] = 1
    return m


def mask_B(k=3):
    # Faithful replication of the reference diagonal-sum construction.
    h, w, d = k, k, k
    diag = h + w - 1 + d
    m = np.zeros((diag, h, w, d), np.float32)
    for i in range(diag):
        for j in range(max(0, i - d + 1), min(i + 1, h)):
            for kk in range(max(0, i - j - d + 1), min(i - j + 1, w)):
                ll = i - j - kk
                if 0 <= ll < d:
                    m[i, j, kk, ll] = 1
    mb = m.sum(0)
    mb[h // 2, w // 2, d // 2 + 1:] = 1
    return mb.astype(np.float32)


def _conv3d_weights(key, c_in, c_out, k, mask=None):
    wkey, bkey = jax.random.split(key)
    fan_in = c_in * k ** 3
    w = jax.random.normal(wkey, (c_out, c_in, k, k, k), jnp.float32) / np.sqrt(fan_in)
    b = jax.random.normal(bkey, (c_out,), jnp.float32) * 0.01
    if mask is not None:
        w = w * jnp.asarray(mask)[None, None]      # weight.data *= mask
    return np.asarray(w), np.asarray(b)


def _pad_conv_w(w):
    out = np.zeros((CPACK, CPACK) + w.shape[2:], np.float32)
    out[:w.shape[0], :w.shape[1]] = w
    return out


def _band_3x3x3(w):
    # w: (8, 8, 3, 3, 3) [co, ci, kd, kh, kw] -> 9 band matrices over (w, c) lanes
    m = np.zeros((9, LANES1, LANES1), np.float32)
    for kd in range(3):
        for kh in range(3):
            j = kd * 3 + kh
            for w_out in range(W):
                for kw in range(3):
                    w_src = w_out + kw - 1
                    if 0 <= w_src < W:
                        m[j, w_src * CPACK:(w_src + 1) * CPACK,
                             w_out * CPACK:(w_out + 1) * CPACK] = w[:, :, kd, kh, kw].T
    return m


def _band_1x1x1(w):
    # w: (8, 8) [co, ci] -> block-diagonal over w positions
    m = np.zeros((LANES1, LANES1), np.float32)
    for wp in range(W):
        m[wp * CPACK:(wp + 1) * CPACK, wp * CPACK:(wp + 1) * CPACK] = w.T
    return m


def _bias_lane1(b):
    bb = np.zeros(CPACK, np.float32)
    bb[:b.shape[0]] = b
    return np.tile(bb, W).reshape(1, LANES1)


def _band_lstm(wpart):
    # wpart: (32, 8, 3, 3) [gate*8+gi, c, kh, kw] -> 3 band matrices (256, 1024)
    m = np.zeros((3, LANES2, GLANES), np.float32)
    for kh in range(3):
        for w_out in range(W2):
            for kw in range(3):
                w_src = w_out + kw - 1
                if 0 <= w_src < W2:
                    for gt in range(4):
                        blk = wpart[gt * LSTM_HID:(gt + 1) * LSTM_HID, :, kh, kw]
                        m[kh, w_src * CPACK:(w_src + 1) * CPACK,
                             gt * LANES2 + w_out * CPACK:
                             gt * LANES2 + (w_out + 1) * CPACK] = blk.T
    return m


def _bias_lane_lstm(bg):
    b = np.zeros(GLANES, np.float32)
    for gt in range(4):
        b[gt * LANES2:(gt + 1) * LANES2] = np.tile(
            bg[gt * LSTM_HID:(gt + 1) * LSTM_HID], W2)
    return b.reshape(1, GLANES)


def make_params(key):
    keys = jax.random.split(key, NUM_LAYERS + 2)
    mconv, bconv = [], []
    w, b = _conv3d_weights(keys[0], SEQ, HID, 3, mask=mask_A())
    mconv.append(_band_3x3x3(_pad_conv_w(w)))
    bconv.append(_bias_lane1(b))
    for i in range(1, NUM_LAYERS):
        w, b = _conv3d_weights(keys[i], HID, HID, 3, mask=mask_B())
        mconv.append(_band_3x3x3(_pad_conv_w(w)))
        bconv.append(_bias_lane1(b))
    wo, bo = _conv3d_weights(keys[NUM_LAYERS], HID, IN_CH, 1)
    m_out = _band_1x1x1(_pad_conv_w(wo)[..., 0, 0, 0])
    b_out = _bias_lane1(bo)

    # TODO(synk): nn.ConvLSTM2d does not exist in PyTorch; standard 3x3 ConvLSTM.
    kg, kb = jax.random.split(keys[NUM_LAYERS + 1])
    c_in_g = D2 + LSTM_HID
    wg = np.asarray(jax.random.normal(kg, (4 * LSTM_HID, c_in_g, 3, 3),
                                      jnp.float32) / np.sqrt(c_in_g * 9))
    bg = np.asarray(jax.random.normal(kb, (4 * LSTM_HID,), jnp.float32) * 0.01)
    mx = _band_lstm(wg[:, :D2])
    mh = _band_lstm(wg[:, D2:])

    return dict(
        m_conv=jnp.asarray(np.stack(mconv), jnp.bfloat16),
        b_conv=jnp.asarray(np.stack(bconv), jnp.float32),
        m_out=jnp.asarray(m_out, jnp.bfloat16),
        b_out=jnp.asarray(b_out, jnp.float32),
        mx=jnp.asarray(mx, jnp.bfloat16),
        mh=jnp.asarray(mh, jnp.bfloat16),
        bg=jnp.asarray(_bias_lane_lstm(bg), jnp.float32),
    )


# ----------------------------------------------------------------------------
if __name__ == "__main__":
    key = jax.random.PRNGKey(0)
    pkey, xkey = jax.random.split(key)
    params = make_params(pkey)
    x = jax.random.normal(xkey, (B, SEQ, IN_CH, H, W), jnp.float32)

    fwd = jax.jit(spa_temp_pixelcnn_vp_forward)
    out = jax.block_until_ready(fwd(x, params))

    assert out.shape == (B, T, LSTM_HID, H2, W2), out.shape
    assert bool(jnp.all(jnp.isfinite(out)))
    print("KERNEL_OK")
</pallas_src>

<mosaic_0001>
module attributes {stable_mosaic.version = 11 : i64} {
  func.func @_pixelcnn_kernel(%arg0: i32, %arg1: memref<1x64x128xf32, #tpu.memory_space<vmem>>, %arg2: memref<4x9x128x128xbf16, #tpu.memory_space<vmem>>, %arg3: memref<4x1x128xf32, #tpu.memory_space<vmem>>, %arg4: memref<128x128xbf16, #tpu.memory_space<vmem>>, %arg5: memref<1x128xf32, #tpu.memory_space<vmem>>, %arg6: memref<1x64x128xf32, #tpu.memory_space<vmem>>, %arg7: memref<112x128xf32, #tpu.memory_space<vmem>>) attributes {dimension_semantics = [#tpu.dimension_semantics<parallel>], iteration_bounds = array<i64: 2>, scalar_prefetch = 0 : i64, scratch_operands = 1 : i64, tpu.core_type = #tpu.core_type<tc>, window_params = [{transform_indices = @transform_0, window_bounds = array<i64: 1, 64, 128>}, {pipeline_mode = #tpu.pipeline_mode<synchronous>, transform_indices = @transform_1, window_bounds = array<i64: 4, 9, 128, 128>}, {pipeline_mode = #tpu.pipeline_mode<synchronous>, transform_indices = @transform_2, window_bounds = array<i64: 4, 1, 128>}, {pipeline_mode = #tpu.pipeline_mode<synchronous>, transform_indices = @transform_3, window_bounds = array<i64: 128, 128>}, {pipeline_mode = #tpu.pipeline_mode<synchronous>, transform_indices = @transform_4, window_bounds = array<i64: 1, 128>}, {transform_indices = @transform_5, window_bounds = array<i64: 1, 64, 128>}]} {
    %cst = arith.constant 0.000000e+00 : f32
    %0 = vector.broadcast %cst : f32 to vector<112x128xf32>
    %c0 = arith.constant 0 : index
    %c0_0 = arith.constant 0 : index
    %1 = vector.load %arg7[%c0, %c0_0] : memref<112x128xf32, #tpu.memory_space<vmem>>, vector<112x128xf32>
    tpu.vector_store %arg7[%c0, %c0_0], %0 {strides = array<i32>} : memref<112x128xf32, #tpu.memory_space<vmem>>, vector<112x128xf32>,
    %c0_1 = arith.constant 0 : index
    %c0_2 = arith.constant 0 : index
    %c0_3 = arith.constant 0 : index
    %2 = vector.load %arg1[%c0_1, %c0_2, %c0_3] : memref<1x64x128xf32, #tpu.memory_space<vmem>>, vector<1x64x128xf32>
    %3 = vector.shape_cast %2 : vector<1x64x128xf32> to vector<64x128xf32>
    %c24 = arith.constant 24 : index
    %c0_4 = arith.constant 0 : index
    %4 = vector.load %arg7[%c24, %c0_4] : memref<112x128xf32, #tpu.memory_space<vmem>>, vector<64x128xf32>
    tpu.vector_store %arg7[%c24, %c0_4], %3 {strides = array<i32>} : memref<112x128xf32, #tpu.memory_space<vmem>>, vector<64x128xf32>,
    %5 = tpu.iota {dimensions = array<i32: 0>} : vector<64x1xi32>
    %c4_i32 = arith.constant 4 : i32
    %6 = vector.broadcast %c4_i32 : i32 to vector<64x1xi32>
    %7 = arith.shrsi %5, %6 : vector<64x1xi32>
    %c15_i32 = arith.constant 15 : i32
    %8 = vector.broadcast %c15_i32 : i32 to vector<64x1xi32>
    %9 = arith.andi %5, %8 : vector<64x1xi32>
    %c-1_i32 = arith.constant -1 : i32
    %10 = vector.broadcast %c-1_i32 : i32 to vector<64x1xi32>
    %11 = arith.addi %7, %10 : vector<64x1xi32>
    %c0_i32 = arith.constant 0 : i32
    %12 = vector.broadcast %c0_i32 : i32 to vector<64x1xi32>
    %13 = arith.cmpi sge, %11, %12 : vector<64x1xi32>
    %c-1_i32_5 = arith.constant -1 : i32
    %14 = vector.broadcast %c-1_i32_5 : i32 to vector<64x1xi32>
    %15 = arith.addi %7, %14 : vector<64x1xi32>
    %c3_i32 = arith.constant 3 : i32
    %16 = vector.broadcast %c3_i32 : i32 to vector<64x1xi32>
    %17 = arith.cmpi sle, %15, %16 : vector<64x1xi32>
    %18 = arith.andi %13, %17 : vector<64x1xi1>
    %c-1_i32_6 = arith.constant -1 : i32
    %19 = vector.broadcast %c-1_i32_6 : i32 to vector<64x1xi32>
    %20 = arith.addi %9, %19 : vector<64x1xi32>
    %c0_i32_7 = arith.constant 0 : i32
    %21 = vector.broadcast %c0_i32_7 : i32 to vector<64x1xi32>
    %22 = arith.cmpi sge, %20, %21 : vector<64x1xi32>
    %c-1_i32_8 = arith.constant -1 : i32
    %23 = vector.broadcast %c-1_i32_8 : i32 to vector<64x1xi32>
    %24 = arith.addi %9, %23 : vector<64x1xi32>
    %c15_i32_9 = arith.constant 15 : i32
    %25 = vector.broadcast %c15_i32_9 : i32 to vector<64x1xi32>
    %26 = arith.cmpi sle, %24, %25 : vector<64x1xi32>
    %27 = arith.andi %22, %26 : vector<64x1xi1>
    %28 = arith.andi %18, %27 : vector<64x1xi1>
    %c-1_i32_10 = arith.constant -1 : i32
    %29 = vector.broadcast %c-1_i32_10 : i32 to vector<64x1xi32>
    %30 = arith.addi %7, %29 : vector<64x1xi32>
    %c0_i32_11 = arith.constant 0 : i32
    %31 = vector.broadcast %c0_i32_11 : i32 to vector<64x1xi32>
    %32 = arith.cmpi sge, %30, %31 : vector<64x1xi32>
    %c-1_i32_12 = arith.constant -1 : i32
    %33 = vector.broadcast %c-1_i32_12 : i32 to vector<64x1xi32>
    %34 = arith.addi %7, %33 : vector<64x1xi32>
    %c3_i32_13 = arith.constant 3 : i32
    %35 = vector.broadcast %c3_i32_13 : i32 to vector<64x1xi32>
    %36 = arith.cmpi sle, %34, %35 : vector<64x1xi32>
    %37 = arith.andi %32, %36 : vector<64x1xi1>
    %c0_i32_14 = arith.constant 0 : i32
    %38 = vector.broadcast %c0_i32_14 : i32 to vector<64x1xi32>
    %39 = arith.addi %9, %38 : vector<64x1xi32>
    %c0_i32_15 = arith.constant 0 : i32
    %40 = vector.broadcast %c0_i32_15 : i32 to vector<64x1xi32>
    %41 = arith.cmpi sge, %39, %40 : vector<64x1xi32>
    %c0_i32_16 = arith.constant 0 : i32
    %42 = vector.broadcast %c0_i32_16 : i32 to vector<64x1xi32>
    %43 = arith.addi %9, %42 : vector<64x1xi32>
    %c15_i32_17 = arith.constant 15 : i32
    %44 = vector.broadcast %c15_i32_17 : i32 to vector<64x1xi32>
    %45 = arith.cmpi sle, %43, %44 : vector<64x1xi32>
    %46 = arith.andi %41, %45 : vector<64x1xi1>
    %47 = arith.andi %37, %46 : vector<64x1xi1>
    %c-1_i32_18 = arith.constant -1 : i32
    %48 = vector.broadcast %c-1_i32_18 : i32 to vector<64x1xi32>
    %49 = arith.addi %7, %48 : vector<64x1xi32>
    %c0_i32_19 = arith.constant 0 : i32
    %50 = vector.broadcast %c0_i32_19 : i32 to vector<64x1xi32>
    %51 = arith.cmpi sge, %49, %50 : vector<64x1xi32>
    %c-1_i32_20 = arith.constant -1 : i32
    %52 = vector.broadcast %c-1_i32_20 : i32 to vector<64x1xi32>
    %53 = arith.addi %7, %52 : vector<64x1xi32>
    %c3_i32_21 = arith.constant 3 : i32
    %54 = vector.broadcast %c3_i32_21 : i32 to vector<64x1xi32>
    %55 = arith.cmpi sle, %53, %54 : vector<64x1xi32>
    %56 = arith.andi %51, %55 : vector<64x1xi1>
    %c1_i32 = arith.constant 1 : i32
    %57 = vector.broadcast %c1_i32 : i32 to vector<64x1xi32>
    %58 = arith.addi %9, %57 : vector<64x1xi32>
    %c0_i32_22 = arith.constant 0 : i32
    %59 = vector.broadcast %c0_i32_22 : i32 to vector<64x1xi32>
    %60 = arith.cmpi sge, %58, %59 : vector<64x1xi32>
    %c1_i32_23 = arith.constant 1 : i32
    %61 = vector.broadcast %c1_i32_23 : i32 to vector<64x1xi32>
    %62 = arith.addi %9, %61 : vector<64x1xi32>
    %c15_i32_24 = arith.constant 15 : i32
    %63 = vector.broadcast %c15_i32_24 : i32 to vector<64x1xi32>
    %64 = arith.cmpi sle, %62, %63 : vector<64x1xi32>
    %65 = arith.andi %60, %64 : vector<64x1xi1>
    %66 = arith.andi %56, %65 : vector<64x1xi1>
    %c0_i32_25 = arith.constant 0 : i32
    %67 = vector.broadcast %c0_i32_25 : i32 to vector<64x1xi32>
    %68 = arith.addi %7, %67 : vector<64x1xi32>
    %c0_i32_26 = arith.constant 0 : i32
    %69 = vector.broadcast %c0_i32_26 : i32 to vector<64x1xi32>
    %70 = arith.cmpi sge, %68, %69 : vector<64x1xi32>
    %c0_i32_27 = arith.constant 0 : i32
    %71 = vector.broadcast %c0_i32_27 : i32 to vector<64x1xi32>
    %72 = arith.addi %7, %71 : vector<64x1xi32>
    %c3_i32_28 = arith.constant 3 : i32
    %73 = vector.broadcast %c3_i32_28 : i32 to vector<64x1xi32>
    %74 = arith.cmpi sle, %72, %73 : vector<64x1xi32>
    %75 = arith.andi %70, %74 : vector<64x1xi1>
    %c-1_i32_29 = arith.constant -1 : i32
    %76 = vector.broadcast %c-1_i32_29 : i32 to vector<64x1xi32>
    %77 = arith.addi %9, %76 : vector<64x1xi32>
    %c0_i32_30 = arith.constant 0 : i32
    %78 = vector.broadcast %c0_i32_30 : i32 to vector<64x1xi32>
    %79 = arith.cmpi sge, %77, %78 : vector<64x1xi32>
    %c-1_i32_31 = arith.constant -1 : i32
    %80 = vector.broadcast %c-1_i32_31 : i32 to vector<64x1xi32>
    %81 = arith.addi %9, %80 : vector<64x1xi32>
    %c15_i32_32 = arith.constant 15 : i32
    %82 = vector.broadcast %c15_i32_32 : i32 to vector<64x1xi32>
    %83 = arith.cmpi sle, %81, %82 : vector<64x1xi32>
    %84 = arith.andi %79, %83 : vector<64x1xi1>
    %85 = arith.andi %75, %84 : vector<64x1xi1>
    %c0_i32_33 = arith.constant 0 : i32
    %86 = vector.broadcast %c0_i32_33 : i32 to vector<64x1xi32>
    %87 = arith.addi %7, %86 : vector<64x1xi32>
    %c0_i32_34 = arith.constant 0 : i32
    %88 = vector.broadcast %c0_i32_34 : i32 to vector<64x1xi32>
    %89 = arith.cmpi sge, %87, %88 : vector<64x1xi32>
    %c0_i32_35 = arith.constant 0 : i32
    %90 = vector.broadcast %c0_i32_35 : i32 to vector<64x1xi32>
    %91 = arith.addi %7, %90 : vector<64x1xi32>
    %c3_i32_36 = arith.constant 3 : i32
    %92 = vector.broadcast %c3_i32_36 : i32 to vector<64x1xi32>
    %93 = arith.cmpi sle, %91, %92 : vector<64x1xi32>
    %94 = arith.andi %89, %93 : vector<64x1xi1>
    %c0_i32_37 = arith.constant 0 : i32
    %95 = vector.broadcast %c0_i32_37 : i32 to vector<64x1xi32>
    %96 = arith.addi %9, %95 : vector<64x1xi32>
    %c0_i32_38 = arith.constant 0 : i32
    %97 = vector.broadcast %c0_i32_38 : i32 to vector<64x1xi32>
    %98 = arith.cmpi sge, %96, %97 : vector<64x1xi32>
    %c0_i32_39 = arith.constant 0 : i32
    %99 = vector.broadcast %c0_i32_39 : i32 to vector<64x1xi32>
    %100 = arith.addi %9, %99 : vector<64x1xi32>
    %c15_i32_40 = arith.constant 15 : i32
    %101 = vector.broadcast %c15_i32_40 : i32 to vector<64x1xi32>
    %102 = arith.cmpi sle, %100, %101 : vector<64x1xi32>
    %103 = arith.andi %98, %102 : vector<64x1xi1>
    %104 = arith.andi %94, %103 : vector<64x1xi1>
    %c0_i32_41 = arith.constant 0 : i32
    %105 = vector.broadcast %c0_i32_41 : i32 to vector<64x1xi32>
    %106 = arith.addi %7, %105 : vector<64x1xi32>
    %c0_i32_42 = arith.constant 0 : i32
    %107 = vector.broadcast %c0_i32_42 : i32 to vector<64x1xi32>
    %108 = arith.cmpi sge, %106, %107 : vector<64x1xi32>
    %c0_i32_43 = arith.constant 0 : i32
    %109 = vector.broadcast %c0_i32_43 : i32 to vector<64x1xi32>
    %110 = arith.addi %7, %109 : vector<64x1xi32>
    %c3_i32_44 = arith.constant 3 : i32
    %111 = vector.broadcast %c3_i32_44 : i32 to vector<64x1xi32>
    %112 = arith.cmpi sle, %110, %111 : vector<64x1xi32>
    %113 = arith.andi %108, %112 : vector<64x1xi1>
    %c1_i32_45 = arith.constant 1 : i32
    %114 = vector.broadcast %c1_i32_45 : i32 to vector<64x1xi32>
    %115 = arith.addi %9, %114 : vector<64x1xi32>
    %c0_i32_46 = arith.constant 0 : i32
    %116 = vector.broadcast %c0_i32_46 : i32 to vector<64x1xi32>
    %117 = arith.cmpi sge, %115, %116 : vector<64x1xi32>
    %c1_i32_47 = arith.constant 1 : i32
    %118 = vector.broadcast %c1_i32_47 : i32 to vector<64x1xi32>
    %119 = arith.addi %9, %118 : vector<64x1xi32>
    %c15_i32_48 = arith.constant 15 : i32
    %120 = vector.broadcast %c15_i32_48 : i32 to vector<64x1xi32>
    %121 = arith.cmpi sle, %119, %120 : vector<64x1xi32>
    %122 = arith.andi %117, %121 : vector<64x1xi1>
    %123 = arith.andi %113, %122 : vector<64x1xi1>
    %c1_i32_49 = arith.constant 1 : i32
    %124 = vector.broadcast %c1_i32_49 : i32 to vector<64x1xi32>
    %125 = arith.addi %7, %124 : vector<64x1xi32>
    %c0_i32_50 = arith.constant 0 : i32
    %126 = vector.broadcast %c0_i32_50 : i32 to vector<64x1xi32>
    %127 = arith.cmpi sge, %125, %126 : vector<64x1xi32>
    %c1_i32_51 = arith.constant 1 : i32
    %128 = vector.broadcast %c1_i32_51 : i32 to vector<64x1xi32>
    %129 = arith.addi %7, %128 : vector<64x1xi32>
    %c3_i32_52 = arith.constant 3 : i32
    %130 = vector.broadcast %c3_i32_52 : i32 to vector<64x1xi32>
    %131 = arith.cmpi sle, %129, %130 : vector<64x1xi32>
    %132 = arith.andi %127, %131 : vector<64x1xi1>
    %c-1_i32_53 = arith.constant -1 : i32
    %133 = vector.broadcast %c-1_i32_53 : i32 to vector<64x1xi32>
    %134 = arith.addi %9, %133 : vector<64x1xi32>
    %c0_i32_54 = arith.constant 0 : i32
    %135 = vector.broadcast %c0_i32_54 : i32 to vector<64x1xi32>
    %136 = arith.cmpi sge, %134, %135 : vector<64x1xi32>
    %c-1_i32_55 = arith.constant -1 : i32
    %137 = vector.broadcast %c-1_i32_55 : i32 to vector<64x1xi32>
    %138 = arith.addi %9, %137 : vector<64x1xi32>
    %c15_i32_56 = arith.constant 15 : i32
    %139 = vector.broadcast %c15_i32_56 : i32 to vector<64x1xi32>
    %140 = arith.cmpi sle, %138, %139 : vector<64x1xi32>
    %141 = arith.andi %136, %140 : vector<64x1xi1>
    %142 = arith.andi %132, %141 : vector<64x1xi1>
    %c1_i32_57 = arith.constant 1 : i32
    %143 = vector.broadcast %c1_i32_57 : i32 to vector<64x1xi32>
    %144 = arith.addi %7, %143 : vector<64x1xi32>
    %c0_i32_58 = arith.constant 0 : i32
    %145 = vector.broadcast %c0_i32_58 : i32 to vector<64x1xi32>
    %146 = arith.cmpi sge, %144, %145 : vector<64x1xi32>
    %c1_i32_59 = arith.constant 1 : i32
    %147 = vector.broadcast %c1_i32_59 : i32 to vector<64x1xi32>
    %148 = arith.addi %7, %147 : vector<64x1xi32>
    %c3_i32_60 = arith.constant 3 : i32
    %149 = vector.broadcast %c3_i32_60 : i32 to vector<64x1xi32>
    %150 = arith.cmpi sle, %148, %149 : vector<64x1xi32>
    %151 = arith.andi %146, %150 : vector<64x1xi1>
    %c0_i32_61 = arith.constant 0 : i32
    %152 = vector.broadcast %c0_i32_61 : i32 to vector<64x1xi32>
    %153 = arith.addi %9, %152 : vector<64x1xi32>
    %c0_i32_62 = arith.constant 0 : i32
    %154 = vector.broadcast %c0_i32_62 : i32 to vector<64x1xi32>
    %155 = arith.cmpi sge, %153, %154 : vector<64x1xi32>
    %c0_i32_63 = arith.constant 0 : i32
    %156 = vector.broadcast %c0_i32_63 : i32 to vector<64x1xi32>
    %157 = arith.addi %9, %156 : vector<64x1xi32>
    %c15_i32_64 = arith.constant 15 : i32
    %158 = vector.broadcast %c15_i32_64 : i32 to vector<64x1xi32>
    %159 = arith.cmpi sle, %157, %158 : vector<64x1xi32>
    %160 = arith.andi %155, %159 : vector<64x1xi1>
    %161 = arith.andi %151, %160 : vector<64x1xi1>
    %c1_i32_65 = arith.constant 1 : i32
    %162 = vector.broadcast %c1_i32_65 : i32 to vector<64x1xi32>
    %163 = arith.addi %7, %162 : vector<64x1xi32>
    %c0_i32_66 = arith.constant 0 : i32
    %164 = vector.broadcast %c0_i32_66 : i32 to vector<64x1xi32>
    %165 = arith.cmpi sge, %163, %164 : vector<64x1xi32>
    %c1_i32_67 = arith.constant 1 : i32
    %166 = vector.broadcast %c1_i32_67 : i32 to vector<64x1xi32>
    %167 = arith.addi %7, %166 : vector<64x1xi32>
    %c3_i32_68 = arith.constant 3 : i32
    %168 = vector.broadcast %c3_i32_68 : i32 to vector<64x1xi32>
    %169 = arith.cmpi sle, %167, %168 : vector<64x1xi32>
    %170 = arith.andi %165, %169 : vector<64x1xi1>
    %c1_i32_69 = arith.constant 1 : i32
    %171 = vector.broadcast %c1_i32_69 : i32 to vector<64x1xi32>
    %172 = arith.addi %9, %171 : vector<64x1xi32>
    %c0_i32_70 = arith.constant 0 : i32
    %173 = vector.broadcast %c0_i32_70 : i32 to vector<64x1xi32>
    %174 = arith.cmpi sge, %172, %173 : vector<64x1xi32>
    %c1_i32_71 = arith.constant 1 : i32
    %175 = vector.broadcast %c1_i32_71 : i32 to vector<64x1xi32>
    %176 = arith.addi %9, %175 : vector<64x1xi32>
    %c15_i32_72 = arith.constant 15 : i32
    %177 = vector.broadcast %c15_i32_72 : i32 to vector<64x1xi32>
    %178 = arith.cmpi sle, %176, %177 : vector<64x1xi32>
    %179 = arith.andi %174, %178 : vector<64x1xi1>
    %180 = arith.andi %170, %179 : vector<64x1xi1>
    %cst_73 = arith.constant 0.000000e+00 : f32
    %181 = vector.broadcast %cst_73 : f32 to vector<64x128xf32>
    %c7 = arith.constant 7 : index
    %c0_74 = arith.constant 0 : index
    %182 = vector.load %arg7[%c7, %c0_74] : memref<112x128xf32, #tpu.memory_space<vmem>>, vector<64x128xf32>
    %cst_75 = arith.constant 0.000000e+00 : f32
    %183 = vector.shape_cast %28 : vector<64x1xi1> to vector<64x1xi1>
    %184 = vector.broadcast %183 : vector<64x1xi1> to vector<64x128xi1>
    %185 = vector.broadcast %cst_75 : f32 to vector<64x128xf32>
    %186 = arith.select %184, %182, %185 : vector<64x128xi1>, vector<64x128xf32>
    %187 = arith.truncf %186 : vector<64x128xf32> to vector<64x128xbf16>
    %c0_76 = arith.constant 0 : index
    %c0_77 = arith.constant 0 : index
    %c0_78 = arith.constant 0 : index
    %c0_79 = arith.constant 0 : index
    %188 = vector.load %arg2[%c0_76, %c0_77, %c0_78, %c0_79] : memref<4x9x128x128xbf16, #tpu.memory_space<vmem>>, vector<1x1x128x128xbf16>
    %189 = vector.shape_cast %188 : vector<1x1x128x128xbf16> to vector<128x128xbf16>
    %cst_80 = arith.constant dense<0.000000e+00> : vector<64x128xf32>
    %190 = tpu.matmul %187, %189, %cst_80 {dimension_numbers = #tpu.dot_dimension_numbers<[1], [0], [0], [1], [0, 0, 1, 1], [], []>} : vector<64x128xbf16>, vector<128x128xbf16>, vector<64x128xf32> -> vector<64x128xf32>
    %191 = arith.addf %181, %190 : vector<64x128xf32>
    %c8 = arith.constant 8 : index
    %c0_81 = arith.constant 0 : index
    %192 = vector.load %arg7[%c8, %c0_81] : memref<112x128xf32, #tpu.memory_space<vmem>>, vector<64x128xf32>
    %cst_82 = arith.constant 0.000000e+00 : f32
    %193 = vector.shape_cast %47 : vector<64x1xi1> to vector<64x1xi1>
    %194 = vector.broadcast %193 : vector<64x1xi1> to vector<64x128xi1>
    %195 = vector.broadcast %cst_82 : f32 to vector<64x128xf32>
    %196 = arith.select %194, %192, %195 : vector<64x128xi1>, vector<64x128xf32>
    %197 = arith.truncf %196 : vector<64x128xf32> to vector<64x128xbf16>
    %c0_83 = arith.constant 0 : index
    %c1 = arith.constant 1 : index
    %c0_84 = arith.constant 0 : index
    %c0_85 = arith.constant 0 : index
    %198 = vector.load %arg2[%c0_83, %c1, %c0_84, %c0_85] : memref<4x9x128x128xbf16, #tpu.memory_space<vmem>>, vector<1x1x128x128xbf16>
    %199 = vector.shape_cast %198 : vector<1x1x128x128xbf16> to vector<128x128xbf16>
    %cst_86 = arith.constant dense<0.000000e+00> : vector<64x128xf32>
    %200 = tpu.matmul %197, %199, %cst_86 {dimension_numbers = #tpu.dot_dimension_numbers<[1], [0], [0], [1], [0, 0, 1, 1], [], []>} : vector<64x128xbf16>, vector<128x128xbf16>, vector<64x128xf32> -> vector<64x128xf32>
    %201 = arith.addf %191, %200 : vector<64x128xf32>
    %c9 = arith.constant 9 : index
    %c0_87 = arith.constant 0 : index
    %202 = vector.load %arg7[%c9, %c0_87] : memref<112x128xf32, #tpu.memory_space<vmem>>, vector<64x128xf32>
    %cst_88 = arith.constant 0.000000e+00 : f32
    %203 = vector.shape_cast %66 : vector<64x1xi1> to vector<64x1xi1>
    %204 = vector.broadcast %203 : vector<64x1xi1> to vector<64x128xi1>
    %205 = vector.broadcast %cst_88 : f32 to vector<64x128xf32>
    %206 = arith.select %204, %202, %205 : vector<64x128xi1>, vector<64x128xf32>
    %207 = arith.truncf %206 : vector<64x128xf32> to vector<64x128xbf16>
    %c0_89 = arith.constant 0 : index
    %c2 = arith.constant 2 : index
    %c0_90 = arith.constant 0 : index
    %c0_91 = arith.constant 0 : index
    %208 = vector.load %arg2[%c0_89, %c2, %c0_90, %c0_91] : memref<4x9x128x128xbf16, #tpu.memory_space<vmem>>, vector<1x1x128x128xbf16>
    %209 = vector.shape_cast %208 : vector<1x1x128x128xbf16> to vector<128x128xbf16>
    %cst_92 = arith.constant dense<0.000000e+00> : vector<64x128xf32>
    %210 = tpu.matmul %207, %209, %cst_92 {dimension_numbers = #tpu.dot_dimension_numbers<[1], [0], [0], [1], [0, 0, 1, 1], [], []>} : vector<64x128xbf16>, vector<128x128xbf16>, vector<64x128xf32> -> vector<64x128xf32>
    %211 = arith.addf %201, %210 : vector<64x128xf32>
    %c23 = arith.constant 23 : index
    %c0_93 = arith.constant 0 : index
    %212 = vector.load %arg7[%c23, %c0_93] : memref<112x128xf32, #tpu.memory_space<vmem>>, vector<64x128xf32>
    %cst_94 = arith.constant 0.000000e+00 : f32
    %213 = vector.shape_cast %85 : vector<64x1xi1> to vector<64x1xi1>
    %214 = vector.broadcast %213 : vector<64x1xi1> to vector<64x128xi1>
    %215 = vector.broadcast %cst_94 : f32 to vector<64x128xf32>
    %216 = arith.select %214, %212, %215 : vector<64x128xi1>, vector<64x128xf32>
    %217 = arith.truncf %216 : vector<64x128xf32> to vector<64x128xbf16>
    %c0_95 = arith.constant 0 : index
    %c3 = arith.constant 3 : index
    %c0_96 = arith.constant 0 : index
    %c0_97 = arith.constant 0 : index
    %218 = vector.load %arg2[%c0_95, %c3, %c0_96, %c0_97] : memref<4x9x128x128xbf16, #tpu.memory_space<vmem>>, vector<1x1x128x128xbf16>
    %219 = vector.shape_cast %218 : vector<1x1x128x128xbf16> to vector<128x128xbf16>
    %cst_98 = arith.constant dense<0.000000e+00> : vector<64x128xf32>
    %220 = tpu.matmul %217, %219, %cst_98 {dimension_numbers = #tpu.dot_dimension_numbers<[1], [0], [0], [1], [0, 0, 1, 1], [], []>} : vector<64x128xbf16>, vector<128x128xbf16>, vector<64x128xf32> -> vector<64x128xf32>
    %221 = arith.addf %211, %220 : vector<64x128xf32>
    %c24_99 = arith.constant 24 : index
    %c0_100 = arith.constant 0 : index
    %222 = vector.load %arg7[%c24_99, %c0_100] : memref<112x128xf32, #tpu.memory_space<vmem>>, vector<64x128xf32>
    %cst_101 = arith.constant 0.000000e+00 : f32
    %223 = vector.shape_cast %104 : vector<64x1xi1> to vector<64x1xi1>
    %224 = vector.broadcast %223 : vector<64x1xi1> to vector<64x128xi1>
    %225 = vector.broadcast %cst_101 : f32 to vector<64x128xf32>
    %226 = arith.select %224, %222, %225 : vector<64x128xi1>, vector<64x128xf32>
    %227 = arith.truncf %226 : vector<64x128xf32> to vector<64x128xbf16>
    %c0_102 = arith.constant 0 : index
    %c4 = arith.constant 4 : index
    %c0_103 = arith.constant 0 : index
    %c0_104 = arith.constant 0 : index
    %228 = vector.load %arg2[%c0_102, %c4, %c0_103, %c0_104] : memref<4x9x128x128xbf16, #tpu.memory_space<vmem>>, vector<1x1x128x128xbf16>
    %229 = vector.shape_cast %228 : vector<1x1x128x128xbf16> to vector<128x128xbf16>
    %cst_105 = arith.constant dense<0.000000e+00> : vector<64x128xf32>
    %230 = tpu.matmul %227, %229, %cst_105 {dimension_numbers = #tpu.dot_dimension_numbers<[1], [0], [0], [1], [0, 0, 1, 1], [], []>} : vector<64x128xbf16>, vector<128x128xbf16>, vector<64x128xf32> -> vector<64x128xf32>
    %231 = arith.addf %221, %230 : vector<64x128xf32>
    %c25 = arith.constant 25 : index
    %c0_106 = arith.constant 0 : index
    %232 = vector.load %arg7[%c25, %c0_106] : memref<112x128xf32, #tpu.memory_space<vmem>>, vector<64x128xf32>
    %cst_107 = arith.constant 0.000000e+00 : f32
    %233 = vector.shape_cast %123 : vector<64x1xi1> to vector<64x1xi1>
    %234 = vector.broadcast %233 : vector<64x1xi1> to vector<64x128xi1>
    %235 = vector.broadcast %cst_107 : f32 to vector<64x128xf32>
    %236 = arith.select %234, %232, %235 : vector<64x128xi1>, vector<64x128xf32>
    %237 = arith.truncf %236 : vector<64x128xf32> to vector<64x128xbf16>
    %c0_108 = arith.constant 0 : index
    %c5 = arith.constant 5 : index
    %c0_109 = arith.constant 0 : index
    %c0_110 = arith.constant 0 : index
    %238 = vector.load %arg2[%c0_108, %c5, %c0_109, %c0_110] : memref<4x9x128x128xbf16, #tpu.memory_space<vmem>>, vector<1x1x128x128xbf16>
    %239 = vector.shape_cast %238 : vector<1x1x128x128xbf16> to vector<128x128xbf16>
    %cst_111 = arith.constant dense<0.000000e+00> : vector<64x128xf32>
    %240 = tpu.matmul %237, %239, %cst_111 {dimension_numbers = #tpu.dot_dimension_numbers<[1], [0], [0], [1], [0, 0, 1, 1], [], []>} : vector<64x128xbf16>, vector<128x128xbf16>, vector<64x128xf32> -> vector<64x128xf32>
    %241 = arith.addf %231, %240 : vector<64x128xf32>
    %c39 = arith.constant 39 : index
    %c0_112 = arith.constant 0 : index
    %242 = vector.load %arg7[%c39, %c0_112] : memref<112x128xf32, #tpu.memory_space<vmem>>, vector<64x128xf32>
    %cst_113 = arith.constant 0.000000e+00 : f32
    %243 = vector.shape_cast %142 : vector<64x1xi1> to vector<64x1xi1>
    %244 = vector.broadcast %243 : vector<64x1xi1> to vector<64x128xi1>
    %245 = vector.broadcast %cst_113 : f32 to vector<64x128xf32>
    %246 = arith.select %244, %242, %245 : vector<64x128xi1>, vector<64x128xf32>
    %247 = arith.truncf %246 : vector<64x128xf32> to vector<64x128xbf16>
    %c0_114 = arith.constant 0 : index
    %c6 = arith.constant 6 : index
    %c0_115 = arith.constant 0 : index
    %c0_116 = arith.constant 0 : index
    %248 = vector.load %arg2[%c0_114, %c6, %c0_115, %c0_116] : memref<4x9x128x128xbf16, #tpu.memory_space<vmem>>, vector<1x1x128x128xbf16>
    %249 = vector.shape_cast %248 : vector<1x1x128x128xbf16> to vector<128x128xbf16>
    %cst_117 = arith.constant dense<0.000000e+00> : vector<64x128xf32>
    %250 = tpu.matmul %247, %249, %cst_117 {dimension_numbers = #tpu.dot_dimension_numbers<[1], [0], [0], [1], [0, 0, 1, 1], [], []>} : vector<64x128xbf16>, vector<128x128xbf16>, vector<64x128xf32> -> vector<64x128xf32>
    %251 = arith.addf %241, %250 : vector<64x128xf32>
    %c40 = arith.constant 40 : index
    %c0_118 = arith.constant 0 : index
    %252 = vector.load %arg7[%c40, %c0_118] : memref<112x128xf32, #tpu.memory_space<vmem>>, vector<64x128xf32>
    %cst_119 = arith.constant 0.000000e+00 : f32
    %253 = vector.shape_cast %161 : vector<64x1xi1> to vector<64x1xi1>
    %254 = vector.broadcast %253 : vector<64x1xi1> to vector<64x128xi1>
    %255 = vector.broadcast %cst_119 : f32 to vector<64x128xf32>
    %256 = arith.select %254, %252, %255 : vector<64x128xi1>, vector<64x128xf32>
    %257 = arith.truncf %256 : vector<64x128xf32> to vector<64x128xbf16>
    %c0_120 = arith.constant 0 : index
    %c7_121 = arith.constant 7 : index
    %c0_122 = arith.constant 0 : index
    %c0_123 = arith.constant 0 : index
    %258 = vector.load %arg2[%c0_120, %c7_121, %c0_122, %c0_123] : memref<4x9x128x128xbf16, #tpu.memory_space<vmem>>, vector<1x1x128x128xbf16>
    %259 = vector.shape_cast %258 : vector<1x1x128x128xbf16> to vector<128x128xbf16>
    %cst_124 = arith.constant dense<0.000000e+00> : vector<64x128xf32>
    %260 = tpu.matmul %257, %259, %cst_124 {dimension_numbers = #tpu.dot_dimension_numbers<[1], [0], [0], [1], [0, 0, 1, 1], [], []>} : vector<64x128xbf16>, vector<128x128xbf16>, vector<64x128xf32> -> vector<64x128xf32>
    %261 = arith.addf %251, %260 : vector<64x128xf32>
    %c41 = arith.constant 41 : index
    %c0_125 = arith.constant 0 : index
    %262 = vector.load %arg7[%c41, %c0_125] : memref<112x128xf32, #tpu.memory_space<vmem>>, vector<64x128xf32>
    %cst_126 = arith.constant 0.000000e+00 : f32
    %263 = vector.shape_cast %180 : vector<64x1xi1> to vector<64x1xi1>
    %264 = vector.broadcast %263 : vector<64x1xi1> to vector<64x128xi1>
    %265 = vector.broadcast %cst_126 : f32 to vector<64x128xf32>
    %266 = arith.select %264, %262, %265 : vector<64x128xi1>, vector<64x128xf32>
    %267 = arith.truncf %266 : vector<64x128xf32> to vector<64x128xbf16>
    %c0_127 = arith.constant 0 : index
    %c8_128 = arith.constant 8 : index
    %c0_129 = arith.constant 0 : index
    %c0_130 = arith.constant 0 : index
    %268 = vector.load %arg2[%c0_127, %c8_128, %c0_129, %c0_130] : memref<4x9x128x128xbf16, #tpu.memory_space<vmem>>, vector<1x1x128x128xbf16>
    %269 = vector.shape_cast %268 : vector<1x1x128x128xbf16> to vector<128x128xbf16>
    %cst_131 = arith.constant dense<0.000000e+00> : vector<64x128xf32>
    %270 = tpu.matmul %267, %269, %cst_131 {dimension_numbers = #tpu.dot_dimension_numbers<[1], [0], [0], [1], [0, 0, 1, 1], [], []>} : vector<64x128xbf16>, vector<128x128xbf16>, vector<64x128xf32> -> vector<64x128xf32>
    %271 = arith.addf %261, %270 : vector<64x128xf32>
    %c0_132 = arith.constant 0 : index
    %c0_133 = arith.constant 0 : index
    %c0_134 = arith.constant 0 : index
    %272 = vector.load %arg3[%c0_132, %c0_133, %c0_134] : memref<4x1x128xf32, #tpu.memory_space<vmem>>, vector<1x1x128xf32>
    %273 = vector.shape_cast %272 : vector<1x1x128xf32> to vector<1x128xf32>
    %274 = vector.broadcast %273 : vector<1x128xf32> to vector<64x128xf32>
    %275 = arith.addf %271, %274 : vector<64x128xf32>
    %cst_135 = arith.constant 0.000000e+00 : f32
    %276 = vector.broadcast %cst_135 : f32 to vector<64x128xf32>
    %277 = arith.maximumf %275, %276 : vector<64x128xf32>
    %c24_136 = arith.constant 24 : index
    %c0_137 = arith.constant 0 : index
    %278 = vector.load %arg7[%c24_136, %c0_137] : memref<112x128xf32, #tpu.memory_space<vmem>>, vector<64x128xf32>
    tpu.vector_store %arg7[%c24_136, %c0_137], %277 {strides = array<i32>} : memref<112x128xf32, #tpu.memory_space<vmem>>, vector<64x128xf32>,
    %cst_138 = arith.constant 0.000000e+00 : f32
    %279 = vector.broadcast %cst_138 : f32 to vector<64x128xf32>
    %c7_139 = arith.constant 7 : index
    %c0_140 = arith.constant 0 : index
    %280 = vector.load %arg7[%c7_139, %c0_140] : memref<112x128xf32, #tpu.memory_space<vmem>>, vector<64x128xf32>
    %cst_141 = arith.constant 0.000000e+00 : f32
    %281 = vector.shape_cast %28 : vector<64x1xi1> to vector<64x1xi1>
    %282 = vector.broadcast %281 : vector<64x1xi1> to vector<64x128xi1>
    %283 = vector.broadcast %cst_141 : f32 to vector<64x128xf32>
    %284 = arith.select %282, %280, %283 : vector<64x128xi1>, vector<64x128xf32>
    %285 = arith.truncf %284 : vector<64x128xf32> to vector<64x128xbf16>
    %c1_142 = arith.constant 1 : index
    %c0_143 = arith.constant 0 : index
    %c0_144 = arith.constant 0 : index
    %c0_145 = arith.constant 0 : index
    %286 = vector.load %arg2[%c1_142, %c0_143, %c0_144, %c0_145] : memref<4x9x128x128xbf16, #tpu.memory_space<vmem>>, vector<1x1x128x128xbf16>
    %287 = vector.shape_cast %286 : vector<1x1x128x128xbf16> to vector<128x128xbf16>
    %cst_146 = arith.constant dense<0.000000e+00> : vector<64x128xf32>
    %288 = tpu.matmul %285, %287, %cst_146 {dimension_numbers = #tpu.dot_dimension_numbers<[1], [0], [0], [1], [0, 0, 1, 1], [], []>} : vector<64x128xbf16>, vector<128x128xbf16>, vector<64x128xf32> -> vector<64x128xf32>
    %289 = arith.addf %279, %288 : vector<64x128xf32>
    %c8_147 = arith.constant 8 : index
    %c0_148 = arith.constant 0 : index
    %290 = vector.load %arg7[%c8_147, %c0_148] : memref<112x128xf32, #tpu.memory_space<vmem>>, vector<64x128xf32>
    %cst_149 = arith.constant 0.000000e+00 : f32
    %291 = vector.shape_cast %47 : vector<64x1xi1> to vector<64x1xi1>
    %292 = vector.broadcast %291 : vector<64x1xi1> to vector<64x128xi1>
    %293 = vector.broadcast %cst_149 : f32 to vector<64x128xf32>
    %294 = arith.select %292, %290, %293 : vector<64x128xi1>, vector<64x128xf32>
    %295 = arith.truncf %294 : vector<64x128xf32> to vector<64x128xbf16>
    %c1_150 = arith.constant 1 : index
    %c1_151 = arith.constant 1 : index
    %c0_152 = arith.constant 0 : index
    %c0_153 = arith.constant 0 : index
    %296 = vector.load %arg2[%c1_150, %c1_151, %c0_152, %c0_153] : memref<4x9x128x128xbf16, #tpu.memory_space<vmem>>, vector<1x1x128x128xbf16>
    %297 = vector.shape_cast %296 : vector<1x1x128x128xbf16> to vector<128x128xbf16>
    %cst_154 = arith.constant dense<0.000000e+00> : vector<64x128xf32>
    %298 = tpu.matmul %295, %297, %cst_154 {dimension_numbers = #tpu.dot_dimension_numbers<[1], [0], [0], [1], [0, 0, 1, 1], [], []>} : vector<64x128xbf16>, vector<128x128xbf16>, vector<64x128xf32> -> vector<64x128xf32>
    %299 = arith.addf %289, %298 : vector<64x128xf32>
    %c9_155 = arith.constant 9 : index
    %c0_156 = arith.constant 0 : index
    %300 = vector.load %arg7[%c9_155, %c0_156] : memref<112x128xf32, #tpu.memory_space<vmem>>, vector<64x128xf32>
    %cst_157 = arith.constant 0.000000e+00 : f32
    %301 = vector.shape_cast %66 : vector<64x1xi1> to vector<64x1xi1>
    %302 = vector.broadcast %301 : vector<64x1xi1> to vector<64x128xi1>
    %303 = vector.broadcast %cst_157 : f32 to vector<64x128xf32>
    %304 = arith.select %302, %300, %303 : vector<64x128xi1>, vector<64x128xf32>
    %305 = arith.truncf %304 : vector<64x128xf32> to vector<64x128xbf16>
    %c1_158 = arith.constant 1 : index
    %c2_159 = arith.constant 2 : index
    %c0_160 = arith.constant 0 : index
    %c0_161 = arith.constant 0 : index
    %306 = vector.load %arg2[%c1_158, %c2_159, %c0_160, %c0_161] : memref<4x9x128x128xbf16, #tpu.memory_space<vmem>>, vector<1x1x128x128xbf16>
    %307 = vector.shape_cast %306 : vector<1x1x128x128xbf16> to vector<128x128xbf16>
    %cst_162 = arith.constant dense<0.000000e+00> : vector<64x128xf32>
    %308 = tpu.matmul %305, %307, %cst_162 {dimension_numbers = #tpu.dot_dimension_numbers<[1], [0], [0], [1], [0, 0, 1, 1], [], []>} : vector<64x128xbf16>, vector<128x128xbf16>, vector<64x128xf32> -> vector<64x128xf32>
    %309 = arith.addf %299, %308 : vector<64x128xf32>
    %c23_163 = arith.constant 23 : index
    %c0_164 = arith.constant 0 : index
    %310 = vector.load %arg7[%c23_163, %c0_164] : memref<112x128xf32, #tpu.memory_space<vmem>>, vector<64x128xf32>
    %cst_165 = arith.constant 0.000000e+00 : f32
    %311 = vector.shape_cast %85 : vector<64x1xi1> to vector<64x1xi1>
    %312 = vector.broadcast %311 : vector<64x1xi1> to vector<64x128xi1>
    %313 = vector.broadcast %cst_165 : f32 to vector<64x128xf32>
    %314 = arith.select %312, %310, %313 : vector<64x128xi1>, vector<64x128xf32>
    %315 = arith.truncf %314 : vector<64x128xf32> to vector<64x128xbf16>
    %c1_166 = arith.constant 1 : index
    %c3_167 = arith.constant 3 : index
    %c0_168 = arith.constant 0 : index
    %c0_169 = arith.constant 0 : index
    %316 = vector.load %arg2[%c1_166, %c3_167, %c0_168, %c0_169] : memref<4x9x128x128xbf16, #tpu.memory_space<vmem>>, vector<1x1x128x128xbf16>
    %317 = vector.shape_cast %316 : vector<1x1x128x128xbf16> to vector<128x128xbf16>
    %cst_170 = arith.constant dense<0.000000e+00> : vector<64x128xf32>
    %318 = tpu.matmul %315, %317, %cst_170 {dimension_numbers = #tpu.dot_dimension_numbers<[1], [0], [0], [1], [0, 0, 1, 1], [], []>} : vector<64x128xbf16>, vector<128x128xbf16>, vector<64x128xf32> -> vector<64x128xf32>
    %319 = arith.addf %309, %318 : vector<64x128xf32>
    %c24_171 = arith.constant 24 : index
    %c0_172 = arith.constant 0 : index
    %320 = vector.load %arg7[%c24_171, %c0_172] : memref<112x128xf32, #tpu.memory_space<vmem>>, vector<64x128xf32>
    %cst_173 = arith.constant 0.000000e+00 : f32
    %321 = vector.shape_cast %104 : vector<64x1xi1> to vector<64x1xi1>
    %322 = vector.broadcast %321 : vector<64x1xi1> to vector<64x128xi1>
    %323 = vector.broadcast %cst_173 : f32 to vector<64x128xf32>
    %324 = arith.select %322, %320, %323 : vector<64x128xi1>, vector<64x128xf32>
    %325 = arith.truncf %324 : vector<64x128xf32> to vector<64x128xbf16>
    %c1_174 = arith.constant 1 : index
    %c4_175 = arith.constant 4 : index
    %c0_176 = arith.constant 0 : index
    %c0_177 = arith.constant 0 : index
    %326 = vector.load %arg2[%c1_174, %c4_175, %c0_176, %c0_177] : memref<4x9x128x128xbf16, #tpu.memory_space<vmem>>, vector<1x1x128x128xbf16>
    %327 = vector.shape_cast %326 : vector<1x1x128x128xbf16> to vector<128x128xbf16>
    %cst_178 = arith.constant dense<0.000000e+00> : vector<64x128xf32>
    %328 = tpu.matmul %325, %327, %cst_178 {dimension_numbers = #tpu.dot_dimension_numbers<[1], [0], [0], [1], [0, 0, 1, 1], [], []>} : vector<64x128xbf16>, vector<128x128xbf16>, vector<64x128xf32> -> vector<64x128xf32>
    %329 = arith.addf %319, %328 : vector<64x128xf32>
    %c25_179 = arith.constant 25 : index
    %c0_180 = arith.constant 0 : index
    %330 = vector.load %arg7[%c25_179, %c0_180] : memref<112x128xf32, #tpu.memory_space<vmem>>, vector<64x128xf32>
    %cst_181 = arith.constant 0.000000e+00 : f32
    %331 = vector.shape_cast %123 : vector<64x1xi1> to vector<64x1xi1>
    %332 = vector.broadcast %331 : vector<64x1xi1> to vector<64x128xi1>
    %333 = vector.broadcast %cst_181 : f32 to vector<64x128xf32>
    %334 = arith.select %332, %330, %333 : vector<64x128xi1>, vector<64x128xf32>
    %335 = arith.truncf %334 : vector<64x128xf32> to vector<64x128xbf16>
    %c1_182 = arith.constant 1 : index
    %c5_183 = arith.constant 5 : index
    %c0_184 = arith.constant 0 : index
    %c0_185 = arith.constant 0 : index
    %336 = vector.load %arg2[%c1_182, %c5_183, %c0_184, %c0_185] : memref<4x9x128x128xbf16, #tpu.memory_space<vmem>>, vector<1x1x128x128xbf16>
    %337 = vector.shape_cast %336 : vector<1x1x128x128xbf16> to vector<128x128xbf16>
    %cst_186 = arith.constant dense<0.000000e+00> : vector<64x128xf32>
    %338 = tpu.matmul %335, %337, %cst_186 {dimension_numbers = #tpu.dot_dimension_numbers<[1], [0], [0], [1], [0, 0, 1, 1], [], []>} : vector<64x128xbf16>, vector<128x128xbf16>, vector<64x128xf32> -> vector<64x128xf32>
    %339 = arith.addf %329, %338 : vector<64x128xf32>
    %c39_187 = arith.constant 39 : index
    %c0_188 = arith.constant 0 : index
    %340 = vector.load %arg7[%c39_187, %c0_188] : memref<112x128xf32, #tpu.memory_space<vmem>>, vector<64x128xf32>
    %cst_189 = arith.constant 0.000000e+00 : f32
    %341 = vector.shape_cast %142 : vector<64x1xi1> to vector<64x1xi1>
    %342 = vector.broadcast %341 : vector<64x1xi1> to vector<64x128xi1>
    %343 = vector.broadcast %cst_189 : f32 to vector<64x128xf32>
    %344 = arith.select %342, %340, %343 : vector<64x128xi1>, vector<64x128xf32>
    %345 = arith.truncf %344 : vector<64x128xf32> to vector<64x128xbf16>
    %c1_190 = arith.constant 1 : index
    %c6_191 = arith.constant 6 : index
    %c0_192 = arith.constant 0 : index
    %c0_193 = arith.constant 0 : index
    %346 = vector.load %arg2[%c1_190, %c6_191, %c0_192, %c0_193] : memref<4x9x128x128xbf16, #tpu.memory_space<vmem>>, vector<1x1x128x128xbf16>
    %347 = vector.shape_cast %346 : vector<1x1x128x128xbf16> to vector<128x128xbf16>
    %cst_194 = arith.constant dense<0.000000e+00> : vector<64x128xf32>
    %348 = tpu.matmul %345, %347, %cst_194 {dimension_numbers = #tpu.dot_dimension_numbers<[1], [0], [0], [1], [0, 0, 1, 1], [], []>} : vector<64x128xbf16>, vector<128x128xbf16>, vector<64x128xf32> -> vector<64x128xf32>
    %349 = arith.addf %339, %348 : vector<64x128xf32>
    %c40_195 = arith.constant 40 : index
    %c0_196 = arith.constant 0 : index
    %350 = vector.load %arg7[%c40_195, %c0_196] : memref<112x128xf32, #tpu.memory_space<vmem>>, vector<64x128xf32>
    %cst_197 = arith.constant 0.000000e+00 : f32
    %351 = vector.shape_cast %161 : vector<64x1xi1> to vector<64x1xi1>
    %352 = vector.broadcast %351 : vector<64x1xi1> to vector<64x128xi1>
    %353 = vector.broadcast %cst_197 : f32 to vector<64x128xf32>
    %354 = arith.select %352, %350, %353 : vector<64x128xi1>, vector<64x128xf32>
    %355 = arith.truncf %354 : vector<64x128xf32> to vector<64x128xbf16>
    %c1_198 = arith.constant 1 : index
    %c7_199 = arith.constant 7 : index
    %c0_200 = arith.constant 0 : index
    %c0_201 = arith.constant 0 : index
    %356 = vector.load %arg2[%c1_198, %c7_199, %c0_200, %c0_201] : memref<4x9x128x128xbf16, #tpu.memory_space<vmem>>, vector<1x1x128x128xbf16>
    %357 = vector.shape_cast %356 : vector<1x1x128x128xbf16> to vector<128x128xbf16>
    %cst_202 = arith.constant dense<0.000000e+00> : vector<64x128xf32>
    %358 = tpu.matmul %355, %357, %cst_202 {dimension_numbers = #tpu.dot_dimension_numbers<[1], [0], [0], [1], [0, 0, 1, 1], [], []>} : vector<64x128xbf16>, vector<128x128xbf16>, vector<64x128xf32> -> vector<64x128xf32>
    %359 = arith.addf %349, %358 : vector<64x128xf32>
    %c41_203 = arith.constant 41 : index
    %c0_204 = arith.constant 0 : index
    %360 = vector.load %arg7[%c41_203, %c0_204] : memref<112x128xf32, #tpu.memory_space<vmem>>, vector<64x128xf32>
    %cst_205 = arith.constant 0.000000e+00 : f32
    %361 = vector.shape_cast %180 : vector<64x1xi1> to vector<64x1xi1>
    %362 = vector.broadcast %361 : vector<64x1xi1> to vector<64x128xi1>
    %363 = vector.broadcast %cst_205 : f32 to vector<64x128xf32>
    %364 = arith.select %362, %360, %363 : vector<64x128xi1>, vector<64x128xf32>
    %365 = arith.truncf %364 : vector<64x128xf32> to vector<64x128xbf16>
    %c1_206 = arith.constant 1 : index
    %c8_207 = arith.constant 8 : index
    %c0_208 = arith.constant 0 : index
    %c0_209 = arith.constant 0 : index
    %366 = vector.load %arg2[%c1_206, %c8_207, %c0_208, %c0_209] : memref<4x9x128x128xbf16, #tpu.memory_space<vmem>>, vector<1x1x128x128xbf16>
    %367 = vector.shape_cast %366 : vector<1x1x128x128xbf16> to vector<128x128xbf16>
    %cst_210 = arith.constant dense<0.000000e+00> : vector<64x128xf32>
    %368 = tpu.matmul %365, %367, %cst_210 {dimension_numbers = #tpu.dot_dimension_numbers<[1], [0], [0], [1], [0, 0, 1, 1], [], []>} : vector<64x128xbf16>, vector<128x128xbf16>, vector<64x128xf32> -> vector<64x128xf32>
    %369 = arith.addf %359, %368 : vector<64x128xf32>
    %c1_211 = arith.constant 1 : index
    %c0_212 = arith.constant 0 : index
    %c0_213 = arith.constant 0 : index
    %370 = vector.load %arg3[%c1_211, %c0_212, %c0_213] : memref<4x1x128xf32, #tpu.memory_space<vmem>>, vector<1x1x128xf32>
    %371 = vector.shape_cast %370 : vector<1x1x128xf32> to vector<1x128xf32>
    %372 = vector.broadcast %371 : vector<1x128xf32> to vector<64x128xf32>
    %373 = arith.addf %369, %372 : vector<64x128xf32>
    %cst_214 = arith.constant 0.000000e+00 : f32
    %374 = vector.broadcast %cst_214 : f32 to vector<64x128xf32>
    %375 = arith.maximumf %373, %374 : vector<64x128xf32>
    %c24_215 = arith.constant 24 : index
    %c0_216 = arith.constant 0 : index
    %376 = vector.load %arg7[%c24_215, %c0_216] : memref<112x128xf32, #tpu.memory_space<vmem>>, vector<64x128xf32>
    tpu.vector_store %arg7[%c24_215, %c0_216], %375 {strides = array<i32>} : memref<112x128xf32, #tpu.memory_space<vmem>>, vector<64x128xf32>,
    %cst_217 = arith.constant 0.000000e+00 : f32
    %377 = vector.broadcast %cst_217 : f32 to vector<64x128xf32>
    %c7_218 = arith.constant 7 : index
    %c0_219 = arith.constant 0 : index
    %378 = vector.load %arg7[%c7_218, %c0_219] : memref<112x128xf32, #tpu.memory_space<vmem>>, vector<64x128xf32>
    %cst_220 = arith.constant 0.000000e+00 : f32
    %379 = vector.shape_cast %28 : vector<64x1xi1> to vector<64x1xi1>
    %380 = vector.broadcast %379 : vector<64x1xi1> to vector<64x128xi1>
    %381 = vector.broadcast %cst_220 : f32 to vector<64x128xf32>
    %382 = arith.select %380, %378, %381 : vector<64x128xi1>, vector<64x128xf32>
    %383 = arith.truncf %382 : vector<64x128xf32> to vector<64x128xbf16>
    %c2_221 = arith.constant 2 : index
    %c0_222 = arith.constant 0 : index
    %c0_223 = arith.constant 0 : index
    %c0_224 = arith.constant 0 : index
    %384 = vector.load %arg2[%c2_221, %c0_222, %c0_223, %c0_224] : memref<4x9x128x128xbf16, #tpu.memory_space<vmem>>, vector<1x1x128x128xbf16>
    %385 = vector.shape_cast %384 : vector<1x1x128x128xbf16> to vector<128x128xbf16>
    %cst_225 = arith.constant dense<0.000000e+00> : vector<64x128xf32>
    %386 = tpu.matmul %383, %385, %cst_225 {dimension_numbers = #tpu.dot_dimension_numbers<[1], [0], [0], [1], [0, 0, 1, 1], [], []>} : vector<64x128xbf16>, vector<128x128xbf16>, vector<64x128xf32> -> vector<64x128xf32>
    %387 = arith.addf %377, %386 : vector<64x128xf32>
    %c8_226 = arith.constant 8 : index
    %c0_227 = arith.constant 0 : index
    %388 = vector.load %arg7[%c8_226, %c0_227] : memref<112x128xf32, #tpu.memory_space<vmem>>, vector<64x128xf32>
    %cst_228 = arith.constant 0.000000e+00 : f32
    %389 = vector.shape_cast %47 : vector<64x1xi1> to vector<64x1xi1>
    %390 = vector.broadcast %389 : vector<64x1xi1> to vector<64x128xi1>
    %391 = vector.broadcast %cst_228 : f32 to vector<64x128xf32>
    %392 = arith.select %390, %388, %391 : vector<64x128xi1>, vector<64x128xf32>
    %393 = arith.truncf %392 : vector<64x128xf32> to vector<64x128xbf16>
    %c2_229 = arith.constant 2 : index
    %c1_230 = arith.constant 1 : index
    %c0_231 = arith.constant 0 : index
    %c0_232 = arith.constant 0 : index
    %394 = vector.load %arg2[%c2_229, %c1_230, %c0_231, %c0_232] : memref<4x9x128x128xbf16, #tpu.memory_space<vmem>>, vector<1x1x128x128xbf16>
    %395 = vector.shape_cast %394 : vector<1x1x128x128xbf16> to vector<128x128xbf16>
    %cst_233 = arith.constant dense<0.000000e+00> : vector<64x128xf32>
    %396 = tpu.matmul %393, %395, %cst_233 {dimension_numbers = #tpu.dot_dimension_numbers<[1], [0], [0], [1], [0, 0, 1, 1], [], []>} : vector<64x128xbf16>, vector<128x128xbf16>, vector<64x128xf32> -> vector<64x128xf32>
    %397 = arith.addf %387, %396 : vector<64x128xf32>
    %c9_234 = arith.constant 9 : index
    %c0_235 = arith.constant 0 : index
    %398 = vector.load %arg7[%c9_234, %c0_235] : memref<112x128xf32, #tpu.memory_space<vmem>>, vector<64x128xf32>
    %cst_236 = arith.constant 0.000000e+00 : f32
    %399 = vector.shape_cast %66 : vector<64x1xi1> to vector<64x1xi1>
    %400 = vector.broadcast %399 : vector<64x1xi1> to vector<64x128xi1>
    %401 = vector.broadcast %cst_236 : f32 to vector<64x128xf32>
    %402 = arith.select %400, %398, %401 : vector<64x128xi1>, vector<64x128xf32>
    %403 = arith.truncf %402 : vector<64x128xf32> to vector<64x128xbf16>
    %c2_237 = arith.constant 2 : index
    %c2_238 = arith.constant 2 : index
    %c0_239 = arith.constant 0 : index
    %c0_240 = arith.constant 0 : index
    %404 = vector.load %arg2[%c2_237, %c2_238, %c0_239, %c0_240] : memref<4x9x128x128xbf16, #tpu.memory_space<vmem>>, vector<1x1x128x128xbf16>
    %405 = vector.shape_cast %404 : vector<1x1x128x128xbf16> to vector<128x128xbf16>
    %cst_241 = arith.constant dense<0.000000e+00> : vector<64x128xf32>
    %406 = tpu.matmul %403, %405, %cst_241 {dimension_numbers = #tpu.dot_dimension_numbers<[1], [0], [0], [1], [0, 0, 1, 1], [], []>} : vector<64x128xbf16>, vector<128x128xbf16>, vector<64x128xf32> -> vector<64x128xf32>
    %407 = arith.addf %397, %406 : vector<64x128xf32>
    %c23_242 = arith.constant 23 : index
    %c0_243 = arith.constant 0 : index
    %408 = vector.load %arg7[%c23_242, %c0_243] : memref<112x128xf32, #tpu.memory_space<vmem>>, vector<64x128xf32>
    %cst_244 = arith.constant 0.000000e+00 : f32
    %409 = vector.shape_cast %85 : vector<64x1xi1> to vector<64x1xi1>
    %410 = vector.broadcast %409 : vector<64x1xi1> to vector<64x128xi1>
    %411 = vector.broadcast %cst_244 : f32 to vector<64x128xf32>
    %412 = arith.select %410, %408, %411 : vector<64x128xi1>, vector<64x128xf32>
    %413 = arith.truncf %412 : vector<64x128xf32> to vector<64x128xbf16>
    %c2_245 = arith.constant 2 : index
    %c3_246 = arith.constant 3 : index
    %c0_247 = arith.constant 0 : index
    %c0_248 = arith.constant 0 : index
    %414 = vector.load %arg2[%c2_245, %c3_246, %c0_247, %c0_248] : memref<4x9x128x128xbf16, #tpu.memory_space<vmem>>, vector<1x1x128x128xbf16>
    %415 = vector.shape_cast %414 : vector<1x1x128x128xbf16> to vector<128x128xbf16>
    %cst_249 = arith.constant dense<0.000000e+00> : vector<64x128xf32>
    %416 = tpu.matmul %413, %415, %cst_249 {dimension_numbers = #tpu.dot_dimension_numbers<[1], [0], [0], [1], [0, 0, 1, 1], [], []>} : vector<64x128xbf16>, vector<128x128xbf16>, vector<64x128xf32> -> vector<64x128xf32>
    %417 = arith.addf %407, %416 : vector<64x128xf32>
    %c24_250 = arith.constant 24 : index
    %c0_251 = arith.constant 0 : index
    %418 = vector.load %arg7[%c24_250, %c0_251] : memref<112x128xf32, #tpu.memory_space<vmem>>, vector<64x128xf32>
    %cst_252 = arith.constant 0.000000e+00 : f32
    %419 = vector.shape_cast %104 : vector<64x1xi1> to vector<64x1xi1>
    %420 = vector.broadcast %419 : vector<64x1xi1> to vector<64x128xi1>
    %421 = vector.broadcast %cst_252 : f32 to vector<64x128xf32>
    %422 = arith.select %420, %418, %421 : vector<64x128xi1>, vector<64x128xf32>
    %423 = arith.truncf %422 : vector<64x128xf32> to vector<64x128xbf16>
    %c2_253 = arith.constant 2 : index
    %c4_254 = arith.constant 4 : index
    %c0_255 = arith.constant 0 : index
    %c0_256 = arith.constant 0 : index
    %424 = vector.load %arg2[%c2_253, %c4_254, %c0_255, %c0_256] : memref<4x9x128x128xbf16, #tpu.memory_space<vmem>>, vector<1x1x128x128xbf16>
    %425 = vector.shape_cast %424 : vector<1x1x128x128xbf16> to vector<128x128xbf16>
    %cst_257 = arith.constant dense<0.000000e+00> : vector<64x128xf32>
    %426 = tpu.matmul %423, %425, %cst_257 {dimension_numbers = #tpu.dot_dimension_numbers<[1], [0], [0], [1], [0, 0, 1, 1], [], []>} : vector<64x128xbf16>, vector<128x128xbf16>, vector<64x128xf32> -> vector<64x128xf32>
    %427 = arith.addf %417, %426 : vector<64x128xf32>
    %c25_258 = arith.constant 25 : index
    %c0_259 = arith.constant 0 : index
    %428 = vector.load %arg7[%c25_258, %c0_259] : memref<112x128xf32, #tpu.memory_space<vmem>>, vector<64x128xf32>
    %cst_260 = arith.constant 0.000000e+00 : f32
    %429 = vector.shape_cast %123 : vector<64x1xi1> to vector<64x1xi1>
    %430 = vector.broadcast %429 : vector<64x1xi1> to vector<64x128xi1>
    %431 = vector.broadcast %cst_260 : f32 to vector<64x128xf32>
    %432 = arith.select %430, %428, %431 : vector<64x128xi1>, vector<64x128xf32>
    %433 = arith.truncf %432 : vector<64x128xf32> to vector<64x128xbf16>
    %c2_261 = arith.constant 2 : index
    %c5_262 = arith.constant 5 : index
    %c0_263 = arith.constant 0 : index
    %c0_264 = arith.constant 0 : index
    %434 = vector.load %arg2[%c2_261, %c5_262, %c0_263, %c0_264] : memref<4x9x128x128xbf16, #tpu.memory_space<vmem>>, vector<1x1x128x128xbf16>
    %435 = vector.shape_cast %434 : vector<1x1x128x128xbf16> to vector<128x128xbf16>
    %cst_265 = arith.constant dense<0.000000e+00> : vector<64x128xf32>
    %436 = tpu.matmul %433, %435, %cst_265 {dimension_numbers = #tpu.dot_dimension_numbers<[1], [0], [0], [1], [0, 0, 1, 1], [], []>} : vector<64x128xbf16>, vector<128x128xbf16>, vector<64x128xf32> -> vector<64x128xf32>
    %437 = arith.addf %427, %436 : vector<64x128xf32>
    %c39_266 = arith.constant 39 : index
    %c0_267 = arith.constant 0 : index
    %438 = vector.load %arg7[%c39_266, %c0_267] : memref<112x128xf32, #tpu.memory_space<vmem>>, vector<64x128xf32>
    %cst_268 = arith.constant 0.000000e+00 : f32
    %439 = vector.shape_cast %142 : vector<64x1xi1> to vector<64x1xi1>
    %440 = vector.broadcast %439 : vector<64x1xi1> to vector<64x128xi1>
    %441 = vector.broadcast %cst_268 : f32 to vector<64x128xf32>
    %442 = arith.select %440, %438, %441 : vector<64x128xi1>, vector<64x128xf32>
    %443 = arith.truncf %442 : vector<64x128xf32> to vector<64x128xbf16>
    %c2_269 = arith.constant 2 : index
    %c6_270 = arith.constant 6 : index
    %c0_271 = arith.constant 0 : index
    %c0_272 = arith.constant 0 : index
    %444 = vector.load %arg2[%c2_269, %c6_270, %c0_271, %c0_272] : memref<4x9x128x128xbf16, #tpu.memory_space<vmem>>, vector<1x1x128x128xbf16>
    %445 = vector.shape_cast %444 : vector<1x1x128x128xbf16> to vector<128x128xbf16>
    %cst_273 = arith.constant dense<0.000000e+00> : vector<64x128xf32>
    %446 = tpu.matmul %443, %445, %cst_273 {dimension_numbers = #tpu.dot_dimension_numbers<[1], [0], [0], [1], [0, 0, 1, 1], [], []>} : vector<64x128xbf16>, vector<128x128xbf16>, vector<64x128xf32> -> vector<64x128xf32>
    %447 = arith.addf %437, %446 : vector<64x128xf32>
    %c40_274 = arith.constant 40 : index
    %c0_275 = arith.constant 0 : index
    %448 = vector.load %arg7[%c40_274, %c0_275] : memref<112x128xf32, #tpu.memory_space<vmem>>, vector<64x128xf32>
    %cst_276 = arith.constant 0.000000e+00 : f32
    %449 = vector.shape_cast %161 : vector<64x1xi1> to vector<64x1xi1>
    %450 = vector.broadcast %449 : vector<64x1xi1> to vector<64x128xi1>
    %451 = vector.broadcast %cst_276 : f32 to vector<64x128xf32>
    %452 = arith.select %450, %448, %451 : vector<64x128xi1>, vector<64x128xf32>
    %453 = arith.truncf %452 : vector<64x128xf32> to vector<64x128xbf16>
    %c2_277 = arith.constant 2 : index
    %c7_278 = arith.constant 7 : index
    %c0_279 = arith.constant 0 : index
    %c0_280 = arith.constant 0 : index
    %454 = vector.load %arg2[%c2_277, %c7_278, %c0_279, %c0_280] : memref<4x9x128x128xbf16, #tpu.memory_space<vmem>>, vector<1x1x128x128xbf16>
    %455 = vector.shape_cast %454 : vector<1x1x128x128xbf16> to vector<128x128xbf16>
    %cst_281 = arith.constant dense<0.000000e+00> : vector<64x128xf32>
    %456 = tpu.matmul %453, %455, %cst_281 {dimension_numbers = #tpu.dot_dimension_numbers<[1], [0], [0], [1], [0, 0, 1, 1], [], []>} : vector<64x128xbf16>, vector<128x128xbf16>, vector<64x128xf32> -> vector<64x128xf32>
    %457 = arith.addf %447, %456 : vector<64x128xf32>
    %c41_282 = arith.constant 41 : index
    %c0_283 = arith.constant 0 : index
    %458 = vector.load %arg7[%c41_282, %c0_283] : memref<112x128xf32, #tpu.memory_space<vmem>>, vector<64x128xf32>
    %cst_284 = arith.constant 0.000000e+00 : f32
    %459 = vector.shape_cast %180 : vector<64x1xi1> to vector<64x1xi1>
    %460 = vector.broadcast %459 : vector<64x1xi1> to vector<64x128xi1>
    %461 = vector.broadcast %cst_284 : f32 to vector<64x128xf32>
    %462 = arith.select %460, %458, %461 : vector<64x128xi1>, vector<64x128xf32>
    %463 = arith.truncf %462 : vector<64x128xf32> to vector<64x128xbf16>
    %c2_285 = arith.constant 2 : index
    %c8_286 = arith.constant 8 : index
    %c0_287 = arith.constant 0 : index
    %c0_288 = arith.constant 0 : index
    %464 = vector.load %arg2[%c2_285, %c8_286, %c0_287, %c0_288] : memref<4x9x128x128xbf16, #tpu.memory_space<vmem>>, vector<1x1x128x128xbf16>
    %465 = vector.shape_cast %464 : vector<1x1x128x128xbf16> to vector<128x128xbf16>
    %cst_289 = arith.constant dense<0.000000e+00> : vector<64x128xf32>
    %466 = tpu.matmul %463, %465, %cst_289 {dimension_numbers = #tpu.dot_dimension_numbers<[1], [0], [0], [1], [0, 0, 1, 1], [], []>} : vector<64x128xbf16>, vector<128x128xbf16>, vector<64x128xf32> -> vector<64x128xf32>
    %467 = arith.addf %457, %466 : vector<64x128xf32>
    %c2_290 = arith.constant 2 : index
    %c0_291 = arith.constant 0 : index
    %c0_292 = arith.constant 0 : index
    %468 = vector.load %arg3[%c2_290, %c0_291, %c0_292] : memref<4x1x128xf32, #tpu.memory_space<vmem>>, vector<1x1x128xf32>
    %469 = vector.shape_cast %468 : vector<1x1x128xf32> to vector<1x128xf32>
    %470 = vector.broadcast %469 : vector<1x128xf32> to vector<64x128xf32>
    %471 = arith.addf %467, %470 : vector<64x128xf32>
    %cst_293 = arith.constant 0.000000e+00 : f32
    %472 = vector.broadcast %cst_293 : f32 to vector<64x128xf32>
    %473 = arith.maximumf %471, %472 : vector<64x128xf32>
    %c24_294 = arith.constant 24 : index
    %c0_295 = arith.constant 0 : index
    %474 = vector.load %arg7[%c24_294, %c0_295] : memref<112x128xf32, #tpu.memory_space<vmem>>, vector<64x128xf32>
    tpu.vector_store %arg7[%c24_294, %c0_295], %473 {strides = array<i32>} : memref<112x128xf32, #tpu.memory_space<vmem>>, vector<64x128xf32>,
    %cst_296 = arith.constant 0.000000e+00 : f32
    %475 = vector.broadcast %cst_296 : f32 to vector<64x128xf32>
    %c7_297 = arith.constant 7 : index
    %c0_298 = arith.constant 0 : index
    %476 = vector.load %arg7[%c7_297, %c0_298] : memref<112x128xf32, #tpu.memory_space<vmem>>, vector<64x128xf32>
    %cst_299 = arith.constant 0.000000e+00 : f32
    %477 = vector.shape_cast %28 : vector<64x1xi1> to vector<64x1xi1>
    %478 = vector.broadcast %477 : vector<64x1xi1> to vector<64x128xi1>
    %479 = vector.broadcast %cst_299 : f32 to vector<64x128xf32>
    %480 = arith.select %478, %476, %479 : vector<64x128xi1>, vector<64x128xf32>
    %481 = arith.truncf %480 : vector<64x128xf32> to vector<64x128xbf16>
    %c3_300 = arith.constant 3 : index
    %c0_301 = arith.constant 0 : index
    %c0_302 = arith.constant 0 : index
    %c0_303 = arith.constant 0 : index
    %482 = vector.load %arg2[%c3_300, %c0_301, %c0_302, %c0_303] : memref<4x9x128x128xbf16, #tpu.memory_space<vmem>>, vector<1x1x128x128xbf16>
    %483 = vector.shape_cast %482 : vector<1x1x128x128xbf16> to vector<128x128xbf16>
    %cst_304 = arith.constant dense<0.000000e+00> : vector<64x128xf32>
    %484 = tpu.matmul %481, %483, %cst_304 {dimension_numbers = #tpu.dot_dimension_numbers<[1], [0], [0], [1], [0, 0, 1, 1], [], []>} : vector<64x128xbf16>, vector<128x128xbf16>, vector<64x128xf32> -> vector<64x128xf32>
    %485 = arith.addf %475, %484 : vector<64x128xf32>
    %c8_305 = arith.constant 8 : index
    %c0_306 = arith.constant 0 : index
    %486 = vector.load %arg7[%c8_305, %c0_306] : memref<112x128xf32, #tpu.memory_space<vmem>>, vector<64x128xf32>
    %cst_307 = arith.constant 0.000000e+00 : f32
    %487 = vector.shape_cast %47 : vector<64x1xi1> to vector<64x1xi1>
    %488 = vector.broadcast %487 : vector<64x1xi1> to vector<64x128xi1>
    %489 = vector.broadcast %cst_307 : f32 to vector<64x128xf32>
    %490 = arith.select %488, %486, %489 : vector<64x128xi1>, vector<64x128xf32>
    %491 = arith.truncf %490 : vector<64x128xf32> to vector<64x128xbf16>
    %c3_308 = arith.constant 3 : index
    %c1_309 = arith.constant 1 : index
    %c0_310 = arith.constant 0 : index
    %c0_311 = arith.constant 0 : index
    %492 = vector.load %arg2[%c3_308, %c1_309, %c0_310, %c0_311] : memref<4x9x128x128xbf16, #tpu.memory_space<vmem>>, vector<1x1x128x128xbf16>
    %493 = vector.shape_cast %492 : vector<1x1x128x128xbf16> to vector<128x128xbf16>
    %cst_312 = arith.constant dense<0.000000e+00> : vector<64x128xf32>
    %494 = tpu.matmul %491, %493, %cst_312 {dimension_numbers = #tpu.dot_dimension_numbers<[1], [0], [0], [1], [0, 0, 1, 1], [], []>} : vector<64x128xbf16>, vector<128x128xbf16>, vector<64x128xf32> -> vector<64x128xf32>
    %495 = arith.addf %485, %494 : vector<64x128xf32>
    %c9_313 = arith.constant 9 : index
    %c0_314 = arith.constant 0 : index
    %496 = vector.load %arg7[%c9_313, %c0_314] : memref<112x128xf32, #tpu.memory_space<vmem>>, vector<64x128xf32>
    %cst_315 = arith.constant 0.000000e+00 : f32
    %497 = vector.shape_cast %66 : vector<64x1xi1> to vector<64x1xi1>
    %498 = vector.broadcast %497 : vector<64x1xi1> to vector<64x128xi1>
    %499 = vector.broadcast %cst_315 : f32 to vector<64x128xf32>
    %500 = arith.select %498, %496, %499 : vector<64x128xi1>, vector<64x128xf32>
    %501 = arith.truncf %500 : vector<64x128xf32> to vector<64x128xbf16>
    %c3_316 = arith.constant 3 : index
    %c2_317 = arith.constant 2 : index
    %c0_318 = arith.constant 0 : index
    %c0_319 = arith.constant 0 : index
    %502 = vector.load %arg2[%c3_316, %c2_317, %c0_318, %c0_319] : memref<4x9x128x128xbf16, #tpu.memory_space<vmem>>, vector<1x1x128x128xbf16>
    %503 = vector.shape_cast %502 : vector<1x1x128x128xbf16> to vector<128x128xbf16>
    %cst_320 = arith.constant dense<0.000000e+00> : vector<64x128xf32>
    %504 = tpu.matmul %501, %503, %cst_320 {dimension_numbers = #tpu.dot_dimension_numbers<[1], [0], [0], [1], [0, 0, 1, 1], [], []>} : vector<64x128xbf16>, vector<128x128xbf16>, vector<64x128xf32> -> vector<64x128xf32>
    %505 = arith.addf %495, %504 : vector<64x128xf32>
    %c23_321 = arith.constant 23 : index
    %c0_322 = arith.constant 0 : index
    %506 = vector.load %arg7[%c23_321, %c0_322] : memref<112x128xf32, #tpu.memory_space<vmem>>, vector<64x128xf32>
    %cst_323 = arith.constant 0.000000e+00 : f32
    %507 = vector.shape_cast %85 : vector<64x1xi1> to vector<64x1xi1>
    %508 = vector.broadcast %507 : vector<64x1xi1> to vector<64x128xi1>
    %509 = vector.broadcast %cst_323 : f32 to vector<64x128xf32>
    %510 = arith.select %508, %506, %509 : vector<64x128xi1>, vector<64x128xf32>
    %511 = arith.truncf %510 : vector<64x128xf32> to vector<64x128xbf16>
    %c3_324 = arith.constant 3 : index
    %c3_325 = arith.constant 3 : index
    %c0_326 = arith.constant 0 : index
    %c0_327 = arith.constant 0 : index
    %512 = vector.load %arg2[%c3_324, %c3_325, %c0_326, %c0_327] : memref<4x9x128x128xbf16, #tpu.memory_space<vmem>>, vector<1x1x128x128xbf16>
    %513 = vector.shape_cast %512 : vector<1x1x128x128xbf16> to vector<128x128xbf16>
    %cst_328 = arith.constant dense<0.000000e+00> : vector<64x128xf32>
    %514 = tpu.matmul %511, %513, %cst_328 {dimension_numbers = #tpu.dot_dimension_numbers<[1], [0], [0], [1], [0, 0, 1, 1], [], []>} : vector<64x128xbf16>, vector<128x128xbf16>, vector<64x128xf32> -> vector<64x128xf32>
    %515 = arith.addf %505, %514 : vector<64x128xf32>
    %c24_329 = arith.constant 24 : index
    %c0_330 = arith.constant 0 : index
    %516 = vector.load %arg7[%c24_329, %c0_330] : memref<112x128xf32, #tpu.memory_space<vmem>>, vector<64x128xf32>
    %cst_331 = arith.constant 0.000000e+00 : f32
    %517 = vector.shape_cast %104 : vector<64x1xi1> to vector<64x1xi1>
    %518 = vector.broadcast %517 : vector<64x1xi1> to vector<64x128xi1>
    %519 = vector.broadcast %cst_331 : f32 to vector<64x128xf32>
    %520 = arith.select %518, %516, %519 : vector<64x128xi1>, vector<64x128xf32>
    %521 = arith.truncf %520 : vector<64x128xf32> to vector<64x128xbf16>
    %c3_332 = arith.constant 3 : index
    %c4_333 = arith.constant 4 : index
    %c0_334 = arith.constant 0 : index
    %c0_335 = arith.constant 0 : index
    %522 = vector.load %arg2[%c3_332, %c4_333, %c0_334, %c0_335] : memref<4x9x128x128xbf16, #tpu.memory_space<vmem>>, vector<1x1x128x128xbf16>
    %523 = vector.shape_cast %522 : vector<1x1x128x128xbf16> to vector<128x128xbf16>
    %cst_336 = arith.constant dense<0.000000e+00> : vector<64x128xf32>
    %524 = tpu.matmul %521, %523, %cst_336 {dimension_numbers = #tpu.dot_dimension_numbers<[1], [0], [0], [1], [0, 0, 1, 1], [], []>} : vector<64x128xbf16>, vector<128x128xbf16>, vector<64x128xf32> -> vector<64x128xf32>
    %525 = arith.addf %515, %524 : vector<64x128xf32>
    %c25_337 = arith.constant 25 : index
    %c0_338 = arith.constant 0 : index
    %526 = vector.load %arg7[%c25_337, %c0_338] : memref<112x128xf32, #tpu.memory_space<vmem>>, vector<64x128xf32>
    %cst_339 = arith.constant 0.000000e+00 : f32
    %527 = vector.shape_cast %123 : vector<64x1xi1> to vector<64x1xi1>
    %528 = vector.broadcast %527 : vector<64x1xi1> to vector<64x128xi1>
    %529 = vector.broadcast %cst_339 : f32 to vector<64x128xf32>
    %530 = arith.select %528, %526, %529 : vector<64x128xi1>, vector<64x128xf32>
    %531 = arith.truncf %530 : vector<64x128xf32> to vector<64x128xbf16>
    %c3_340 = arith.constant 3 : index
    %c5_341 = arith.constant 5 : index
    %c0_342 = arith.constant 0 : index
    %c0_343 = arith.constant 0 : index
    %532 = vector.load %arg2[%c3_340, %c5_341, %c0_342, %c0_343] : memref<4x9x128x128xbf16, #tpu.memory_space<vmem>>, vector<1x1x128x128xbf16>
    %533 = vector.shape_cast %532 : vector<1x1x128x128xbf16> to vector<128x128xbf16>
    %cst_344 = arith.constant dense<0.000000e+00> : vector<64x128xf32>
    %534 = tpu.matmul %531, %533, %cst_344 {dimension_numbers = #tpu.dot_dimension_numbers<[1], [0], [0], [1], [0, 0, 1, 1], [], []>} : vector<64x128xbf16>, vector<128x128xbf16>, vector<64x128xf32> -> vector<64x128xf32>
    %535 = arith.addf %525, %534 : vector<64x128xf32>
    %c39_345 = arith.constant 39 : index
    %c0_346 = arith.constant 0 : index
    %536 = vector.load %arg7[%c39_345, %c0_346] : memref<112x128xf32, #tpu.memory_space<vmem>>, vector<64x128xf32>
    %cst_347 = arith.constant 0.000000e+00 : f32
    %537 = vector.shape_cast %142 : vector<64x1xi1> to vector<64x1xi1>
    %538 = vector.broadcast %537 : vector<64x1xi1> to vector<64x128xi1>
    %539 = vector.broadcast %cst_347 : f32 to vector<64x128xf32>
    %540 = arith.select %538, %536, %539 : vector<64x128xi1>, vector<64x128xf32>
    %541 = arith.truncf %540 : vector<64x128xf32> to vector<64x128xbf16>
    %c3_348 = arith.constant 3 : index
    %c6_349 = arith.constant 6 : index
    %c0_350 = arith.constant 0 : index
    %c0_351 = arith.constant 0 : index
    %542 = vector.load %arg2[%c3_348, %c6_349, %c0_350, %c0_351] : memref<4x9x128x128xbf16, #tpu.memory_space<vmem>>, vector<1x1x128x128xbf16>
    %543 = vector.shape_cast %542 : vector<1x1x128x128xbf16> to vector<128x128xbf16>
    %cst_352 = arith.constant dense<0.000000e+00> : vector<64x128xf32>
    %544 = tpu.matmul %541, %543, %cst_352 {dimension_numbers = #tpu.dot_dimension_numbers<[1], [0], [0], [1], [0, 0, 1, 1], [], []>} : vector<64x128xbf16>, vector<128x128xbf16>, vector<64x128xf32> -> vector<64x128xf32>
    %545 = arith.addf %535, %544 : vector<64x128xf32>
    %c40_353 = arith.constant 40 : index
    %c0_354 = arith.constant 0 : index
    %546 = vector.load %arg7[%c40_353, %c0_354] : memref<112x128xf32, #tpu.memory_space<vmem>>, vector<64x128xf32>
    %cst_355 = arith.constant 0.000000e+00 : f32
    %547 = vector.shape_cast %161 : vector<64x1xi1> to vector<64x1xi1>
    %548 = vector.broadcast %547 : vector<64x1xi1> to vector<64x128xi1>
    %549 = vector.broadcast %cst_355 : f32 to vector<64x128xf32>
    %550 = arith.select %548, %546, %549 : vector<64x128xi1>, vector<64x128xf32>
    %551 = arith.truncf %550 : vector<64x128xf32> to vector<64x128xbf16>
    %c3_356 = arith.constant 3 : index
    %c7_357 = arith.constant 7 : index
    %c0_358 = arith.constant 0 : index
    %c0_359 = arith.constant 0 : index
    %552 = vector.load %arg2[%c3_356, %c7_357, %c0_358, %c0_359] : memref<4x9x128x128xbf16, #tpu.memory_space<vmem>>, vector<1x1x128x128xbf16>
    %553 = vector.shape_cast %552 : vector<1x1x128x128xbf16> to vector<128x128xbf16>
    %cst_360 = arith.constant dense<0.000000e+00> : vector<64x128xf32>
    %554 = tpu.matmul %551, %553, %cst_360 {dimension_numbers = #tpu.dot_dimension_numbers<[1], [0], [0], [1], [0, 0, 1, 1], [], []>} : vector<64x128xbf16>, vector<128x128xbf16>, vector<64x128xf32> -> vector<64x128xf32>
    %555 = arith.addf %545, %554 : vector<64x128xf32>
    %c41_361 = arith.constant 41 : index
    %c0_362 = arith.constant 0 : index
    %556 = vector.load %arg7[%c41_361, %c0_362] : memref<112x128xf32, #tpu.memory_space<vmem>>, vector<64x128xf32>
    %cst_363 = arith.constant 0.000000e+00 : f32
    %557 = vector.shape_cast %180 : vector<64x1xi1> to vector<64x1xi1>
    %558 = vector.broadcast %557 : vector<64x1xi1> to vector<64x128xi1>
    %559 = vector.broadcast %cst_363 : f32 to vector<64x128xf32>
    %560 = arith.select %558, %556, %559 : vector<64x128xi1>, vector<64x128xf32>
    %561 = arith.truncf %560 : vector<64x128xf32> to vector<64x128xbf16>
    %c3_364 = arith.constant 3 : index
    %c8_365 = arith.constant 8 : index
    %c0_366 = arith.constant 0 : index
    %c0_367 = arith.constant 0 : index
    %562 = vector.load %arg2[%c3_364, %c8_365, %c0_366, %c0_367] : memref<4x9x128x128xbf16, #tpu.memory_space<vmem>>, vector<1x1x128x128xbf16>
    %563 = vector.shape_cast %562 : vector<1x1x128x128xbf16> to vector<128x128xbf16>
    %cst_368 = arith.constant dense<0.000000e+00> : vector<64x128xf32>
    %564 = tpu.matmul %561, %563, %cst_368 {dimension_numbers = #tpu.dot_dimension_numbers<[1], [0], [0], [1], [0, 0, 1, 1], [], []>} : vector<64x128xbf16>, vector<128x128xbf16>, vector<64x128xf32> -> vector<64x128xf32>
    %565 = arith.addf %555, %564 : vector<64x128xf32>
    %c3_369 = arith.constant 3 : index
    %c0_370 = arith.constant 0 : index
    %c0_371 = arith.constant 0 : index
    %566 = vector.load %arg3[%c3_369, %c0_370, %c0_371] : memref<4x1x128xf32, #tpu.memory_space<vmem>>, vector<1x1x128xf32>
    %567 = vector.shape_cast %566 : vector<1x1x128xf32> to vector<1x128xf32>
    %568 = vector.broadcast %567 : vector<1x128xf32> to vector<64x128xf32>
    %569 = arith.addf %565, %568 : vector<64x128xf32>
    %cst_372 = arith.constant 0.000000e+00 : f32
    %570 = vector.broadcast %cst_372 : f32 to vector<64x128xf32>
    %571 = arith.maximumf %569, %570 : vector<64x128xf32>
    %572 = arith.truncf %571 : vector<64x128xf32> to vector<64x128xbf16>
    %c0_373 = arith.constant 0 : index
    %c0_374 = arith.constant 0 : index
    %573 = vector.load %arg4[%c0_373, %c0_374] : memref<128x128xbf16, #tpu.memory_space<vmem>>, vector<128x128xbf16>
    %cst_375 = arith.constant dense<0.000000e+00> : vector<64x128xf32>
    %574 = tpu.matmul %572, %573, %cst_375 {dimension_numbers = #tpu.dot_dimension_numbers<[1], [0], [0], [1], [0, 0, 1, 1], [], []>} : vector<64x128xbf16>, vector<128x128xbf16>, vector<64x128xf32> -> vector<64x128xf32>
    %c0_376 = arith.constant 0 : index
    %c0_377 = arith.constant 0 : index
    %575 = vector.load %arg5[%c0_376, %c0_377] : memref<1x128xf32, #tpu.memory_space<vmem>>, vector<1x128xf32>
    %576 = vector.broadcast %575 : vector<1x128xf32> to vector<64x128xf32>
    %577 = arith.addf %574, %576 : vector<64x128xf32>
    %c0_378 = arith.constant 0 : index
    %c0_379 = arith.constant 0 : index
    %c0_380 = arith.constant 0 : index
    %578 = vector.load %arg6[%c0_378, %c0_379, %c0_380] : memref<1x64x128xf32, #tpu.memory_space<vmem>>, vector<1x64x128xf32>
    %579 = vector.shape_cast %578 : vector<1x64x128xf32> to vector<64x128xf32>
    %580 = vector.shape_cast %577 : vector<64x128xf32> to vector<1x64x128xf32>
    tpu.vector_store %arg6[%c0_378, %c0_379, %c0_380], %580 {strides = array<i32>} : memref<1x64x128xf32, #tpu.memory_space<vmem>>, vector<1x64x128xf32>,
    return
  }
  func.func @transform_0(%arg0: i32) -> (i32, i32, i32) {
    %c0_i32 = arith.constant 0 : i32
    %c0_i32_0 = arith.constant 0 : i32
    %c0_i32_1 = arith.constant 0 : i32
    return %arg0, %c0_i32, %c0_i32_0 : i32, i32, i32
  }
  func.func @transform_1(%arg0: i32) -> (i32, i32, i32, i32) {
    %c0_i32 = arith.constant 0 : i32
    %c0_i32_0 = arith.constant 0 : i32
    %c0_i32_1 = arith.constant 0 : i32
    %c0_i32_2 = arith.constant 0 : i32
    %c0_i32_3 = arith.constant 0 : i32
    return %c0_i32, %c0_i32_0, %c0_i32_1, %c0_i32_2 : i32, i32, i32, i32
  }
  func.func @transform_2(%arg0: i32) -> (i32, i32, i32) {
    %c0_i32 = arith.constant 0 : i32
    %c0_i32_0 = arith.constant 0 : i32
    %c0_i32_1 = arith.constant 0 : i32
    %c0_i32_2 = arith.constant 0 : i32
    return %c0_i32, %c0_i32_0, %c0_i32_1 : i32, i32, i32
  }
  func.func @transform_3(%arg0: i32) -> (i32, i32) {
    %c0_i32 = arith.constant 0 : i32
    %c0_i32_0 = arith.constant 0 : i32
    %c0_i32_1 = arith.constant 0 : i32
    return %c0_i32, %c0_i32_0 : i32, i32
  }
  func.func @transform_4(%arg0: i32) -> (i32, i32) {
    %c0_i32 = arith.constant 0 : i32
    %c0_i32_0 = arith.constant 0 : i32
    %c0_i32_1 = arith.constant 0 : i32
    return %c0_i32, %c0_i32_0 : i32, i32
  }
  func.func @transform_5(%arg0: i32) -> (i32, i32, i32) {
    %c0_i32 = arith.constant 0 : i32
    %c0_i32_0 = arith.constant 0 : i32
    %c0_i32_1 = arith.constant 0 : i32
    return %arg0, %c0_i32, %c0_i32_0 : i32, i32, i32
  }
}

module attributes {stable_mosaic.version = 11 : i64} {
  func.func @_convlstm_kernel(%arg0: i32, %arg1: i32, %arg2: memref<1x1x32x256xf32, #tpu.memory_space<vmem>>, %arg3: memref<3x256x1024xbf16, #tpu.memory_space<vmem>>, %arg4: memref<3x256x1024xbf16, #tpu.memory_space<vmem>>, %arg5: memref<1x1024xf32, #tpu.memory_space<vmem>>, %arg6: memref<1x1x32x256xf32, #tpu.memory_space<vmem>>, %arg7: memref<48x256xf32, #tpu.memory_space<vmem>>, %arg8: memref<48x256xf32, #tpu.memory_space<vmem>>, %arg9: memref<32x256xf32, #tpu.memory_space<vmem>>) attributes {dimension_semantics = [#tpu.dimension_semantics<parallel>, #tpu.dimension_semantics<arbitrary>], iteration_bounds = array<i64: 2, 4>, scalar_prefetch = 0 : i64, scratch_operands = 3 : i64, tpu.core_type = #tpu.core_type<tc>, window_params = [{transform_indices = @transform_0, window_bounds = array<i64: 1, 1, 32, 256>}, {pipeline_mode = #tpu.pipeline_mode<synchronous>, transform_indices = @transform_1, window_bounds = array<i64: 3, 256, 1024>}, {pipeline_mode = #tpu.pipeline_mode<synchronous>, transform_indices = @transform_2, window_bounds = array<i64: 3, 256, 1024>}, {pipeline_mode = #tpu.pipeline_mode<synchronous>, transform_indices = @transform_3, window_bounds = array<i64: 1, 1024>}, {transform_indices = @transform_4, window_bounds = array<i64: 1, 1, 32, 256>}]} {
    %c0_i32 = arith.constant 0 : i32
    %0 = arith.cmpi eq, %arg1, %c0_i32 : i32
    %1 = arith.extui %0 : i1 to i32
    %c0_i32_0 = arith.constant 0 : i32
    %2 = arith.cmpi ne, %1, %c0_i32_0 : i32
    scf.if %2 {
      %cst_61 = arith.constant 0.000000e+00 : f32
      %112 = vector.broadcast %cst_61 : f32 to vector<48x256xf32>
      %c0_62 = arith.constant 0 : index
      %c0_63 = arith.constant 0 : index
      %113 = vector.load %arg7[%c0_62, %c0_63] : memref<48x256xf32, #tpu.memory_space<vmem>>, vector<48x256xf32>
      tpu.vector_store %arg7[%c0_62, %c0_63], %112 {strides = array<i32>} : memref<48x256xf32, #tpu.memory_space<vmem>>, vector<48x256xf32>,
      %cst_64 = arith.constant 0.000000e+00 : f32
      %114 = vector.broadcast %cst_64 : f32 to vector<48x256xf32>
      %c0_65 = arith.constant 0 : index
      %c0_66 = arith.constant 0 : index
      %115 = vector.load %arg8[%c0_65, %c0_66] : memref<48x256xf32, #tpu.memory_space<vmem>>, vector<48x256xf32>
      tpu.vector_store %arg8[%c0_65, %c0_66], %114 {strides = array<i32>} : memref<48x256xf32, #tpu.memory_space<vmem>>, vector<48x256xf32>,
      %cst_67 = arith.constant 0.000000e+00 : f32
      %116 = vector.broadcast %cst_67 : f32 to vector<32x256xf32>
      %c0_68 = arith.constant 0 : index
      %c0_69 = arith.constant 0 : index
      %117 = vector.load %arg9[%c0_68, %c0_69] : memref<32x256xf32, #tpu.memory_space<vmem>>, vector<32x256xf32>
      tpu.vector_store %arg9[%c0_68, %c0_69], %116 {strides = array<i32>} : memref<32x256xf32, #tpu.memory_space<vmem>>, vector<32x256xf32>,
    } else {
    }
    %c0 = arith.constant 0 : index
    %c0_1 = arith.constant 0 : index
    %c0_2 = arith.constant 0 : index
    %c0_3 = arith.constant 0 : index
    %3 = vector.load %arg2[%c0, %c0_1, %c0_2, %c0_3] : memref<1x1x32x256xf32, #tpu.memory_space<vmem>>, vector<1x1x32x256xf32>
    %4 = vector.shape_cast %3 : vector<1x1x32x256xf32> to vector<32x256xf32>
    %c8 = arith.constant 8 : index
    %c0_4 = arith.constant 0 : index
    %5 = vector.load %arg7[%c8, %c0_4] : memref<48x256xf32, #tpu.memory_space<vmem>>, vector<32x256xf32>
    tpu.vector_store %arg7[%c8, %c0_4], %4 {strides = array<i32>} : memref<48x256xf32, #tpu.memory_space<vmem>>, vector<32x256xf32>,
    %6 = tpu.iota {dimensions = array<i32: 0>} : vector<32x1xi32>
    %cst = arith.constant 0.000000e+00 : f32
    %7 = vector.broadcast %cst : f32 to vector<32x1024xf32>
    %c7 = arith.constant 7 : index
    %c0_5 = arith.constant 0 : index
    %8 = vector.load %arg7[%c7, %c0_5] : memref<48x256xf32, #tpu.memory_space<vmem>>, vector<32x256xf32>
    %c7_6 = arith.constant 7 : index
    %c0_7 = arith.constant 0 : index
    %9 = vector.load %arg8[%c7_6, %c0_7] : memref<48x256xf32, #tpu.memory_space<vmem>>, vector<32x256xf32>
    %c-1_i32 = arith.constant -1 : i32
    %10 = vector.broadcast %c-1_i32 : i32 to vector<32x1xi32>
    %11 = arith.addi %6, %10 : vector<32x1xi32>
    %c0_i32_8 = arith.constant 0 : i32
    %12 = vector.broadcast %c0_i32_8 : i32 to vector<32x1xi32>
    %13 = arith.cmpi sge, %11, %12 : vector<32x1xi32>
    %c-1_i32_9 = arith.constant -1 : i32
    %14 = vector.broadcast %c-1_i32_9 : i32 to vector<32x1xi32>
    %15 = arith.addi %6, %14 : vector<32x1xi32>
    %c31_i32 = arith.constant 31 : i32
    %16 = vector.broadcast %c31_i32 : i32 to vector<32x1xi32>
    %17 = arith.cmpi sle, %15, %16 : vector<32x1xi32>
    %18 = arith.andi %13, %17 : vector<32x1xi1>
    %cst_10 = arith.constant 0.000000e+00 : f32
    %19 = vector.shape_cast %18 : vector<32x1xi1> to vector<32x1xi1>
    %20 = vector.broadcast %19 : vector<32x1xi1> to vector<32x256xi1>
    %21 = vector.broadcast %cst_10 : f32 to vector<32x256xf32>
    %22 = arith.select %20, %8, %21 : vector<32x256xi1>, vector<32x256xf32>
    %cst_11 = arith.constant 0.000000e+00 : f32
    %23 = vector.shape_cast %18 : vector<32x1xi1> to vector<32x1xi1>
    %24 = vector.broadcast %23 : vector<32x1xi1> to vector<32x256xi1>
    %25 = vector.broadcast %cst_11 : f32 to vector<32x256xf32>
    %26 = arith.select %24, %9, %25 : vector<32x256xi1>, vector<32x256xf32>
    %27 = arith.truncf %22 : vector<32x256xf32> to vector<32x256xbf16>
    %c0_12 = arith.constant 0 : index
    %c0_13 = arith.constant 0 : index
    %c0_14 = arith.constant 0 : index
    %28 = vector.load %arg3[%c0_12, %c0_13, %c0_14] : memref<3x256x1024xbf16, #tpu.memory_space<vmem>>, vector<1x256x1024xbf16>
    %29 = vector.shape_cast %28 : vector<1x256x1024xbf16> to vector<256x1024xbf16>
    %cst_15 = arith.constant dense<0.000000e+00> : vector<32x1024xf32>
    %30 = tpu.matmul %27, %29, %cst_15 {dimension_numbers = #tpu.dot_dimension_numbers<[1], [0], [0], [1], [0, 0, 1, 1], [], []>} : vector<32x256xbf16>, vector<256x1024xbf16>, vector<32x1024xf32> -> vector<32x1024xf32>
    %31 = arith.addf %7, %30 : vector<32x1024xf32>
    %32 = arith.truncf %26 : vector<32x256xf32> to vector<32x256xbf16>
    %c0_16 = arith.constant 0 : index
    %c0_17 = arith.constant 0 : index
    %c0_18 = arith.constant 0 : index
    %33 = vector.load %arg4[%c0_16, %c0_17, %c0_18] : memref<3x256x1024xbf16, #tpu.memory_space<vmem>>, vector<1x256x1024xbf16>
    %34 = vector.shape_cast %33 : vector<1x256x1024xbf16> to vector<256x1024xbf16>
    %cst_19 = arith.constant dense<0.000000e+00> : vector<32x1024xf32>
    %35 = tpu.matmul %32, %34, %cst_19 {dimension_numbers = #tpu.dot_dimension_numbers<[1], [0], [0], [1], [0, 0, 1, 1], [], []>} : vector<32x256xbf16>, vector<256x1024xbf16>, vector<32x1024xf32> -> vector<32x1024xf32>
    %36 = arith.addf %31, %35 : vector<32x1024xf32>
    %c8_20 = arith.constant 8 : index
    %c0_21 = arith.constant 0 : index
    %37 = vector.load %arg7[%c8_20, %c0_21] : memref<48x256xf32, #tpu.memory_space<vmem>>, vector<32x256xf32>
    %c8_22 = arith.constant 8 : index
    %c0_23 = arith.constant 0 : index
    %38 = vector.load %arg8[%c8_22, %c0_23] : memref<48x256xf32, #tpu.memory_space<vmem>>, vector<32x256xf32>
    %39 = arith.truncf %37 : vector<32x256xf32> to vector<32x256xbf16>
    %c1 = arith.constant 1 : index
    %c0_24 = arith.constant 0 : index
    %c0_25 = arith.constant 0 : index
    %40 = vector.load %arg3[%c1, %c0_24, %c0_25] : memref<3x256x1024xbf16, #tpu.memory_space<vmem>>, vector<1x256x1024xbf16>
    %41 = vector.shape_cast %40 : vector<1x256x1024xbf16> to vector<256x1024xbf16>
    %cst_26 = arith.constant dense<0.000000e+00> : vector<32x1024xf32>
    %42 = tpu.matmul %39, %41, %cst_26 {dimension_numbers = #tpu.dot_dimension_numbers<[1], [0], [0], [1], [0, 0, 1, 1], [], []>} : vector<32x256xbf16>, vector<256x1024xbf16>, vector<32x1024xf32> -> vector<32x1024xf32>
    %43 = arith.addf %36, %42 : vector<32x1024xf32>
    %44 = arith.truncf %38 : vector<32x256xf32> to vector<32x256xbf16>
    %c1_27 = arith.constant 1 : index
    %c0_28 = arith.constant 0 : index
    %c0_29 = arith.constant 0 : index
    %45 = vector.load %arg4[%c1_27, %c0_28, %c0_29] : memref<3x256x1024xbf16, #tpu.memory_space<vmem>>, vector<1x256x1024xbf16>
    %46 = vector.shape_cast %45 : vector<1x256x1024xbf16> to vector<256x1024xbf16>
    %cst_30 = arith.constant dense<0.000000e+00> : vector<32x1024xf32>
    %47 = tpu.matmul %44, %46, %cst_30 {dimension_numbers = #tpu.dot_dimension_numbers<[1], [0], [0], [1], [0, 0, 1, 1], [], []>} : vector<32x256xbf16>, vector<256x1024xbf16>, vector<32x1024xf32> -> vector<32x1024xf32>
    %48 = arith.addf %43, %47 : vector<32x1024xf32>
    %c9 = arith.constant 9 : index
    %c0_31 = arith.constant 0 : index
    %49 = vector.load %arg7[%c9, %c0_31] : memref<48x256xf32, #tpu.memory_space<vmem>>, vector<32x256xf32>
    %c9_32 = arith.constant 9 : index
    %c0_33 = arith.constant 0 : index
    %50 = vector.load %arg8[%c9_32, %c0_33] : memref<48x256xf32, #tpu.memory_space<vmem>>, vector<32x256xf32>
    %c1_i32 = arith.constant 1 : i32
    %51 = vector.broadcast %c1_i32 : i32 to vector<32x1xi32>
    %52 = arith.addi %6, %51 : vector<32x1xi32>
    %c0_i32_34 = arith.constant 0 : i32
    %53 = vector.broadcast %c0_i32_34 : i32 to vector<32x1xi32>
    %54 = arith.cmpi sge, %52, %53 : vector<32x1xi32>
    %c1_i32_35 = arith.constant 1 : i32
    %55 = vector.broadcast %c1_i32_35 : i32 to vector<32x1xi32>
    %56 = arith.addi %6, %55 : vector<32x1xi32>
    %c31_i32_36 = arith.constant 31 : i32
    %57 = vector.broadcast %c31_i32_36 : i32 to vector<32x1xi32>
    %58 = arith.cmpi sle, %56, %57 : vector<32x1xi32>
    %59 = arith.andi %54, %58 : vector<32x1xi1>
    %cst_37 = arith.constant 0.000000e+00 : f32
    %60 = vector.shape_cast %59 : vector<32x1xi1> to vector<32x1xi1>
    %61 = vector.broadcast %60 : vector<32x1xi1> to vector<32x256xi1>
    %62 = vector.broadcast %cst_37 : f32 to vector<32x256xf32>
    %63 = arith.select %61, %49, %62 : vector<32x256xi1>, vector<32x256xf32>
    %cst_38 = arith.constant 0.000000e+00 : f32
    %64 = vector.shape_cast %59 : vector<32x1xi1> to vector<32x1xi1>
    %65 = vector.broadcast %64 : vector<32x1xi1> to vector<32x256xi1>
    %66 = vector.broadcast %cst_38 : f32 to vector<32x256xf32>
    %67 = arith.select %65, %50, %66 : vector<32x256xi1>, vector<32x256xf32>
    %68 = arith.truncf %63 : vector<32x256xf32> to vector<32x256xbf16>
    %c2 = arith.constant 2 : index
    %c0_39 = arith.constant 0 : index
    %c0_40 = arith.constant 0 : index
    %69 = vector.load %arg3[%c2, %c0_39, %c0_40] : memref<3x256x1024xbf16, #tpu.memory_space<vmem>>, vector<1x256x1024xbf16>
    %70 = vector.shape_cast %69 : vector<1x256x1024xbf16> to vector<256x1024xbf16>
    %cst_41 = arith.constant dense<0.000000e+00> : vector<32x1024xf32>
    %71 = tpu.matmul %68, %70, %cst_41 {dimension_numbers = #tpu.dot_dimension_numbers<[1], [0], [0], [1], [0, 0, 1, 1], [], []>} : vector<32x256xbf16>, vector<256x1024xbf16>, vector<32x1024xf32> -> vector<32x1024xf32>
    %72 = arith.addf %48, %71 : vector<32x1024xf32>
    %73 = arith.truncf %67 : vector<32x256xf32> to vector<32x256xbf16>
    %c2_42 = arith.constant 2 : index
    %c0_43 = arith.constant 0 : index
    %c0_44 = arith.constant 0 : index
    %74 = vector.load %arg4[%c2_42, %c0_43, %c0_44] : memref<3x256x1024xbf16, #tpu.memory_space<vmem>>, vector<1x256x1024xbf16>
    %75 = vector.shape_cast %74 : vector<1x256x1024xbf16> to vector<256x1024xbf16>
    %cst_45 = arith.constant dense<0.000000e+00> : vector<32x1024xf32>
    %76 = tpu.matmul %73, %75, %cst_45 {dimension_numbers = #tpu.dot_dimension_numbers<[1], [0], [0], [1], [0, 0, 1, 1], [], []>} : vector<32x256xbf16>, vector<256x1024xbf16>, vector<32x1024xf32> -> vector<32x1024xf32>
    %77 = arith.addf %72, %76 : vector<32x1024xf32>
    %c0_46 = arith.constant 0 : index
    %c0_47 = arith.constant 0 : index
    %78 = vector.load %arg5[%c0_46, %c0_47] : memref<1x1024xf32, #tpu.memory_space<vmem>>, vector<1x1024xf32>
    %79 = vector.broadcast %78 : vector<1x1024xf32> to vector<32x1024xf32>
    %80 = arith.addf %77, %79 : vector<32x1024xf32>
    %81 = vector.extract_strided_slice %80 {offsets = [0, 0], sizes = [32, 256], strides = [1, 1]} : vector<32x1024xf32> to vector<32x256xf32>
    %82 = arith.negf %81 : vector<32x256xf32>
    %83 = math.exp %82 : vector<32x256xf32>
    %cst_48 = arith.constant 1.000000e+00 : f32
    %84 = vector.broadcast %cst_48 : f32 to vector<32x256xf32>
    %85 = arith.addf %84, %83 : vector<32x256xf32>
    %86 = arith.divf %84, %85 : vector<32x256xf32>
    %87 = vector.extract_strided_slice %80 {offsets = [0, 256], sizes = [32, 256], strides = [1, 1]} : vector<32x1024xf32> to vector<32x256xf32>
    %88 = arith.negf %87 : vector<32x256xf32>
    %89 = math.exp %88 : vector<32x256xf32>
    %cst_49 = arith.constant 1.000000e+00 : f32
    %90 = vector.broadcast %cst_49 : f32 to vector<32x256xf32>
    %91 = arith.addf %90, %89 : vector<32x256xf32>
    %92 = arith.divf %90, %91 : vector<32x256xf32>
    %93 = vector.extract_strided_slice %80 {offsets = [0, 512], sizes = [32, 256], strides = [1, 1]} : vector<32x1024xf32> to vector<32x256xf32>
    %94 = arith.negf %93 : vector<32x256xf32>
    %95 = math.exp %94 : vector<32x256xf32>
    %cst_50 = arith.constant 1.000000e+00 : f32
    %96 = vector.broadcast %cst_50 : f32 to vector<32x256xf32>
    %97 = arith.addf %96, %95 : vector<32x256xf32>
    %98 = arith.divf %96, %97 : vector<32x256xf32>
    %99 = vector.extract_strided_slice %80 {offsets = [0, 768], sizes = [32, 256], strides = [1, 1]} : vector<32x1024xf32> to vector<32x256xf32>
    %100 = math.tanh %99 : vector<32x256xf32>
    %c0_51 = arith.constant 0 : index
    %c0_52 = arith.constant 0 : index
    %101 = vector.load %arg9[%c0_51, %c0_52] : memref<32x256xf32, #tpu.memory_space<vmem>>, vector<32x256xf32>
    %102 = arith.mulf %92, %101 : vector<32x256xf32>
    %103 = arith.mulf %86, %100 : vector<32x256xf32>
    %104 = arith.addf %102, %103 : vector<32x256xf32>
    %105 = math.tanh %104 : vector<32x256xf32>
    %106 = arith.mulf %98, %105 : vector<32x256xf32>
    %c0_53 = arith.constant 0 : index
    %c0_54 = arith.constant 0 : index
    %107 = vector.load %arg9[%c0_53, %c0_54] : memref<32x256xf32, #tpu.memory_space<vmem>>, vector<32x256xf32>
    tpu.vector_store %arg9[%c0_53, %c0_54], %104 {strides = array<i32>} : memref<32x256xf32, #tpu.memory_space<vmem>>, vector<32x256xf32>,
    %c8_55 = arith.constant 8 : index
    %c0_56 = arith.constant 0 : index
    %108 = vector.load %arg8[%c8_55, %c0_56] : memref<48x256xf32, #tpu.memory_space<vmem>>, vector<32x256xf32>
    tpu.vector_store %arg8[%c8_55, %c0_56], %106 {strides = array<i32>} : memref<48x256xf32, #tpu.memory_space<vmem>>, vector<32x256xf32>,
    %c0_57 = arith.constant 0 : index
    %c0_58 = arith.constant 0 : index
    %c0_59 = arith.constant 0 : index
    %c0_60 = arith.constant 0 : index
    %109 = vector.load %arg6[%c0_57, %c0_58, %c0_59, %c0_60] : memref<1x1x32x256xf32, #tpu.memory_space<vmem>>, vector<1x1x32x256xf32>
    %110 = vector.shape_cast %109 : vector<1x1x32x256xf32> to vector<32x256xf32>
    %111 = vector.shape_cast %106 : vector<32x256xf32> to vector<1x1x32x256xf32>
    tpu.vector_store %arg6[%c0_57, %c0_58, %c0_59, %c0_60], %111 {strides = array<i32>} : memref<1x1x32x256xf32, #tpu.memory_space<vmem>>, vector<1x1x32x256xf32>,
    return
  }
  func.func @transform_0(%arg0: i32, %arg1: i32) -> (i32, i32, i32, i32) {
    %c0_i32 = arith.constant 0 : i32
    %c0_i32_0 = arith.constant 0 : i32
    %c0_i32_1 = arith.constant 0 : i32
    return %arg0, %arg1, %c0_i32, %c0_i32_0 : i32, i32, i32, i32
  }
  func.func @transform_1(%arg0: i32, %arg1: i32) -> (i32, i32, i32) {
    %c0_i32 = arith.constant 0 : i32
    %c0_i32_0 = arith.constant 0 : i32
    %c0_i32_1 = arith.constant 0 : i32
    %c0_i32_2 = arith.constant 0 : i32
    return %c0_i32, %c0_i32_0, %c0_i32_1 : i32, i32, i32
  }
  func.func @transform_2(%arg0: i32, %arg1: i32) -> (i32, i32, i32) {
    %c0_i32 = arith.constant 0 : i32
    %c0_i32_0 = arith.constant 0 : i32
    %c0_i32_1 = arith.constant 0 : i32
    %c0_i32_2 = arith.constant 0 : i32
    return %c0_i32, %c0_i32_0, %c0_i32_1 : i32, i32, i32
  }
  func.func @transform_3(%arg0: i32, %arg1: i32) -> (i32, i32) {
    %c0_i32 = arith.constant 0 : i32
    %c0_i32_0 = arith.constant 0 : i32
    %c0_i32_1 = arith.constant 0 : i32
    return %c0_i32, %c0_i32_0 : i32, i32
  }
  func.func @transform_4(%arg0: i32, %arg1: i32) -> (i32, i32, i32, i32) {
    %c0_i32 = arith.constant 0 : i32
    %c0_i32_0 = arith.constant 0 : i32
    %c0_i32_1 = arith.constant 0 : i32
    return %arg0, %arg1, %c0_i32, %c0_i32_0 : i32, i32, i32, i32
  }
}

</mosaic_0001>

<bundles_post_ra>
// kernel: spa_temp_pixelcnn_vp_forward.2
= control target key start
LH: loop header
LB: loop body
LE: loop exit
PB: predicated region body
PF: predicated region fallthrough
CT: control target
= control target key end

     0   :  { %s9879_s18 = smov 0   ;;  %s11974_s0 = inlined_call_operand.vmem [shape: f32[2,64,128], index: 0, kind: input, shape index: {}]   ;;  %s11975_s1 = inlined_call_operand.vmem [shape: bf16[4,9,128,128], index: 1, kind: input, shape index: {}]   ;;  %s11976_s2 = inlined_call_operand.vmem [shape: f32[4,1,128], index: 2, kind: input, shape index: {}]   ;;  %s11977_s3 = inlined_call_operand.vmem [shape: bf16[128,128], index: 3, kind: input, shape index: {}]   ;;  %s11978_s4 = inlined_call_operand.vmem [shape: f32[1,128], index: 4, kind: input, shape index: {}]   ;;  %s11979_s5 = inlined_call_operand.vmem [shape: f32[2,64,128], index: 5, kind: output, shape index: {}]  }
   0x1 LB: > { %s6618_s19 = sadd.s32 4294967295, %s9845_s18   ;;  %p6622_p0 = scmp.ge.s32.totalorder %s9845_s18, 1  ;;  %s9845_s18 = sphi %s9879_s18, %s15_s18  }
   0x2   : > { %p187_p1 = scmp.lt.s32.totalorder %s9845_s18, 3 }
   0x4   : > { %p188_p2 = pnand %p6622_p0, %p187_p1 }
   0x5   : > { %v9540_v0 = vld [vmem:[%s11975_s1 + $0x40] sm:$0xff] (!%p188_p2)   ;;  %v256_v1 = vlaneseq (!%p188_p2)  ;;  %v9541_v2 = vld [vmem:[%s11975_s1 + $0x48] sm:$0xff] (!%p188_p2)   ;;  %v9847_v3 = vmov (!%p188_p2), 0.0   ;;  %p215_p3 = scmp.lt.s32.totalorder (!%p188_p2), %s6618_s19, 1  ;;  %v9542_v5 = vld [vmem:[%s11975_s1 + $0x50] sm:$0xff] (!%p188_p2)   ;;  %v12065_v19 = vmov (!%p188_p2), 0 }
   0x6   : > { %191 = sbr.rel (%p188_p2) target bundleno = 2173 (0x87d), region = 40  ;;  %227 = vst [vmem:[#allocation2 + $0x8] sm:$0xff] (!%p188_p2), %v9847_v3  ;;  %228 = vst [vmem:[#allocation2 + $0x10] sm:$0xff] (!%p188_p2), %v9847_v3  ;;  %8371 = vmatprep.subr.bf16.mxu0 (!%p188_p2), %v9540_v0  ;;  %v9543_v10 = vld [vmem:[%s11975_s1 + $0x58] sm:$0xff] (!%p188_p2)   ;;  %v9544_v12 = vld [vmem:[%s11975_s1 + $0x60] sm:$0xff] (!%p188_p2)   ;;  %v9848_v20 = vmov (!%p188_p2), 0.0|0.0  }
   0x7   : > { %226 = vst [vmem:[#allocation2] sm:$0xff] (!%p188_p2), %v9847_v3  ;;  %237 = vst [vmem:[#allocation2 + $0x58] sm:$0xff] (!%p188_p2), %v9847_v3  ;;  %v9893_v4 = vshrl.u32 (!%p188_p2), %v256_v1, 7  ;;  %8372 = vmatpush3.bf16.msra.mxu0 (!%p188_p2), %v9540_v0  ;;  %v9545_v25 = vld [vmem:[%s11975_s1 + $0x68] sm:$0xff] (!%p188_p2)   ;;  %v9546_v32 = vld [vmem:[%s11975_s1 + $0x70] sm:$0xff] (!%p188_p2)   ;;  %v12075_v53 = vmov (!%p188_p2), 0 }
   0x8   : > { %238 = vst [vmem:[#allocation2 + $0x60] sm:$0xff] (!%p188_p2), %v9847_v3  ;;  %239 = vst [vmem:[#allocation2 + $0x68] sm:$0xff] (!%p188_p2), %v9847_v3  ;;  %8373 = vmatprep.subr.bf16.mxu0 (!%p188_p2), %v9541_v2  ;;  %v9547_v39 = vld [vmem:[%s11975_s1 + $0x78] sm:$0xff] (!%p188_p2)   ;;  %v9548_v44 = vld [vmem:[%s11975_s1] sm:$0xff] (!%p188_p2)   ;;  %v12077_v55 = vmov (!%p188_p2), 0  ;;  %v12083_v62 = vmov (!%p188_p2), 0 }
   0x9   : > { %v9899_v6 = vadd.s32 (!%p188_p2), 8, %v9893_v4  ;;  %v9902_v7 = vshra.s32 (!%p188_p2), %v9893_v4, 4  ;;  %v9936_v17 = vadd.s32 (!%p188_p2), 16, %v9893_v4  ;;  %v9939_v18 = vadd.s32 (!%p188_p2), 24, %v9893_v4  ;;  %v9549_v51 = vld [vmem:[%s11975_s1 + $0x8] sm:$0xff] (!%p188_p2)   ;;  %v9550_v56 = vld [vmem:[%s11975_s1 + $0x10] sm:$0xff] (!%p188_p2)  }
   0xa   : > { %v9952_v21 = vadd.s32 (!%p188_p2), 32, %v9893_v4  ;;  %v9955_v22 = vadd.s32 (!%p188_p2), 40, %v9893_v4  ;;  %v9981_v34 = vadd.s32 (!%p188_p2), 48, %v9893_v4  ;;  %v9986_v37 = vadd.s32 (!%p188_p2), 56, %v9893_v4  ;;  %v9551_v0 = vld [vmem:[%s11975_s1 + $0x18] sm:$0xff] (!%p188_p2)   ;;  %v9565_v48 = vld [vmem:[%s11975_s1 + $0xc8] sm:$0xff] (!%p188_p2)  }
   0xb   : > { %v9907_v8 = vshra.s32 (!%p188_p2), %v9899_v6, 4  ;;  %8374 = vmatpush3.bf16.msra.mxu0 (!%p188_p2), %v9541_v2  ;;  %v281_v9 = vadd.s32 (!%p188_p2), 4294967295, %v9902_v7  ;;  %v9958_v23 = vshra.s32 (!%p188_p2), %v9936_v17, 4  ;;  %v9961_v24 = vshra.s32 (!%p188_p2), %v9939_v18, 4  ;;  %v9552_v2 = vld [vmem:[%s11975_s1 + $0x20] sm:$0xff] (!%p188_p2)   ;;  %v9566_v46 = vld [vmem:[%s11975_s1 + $0xd0] sm:$0xff] (!%p188_p2)  }
   0xc   : > { %8375 = vmatprep.subr.bf16.mxu0 (!%p188_p2), %v9542_v5  ;;  %v9967_v26 = vshra.s32 (!%p188_p2), %v9952_v21, 4  ;;  %v9972_v29 = vshra.s32 (!%p188_p2), %v9955_v22, 4  ;;  %v9993_v40 = vshra.s32 (!%p188_p2), %v9981_v34, 4  ;;  %v9996_v41 = vshra.s32 (!%p188_p2), %v9986_v37, 4  ;;  %v9568_v57 = vld [vmem:[%s11975_s1 + $0xe0] sm:$0xff] (!%p188_p2)  }
   0xd   : > { %s12291_s19 = smov (!%p215_p3, %s6618_s19), 1  ;;  %v282_v11 = vadd.s32 4294967295, %v9907_v8  ;;  %vm289_vm0 = vcmp.ge.s32.totalorder %v281_v9, 0  ;;  %vm297_vm1 = vcmp.le.s32.totalorder %v281_v9, 3  ;;  %v283_v30 = vadd.s32 4294967295, %v9958_v23  ;;  %v530_v60 = vld [vmem:[#allocation2 + $0xf] sm:$0xff] }
   0xe   : > { %s7925_s28 = sshll.u32 %s12291_s19, 6  ;;  %vm9918_vm4 = vmand %vm289_vm0, %vm297_vm1  ;;  %v284_v31 = vadd.s32 4294967295, %v9961_v24  ;;  %v285_v35 = vadd.s32 4294967295, %v9967_v26  ;;  %v286_v38 = vadd.s32 4294967295, %v9972_v29  ;;  %v273_v43 = vand.u32 15, %v9893_v4  ;;  %v529_v58 = vld [vmem:[#allocation2 + $0x7] sm:$0xff] }
   0xf   : > { %vm290_vm2 = vcmp.ge.s32.totalorder %v282_v11, 0  ;;  %vm298_vm3 = vcmp.le.s32.totalorder %v282_v11, 3  ;;  %s9927_s8 = scalar_lea.vmem %s11974_s0, %s7925_s28  ;;  %8376 = vmatpush3.bf16.msra.mxu0 %v9542_v5  ;;  %vm291_vm7 = vcmp.ge.s32.totalorder %v283_v30, 0  ;;  %vm299_vm9 = vcmp.le.s32.totalorder %v283_v30, 3  ;;  %v9553_v4 = vld [vmem:[%s11975_s1 + $0x28] sm:$0xff]   ;;  %v9554_v11 = vld [vmem:[%s11975_s1 + $0x30] sm:$0xff]   ;;  %s224_s10 = scalar_lea.vmem %s11979_s5, %s7925_s28 }
  0x10   : > { %vm9929_vm5 = vmand %vm290_vm2, %vm298_vm3  ;;  %v240_v15 = vld [vmem:[%s9927_s8] sm:$0xff]  ;;  %v241_v16 = vld [vmem:[%s9927_s8 + $0x8] sm:$0xff]  ;;  %8377 = vmatprep.subr.bf16.mxu0 %v9543_v10  ;;  %vm292_vm8 = vcmp.ge.s32.totalorder %v284_v31, 0  ;;  %vm300_vm10 = vcmp.le.s32.totalorder %v284_v31, 3  ;;  %vm293_vm11 = vcmp.ge.s32.totalorder %v285_v35, 0  ;;  %vm301_vm12 = vcmp.le.s32.totalorder %v285_v35, 3 }
  0x11   : > { %vm9945_vm6 = vmpackc.low %vm9929_vm5, %vm9918_vm4  ;;  %248 = vst [vmem:[#allocation2 + $0x18] sm:$0xff] %v240_v15  ;;  %v242_v27 = vld [vmem:[%s9927_s8 + $0x10] sm:$0xff]  ;;  %v243_v28 = vld [vmem:[%s9927_s8 + $0x18] sm:$0xff]  ;;  %vm294_vm14 = vcmp.ge.s32.totalorder %v286_v38, 0  ;;  %vm302_vm15 = vcmp.le.s32.totalorder %v286_v38, 3  ;;  %v287_v47 = vadd.s32 4294967295, %v9993_v40  ;;  %v10020_v50 = vpack.c.bf16 %v241_v16, %v240_v15 }
  0x12   : > { %v12066_v19 = vsel %vm9945_vm6, 4294967295, %v12065_v19  ;;  %249 = vst [vmem:[#allocation2 + $0x20] sm:$0xff] %v241_v16  ;;  %8387 = vmatprep.mubr.msk.bf16.mxu0 %vm9945_vm6, %v9848_v20  ;;  %250 = vst [vmem:[#allocation2 + $0x28] sm:$0xff] %v242_v27  ;;  %v244_v33 = vld [vmem:[%s9927_s8 + $0x20] sm:$0xff]  ;;  %v245_v36 = vld [vmem:[%s9927_s8 + $0x28] sm:$0xff]  ;;  %v288_v49 = vadd.s32 4294967295, %v9996_v41  ;;  %v10035_v54 = vpack.c.bf16 %v243_v28, %v242_v27  ;;  %v6672_v63 = vpack.c.bf16 %v530_v60, %v529_v58 }
  0x13   : > { %8378 = vmatpush3.bf16.msra.mxu0 %v9543_v10  ;;  %251 = vst [vmem:[#allocation2 + $0x30] sm:$0xff] %v243_v28  ;;  %252 = vst [vmem:[#allocation2 + $0x38] sm:$0xff] %v244_v33  ;;  %v10025_v52 = vadd.s32 4294967295, %v273_v43  ;;  %v10067_v61 = vpack.c.bf16 %v245_v36, %v244_v33  ;;  %v12085_v1 = vmov 0  ;;  %v275_v3 = vand.u32 15, %v9936_v17  ;;  %v246_v5 = vld [vmem:[%s9927_s8 + $0x30] sm:$0xff] }
  0x14   : > { %8379 = vmatprep.subr.bf16.mxu0 %v9544_v12  ;;  %253 = vst [vmem:[#allocation2 + $0x40] sm:$0xff] %v245_v36  ;;  %vm9998_vm13 = vmand %vm291_vm7, %vm299_vm9  ;;  %vm303_vm9 = vcmp.le.s32.totalorder %v287_v47, 3  ;;  %v277_v10 = vand.u32 15, %v9952_v21  ;;  %v279_v15 = vand.u32 15, %v9981_v34  ;;  %v9555_v16 = vld [vmem:[%s11975_s1 + $0x38] sm:$0xff]   ;;  %v274_v20 = vand.u32 15, %v9899_v6 }
  0x15   : > { %vm10006_vm0 = vmand %vm292_vm8, %vm300_vm10  ;;  %vm295_vm8 = vcmp.ge.s32.totalorder %v287_v47, 0  ;;  %vm296_vm10 = vcmp.ge.s32.totalorder %v288_v49, 0  ;;  %254 = vst [vmem:[#allocation2 + $0x48] sm:$0xff] %v246_v5  ;;  %v10099_v9 = vadd.s32 4294967295, %v275_v3  ;;  %v9556_v21 = vld [vmem:[%s11975_s1 + $0x80] sm:$0xff]   ;;  %v247_v6 = vld [vmem:[%s9927_s8 + $0x38] sm:$0xff] }
  0x16   : > { %vm10010_vm1 = vmand %vm293_vm11, %vm301_vm12  ;;  %vm304_vm11 = vcmp.le.s32.totalorder %v288_v49, 3  ;;  %vm11983_vm12 = vcmp.ge.s32.totalorder %v10025_v52, 0  ;;  %v10125_v28 = vadd.s32 4294967295, %v279_v15  ;;  %v10134_v33 = vadd.s32 1, %v274_v20  ;;  %255 = vst [vmem:[#allocation2 + $0x50] sm:$0xff] %v247_v6  ;;  %v9557_v38 = vld [vmem:[%s11975_s1 + $0x88] sm:$0xff]  }
  0x17   : > { %8380 = vmatpush3.bf16.msra.mxu0 %v9544_v12  ;;  %vm10015_vm2 = vmand %vm294_vm14, %vm302_vm15  ;;  %v10106_v12 = vadd.s32 4294967295, %v277_v10  ;;  %v10136_v34 = vpack.c.bf16 %v247_v6, %v246_v5  ;;  %v12089_v35 = vmov 0  ;;  %v9558_v43 = vld [vmem:[%s11975_s1 + $0x90] sm:$0xff]   ;;  %v276_v58 = vand.u32 15, %v9939_v18  ;;  %v9559_v60 = vld [vmem:[%s11975_s1 + $0x98] sm:$0xff]  }
  0x18   : > { %8381 = vmatprep.subr.bf16.mxu0 %v9545_v25  ;;  %vm10031_vm3 = vmpackc.low %vm10006_vm0, %vm9998_vm13  ;;  %v860_v49 = vld [vmem:[#allocation2 + $0x9] sm:$0xff]  ;;  %v12095_v14 = vmov 0  ;;  %v278_v13 = vand.u32 15, %v9955_v22  ;;  %v9563_v22 = vld [vmem:[%s11975_s1 + $0xb8] sm:$0xff]   ;;  %v12097_v20 = vmov 0 }
  0x19   : > { %v12076_v53 = vsel %vm10031_vm3, 4294967295, %v12075_v53  ;;  %vm10041_vm7 = vmpackc.low %vm10015_vm2, %vm10010_vm1  ;;  %v532_v27 = vld [vmem:[#allocation2 + $0x1f] sm:$0xff]  ;;  %v533_v30 = vld [vmem:[#allocation2 + $0x27] sm:$0xff]  ;;  %v10197_v18 = vadd.s32 1, %v276_v58 }
  0x1a   : > { %v12078_v55 = vsel %vm10041_vm7, 4294967295, %v12077_v55  ;;  %vm10055_vm14 = vmand %vm295_vm8, %vm303_vm9  ;;  %v534_v31 = vld [vmem:[#allocation2 + $0x2f] sm:$0xff]  ;;  %v10213_v10 = vadd.s32 1, %v278_v13  ;;  %v9567_v6 = vld [vmem:[%s11975_s1 + $0xd8] sm:$0xff]  }
  0x1b   : > { %8382 = vmatpush3.bf16.msra.mxu0 %v9545_v25  ;;  %vm10059_vm15 = vmand %vm296_vm10, %vm304_vm11  ;;  %vm11984_vm11 = vcmp.ge.s32.totalorder %v10106_v12, 0  ;;  %v531_v25 = vld [vmem:[#allocation2 + $0x17] sm:$0xff]  ;;  %v10146_v36 = vpack.c.bf16 %v534_v31, %v533_v30  ;;  %v536_v47 = vld [vmem:[#allocation2 + $0x3f] sm:$0xff] }
  0x1c   : > { %8383 = vmatprep.subr.bf16.mxu0 %v9546_v32  ;;  %vm10073_vm8 = vmpackc.low %vm10059_vm15, %vm10055_vm14  ;;  %v9561_v3 = vld [vmem:[%s11975_s1 + $0xa8] sm:$0xff]   ;;  %v9562_v5 = vld [vmem:[%s11975_s1 + $0xb0] sm:$0xff]  }
  0x1d   : > { %v12084_v62 = vsel %vm10073_vm8, 4294967295, %v12083_v62  ;;  %v864_v45 = vld [vmem:[#allocation2 + $0x29] sm:$0xff]  ;;  %v865_v17 = vld [vmem:[#allocation2 + $0x31] sm:$0xff]  ;;  %v866_v30 = vld [vmem:[#allocation2 + $0x39] sm:$0xff] }
  0x1e   : > { %v10252_v42 = vpack.c.bf16 %v865_v17, %v864_v45  ;;  %v867_v59 = vld [vmem:[#allocation2 + $0x41] sm:$0xff]  ;;  %v9574_v45 = vld [vmem:[%s11975_s1 + $0x110] sm:$0xff]   ;;  %v9583_v31 = vld [vmem:[%s11975_s1 + $0x158] sm:$0xff]  }
  0x1f   : > { %8384 = vmatpush3.bf16.msra.mxu0 %v9546_v32  ;;  %v10132_v32 = vpack.c.bf16 %v532_v27, %v531_v25  ;;  %v12099_v25 = vmov 0  ;;  %v1041_v17 = vld [vmem:[#allocation2 + $0x4f] sm:$0xff]  ;;  %v9580_v58 = vld [vmem:[%s11975_s1 + $0x140] sm:$0xff]   ;;  %v477_v27 = vadd.s32 1, %v9967_v26 }
  0x20   : > { %8385 = vmatprep.subr.bf16.mxu0 %v9547_v39 }
  0x23   : > { %8386 = vmatpush3.bf16.msra.mxu0 %v9547_v39  ;;  %v12091_v39 = vmov 0 }
  0x24   : > { %8395 = vmatprep.subr.bf16.mxu0 %v9548_v44 }
  0x26   : > { %8388 = vmatmul.mubr.msk.bf16.vlgmr.msra.gmra.mrb[0].mxu0 %vm10031_vm3, %v10020_v50  ;;  %vm345_vm3 = vmand %vm9918_vm4, %vm11983_vm12 }
  0x27   : > { %8396 = vmatpush3.bf16.msra.mxu0 %v9548_v44  ;;  %8391 = vmatprep.mubr.msk.bf16.mxu0 %vm10041_vm7, %v10035_v54  ;;  %vm10082_vm9 = vmpackc.low %vm9929_vm5, %vm345_vm3  ;;  %vm11982_vm3 = vcmp.ge.s32.totalorder %v10099_v9, 0  ;;  %v535_v44 = vld [vmem:[#allocation2 + $0x37] sm:$0xff]  ;;  %vm440_vm7 = vcmp.le.s32.totalorder %v9996_v41, 3 }
  0x28   : > { %8397 = vmatprep.subr.bf16.mxu0 %v9549_v51  ;;  %v12086_v1 = vsel %vm10082_vm9, 4294967295, %v12085_v1  ;;  %vm10116_vm10 = vmand %vm9998_vm13, %vm11982_vm3 }
  0x29   : > { %vm349_vm3 = vmand %vm10010_vm1, %vm11984_vm11  ;;  %vm11989_vm11 = vcmp.ge.s32.totalorder %v10125_v28, 0 }
  0x2a   : > { %vm10142_vm12 = vmpackc.low %vm10006_vm0, %vm10116_vm10 }
  0x2b   : > { %8398 = vmatpush3.bf16.msra.mxu0 %v9549_v51  ;;  %v12090_v35 = vsel %vm10142_vm12, 4294967295, %v12089_v35  ;;  %vm351_vm10 = vmand %vm10055_vm14, %vm11989_vm11  ;;  %v861_v51 = vld [vmem:[#allocation2 + $0x11] sm:$0xff] }
  0x2c   : > { %8399 = vmatprep.subr.bf16.mxu0 %v9550_v56  ;;  %vm10184_vm11 = vmpackc.low %vm10059_vm15, %vm351_vm10  ;;  %vm11996_vm10 = vcmp.le.s32.totalorder %v10213_v10, 15 }
  0x2e   : > { %8392 = vmatmul.mubr.msk.bf16.gmra.mrb[4].mxu0 %vm10073_vm8, %v10067_v61  ;;  %vm11990_vm8 = vcmp.le.s32.totalorder %v10134_v33, 15 }
  0x2f   : > { %8400 = vmatpush3.bf16.msra.mxu0 %v9550_v56  ;;  %8411 = vmatprep.mubr.msk.bf16.mxu0 %vm10082_vm9, %v6672_v63  ;;  %vm10154_vm9 = vmpackc.low %vm10015_vm2, %vm349_vm3  ;;  %v10176_v56 = vpack.c.bf16 %v536_v47, %v535_v44  ;;  %v12093_v63 = vmov 0  ;;  %v12108_v44 = vmov 0  ;;  %v9569_v47 = vld [vmem:[%s11975_s1 + $0xe8] sm:$0xff]  }
  0x30   : > { %8401 = vmatprep.subr.bf16.mxu0 %v9551_v0  ;;  %v12092_v39 = vsel %vm10154_vm9, 4294967295, %v12091_v39  ;;  %vm418_vm3 = vmand %vm9929_vm5, %vm11990_vm8  ;;  %v12094_v63 = vsel %vm10184_vm11, 4294967295, %v12093_v63 }
  0x31   : > { %vm10190_vm5 = vmpackc.low %vm418_vm3, %vm9918_vm4  ;;  %vm11991_vm4 = vcmp.le.s32.totalorder %v10197_v18, 15 }
  0x32   : > { %v12096_v14 = vsel %vm10190_vm5, 4294967295, %v12095_v14  ;;  %vm420_vm3 = vmand %vm10006_vm0, %vm11991_vm4 }
  0x33   : > { %8402 = vmatpush3.bf16.msra.mxu0 %v9551_v0  ;;  %v6708_v0 = vpack.c.bf16 %v861_v51, %v860_v49  ;;  %vm422_vm8 = vmand %vm10015_vm2, %vm11996_vm10  ;;  %vm434_vm10 = vcmp.le.s32.totalorder %v9907_v8, 3  ;;  %v9570_v49 = vld [vmem:[%s11975_s1 + $0xf0] sm:$0xff]   ;;  %v9615_v51 = vld [vmem:[%s11975_s1 + $0x298] sm:$0xff]  }
  0x34   : > { %8403 = vmatprep.subr.bf16.mxu0 %v9552_v2  ;;  %vm10235_vm4 = vmpackc.low %vm420_vm3, %vm9998_vm13  ;;  %vm426_vm3 = vcmp.ge.s32.totalorder %v9907_v8, 0 }
  0x35   : > { %v12098_v20 = vsel %vm10235_vm4, 4294967295, %v12097_v20  ;;  %vm10248_vm2 = vmpackc.low %vm422_vm8, %vm10010_vm1 }
  0x36   : > { %v12100_v25 = vsel %vm10248_vm2, 4294967295, %v12099_v25  ;;  %vm10273_vm1 = vmand %vm426_vm3, %vm434_vm10  ;;  %vm427_vm10 = vcmp.ge.s32.totalorder %v9958_v23, 0  ;;  %vm436_vm3 = vcmp.le.s32.totalorder %v9961_v24, 3 }
  0x37   : > { %8404 = vmatpush3.bf16.msra.mxu0 %v9552_v2  ;;  %v9560_v2 = vld [vmem:[%s11975_s1 + $0xa0] sm:$0xff]  }
  0x38   : > { %8405 = vmatprep.subr.bf16.mxu0 %v9553_v4 }
  0x3b   : > { %8406 = vmatpush3.bf16.msra.mxu0 %v9553_v4  ;;  %v280_v4 = vand.u32 15, %v9986_v37  ;;  %v862_v37 = vld [vmem:[#allocation2 + $0x19] sm:$0xff] }
  0x3c   : > { %8407 = vmatprep.subr.bf16.mxu0 %v9554_v11 }
  0x3d   : > { %v10223_v15 = vadd.s32 1, %v280_v4  ;;  %v9587_v4 = vld [vmem:[%s11975_s1 + $0x178] sm:$0xff]  }
  0x3f   : > { %8408 = vmatpush3.bf16.msra.mxu0 %v9554_v11  ;;  %v863_v11 = vld [vmem:[#allocation2 + $0x21] sm:$0xff]  ;;  %vm11999_vm0 = vcmp.le.s32.totalorder %v10223_v15, 15 }
  0x40   : > { %8409 = vmatprep.subr.bf16.mxu0 %v9555_v16  ;;  %vm424_vm13 = vmand %vm10059_vm15, %vm11999_vm0  ;;  %vm12105_vm15 = vcmp.ge.s32.totalorder %v10025_v52, 0  ;;  %vm437_vm0 = vcmp.le.s32.totalorder %v9967_v26, 3 }
  0x43   : > { %8410 = vmatpush3.bf16.msra.mxu0 %v9555_v16  ;;  %v9564_v16 = vld [vmem:[%s11975_s1 + $0xc0] sm:$0xff]  }
  0x44   : > { %8419 = vmatprep.subr.bf16.mxu0 %v9556_v21 }
  0x46   : > { %8412 = vmatmul.mubr.msk.bf16.vlgmr.msra.gmra.mrb[0].mxu0 %vm10142_vm12, %v10132_v32 }
  0x47   : > { %8420 = vmatpush3.bf16.msra.mxu0 %v9556_v21  ;;  %8415 = vmatprep.mubr.msk.bf16.mxu0 %vm10154_vm9, %v10146_v36  ;;  %v10239_v21 = vpack.c.bf16 %v863_v11, %v862_v37  ;;  %v12129_v37 = vmov 0  ;;  %v12131_v11 = vmov 0 }
  0x48   : > { %8421 = vmatprep.subr.bf16.mxu0 %v9557_v38 }
  0x4b   : > { %8422 = vmatpush3.bf16.msra.mxu0 %v9557_v38  ;;  %v12106_v38 = vmov 0 }
  0x4c   : > { %8423 = vmatprep.subr.bf16.mxu0 %v9558_v43 }
  0x4e   : > { %8416 = vmatmul.mubr.msk.bf16.gmra.mrb[4].mxu0 %vm10184_vm11, %v10176_v56  ;;  %vm433_vm11 = vcmp.le.s32.totalorder %v9902_v7, 3 }
  0x4f   : > { %8424 = vmatpush3.bf16.msra.mxu0 %v9558_v43  ;;  %8435 = vmatprep.mubr.msk.bf16.mxu0 %vm10190_vm5, %v6708_v0  ;;  %vm425_vm5 = vcmp.ge.s32.totalorder %v9902_v7, 0  ;;  %v10290_v43 = vpack.c.bf16 %v867_v59, %v866_v30  ;;  %v12133_v30 = vmov 0  ;;  %v9576_v59 = vld [vmem:[%s11975_s1 + $0x120] sm:$0xff]   ;;  %v12168_v0 = vmov 0 }
  0x50   : > { %8425 = vmatprep.subr.bf16.mxu0 %v9559_v60  ;;  %vm10260_vm9 = vmand %vm425_vm5, %vm433_vm11 }
  0x51   : > { %vm449_vm8 = vmand %vm10260_vm9, %vm12105_vm15 }
  0x52   : > { %vm10286_vm11 = vmpackc.low %vm424_vm13, %vm10055_vm14  ;;  %vm428_vm14 = vcmp.ge.s32.totalorder %v9961_v24, 0  ;;  %vm435_vm13 = vcmp.le.s32.totalorder %v9958_v23, 3 }
  0x53   : > { %8426 = vmatpush3.bf16.msra.mxu0 %v9559_v60  ;;  %v12107_v38 = vsel %vm10286_vm11, 4294967295, %v12106_v38  ;;  %vm10294_vm5 = vmpackc.low %vm10273_vm1, %vm449_vm8  ;;  %vm429_vm8 = vcmp.ge.s32.totalorder %v9967_v26, 0  ;;  %v9571_v60 = vld [vmem:[%s11975_s1 + $0xf8] sm:$0xff]   ;;  %v479_v26 = vadd.s32 1, %v9993_v40 }
  0x54   : > { %8427 = vmatprep.subr.bf16.mxu0 %v9560_v2  ;;  %v12109_v44 = vsel %vm10294_vm5, 4294967295, %v12108_v44  ;;  %vm10319_vm15 = vmand %vm427_vm10, %vm435_vm13  ;;  %vm431_vm13 = vcmp.ge.s32.totalorder %v9993_v40, 0 }
  0x57   : > { %8428 = vmatpush3.bf16.msra.mxu0 %v9560_v2  ;;  %v9586_v2 = vld [vmem:[%s11975_s1 + $0x170] sm:$0xff]  }
  0x58   : > { %8429 = vmatprep.subr.bf16.mxu0 %v9561_v3 }
  0x5b   : > { %8430 = vmatpush3.bf16.msra.mxu0 %v9561_v3  ;;  %v9572_v3 = vld [vmem:[%s11975_s1 + $0x100] sm:$0xff]  }
  0x5c   : > { %8431 = vmatprep.subr.bf16.mxu0 %v9562_v5 }
  0x5f   : > { %8432 = vmatpush3.bf16.msra.mxu0 %v9562_v5  ;;  %v12127_v5 = vmov 0 }
  0x60   : > { %8433 = vmatprep.subr.bf16.mxu0 %v9563_v22 }
  0x63   : > { %8434 = vmatpush3.bf16.msra.mxu0 %v9563_v22  ;;  %v9573_v22 = vld [vmem:[%s11975_s1 + $0x108] sm:$0xff]  }
  0x64   : > { %8443 = vmatprep.subr.bf16.mxu0 %v9564_v16 }
  0x66   : > { %8436 = vmatmul.mubr.msk.bf16.vlgmr.msra.gmra.mrb[0].mxu0 %vm10235_vm4, %v10239_v21  ;;  %vm12114_vm4 = vcmp.ge.s32.totalorder %v10099_v9, 0 }
  0x67   : > { %8444 = vmatpush3.bf16.msra.mxu0 %v9564_v16  ;;  %8439 = vmatprep.mubr.msk.bf16.mxu0 %vm10248_vm2, %v10252_v42  ;;  %vm438_vm2 = vcmp.le.s32.totalorder %v9972_v29, 3  ;;  %vm10335_vm10 = vmand %vm10319_vm15, %vm12114_vm4  ;;  %vm432_vm4 = vcmp.ge.s32.totalorder %v9996_v41, 0  ;;  %v1040_v16 = vld [vmem:[#allocation2 + $0x47] sm:$0xff] }
  0x68   : > { %8445 = vmatprep.subr.bf16.mxu0 %v9565_v48 }
  0x6b   : > { %8446 = vmatpush3.bf16.msra.mxu0 %v9565_v48  ;;  %v9575_v48 = vld [vmem:[%s11975_s1 + $0x118] sm:$0xff]  }
  0x6c   : > { %8447 = vmatprep.subr.bf16.mxu0 %v9566_v46 }
  0x6e   : > { %8440 = vmatmul.mubr.msk.bf16.gmra.mrb[4].mxu0 %vm10286_vm11, %v10290_v43  ;;  %vm430_vm11 = vcmp.ge.s32.totalorder %v9972_v29, 0 }
  0x6f   : > { %8448 = vmatpush3.bf16.msra.mxu0 %v9566_v46  ;;  %8459 = vmatprep.mubr.msk.bf16.mxu0 %vm10294_vm5, %v10132_v32  ;;  %v12110_v32 = vmov 0  ;;  %vm10325_vm5 = vmand %vm428_vm14, %vm436_vm3  ;;  %vm439_vm14 = vcmp.le.s32.totalorder %v9993_v40, 3  ;;  %v10408_v46 = vpack.c.bf16 %v1041_v17, %v1040_v16  ;;  %v473_v16 = vadd.s32 1, %v9902_v7  ;;  %v9592_v40 = vld [vmem:[%s11975_s1 + $0x1a0] sm:$0xff]  }
  0x70   : > { %8449 = vmatprep.subr.bf16.mxu0 %v9567_v6  ;;  %v12111_v32 = vsel %vm10319_vm15, 4294967295, %v12110_v32  ;;  %vm10344_vm3 = vmand %vm429_vm8, %vm437_vm0  ;;  %vm12123_vm0 = vcmp.ge.s32.totalorder %v10106_v12, 0  ;;  %vm12126_vm8 = vcmp.ge.s32.totalorder %v10125_v28, 0  ;;  %v474_v7 = vadd.s32 1, %v9907_v8 }
  0x71   : > { %vm10348_vm12 = vmand %vm430_vm11, %vm438_vm2  ;;  %v12141_v17 = vmov 0  ;;  %v12143_v8 = vmov 0 }
  0x72   : > { %vm10354_vm15 = vmand %vm431_vm13, %vm439_vm14 }
  0x73   : > { %8450 = vmatpush3.bf16.msra.mxu0 %v9567_v6  ;;  %vm453_vm2 = vmand %vm10344_vm3, %vm12123_vm0  ;;  %v9577_v6 = vld [vmem:[%s11975_s1 + $0x128] sm:$0xff]   ;;  %vm12135_vm0 = vnez %v12111_v32  ;;  %v9588_v32 = vld [vmem:[%s11975_s1 + $0x180] sm:$0xff]  }
  0x74   : > { %8451 = vmatprep.subr.bf16.mxu0 %v9568_v57  ;;  %vm10365_vm11 = vmand %vm432_vm4, %vm440_vm7 }
  0x75   : > { %vm455_vm13 = vmand %vm10354_vm15, %vm12126_vm8 }
  0x76   : > { %vm10377_vm14 = vmpackc.low %vm10325_vm5, %vm10335_vm10 }
  0x77   : > { %8452 = vmatpush3.bf16.msra.mxu0 %v9568_v57  ;;  %v12128_v5 = vsel %vm10377_vm14, 4294967295, %v12127_v5  ;;  %vm10386_vm7 = vmpackc.low %vm10348_vm12, %vm453_vm2  ;;  %v9578_v57 = vld [vmem:[%s11975_s1 + $0x130] sm:$0xff]  }
  0x78   : > { %8453 = vmatprep.subr.bf16.mxu0 %v9569_v47  ;;  %v12130_v37 = vsel %vm10386_vm7, 4294967295, %v12129_v37  ;;  %vm10392_vm4 = vmpackc.low %vm10365_vm11, %vm455_vm13  ;;  %vm12140_vm13 = vcmp.le.s32.totalorder %v10134_v33, 15 }
  0x79   : > { %v12132_v11 = vsel %vm10392_vm4, 4294967295, %v12131_v11  ;;  %vm10414_vm10 = vmpackc.low %vm10273_vm1, %vm10260_vm9 }
  0x7a   : > { %v12134_v30 = vsel %vm10414_vm10, 4294967295, %v12133_v30  ;;  %vm10451_vm2 = vmpackc.low %vm10325_vm5, %vm12135_vm0 }
  0x7b   : > { %8454 = vmatpush3.bf16.msra.mxu0 %v9569_v47  ;;  %v9836_v47 = vld [vmem:[#allocation2 + $0x8] sm:$0xff]  ;;  %vm10459_vm8 = vmpackc.low %vm10348_vm12, %vm10344_vm3 }
  0x7c   : > { %8455 = vmatprep.subr.bf16.mxu0 %v9570_v49 }
  0x7f   : > { %8456 = vmatpush3.bf16.msra.mxu0 %v9570_v49  ;;  %v10433_v49 = vpack.c.bf16 %v9836_v47, %v9836_v47  ;;  %v9607_v47 = vld [vmem:[%s11975_s1 + $0x218] sm:$0xff]  }
  0x80   : > { %8457 = vmatprep.subr.bf16.mxu0 %v9571_v60 }
  0x81   : > { %8603 = vmatprep.mubr.msk.bf16.mxu1 %vm9945_vm6, %v10433_v49 }
  0x83   : > { %8458 = vmatpush3.bf16.msra.mxu0 %v9571_v60  ;;  %v9581_v60 = vld [vmem:[%s11975_s1 + $0x148] sm:$0xff]  }
  0x84   : > { %8467 = vmatprep.subr.bf16.mxu0 %v9572_v3 }
  0x86   : > { %8460 = vmatmul.mubr.msk.bf16.vlgmr.msra.gmra.mrb[0].mxu0 %vm10377_vm14, %v10146_v36 }
  0x87   : > { %8468 = vmatpush3.bf16.msra.mxu0 %v9572_v3  ;;  %8463 = vmatprep.mubr.msk.bf16.mxu0 %vm10386_vm7, %v10176_v56  ;;  %v12136_v3 = vmov 0 }
  0x88   : > { %8469 = vmatprep.subr.bf16.mxu0 %v9573_v22  ;;  %v12137_v3 = vsel %vm10451_vm2, 4294967295, %v12136_v3 }
  0x8b   : > { %8470 = vmatpush3.bf16.msra.mxu0 %v9573_v22  ;;  %v12138_v22 = vmov 0 }
  0x8c   : > { %8471 = vmatprep.subr.bf16.mxu0 %v9574_v45  ;;  %v12139_v22 = vsel %vm10459_vm8, 4294967295, %v12138_v22 }
  0x8e   : > { %8464 = vmatmul.mubr.msk.bf16.gmra.mrb[4].mxu0 %vm10392_vm4, %v10408_v46 }
  0x8f   : > { %8472 = vmatpush3.bf16.msra.mxu0 %v9574_v45  ;;  %8483 = vmatprep.mubr.msk.bf16.mxu0 %vm10414_vm10, %v10020_v50  ;;  %v9579_v50 = vld [vmem:[%s11975_s1 + $0x138] sm:$0xff]   ;;  %vm466_vm10 = vmand %vm10273_vm1, %vm12140_vm13  ;;  %v9582_v45 = vld [vmem:[%s11975_s1 + $0x150] sm:$0xff]   ;;  %vm489_vm13 = vcmp.le.s32.totalorder %v473_v16, 3 }
  0x90   : > { %8473 = vmatprep.subr.bf16.mxu0 %v9575_v48  ;;  %vm10494_vm1 = vmpackc.low %vm466_vm10, %vm10260_vm9  ;;  %vm12145_vm9 = vcmp.ge.s32.totalorder %v473_v16, 0  ;;  %v1562_v16 = vld [vmem:[#allocation2 + $0x57] sm:$0xff] }
  0x91   : > { %v12144_v8 = vsel %vm10494_vm1, 4294967295, %v12143_v8  ;;  %vm10521_vm10 = vmand %vm12145_vm9, %vm489_vm13  ;;  %vm12151_vm13 = vcmp.le.s32.totalorder %v10213_v10, 15 }
  0x92   : > { %vm10544_vm9 = vmand %vm10348_vm12, %vm12151_vm13  ;;  %vm12154_vm12 = vcmp.le.s32.totalorder %v10223_v15, 15  ;;  %vm12158_vm13 = vcmp.ge.s32.totalorder %v474_v7, 0 }
  0x93   : > { %8474 = vmatpush3.bf16.msra.mxu0 %v9575_v48  ;;  %v10487_v48 = vadd.s32 1, %v9958_v23  ;;  %v9584_v23 = vld [vmem:[%s11975_s1 + $0x160] sm:$0xff]  }
  0x94   : > { %8475 = vmatprep.subr.bf16.mxu0 %v9576_v59 }
  0x97   : > { %8476 = vmatpush3.bf16.msra.mxu0 %v9576_v59  ;;  %v10499_v59 = vadd.s32 1, %v9961_v24  ;;  %v9612_v24 = vld [vmem:[%s11975_s1 + $0x280] sm:$0xff]  }
  0x98   : > { %8477 = vmatprep.subr.bf16.mxu0 %v9577_v6  ;;  %8587 = vmatprep.subr.bf16.mxu1 %v9612_v24 }
  0x99   : > { %8588 = vmatpush3.bf16.msra.mxu1 %v9612_v24  ;;  %v1389_v24 = vld [vmem:[#allocation2 + $0x51] sm:$0xff] }
  0x9b   : > { %8478 = vmatpush3.bf16.msra.mxu0 %v9577_v6  ;;  %v10509_v6 = vadd.s32 1, %v9972_v29  ;;  %v10527_v29 = vadd.s32 1, %v9996_v41  ;;  %v9585_v41 = vld [vmem:[%s11975_s1 + $0x168] sm:$0xff]  }
  0x9c   : > { %8479 = vmatprep.subr.bf16.mxu0 %v9578_v57 }
  0x9f   : > { %8480 = vmatpush3.bf16.msra.mxu0 %v9578_v57  ;;  %v9613_v57 = vld [vmem:[%s11975_s1 + $0x288] sm:$0xff]  }
  0xa0   : > { %8481 = vmatprep.subr.bf16.mxu0 %v9579_v50  ;;  %8589 = vmatprep.subr.bf16.mxu1 %v9613_v57 }
  0xa1   : > { %8590 = vmatpush3.bf16.msra.mxu1 %v9613_v57  ;;  %v9590_v57 = vld [vmem:[%s11975_s1 + $0x190] sm:$0xff]  }
  0xa3   : > { %8482 = vmatpush3.bf16.msra.mxu0 %v9579_v50  ;;  %v9591_v50 = vld [vmem:[%s11975_s1 + $0x198] sm:$0xff]  }
  0xa4   : > { %8491 = vmatprep.subr.bf16.mxu0 %v9580_v58 }
  0xa6   : > { %8484 = vmatmul.mubr.msk.bf16.vlgmr.msra.gmra.mrb[0].mxu0 %vm10451_vm2, %v10035_v54  ;;  %vm10482_vm2 = vmpackc.low %vm10365_vm11, %vm10354_vm15 }
  0xa7   : > { %8492 = vmatpush3.bf16.msra.mxu0 %v9580_v58  ;;  %8487 = vmatprep.mubr.msk.bf16.mxu0 %vm10459_vm8, %v10067_v61  ;;  %v12142_v17 = vsel %vm10482_vm2, 4294967295, %v12141_v17  ;;  %vm12148_vm8 = vcmp.le.s32.totalorder %v10197_v18, 15  ;;  %v12202_v58 = vmov 0 }
  0xa8   : > { %8493 = vmatprep.subr.bf16.mxu0 %v9581_v60  ;;  %vm10533_vm4 = vmand %vm10325_vm5, %vm12148_vm8  ;;  %vm12157_vm8 = vcmp.le.s32.totalorder %v474_v7, 3  ;;  %v9589_v7 = vld [vmem:[%s11975_s1 + $0x188] sm:$0xff]  }
  0xa9   : > { %vm10561_vm5 = vmand %vm10365_vm11, %vm12154_vm12  ;;  %vm491_vm12 = vcmp.le.s32.totalorder %v10487_v48, 3 }
  0xaa   : > { %vm10596_vm11 = vmpackc.low %vm10544_vm9, %vm10344_vm3 }
  0xab   : > { %8494 = vmatpush3.bf16.msra.mxu0 %v9581_v60  ;;  %vm10610_vm3 = vmpackc.low %vm10561_vm5, %vm10354_vm15  ;;  %vm12172_vm15 = vcmp.ge.s32.totalorder %v10487_v48, 0  ;;  %v9604_v60 = vld [vmem:[%s11975_s1 + $0x200] sm:$0xff]  }
  0xac   : > { %8495 = vmatprep.subr.bf16.mxu0 %v9582_v45  ;;  %v12169_v0 = vsel %vm10610_vm3, 4294967295, %v12168_v0  ;;  %vm10628_vm5 = vmand %vm12172_vm15, %vm491_vm12  ;;  %vm12178_vm15 = vcmp.ge.s32.totalorder %v479_v26, 0  ;;  %vm12181_vm12 = vcmp.le.s32.totalorder %v10499_v59, 3  ;;  %v7913_v48 = vld [vmem:[%s11976_s2 + $0x3] ss:$0 sm:$0xff] }
  0xae   : > { %8488 = vmatmul.mubr.msk.bf16.gmra.mrb[4].mxu0 %vm10482_vm2, %v10136_v34  ;;  %vm12161_vm2 = vcmp.ge.s32.totalorder %v10025_v52, 0  ;;  %v12164_v52 = vmov 0 }
  0xaf   : > { %8496 = vmatpush3.bf16.msra.mxu0 %v9582_v45  ;;  %8507 = vmatprep.mubr.msk.bf16.mxu0 %vm10494_vm1, %v10239_v21  ;;  %v9614_v21 = vld [vmem:[%s11975_s1 + $0x290] sm:$0xff]   ;;  %vm10567_vm1 = vmand %vm12158_vm13, %vm12157_vm8  ;;  %vm493_vm13 = vcmp.le.s32.totalorder %v477_v27, 3  ;;  %v12166_v45 = vmov 0 }
  0xb0   : > { %8497 = vmatprep.subr.bf16.mxu0 %v9583_v31  ;;  %8591 = vmatprep.subr.bf16.mxu1 %v9614_v21  ;;  %vm10575_vm6 = vmand %vm10521_vm10, %vm12161_vm2  ;;  %vm485_vm2 = vcmp.ge.s32.totalorder %v477_v27, 0  ;;  %v12167_v45 = vsel %vm10596_vm11, 4294967295, %v12166_v45  ;;  %v9619_v27 = vld [vmem:[%s11975_s1 + $0x2b8] sm:$0xff]  }
  0xb1   : > { %8592 = vmatpush3.bf16.msra.mxu1 %v9614_v21  ;;  %vm10588_vm8 = vmpackc.low %vm10533_vm4, %vm12135_vm0 }
  0xb2   : > { %8593 = vmatprep.subr.bf16.mxu1 %v9615_v51  ;;  %v12165_v52 = vsel %vm10588_vm8, 4294967295, %v12164_v52  ;;  %vm10618_vm9 = vmpackc.low %vm10567_vm1, %vm10575_vm6 }
  0xb3   : > { %8498 = vmatpush3.bf16.msra.mxu0 %v9583_v31  ;;  %v12170_v31 = vmov 0  ;;  %vm10642_vm0 = vmand %vm485_vm2, %vm493_vm13  ;;  %vm12177_vm13 = vcmp.le.s32.totalorder %v479_v26, 3  ;;  %vm12185_vm2 = vcmp.ge.s32.totalorder %v10099_v9, 0  ;;  %v9593_v9 = vld [vmem:[%s11975_s1 + $0x1a8] sm:$0xff]   ;;  %v9620_v26 = vld [vmem:[%s11975_s1 + $0x240] sm:$0xff]  }
  0xb4   : > { %8499 = vmatprep.subr.bf16.mxu0 %v9584_v23  ;;  %v12171_v31 = vsel %vm10618_vm9, 4294967295, %v12170_v31  ;;  %vm10658_vm6 = vmand %vm12178_vm15, %vm12177_vm13  ;;  %vm12182_vm13 = vcmp.ge.s32.totalorder %v10499_v59, 0  ;;  %v9594_v59 = vld [vmem:[%s11975_s1 + $0x1b0] sm:$0xff]  }
  0xb5   : > { %8594 = vmatpush3.bf16.msra.mxu1 %v9615_v51  ;;  %vm10675_vm15 = vmand %vm12182_vm13, %vm12181_vm12  ;;  %v9597_v51 = vld [vmem:[%s11975_s1 + $0x1c8] sm:$0xff]  }
  0xb6   : > { %vm507_vm4 = vmand %vm10628_vm5, %vm12185_vm2 }
  0xb7   : > { %8500 = vmatpush3.bf16.msra.mxu0 %v9584_v23  ;;  %v1388_v23 = vld [vmem:[#allocation2 + $0x49] sm:$0xff]  ;;  %vm10718_vm7 = vmpackc.low %vm10675_vm15, %vm507_vm4 }
  0xb8   : > { %8501 = vmatprep.subr.bf16.mxu0 %v9585_v41  ;;  %v10652_v21 = vpack.c.bf16 %v1389_v24, %v1388_v23  ;;  %v9602_v24 = vld [vmem:[%s11975_s1 + $0x1f0] sm:$0xff]  }
  0xbb   : > { %8502 = vmatpush3.bf16.msra.mxu0 %v9585_v41  ;;  %v12196_v41 = vmov 0 }
  0xbc   : > { %8503 = vmatprep.subr.bf16.mxu0 %v9586_v2  ;;  %v12197_v41 = vsel %vm10718_vm7, 4294967295, %v12196_v41 }
  0xbf   : > { %8504 = vmatpush3.bf16.msra.mxu0 %v9586_v2  ;;  %v12200_v2 = vmov 0 }
  0xc0   : > { %8505 = vmatprep.subr.bf16.mxu0 %v9587_v4 }
  0xc3   : > { %8506 = vmatpush3.bf16.msra.mxu0 %v9587_v4  ;;  %v1563_v4 = vld [vmem:[#allocation2 + $0x5f] sm:$0xff] }
  0xc4   : > { %8515 = vmatprep.subr.bf16.mxu0 %v9588_v32  ;;  %v6861_v23 = vpack.c.bf16 %v1563_v4, %v1562_v16 }
  0xc6   : > { %8508 = vmatmul.mubr.msk.bf16.vlgmr.msra.gmra.mrb[0].mxu0 %vm10588_vm8, %v10252_v42 }
  0xc7   : > { %8516 = vmatpush3.bf16.msra.mxu0 %v9588_v32  ;;  %8511 = vmatprep.mubr.msk.bf16.mxu0 %vm10596_vm11, %v10290_v43  ;;  %vm12187_vm11 = vcmp.ge.s32.totalorder %v10509_v6, 0  ;;  %v9598_v32 = vld [vmem:[%s11975_s1 + $0x1d0] sm:$0xff]  }
  0xc8   : > { %8517 = vmatprep.subr.bf16.mxu0 %v9589_v7 }
  0xcb   : > { %8518 = vmatpush3.bf16.msra.mxu0 %v9589_v7  ;;  %v9599_v7 = vld [vmem:[%s11975_s1 + $0x1d8] sm:$0xff]  }
  0xcc   : > { %8519 = vmatprep.subr.bf16.mxu0 %v9590_v57 }
  0xce   : > { %8512 = vmatmul.mubr.msk.bf16.gmra.mrb[4].mxu0 %vm10610_vm3, %v10652_v21  ;;  %vm12186_vm3 = vcmp.le.s32.totalorder %v10509_v6, 3  ;;  %v9595_v6 = vld [vmem:[%s11975_s1 + $0x1b8] sm:$0xff]  }
  0xcf   : > { %8520 = vmatpush3.bf16.msra.mxu0 %v9590_v57  ;;  %8531 = vmatprep.mubr.msk.bf16.mxu0 %vm10618_vm9, %v10146_v36  ;;  %vm10687_vm8 = vmand %vm12187_vm11, %vm12186_vm3  ;;  %vm12190_vm9 = vcmp.ge.s32.totalorder %v10106_v12, 0  ;;  %vm12191_vm11 = vcmp.le.s32.totalorder %v10527_v29, 3  ;;  %vm12192_vm3 = vcmp.ge.s32.totalorder %v10527_v29, 0  ;;  %v12198_v29 = vmov 0  ;;  %v6935_v36 = vld [vmem:[%s11976_s2] ss:$0 sm:$0xff] }
  0xd0   : > { %8521 = vmatprep.subr.bf16.mxu0 %v9591_v50  ;;  %vm509_vm12 = vmand %vm10642_vm0, %vm12190_vm9  ;;  %vm12195_vm9 = vcmp.ge.s32.totalorder %v10125_v28, 0  ;;  %v9596_v28 = vld [vmem:[%s11975_s1 + $0x1c0] sm:$0xff]   ;;  %v12205_v57 = vmov 0 }
  0xd1   : > { %vm10705_vm2 = vmand %vm12192_vm3, %vm12191_vm11  ;;  %vm12204_vm3 = vcmp.le.s32.totalorder %v10134_v33, 15  ;;  %v12207_v33 = vmov 0 }
  0xd2   : > { %vm511_vm13 = vmand %vm10658_vm6, %vm12195_vm9 }
  0xd3   : > { %8522 = vmatpush3.bf16.msra.mxu0 %v9591_v50  ;;  %vm10724_vm11 = vmpackc.low %vm10687_vm8, %vm509_vm12  ;;  %v9605_v50 = vld [vmem:[%s11975_s1 + $0x208] sm:$0xff]  }
  0xd4   : > { %8523 = vmatprep.subr.bf16.mxu0 %v9592_v40  ;;  %v12199_v29 = vsel %vm10724_vm11, 4294967295, %v12198_v29  ;;  %vm10736_vm4 = vmpackc.low %vm10705_vm2, %vm511_vm13 }
  0xd5   : > { %v12201_v2 = vsel %vm10736_vm4, 4294967295, %v12200_v2  ;;  %vm10744_vm12 = vmpackc.low %vm10567_vm1, %vm10521_vm10 }
  0xd6   : > { %v12203_v58 = vsel %vm10744_vm12, 4294967295, %v12202_v58  ;;  %vm522_vm9 = vmand %vm10567_vm1, %vm12204_vm3 }
  0xd7   : > { %8524 = vmatpush3.bf16.msra.mxu0 %v9592_v40  ;;  %vm10785_vm13 = vmpackc.low %vm10675_vm15, %vm10628_vm5  ;;  %v12209_v40 = vmov 0 }
  0xd8   : > { %8525 = vmatprep.subr.bf16.mxu0 %v9593_v9  ;;  %v12206_v57 = vsel %vm10785_vm13, 4294967295, %v12205_v57  ;;  %vm10807_vm1 = vmpackc.low %vm10705_vm2, %vm10658_vm6 }
  0xd9   : > { %v12210_v40 = vsel %vm10807_vm1, 4294967295, %v12209_v40  ;;  %vm10813_vm3 = vmpackc.low %vm522_vm9, %vm10521_vm10  ;;  %vm12213_vm10 = vcmp.le.s32.totalorder %v10197_v18, 15  ;;  %v1910_v18 = vld [vmem:[#allocation2 + $0x59] sm:$0xff] }
  0xda   : > { %vm524_vm9 = vmand %vm10675_vm15, %vm12213_vm10  ;;  %vm12223_vm15 = vnez %v12078_v55  ;;  %vm12227_vm10 = vnez %v12092_v39 }
  0xdb   : > { %8526 = vmatpush3.bf16.msra.mxu0 %v9593_v9  ;;  %v12211_v9 = vmov 0 }
  0xdc   : > { %8527 = vmatprep.subr.bf16.mxu0 %v9594_v59  ;;  %v12212_v9 = vsel %vm10813_vm3, 4294967295, %v12211_v9 }
  0xdf   : > { %8528 = vmatpush3.bf16.msra.mxu0 %v9594_v59  ;;  %v9606_v59 = vld [vmem:[%s11975_s1 + $0x210] sm:$0xff]  }
  0xe0   : > { %8529 = vmatprep.subr.bf16.mxu0 %v9595_v6 }
  0xe3   : > { %8530 = vmatpush3.bf16.msra.mxu0 %v9595_v6  ;;  %v9834_v6 = vld [vmem:[%s11977_s3 + $0x30] sm:$0xff]  }
  0xe4   : > { %8539 = vmatprep.subr.bf16.mxu0 %v9596_v28 }
  0xe6   : > { %8532 = vmatmul.mubr.msk.bf16.vlgmr.msra.gmra.mrb[0].mxu0 %vm10718_vm7, %v10176_v56  ;;  %v9600_v56 = vld [vmem:[%s11975_s1 + $0x1e0] sm:$0xff]  }
  0xe7   : > { %8540 = vmatpush3.bf16.msra.mxu0 %v9596_v28  ;;  %8535 = vmatprep.mubr.msk.bf16.mxu0 %vm10724_vm11, %v10408_v46  ;;  %v9601_v46 = vld [vmem:[%s11975_s1 + $0x1e8] sm:$0xff]   ;;  %v9835_v28 = vld [vmem:[%s11977_s3 + $0x38] sm:$0xff]  }
  0xe8   : > { %8541 = vmatprep.subr.bf16.mxu0 %v9597_v51 }
  0xeb   : > { %8542 = vmatpush3.bf16.msra.mxu0 %v9597_v51 }
  0xec   : > { %8543 = vmatprep.subr.bf16.mxu0 %v9598_v32 }
  0xee   : > { %8536 = vmatmul.mubr.msk.bf16.gmra.mrb[4].mxu0 %vm10736_vm4, %v6861_v23 }
  0xef   : > { %8544 = vmatpush3.bf16.msra.mxu0 %v9598_v32  ;;  %8555 = vmatprep.mubr.msk.bf16.mxu0 %vm10744_vm12, %v10035_v54  ;;  %v9603_v54 = vld [vmem:[%s11975_s1 + $0x1f8] sm:$0xff]   ;;  %vm10793_vm12 = vmpackc.low %vm10687_vm8, %vm10642_vm0 }
  0xf0   : > { %8545 = vmatprep.subr.bf16.mxu0 %v9599_v7  ;;  %v12208_v33 = vsel %vm10793_vm12, 4294967295, %v12207_v33 }
  0xf3   : > { %8546 = vmatpush3.bf16.msra.mxu0 %v9599_v7 }
  0xf4   : > { %8547 = vmatprep.subr.bf16.mxu0 %v9600_v56 }
  0xf7   : > { %8548 = vmatpush3.bf16.msra.mxu0 %v9600_v56 }
  0xf8   : > { %8549 = vmatprep.subr.bf16.mxu0 %v9601_v46 }
  0xfb   : > { %8550 = vmatpush3.bf16.msra.mxu0 %v9601_v46 }
  0xfc   : > { %8551 = vmatprep.subr.bf16.mxu0 %v9602_v24 }
  0xff   : > { %8552 = vmatpush3.bf16.msra.mxu0 %v9602_v24 }
 0x100   : > { %8553 = vmatprep.subr.bf16.mxu0 %v9603_v54 }
 0x103   : > { %8554 = vmatpush3.bf16.msra.mxu0 %v9603_v54 }
 0x104   : > { %8563 = vmatprep.subr.bf16.mxu0 %v9604_v60 }
 0x106   : > { %8556 = vmatmul.mubr.msk.bf16.vlgmr.msra.gmra.mrb[0].mxu0 %vm10785_vm13, %v10067_v61  ;;  %v9608_v61 = vld [vmem:[%s11975_s1 + $0x220] sm:$0xff]  }
 0x107   : > { %8564 = vmatpush3.bf16.msra.mxu0 %v9604_v60  ;;  %8559 = vmatprep.mubr.msk.bf16.mxu0 %vm10793_vm12, %v10136_v34  ;;  %v9609_v34 = vld [vmem:[%s11975_s1 + $0x228] sm:$0xff]   ;;  %vm10857_vm12 = vmpackc.low %vm524_vm9, %vm10628_vm5  ;;  %vm12228_vm9 = vnez %v12094_v63 }
 0x108   : > { %8565 = vmatprep.subr.bf16.mxu0 %v9605_v50 }
 0x10b   : > { %8566 = vmatpush3.bf16.msra.mxu0 %v9605_v50 }
 0x10c   : > { %8567 = vmatprep.subr.bf16.mxu0 %v9606_v59 }
 0x10e   : > { %8560 = vmatmul.mubr.msk.bf16.gmra.mrb[4].mxu0 %vm10807_vm1, %v10433_v49  ;;  %v9610_v49 = vld [vmem:[%s11975_s1 + $0x230] sm:$0xff]  }
 0x10f   : > { %8568 = vmatpush3.bf16.msra.mxu0 %v9606_v59  ;;  %8579 = vmatprep.mubr.msk.bf16.mxu0 %vm10813_vm3, %v10252_v42  ;;  %v9611_v42 = vld [vmem:[%s11975_s1 + $0x238] sm:$0xff]   ;;  %vm12214_vm3 = vcmp.le.s32.totalorder %v10213_v10, 15  ;;  %v1911_v10 = vld [vmem:[#allocation2 + $0x61] sm:$0xff] }
 0x110   : > { %8569 = vmatprep.subr.bf16.mxu0 %v9607_v47  ;;  %vm526_vm1 = vmand %vm10687_vm8, %vm12214_vm3  ;;  %vm12219_vm8 = vcmp.le.s32.totalorder %v10223_v15, 15  ;;  %v6933_v13 = vpack.c.bf16 %v1911_v10, %v1910_v18  ;;  %v9617_v15 = vld [vmem:[%s11975_s1 + $0x2a8] sm:$0xff]   ;;  %vm12226_vm3 = vnez %v12090_v35 }
 0x111   : > { %vm10863_vm13 = vmpackc.low %vm526_vm1, %vm10642_vm0  ;;  %vm12225_vm1 = vnez %v12086_v1  ;;  %v9771_v1 = vld [vmem:[%s11975_s1 + $0x6f8] sm:$0xff]  }
 0x112   : > { %vm528_vm5 = vmand %vm10705_vm2, %vm12219_vm8  ;;  %vm12224_vm2 = vnez %v12084_v62  ;;  %vm12229_vm8 = vnez %v12096_v14  ;;  %v9770_v62 = vld [vmem:[%s11975_s1 + $0x6f0] sm:$0xff]  }
 0x113   : > { %8570 = vmatpush3.bf16.msra.mxu0 %v9607_v47  ;;  %vm10879_vm0 = vmpackc.low %vm528_vm5, %vm10658_vm6  ;;  %vm12222_vm6 = vnez %v12076_v53  ;;  %vm12230_vm5 = vnez %v12098_v20 }
 0x114   : > { %8571 = vmatprep.subr.bf16.mxu0 %v9608_v61 }
 0x117   : > { %8572 = vmatpush3.bf16.msra.mxu0 %v9608_v61  ;;  %v9621_v61 = vld [vmem:[%s11975_s1 + $0x248] sm:$0xff]  }
 0x118   : > { %8573 = vmatprep.subr.bf16.mxu0 %v9609_v34 }
 0x11b   : > { %8574 = vmatpush3.bf16.msra.mxu0 %v9609_v34 }
 0x11c   : > { %8575 = vmatprep.subr.bf16.mxu0 %v9610_v49 }
 0x11f   : > { %8576 = vmatpush3.bf16.msra.mxu0 %v9610_v49 }
 0x120   : > { %8577 = vmatprep.subr.bf16.mxu0 %v9611_v42 }
 0x123   : > { %8578 = vmatpush3.bf16.msra.mxu0 %v9611_v42 }
 0x126   : > { %8580 = vmatmul.mubr.msk.bf16.vlgmr.msra.gmra.mrb[0].mxu0 %vm10857_vm12, %v10290_v43  ;;  %v9616_v43 = vld [vmem:[%s11975_s1 + $0x2a0] sm:$0xff]  }
 0x127   : > { %8583 = vmatprep.mubr.msk.bf16.mxu0 %vm10863_vm13, %v10652_v21  ;;  %8595 = vmatprep.subr.bf16.mxu1 %v9616_v43  ;;  %v9618_v21 = vld [vmem:[%s11975_s1 + $0x2b0] sm:$0xff]  }
 0x128   : > { %8596 = vmatpush3.bf16.msra.mxu1 %v9616_v43 }
 0x129   : > { %8597 = vmatprep.subr.bf16.mxu1 %v9617_v15 }
 0x12c   : > { %8598 = vmatpush3.bf16.msra.mxu1 %v9617_v15 }
 0x12d   : > { %8599 = vmatprep.subr.bf16.mxu1 %v9618_v21 }
 0x12e   : > { %8584 = vmatmul.mubr.msk.bf16.gmra.mrb[4].mxu0 %vm10879_vm0, %v6933_v13 }
 0x130   : > { %8600 = vmatpush3.bf16.msra.mxu1 %v9618_v21 }
 0x131   : > { %8601 = vmatprep.subr.bf16.mxu1 %v9619_v27 }
 0x134   : > { %8602 = vmatpush3.bf16.msra.mxu1 %v9619_v27  ;;  %v9622_v27 = vld [vmem:[%s11975_s1 + $0x250] sm:$0xff]  }
 0x135   : > { %8611 = vmatprep.subr.bf16.mxu1 %v9620_v26 }
 0x1f9   : > { %v8581_v12 = vpop.f32.mrb[0].mxu0 }
 0x1fa   : > { %v2087_v51 = vadd.f32 %v8581_v12, %v6935_v36  ;;  %v2039_v16 = vpop.f32.mrb[1].mxu0  ;;  %v2109_v12 = vld [vmem:[#allocation2 + $0x7] sm:$0xff] }
 0x1fb   : > { %v2085_v4 = vadd.f32 %v6935_v36, %v2039_v16  ;;  %v8582_v32 = vpop.f32.mrb[2].mxu0 }
 0x1fc   : > { %v2095_v7 = vmax.f32 %v2087_v51, 0.0  ;;  %v2088_v23 = vadd.f32 %v8582_v32, %v6935_v36  ;;  %v2042_v56 = vpop.f32.mrb[3].mxu0  ;;  %v2110_v51 = vld [vmem:[#allocation2 + $0xf] sm:$0xff] }
 0x1fd   : > { %v2093_v46 = vmax.f32 %v2085_v4, 0.0  ;;  %v2086_v24 = vadd.f32 %v6935_v36, %v2042_v56  ;;  %v9625_v56 = vld [vmem:[%s11975_s1 + $0x268] sm:$0xff]  }
 0x1fe   : > { %2103 = vst [vmem:[#allocation2 + $0x28] sm:$0xff] %v2095_v7  ;;  %v2096_v54 = vmax.f32 %v2088_v23, 0.0  ;;  %v9624_v23 = vld [vmem:[%s11975_s1 + $0x260] sm:$0xff]  }
 0x1ff   : > { %2101 = vst [vmem:[#allocation2 + $0x18] sm:$0xff] %v2093_v46  ;;  %v2094_v60 = vmax.f32 %v2086_v24, 0.0  ;;  %v9627_v24 = vld [vmem:[%s11975_s1 + $0x278] sm:$0xff]  }
 0x200   : > { %2104 = vst [vmem:[#allocation2 + $0x30] sm:$0xff] %v2096_v54  ;;  %v10903_v50 = vpack.c.bf16 %v2096_v54, %v2095_v7  ;;  %v9628_v54 = vld [vmem:[%s11975_s1 + $0x2c0] sm:$0xff]  }
 0x201   : > { %2102 = vst [vmem:[#allocation2 + $0x20] sm:$0xff] %v2094_v60  ;;  %v8585_v59 = vpop.f32.mrb[4].mxu0  ;;  %v10905_v47 = vpack.c.bf16 %v2094_v60, %v2093_v46  ;;  %v9626_v46 = vld [vmem:[%s11975_s1 + $0x270] sm:$0xff]  }
 0x202   : > { %v2091_v34 = vadd.f32 %v8585_v59, %v6935_v36  ;;  %v2055_v49 = vpop.f32.mrb[5].mxu0 }
 0x203   : > { %v2089_v42 = vadd.f32 %v6935_v36, %v2055_v49  ;;  %v8586_v18 = vpop.f32.mrb[6].mxu0  ;;  %8604 = vmatmul.mubr.msk.bf16.vlgmr.msra.gmra.mrb[0].mxu1 %vm12222_vm6, %v10905_v47 }
 0x204   : > { %v2099_v10 = vmax.f32 %v2091_v34, 0.0  ;;  %v2092_v13 = vadd.f32 %v8586_v18, %v6935_v36  ;;  %v2058_v43 = vpop.f32.mrb[7].mxu0  ;;  %8612 = vmatpush3.bf16.msra.mxu1 %v9620_v26  ;;  %8607 = vmatprep.mubr.msk.bf16.mxu1 %vm12223_vm15, %v10903_v50  ;;  %v6997_v26 = vpack.c.bf16 %v2110_v51, %v2109_v12  ;;  %v9631_v12 = vld [vmem:[%s11975_s1 + $0x2d8] sm:$0xff]  }
 0x205   : > { %v2097_v15 = vmax.f32 %v2089_v42, 0.0  ;;  %v2090_v21 = vadd.f32 %v6935_v36, %v2058_v43  ;;  %8613 = vmatprep.subr.bf16.mxu1 %v9621_v61  ;;  %v9623_v36 = vld [vmem:[%s11975_s1 + $0x258] sm:$0xff]   ;;  %v9629_v42 = vld [vmem:[%s11975_s1 + $0x2c8] sm:$0xff]  }
 0x206   : > { %2107 = vst [vmem:[#allocation2 + $0x48] sm:$0xff] %v2099_v10  ;;  %v2100_v16 = vmax.f32 %v2092_v13, 0.0  ;;  %v2111_v34 = vld [vmem:[#allocation2 + $0x17] sm:$0xff]  ;;  %v2409_v43 = vld [vmem:[#allocation2 + $0x9] sm:$0xff] }
 0x207   : > { %2105 = vst [vmem:[#allocation2 + $0x38] sm:$0xff] %v2097_v15  ;;  %v2098_v4 = vmax.f32 %v2090_v21, 0.0 }
 0x208   : > { %2108 = vst [vmem:[#allocation2 + $0x50] sm:$0xff] %v2100_v16  ;;  %8614 = vmatpush3.bf16.msra.mxu1 %v9621_v61  ;;  %v10919_v32 = vpack.c.bf16 %v2100_v16, %v2099_v10  ;;  %v2112_v60 = vld [vmem:[#allocation2 + $0x1f] sm:$0xff]  ;;  %v2113_v59 = vld [vmem:[#allocation2 + $0x27] sm:$0xff]  ;;  %v2114_v61 = vld [vmem:[#allocation2 + $0x2f] sm:$0xff] }
 0x209   : > { %2106 = vst [vmem:[#allocation2 + $0x40] sm:$0xff] %v2098_v4  ;;  %8615 = vmatprep.subr.bf16.mxu1 %v9622_v27  ;;  %v10921_v7 = vpack.c.bf16 %v2098_v4, %v2097_v15  ;;  %v7000_v49 = vpack.c.bf16 %v2112_v60, %v2111_v34  ;;  %v10949_v18 = vpack.c.bf16 %v2114_v61, %v2113_v59  ;;  %v9630_v10 = vld [vmem:[%s11975_s1 + $0x2d0] sm:$0xff]   ;;  %v9632_v16 = vld [vmem:[%s11975_s1 + $0x2e0] sm:$0xff]   ;;  %v9633_v4 = vld [vmem:[%s11975_s1 + $0x2e8] sm:$0xff]  }
 0x20a   : > { %v2410_v15 = vld [vmem:[#allocation2 + $0x11] sm:$0xff]  ;;  %v2413_v60 = vld [vmem:[#allocation2 + $0x29] sm:$0xff] }
 0x20b   : > { %8608 = vmatmul.mubr.msk.bf16.gmra.mrb[4].mxu1 %vm12224_vm2, %v10921_v7  ;;  %v7033_v51 = vpack.c.bf16 %v2410_v15, %v2409_v43  ;;  %v9637_v59 = vld [vmem:[%s11975_s1 + $0x308] sm:$0xff]   ;;  %v9638_v34 = vld [vmem:[%s11975_s1 + $0x310] sm:$0xff]   ;;  %v9639_v43 = vld [vmem:[%s11975_s1 + $0x318] sm:$0xff]  }
 0x20c   : > { %8616 = vmatpush3.bf16.msra.mxu1 %v9622_v27  ;;  %8627 = vmatprep.mubr.msk.bf16.mxu1 %vm12225_vm1, %v6997_v26  ;;  %v9634_v26 = vld [vmem:[%s11975_s1 + $0x2f0] sm:$0xff]   ;;  %v9640_v15 = vld [vmem:[%s11975_s1 + $0x320] sm:$0xff]  }
 0x20d   : > { %8617 = vmatprep.subr.bf16.mxu1 %v9623_v36 }
 0x20e   : > { %v2115_v21 = vld [vmem:[#allocation2 + $0x37] sm:$0xff] }
 0x210   : > { %8618 = vmatpush3.bf16.msra.mxu1 %v9623_v36  ;;  %v2116_v13 = vld [vmem:[#allocation2 + $0x3f] sm:$0xff] }
 0x211   : > { %8619 = vmatprep.subr.bf16.mxu1 %v9624_v23  ;;  %v10959_v27 = vpack.c.bf16 %v2116_v13, %v2115_v21  ;;  %v9635_v36 = vld [vmem:[%s11975_s1 + $0x2f8] sm:$0xff]   ;;  %v9641_v21 = vld [vmem:[%s11975_s1 + $0x328] sm:$0xff]  }
 0x214   : > { %8620 = vmatpush3.bf16.msra.mxu1 %v9624_v23  ;;  %v9636_v23 = vld [vmem:[%s11975_s1 + $0x300] sm:$0xff]  }
 0x215   : > { %8621 = vmatprep.subr.bf16.mxu1 %v9625_v56 }
 0x218   : > { %8622 = vmatpush3.bf16.msra.mxu1 %v9625_v56  ;;  %v2411_v56 = vld [vmem:[#allocation2 + $0x19] sm:$0xff] }
 0x219   : > { %8623 = vmatprep.subr.bf16.mxu1 %v9626_v46 }
 0x21c   : > { %8624 = vmatpush3.bf16.msra.mxu1 %v9626_v46  ;;  %v2412_v46 = vld [vmem:[#allocation2 + $0x21] sm:$0xff] }
 0x21d   : > { %8625 = vmatprep.subr.bf16.mxu1 %v9627_v24 }
 0x220   : > { %8626 = vmatpush3.bf16.msra.mxu1 %v9627_v24  ;;  %v2414_v24 = vld [vmem:[#allocation2 + $0x31] sm:$0xff] }
 0x221   : > { %8635 = vmatprep.subr.bf16.mxu1 %v9628_v54  ;;  %v10989_v61 = vpack.c.bf16 %v2414_v24, %v2413_v60  ;;  %v9647_v24 = vld [vmem:[%s11975_s1 + $0x358] sm:$0xff]   ;;  %v9648_v60 = vld [vmem:[%s11975_s1 + $0x360] sm:$0xff]  }
 0x223   : > { %8628 = vmatmul.mubr.msk.bf16.vlgmr.msra.gmra.mrb[0].mxu1 %vm12226_vm3, %v7000_v49 }
 0x224   : > { %8631 = vmatprep.mubr.msk.bf16.mxu1 %vm12227_vm10, %v10949_v18  ;;  %8636 = vmatpush3.bf16.msra.mxu1 %v9628_v54  ;;  %v10984_v54 = vpack.c.bf16 %v2412_v46, %v2411_v56 }
 0x225   : > { %8637 = vmatprep.subr.bf16.mxu1 %v9629_v42 }
 0x228   : > { %8638 = vmatpush3.bf16.msra.mxu1 %v9629_v42  ;;  %v2415_v42 = vld [vmem:[#allocation2 + $0x39] sm:$0xff] }
 0x229   : > { %8639 = vmatprep.subr.bf16.mxu1 %v9630_v10 }
 0x22b   : > { %8632 = vmatmul.mubr.msk.bf16.gmra.mrb[4].mxu1 %vm12228_vm9, %v10959_v27 }
 0x22c   : > { %8640 = vmatpush3.bf16.msra.mxu1 %v9630_v10  ;;  %8651 = vmatprep.mubr.msk.bf16.mxu1 %vm12229_vm8, %v7033_v51  ;;  %vm12231_vm8 = vnez %v12100_v25  ;;  %v2416_v10 = vld [vmem:[#allocation2 + $0x41] sm:$0xff] }
 0x22d   : > { %8641 = vmatprep.subr.bf16.mxu1 %v9631_v12  ;;  %v11000_v13 = vpack.c.bf16 %v2416_v10, %v2415_v42  ;;  %v9644_v51 = vld [vmem:[%s11975_s1 + $0x340] sm:$0xff]   ;;  %v9653_v10 = vld [vmem:[%s11975_s1 + $0x388] sm:$0xff]  }
 0x22e   : > { %v9652_v42 = vld [vmem:[%s11975_s1 + $0x380] sm:$0xff]  }
 0x230   : > { %8642 = vmatpush3.bf16.msra.mxu1 %v9631_v12  ;;  %v9642_v12 = vld [vmem:[%s11975_s1 + $0x330] sm:$0xff]  }
 0x231   : > { %8643 = vmatprep.subr.bf16.mxu1 %v9632_v16 }
 0x234   : > { %8644 = vmatpush3.bf16.msra.mxu1 %v9632_v16  ;;  %v9645_v16 = vld [vmem:[%s11975_s1 + $0x348] sm:$0xff]  }
 0x235   : > { %8645 = vmatprep.subr.bf16.mxu1 %v9633_v4 }
 0x238   : > { %8646 = vmatpush3.bf16.msra.mxu1 %v9633_v4  ;;  %v9646_v4 = vld [vmem:[%s11975_s1 + $0x350] sm:$0xff]  }
 0x239   : > { %8647 = vmatprep.subr.bf16.mxu1 %v9634_v26 }
 0x23c   : > { %8648 = vmatpush3.bf16.msra.mxu1 %v9634_v26  ;;  %v2573_v26 = vld [vmem:[#allocation2 + $0x47] sm:$0xff] }
 0x23d   : > { %8649 = vmatprep.subr.bf16.mxu1 %v9635_v36 }
 0x240   : > { %8650 = vmatpush3.bf16.msra.mxu1 %v9635_v36  ;;  %v2574_v36 = vld [vmem:[#allocation2 + $0x4f] sm:$0xff] }
 0x241   : > { %8659 = vmatprep.subr.bf16.mxu1 %v9636_v23  ;;  %v11039_v46 = vpack.c.bf16 %v2574_v36, %v2573_v26  ;;  %v9659_v26 = vld [vmem:[%s11975_s1 + $0x3b8] sm:$0xff]   ;;  %v9660_v36 = vld [vmem:[%s11975_s1 + $0x3c0] sm:$0xff]  }
 0x243   : > { %8652 = vmatmul.mubr.msk.bf16.vlgmr.msra.gmra.mrb[0].mxu1 %vm12230_vm5, %v10984_v54  ;;  %vm12232_vm5 = vnez %v12107_v38 }
 0x244   : > { %8655 = vmatprep.mubr.msk.bf16.mxu1 %vm12231_vm8, %v10989_v61  ;;  %8660 = vmatpush3.bf16.msra.mxu1 %v9636_v23  ;;  %vm12233_vm8 = vnez %v12109_v44  ;;  %v9837_v23 = vld [vmem:[#allocation2 + $0x8] sm:$0xff] }
 0x245   : > { %8661 = vmatprep.subr.bf16.mxu1 %v9637_v59  ;;  %v11037_v56 = vpack.c.bf16 %v9837_v23, %v9837_v23  ;;  %v9661_v23 = vld [vmem:[%s11975_s1 + $0x3c8] sm:$0xff]  }
 0x248   : > { %8662 = vmatpush3.bf16.msra.mxu1 %v9637_v59  ;;  %v9649_v59 = vld [vmem:[%s11975_s1 + $0x368] sm:$0xff]  }
 0x249   : > { %8663 = vmatprep.subr.bf16.mxu1 %v9638_v34 }
 0x24b   : > { %8656 = vmatmul.mubr.msk.bf16.gmra.mrb[4].mxu1 %vm12232_vm5, %v11000_v13  ;;  %vm12237_vm5 = vnez %v12134_v30 }
 0x24c   : > { %8664 = vmatpush3.bf16.msra.mxu1 %v9638_v34  ;;  %8675 = vmatprep.mubr.msk.bf16.mxu1 %vm12233_vm8, %v7000_v49  ;;  %v9643_v49 = vld [vmem:[%s11975_s1 + $0x338] sm:$0xff]   ;;  %vm12234_vm8 = vnez %v12130_v37  ;;  %v9650_v34 = vld [vmem:[%s11975_s1 + $0x370] sm:$0xff]  }
 0x24d   : > { %8665 = vmatprep.subr.bf16.mxu1 %v9639_v43 }
 0x250   : > { %8666 = vmatpush3.bf16.msra.mxu1 %v9639_v43  ;;  %v9654_v43 = vld [vmem:[%s11975_s1 + $0x390] sm:$0xff]  }
 0x251   : > { %8667 = vmatprep.subr.bf16.mxu1 %v9640_v15 }
 0x254   : > { %8668 = vmatpush3.bf16.msra.mxu1 %v9640_v15  ;;  %v9655_v15 = vld [vmem:[%s11975_s1 + $0x398] sm:$0xff]  }
 0x255   : > { %8669 = vmatprep.subr.bf16.mxu1 %v9641_v21 }
 0x258   : > { %8670 = vmatpush3.bf16.msra.mxu1 %v9641_v21  ;;  %v9684_v21 = vld [vmem:[%s11975_s1 + $0x4c0] sm:$0xff]  }
 0x259   : > { %8671 = vmatprep.subr.bf16.mxu1 %v9642_v12  ;;  %8803 = vmatprep.subr.bf16.mxu0 %v9684_v21 }
 0x25a   : > { %8804 = vmatpush3.bf16.msra.mxu0 %v9684_v21  ;;  %v9669_v21 = vld [vmem:[%s11975_s1 + $0x408] sm:$0xff]  }
 0x25c   : > { %8672 = vmatpush3.bf16.msra.mxu1 %v9642_v12  ;;  %v9685_v12 = vld [vmem:[%s11975_s1 + $0x4c8] sm:$0xff]  }
 0x25d   : > { %8673 = vmatprep.subr.bf16.mxu1 %v9643_v49  ;;  %8805 = vmatprep.subr.bf16.mxu0 %v9685_v12 }
 0x25e   : > { %8806 = vmatpush3.bf16.msra.mxu0 %v9685_v12  ;;  %v9670_v12 = vld [vmem:[%s11975_s1 + $0x410] sm:$0xff]  }
 0x260   : > { %8674 = vmatpush3.bf16.msra.mxu1 %v9643_v49  ;;  %v9656_v49 = vld [vmem:[%s11975_s1 + $0x3a0] sm:$0xff]  }
 0x261   : > { %8683 = vmatprep.subr.bf16.mxu1 %v9644_v51 }
 0x263   : > { %8676 = vmatmul.mubr.msk.bf16.vlgmr.msra.gmra.mrb[0].mxu1 %vm10377_vm14, %v10949_v18  ;;  %vm12236_vm14 = vnez %v12132_v11 }
 0x264   : > { %8679 = vmatprep.mubr.msk.bf16.mxu1 %vm12234_vm8, %v10959_v27  ;;  %8684 = vmatpush3.bf16.msra.mxu1 %v9644_v51  ;;  %vm12235_vm8 = vnez %v12066_v19  ;;  %v9686_v51 = vld [vmem:[%s11975_s1 + $0x4d0] sm:$0xff]  }
 0x265   : > { %8685 = vmatprep.subr.bf16.mxu1 %v9645_v16  ;;  %8819 = vmatprep.mubr.msk.bf16.mxu0 %vm12235_vm8, %v11037_v56  ;;  %vm12240_vm8 = vnez %v12142_v17 }
 0x266   : > { %8807 = vmatprep.subr.bf16.mxu0 %v9686_v51 }
 0x267   : > { %8808 = vmatpush3.bf16.msra.mxu0 %v9686_v51  ;;  %v3048_v51 = vld [vmem:[#allocation2 + $0x5f] sm:$0xff] }
 0x268   : > { %8686 = vmatpush3.bf16.msra.mxu1 %v9645_v16  ;;  %v9657_v16 = vld [vmem:[%s11975_s1 + $0x3a8] sm:$0xff]  }
 0x269   : > { %8687 = vmatprep.subr.bf16.mxu1 %v9646_v4 }
 0x26b   : > { %8680 = vmatmul.mubr.msk.bf16.gmra.mrb[4].mxu1 %vm12236_vm14, %v11039_v46  ;;  %vm12239_vm14 = vnez %v12139_v22 }
 0x26c   : > { %8688 = vmatpush3.bf16.msra.mxu1 %v9646_v4  ;;  %8699 = vmatprep.mubr.msk.bf16.mxu1 %vm12237_vm5, %v10905_v47  ;;  %v9651_v47 = vld [vmem:[%s11975_s1 + $0x378] sm:$0xff]   ;;  %vm12238_vm5 = vnez %v12137_v3  ;;  %v9658_v4 = vld [vmem:[%s11975_s1 + $0x3b0] sm:$0xff]   ;;  %v11772_v3 = vld [vmem:[%s11977_s3] sm:$0xff]  }
 0x26d   : > { %8689 = vmatprep.subr.bf16.mxu1 %v9647_v24 }
 0x270   : > { %8690 = vmatpush3.bf16.msra.mxu1 %v9647_v24  ;;  %v9662_v24 = vld [vmem:[%s11975_s1 + $0x3d0] sm:$0xff]  }
 0x271   : > { %8691 = vmatprep.subr.bf16.mxu1 %v9648_v60 }
 0x274   : > { %8692 = vmatpush3.bf16.msra.mxu1 %v9648_v60  ;;  %v2889_v60 = vld [vmem:[#allocation2 + $0x49] sm:$0xff] }
 0x275   : > { %8693 = vmatprep.subr.bf16.mxu1 %v9649_v59 }
 0x278   : > { %8694 = vmatpush3.bf16.msra.mxu1 %v9649_v59  ;;  %v2890_v59 = vld [vmem:[#allocation2 + $0x51] sm:$0xff] }
 0x279   : > { %8695 = vmatprep.subr.bf16.mxu1 %v9650_v34 }
 0x27c   : > { %8696 = vmatpush3.bf16.msra.mxu1 %v9650_v34  ;;  %v11128_v34 = vpack.c.bf16 %v2890_v59, %v2889_v60  ;;  %v9682_v60 = vld [vmem:[%s11975_s1 + $0x470] sm:$0xff]   ;;  %v3363_v59 = vld [vmem:[#allocation2 + $0x59] sm:$0xff] }
 0x27d   : > { %8697 = vmatprep.subr.bf16.mxu1 %v9651_v47 }
 0x280   : > { %8698 = vmatpush3.bf16.msra.mxu1 %v9651_v47  ;;  %v9663_v47 = vld [vmem:[%s11975_s1 + $0x3d8] sm:$0xff]  }
 0x281   : > { %8707 = vmatprep.subr.bf16.mxu1 %v9652_v42 }
 0x283   : > { %8700 = vmatmul.mubr.msk.bf16.vlgmr.msra.gmra.mrb[0].mxu1 %vm12238_vm5, %v10903_v50 }
 0x284   : > { %8703 = vmatprep.mubr.msk.bf16.mxu1 %vm12239_vm14, %v10921_v7  ;;  %8708 = vmatpush3.bf16.msra.mxu1 %v9652_v42  ;;  %vm12241_vm14 = vnez %v12144_v8  ;;  %v9664_v42 = vld [vmem:[%s11975_s1 + $0x3e0] sm:$0xff]  }
 0x285   : > { %8709 = vmatprep.subr.bf16.mxu1 %v9653_v10 }
 0x288   : > { %8710 = vmatpush3.bf16.msra.mxu1 %v9653_v10  ;;  %v9665_v10 = vld [vmem:[%s11975_s1 + $0x3e8] sm:$0xff]  }
 0x289   : > { %8711 = vmatprep.subr.bf16.mxu1 %v9654_v43 }
 0x28b   : > { %8704 = vmatmul.mubr.msk.bf16.gmra.mrb[4].mxu1 %vm12240_vm8, %v10919_v32  ;;  %vm12243_vm8 = vnez %v12167_v45 }
 0x28c   : > { %8712 = vmatpush3.bf16.msra.mxu1 %v9654_v43  ;;  %8723 = vmatprep.mubr.msk.bf16.mxu1 %vm12241_vm14, %v10984_v54  ;;  %v9687_v54 = vld [vmem:[%s11975_s1 + $0x4d8] sm:$0xff]   ;;  %vm12242_vm14 = vnez %v12165_v52  ;;  %v9666_v43 = vld [vmem:[%s11975_s1 + $0x3f0] sm:$0xff]  }
 0x28d   : > { %8713 = vmatprep.subr.bf16.mxu1 %v9655_v15  ;;  %8809 = vmatprep.subr.bf16.mxu0 %v9687_v54 }
 0x28e   : > { %8810 = vmatpush3.bf16.msra.mxu0 %v9687_v54  ;;  %v9671_v54 = vld [vmem:[%s11975_s1 + $0x418] sm:$0xff]  }
 0x290   : > { %8714 = vmatpush3.bf16.msra.mxu1 %v9655_v15  ;;  %v9668_v15 = vld [vmem:[%s11975_s1 + $0x400] sm:$0xff]  }
 0x291   : > { %8715 = vmatprep.subr.bf16.mxu1 %v9656_v49 }
 0x294   : > { %8716 = vmatpush3.bf16.msra.mxu1 %v9656_v49  ;;  %v3047_v49 = vld [vmem:[#allocation2 + $0x57] sm:$0xff] }
 0x295   : > { %8717 = vmatprep.subr.bf16.mxu1 %v9657_v16 }
 0x298   : > { %8718 = vmatpush3.bf16.msra.mxu1 %v9657_v16  ;;  %v7186_v16 = vpack.c.bf16 %v3048_v51, %v3047_v49 }
 0x299   : > { %8719 = vmatprep.subr.bf16.mxu1 %v9658_v4 }
 0x29c   : > { %8720 = vmatpush3.bf16.msra.mxu1 %v9658_v4  ;;  %v9674_v4 = vld [vmem:[%s11975_s1 + $0x430] sm:$0xff]  }
 0x29d   : > { %8721 = vmatprep.subr.bf16.mxu1 %v9659_v26 }
 0x2a0   : > { %8722 = vmatpush3.bf16.msra.mxu1 %v9659_v26  ;;  %v9676_v26 = vld [vmem:[%s11975_s1 + $0x440] sm:$0xff]  }
 0x2a1   : > { %8731 = vmatprep.subr.bf16.mxu1 %v9660_v36 }
 0x2a3   : > { %8724 = vmatmul.mubr.msk.bf16.vlgmr.msra.gmra.mrb[0].mxu1 %vm12242_vm14, %v10989_v61  ;;  %vm12244_vm14 = vnez %v12169_v0 }
 0x2a4   : > { %8727 = vmatprep.mubr.msk.bf16.mxu1 %vm12243_vm8, %v11000_v13  ;;  %8732 = vmatpush3.bf16.msra.mxu1 %v9660_v36  ;;  %vm12245_vm8 = vnez %v12171_v31  ;;  %v9677_v36 = vld [vmem:[%s11975_s1 + $0x448] sm:$0xff]  }
 0x2a5   : > { %8733 = vmatprep.subr.bf16.mxu1 %v9661_v23 }
 0x2a8   : > { %8734 = vmatpush3.bf16.msra.mxu1 %v9661_v23  ;;  %v9678_v23 = vld [vmem:[%s11975_s1 + $0x450] sm:$0xff]  }
 0x2a9   : > { %8735 = vmatprep.subr.bf16.mxu1 %v9662_v24 }
 0x2ab   : > { %8728 = vmatmul.mubr.msk.bf16.gmra.mrb[4].mxu1 %vm12244_vm14, %v11128_v34 }
 0x2ac   : > { %8736 = vmatpush3.bf16.msra.mxu1 %v9662_v24  ;;  %8747 = vmatprep.mubr.msk.bf16.mxu1 %vm12245_vm8, %v10949_v18  ;;  %v9667_v18 = vld [vmem:[%s11975_s1 + $0x3f8] sm:$0xff]  }
 0x2ad   : > { %8737 = vmatprep.subr.bf16.mxu1 %v9663_v47  ;;  %v9679_v24 = vld [vmem:[%s11975_s1 + $0x458] sm:$0xff]  }
 0x2b0   : > { %8738 = vmatpush3.bf16.msra.mxu1 %v9663_v47  ;;  %v3364_v47 = vld [vmem:[#allocation2 + $0x61] sm:$0xff] }
 0x2b1   : > { %8739 = vmatprep.subr.bf16.mxu1 %v9664_v42 }
 0x2b4   : > { %8740 = vmatpush3.bf16.msra.mxu1 %v9664_v42  ;;  %v7258_v42 = vpack.c.bf16 %v3364_v47, %v3363_v59 }
 0x2b5   : > { %8741 = vmatprep.subr.bf16.mxu1 %v9665_v10 }
 0x2b8   : > { %8742 = vmatpush3.bf16.msra.mxu1 %v9665_v10  ;;  %v9688_v10 = vld [vmem:[%s11975_s1 + $0x4e0] sm:$0xff]  }
 0x2b9   : > { %8743 = vmatprep.subr.bf16.mxu1 %v9666_v43  ;;  %8811 = vmatprep.subr.bf16.mxu0 %v9688_v10 }
 0x2ba   : > { %8812 = vmatpush3.bf16.msra.mxu0 %v9688_v10 }
 0x2bc   : > { %8744 = vmatpush3.bf16.msra.mxu1 %v9666_v43  ;;  %v9691_v43 = vld [vmem:[%s11975_s1 + $0x4f8] sm:$0xff]  }
 0x2bd   : > { %8745 = vmatprep.subr.bf16.mxu1 %v9667_v18 }
 0x2c0   : > { %8746 = vmatpush3.bf16.msra.mxu1 %v9667_v18  ;;  %v9692_v18 = vld [vmem:[%s11975_s1 + $0x480] sm:$0xff]  }
 0x2c1   : > { %8755 = vmatprep.subr.bf16.mxu1 %v9668_v15 }
 0x2c3   : > { %8748 = vmatmul.mubr.msk.bf16.vlgmr.msra.gmra.mrb[0].mxu1 %vm10718_vm7, %v10959_v27  ;;  %v9672_v27 = vld [vmem:[%s11975_s1 + $0x420] sm:$0xff]   ;;  %vm12249_vm7 = vnez %v12210_v40  ;;  %v9826_v40 = vld [vmem:[%s11975_s1 + $0x8f0] sm:$0xff]  }
 0x2c4   : > { %8751 = vmatprep.mubr.msk.bf16.mxu1 %vm10724_vm11, %v11039_v46  ;;  %8756 = vmatpush3.bf16.msra.mxu1 %v9668_v15  ;;  %vm12246_vm11 = vnez %v12203_v58  ;;  %v9673_v46 = vld [vmem:[%s11975_s1 + $0x428] sm:$0xff]   ;;  %v7261_v15 = vld [vmem:[%s11976_s2 + $0x1] ss:$0 sm:$0xff] }
 0x2c5   : > { %8757 = vmatprep.subr.bf16.mxu1 %v9669_v21 }
 0x2c8   : > { %8758 = vmatpush3.bf16.msra.mxu1 %v9669_v21 }
 0x2c9   : > { %8759 = vmatprep.subr.bf16.mxu1 %v9670_v12 }
 0x2cb   : > { %8752 = vmatmul.mubr.msk.bf16.gmra.mrb[4].mxu1 %vm10736_vm4, %v7186_v16  ;;  %vm12248_vm4 = vnez %v12208_v33 }
 0x2cc   : > { %8760 = vmatpush3.bf16.msra.mxu1 %v9670_v12  ;;  %8771 = vmatprep.mubr.msk.bf16.mxu1 %vm12246_vm11, %v10903_v50  ;;  %v9675_v50 = vld [vmem:[%s11975_s1 + $0x438] sm:$0xff]   ;;  %vm12247_vm11 = vnez %v12206_v57  ;;  %v9824_v57 = vld [vmem:[%s11975_s1 + $0x8e0] sm:$0xff]  }
 0x2cd   : > { %8761 = vmatprep.subr.bf16.mxu1 %v9671_v54 }
 0x2d0   : > { %8762 = vmatpush3.bf16.msra.mxu1 %v9671_v54 }
 0x2d1   : > { %8763 = vmatprep.subr.bf16.mxu1 %v9672_v27 }
 0x2d4   : > { %8764 = vmatpush3.bf16.msra.mxu1 %v9672_v27 }
 0x2d5   : > { %8765 = vmatprep.subr.bf16.mxu1 %v9673_v46 }
 0x2d8   : > { %8766 = vmatpush3.bf16.msra.mxu1 %v9673_v46 }
 0x2d9   : > { %8767 = vmatprep.subr.bf16.mxu1 %v9674_v4 }
 0x2dc   : > { %8768 = vmatpush3.bf16.msra.mxu1 %v9674_v4 }
 0x2dd   : > { %8769 = vmatprep.subr.bf16.mxu1 %v9675_v50 }
 0x2e0   : > { %8770 = vmatpush3.bf16.msra.mxu1 %v9675_v50 }
 0x2e1   : > { %8779 = vmatprep.subr.bf16.mxu1 %v9676_v26 }
 0x2e3   : > { %8772 = vmatmul.mubr.msk.bf16.vlgmr.msra.gmra.mrb[0].mxu1 %vm12247_vm11, %v10921_v7  ;;  %v9681_v7 = vld [vmem:[%s11975_s1 + $0x468] sm:$0xff]  }
 0x2e4   : > { %8775 = vmatprep.mubr.msk.bf16.mxu1 %vm12248_vm4, %v10919_v32  ;;  %8780 = vmatpush3.bf16.msra.mxu1 %v9676_v26  ;;  %vm12250_vm4 = vnez %v12212_v9  ;;  %v9680_v32 = vld [vmem:[%s11975_s1 + $0x460] sm:$0xff]   ;;  %v9827_v9 = vld [vmem:[%s11975_s1 + $0x8f8] sm:$0xff]  }
 0x2e5   : > { %8781 = vmatprep.subr.bf16.mxu1 %v9677_v36 }
 0x2e8   : > { %8782 = vmatpush3.bf16.msra.mxu1 %v9677_v36 }
 0x2e9   : > { %8783 = vmatprep.subr.bf16.mxu1 %v9678_v23 }
 0x2eb   : > { %8776 = vmatmul.mubr.msk.bf16.gmra.mrb[4].mxu1 %vm12249_vm7, %v11037_v56 }
 0x2ec   : > { %8784 = vmatpush3.bf16.msra.mxu1 %v9678_v23  ;;  %8795 = vmatprep.mubr.msk.bf16.mxu1 %vm12250_vm4, %v10989_v61  ;;  %v9683_v61 = vld [vmem:[%s11975_s1 + $0x478] sm:$0xff]  }
 0x2ed   : > { %8785 = vmatprep.subr.bf16.mxu1 %v9679_v24 }
 0x2f0   : > { %8786 = vmatpush3.bf16.msra.mxu1 %v9679_v24 }
 0x2f1   : > { %8787 = vmatprep.subr.bf16.mxu1 %v9680_v32 }
 0x2f4   : > { %8788 = vmatpush3.bf16.msra.mxu1 %v9680_v32 }
 0x2f5   : > { %8789 = vmatprep.subr.bf16.mxu1 %v9681_v7 }
 0x2f8   : > { %8790 = vmatpush3.bf16.msra.mxu1 %v9681_v7  ;;  %v9693_v7 = vld [vmem:[%s11975_s1 + $0x488] sm:$0xff]  }
 0x2f9   : > { %8791 = vmatprep.subr.bf16.mxu1 %v9682_v60 }
 0x2fc   : > { %8792 = vmatpush3.bf16.msra.mxu1 %v9682_v60 }
 0x2fd   : > { %8793 = vmatprep.subr.bf16.mxu1 %v9683_v61 }
 0x300   : > { %8794 = vmatpush3.bf16.msra.mxu1 %v9683_v61 }
 0x303   : > { %8796 = vmatmul.mubr.msk.bf16.vlgmr.msra.gmra.mrb[0].mxu1 %vm10857_vm12, %v11000_v13  ;;  %v9689_v13 = vld [vmem:[%s11975_s1 + $0x4e8] sm:$0xff]  }
 0x304   : > { %8799 = vmatprep.mubr.msk.bf16.mxu1 %vm10863_vm13, %v11128_v34  ;;  %8813 = vmatprep.subr.bf16.mxu0 %v9689_v13  ;;  %v9690_v34 = vld [vmem:[%s11975_s1 + $0x4f0] sm:$0xff]  }
 0x305   : > { %8814 = vmatpush3.bf16.msra.mxu0 %v9689_v13 }
 0x306   : > { %8815 = vmatprep.subr.bf16.mxu0 %v9690_v34 }
 0x309   : > { %8816 = vmatpush3.bf16.msra.mxu0 %v9690_v34 }
 0x30a   : > { %8817 = vmatprep.subr.bf16.mxu0 %v9691_v43 }
 0x30b   : > { %8800 = vmatmul.mubr.msk.bf16.gmra.mrb[4].mxu1 %vm10879_vm0, %v7258_v42 }
 0x30d   : > { %8818 = vmatpush3.bf16.msra.mxu0 %v9691_v43 }
 0x30e   : > { %8827 = vmatprep.subr.bf16.mxu0 %v9692_v18 }
 0x3d6   : > { %v8797_v21 = vpop.f32.mrb[0].mxu1 }
 0x3d7   : > { %v3525_v12 = vadd.f32 %v8797_v21, %v7261_v15  ;;  %v3476_v49 = vpop.f32.mrb[1].mxu1  ;;  %v9694_v21 = vld [vmem:[%s11975_s1 + $0x490] sm:$0xff]  }
 0x3d8   : > { %v3523_v51 = vadd.f32 %v7261_v15, %v3476_v49  ;;  %v8798_v16 = vpop.f32.mrb[2].mxu1  ;;  %v3548_v49 = vld [vmem:[#allocation2 + $0xf] sm:$0xff] }
 0x3d9   : > { %v3533_v54 = vmax.f32 %v3525_v12, 0.0  ;;  %v3526_v27 = vadd.f32 %v8798_v16, %v7261_v15  ;;  %v3479_v46 = vpop.f32.mrb[3].mxu1  ;;  %v3547_v12 = vld [vmem:[#allocation2 + $0x7] sm:$0xff] }
 0x3da   : > { %v3531_v4 = vmax.f32 %v3523_v51, 0.0  ;;  %v3524_v50 = vadd.f32 %v7261_v15, %v3479_v46  ;;  %v9696_v46 = vld [vmem:[%s11975_s1 + $0x4a0] sm:$0xff]  }
 0x3db   : > { %3541 = vst [vmem:[#allocation2 + $0x28] sm:$0xff] %v3533_v54  ;;  %v3534_v26 = vmax.f32 %v3526_v27, 0.0 }
 0x3dc   : > { %3539 = vst [vmem:[#allocation2 + $0x18] sm:$0xff] %v3531_v4  ;;  %v3532_v36 = vmax.f32 %v3524_v50, 0.0  ;;  %v9698_v50 = vld [vmem:[%s11975_s1 + $0x4b0] sm:$0xff]  }
 0x3dd   : > { %3542 = vst [vmem:[#allocation2 + $0x30] sm:$0xff] %v3534_v26  ;;  %v11248_v23 = vpack.c.bf16 %v3534_v26, %v3533_v54  ;;  %v9699_v26 = vld [vmem:[%s11975_s1 + $0x4b8] sm:$0xff]  }
 0x3de   : > { %3540 = vst [vmem:[#allocation2 + $0x20] sm:$0xff] %v3532_v36  ;;  %v8801_v24 = vpop.f32.mrb[4].mxu1  ;;  %v11250_v32 = vpack.c.bf16 %v3532_v36, %v3531_v4  ;;  %v9697_v4 = vld [vmem:[%s11975_s1 + $0x4a8] sm:$0xff]   ;;  %v9700_v36 = vld [vmem:[%s11975_s1 + $0x500] sm:$0xff]  }
 0x3df   : > { %v3529_v60 = vadd.f32 %v8801_v24, %v7261_v15  ;;  %v3492_v61 = vpop.f32.mrb[5].mxu1 }
 0x3e0   : > { %v3527_v59 = vadd.f32 %v7261_v15, %v3492_v61  ;;  %v8802_v47 = vpop.f32.mrb[6].mxu1  ;;  %8820 = vmatmul.mubr.msk.bf16.vlgmr.msra.gmra.mrb[8].mxu0 %vm12222_vm6, %v11250_v32 }
 0x3e1   : > { %v3537_v42 = vmax.f32 %v3529_v60, 0.0  ;;  %v3530_v10 = vadd.f32 %v8802_v47, %v7261_v15  ;;  %v3495_v13 = vpop.f32.mrb[7].mxu1  ;;  %8828 = vmatpush3.bf16.msra.mxu0 %v9692_v18  ;;  %8823 = vmatprep.mubr.msk.bf16.mxu0 %vm12223_vm15, %v11248_v23  ;;  %v7323_v18 = vpack.c.bf16 %v3548_v49, %v3547_v12  ;;  %v9701_v47 = vld [vmem:[%s11975_s1 + $0x508] sm:$0xff]   ;;  %v9703_v49 = vld [vmem:[%s11975_s1 + $0x518] sm:$0xff]  }
 0x3e2   : > { %v3535_v34 = vmax.f32 %v3527_v59, 0.0  ;;  %v3528_v43 = vadd.f32 %v7261_v15, %v3495_v13  ;;  %8829 = vmatprep.subr.bf16.mxu0 %v9693_v7  ;;  %v9695_v15 = vld [vmem:[%s11975_s1 + $0x498] sm:$0xff]  }
 0x3e3   : > { %3545 = vst [vmem:[#allocation2 + $0x48] sm:$0xff] %v3537_v42  ;;  %v3538_v51 = vmax.f32 %v3530_v10, 0.0  ;;  %v3549_v61 = vld [vmem:[#allocation2 + $0x17] sm:$0xff] }
 0x3e4   : > { %3543 = vst [vmem:[#allocation2 + $0x38] sm:$0xff] %v3535_v34  ;;  %v3536_v16 = vmax.f32 %v3528_v43, 0.0  ;;  %v3552_v60 = vld [vmem:[#allocation2 + $0x2f] sm:$0xff] }
 0x3e5   : > { %3546 = vst [vmem:[#allocation2 + $0x50] sm:$0xff] %v3538_v51  ;;  %8830 = vmatpush3.bf16.msra.mxu0 %v9693_v7  ;;  %v11264_v54 = vpack.c.bf16 %v3538_v51, %v3537_v42  ;;  %v3550_v24 = vld [vmem:[#allocation2 + $0x1f] sm:$0xff]  ;;  %v3551_v7 = vld [vmem:[#allocation2 + $0x27] sm:$0xff]  ;;  %v9702_v10 = vld [vmem:[%s11975_s1 + $0x510] sm:$0xff]  }
 0x3e6   : > { %3544 = vst [vmem:[#allocation2 + $0x40] sm:$0xff] %v3536_v16  ;;  %8831 = vmatprep.subr.bf16.mxu0 %v9694_v21  ;;  %v11266_v27 = vpack.c.bf16 %v3536_v16, %v3535_v34  ;;  %v7326_v59 = vpack.c.bf16 %v3550_v24, %v3549_v61  ;;  %v11294_v42 = vpack.c.bf16 %v3552_v60, %v3551_v7  ;;  %v3847_v34 = vld [vmem:[#allocation2 + $0x9] sm:$0xff]  ;;  %v3848_v43 = vld [vmem:[#allocation2 + $0x11] sm:$0xff]  ;;  %v9704_v16 = vld [vmem:[%s11975_s1 + $0x520] sm:$0xff]  }
 0x3e7   : > { %v7359_v51 = vpack.c.bf16 %v3848_v43, %v3847_v34  ;;  %v3851_v7 = vld [vmem:[#allocation2 + $0x29] sm:$0xff]  ;;  %v9711_v43 = vld [vmem:[%s11975_s1 + $0x558] sm:$0xff]  }
 0x3e8   : > { %8824 = vmatmul.mubr.msk.bf16.gmra.mrb[12].mxu0 %vm12224_vm2, %v11266_v27  ;;  %v9709_v60 = vld [vmem:[%s11975_s1 + $0x548] sm:$0xff]  }
 0x3e9   : > { %8832 = vmatpush3.bf16.msra.mxu0 %v9694_v21  ;;  %8843 = vmatprep.mubr.msk.bf16.mxu0 %vm12225_vm1, %v7323_v18  ;;  %v9705_v18 = vld [vmem:[%s11975_s1 + $0x528] sm:$0xff]  }
 0x3ea   : > { %8833 = vmatprep.subr.bf16.mxu0 %v9695_v15 }
 0x3eb   : > { %v3553_v21 = vld [vmem:[#allocation2 + $0x37] sm:$0xff] }
 0x3ed   : > { %8834 = vmatpush3.bf16.msra.mxu0 %v9695_v15  ;;  %v3554_v13 = vld [vmem:[#allocation2 + $0x3f] sm:$0xff]  ;;  %v9706_v15 = vld [vmem:[%s11975_s1 + $0x530] sm:$0xff]  }
 0x3ee   : > { %8835 = vmatprep.subr.bf16.mxu0 %v9696_v46  ;;  %v11304_v12 = vpack.c.bf16 %v3554_v13, %v3553_v21  ;;  %v3854_v13 = vld [vmem:[#allocation2 + $0x41] sm:$0xff] }
 0x3ef   : > { %v9712_v21 = vld [vmem:[%s11975_s1 + $0x560] sm:$0xff]  }
 0x3f1   : > { %8836 = vmatpush3.bf16.msra.mxu0 %v9696_v46  ;;  %v9707_v46 = vld [vmem:[%s11975_s1 + $0x538] sm:$0xff]  }
 0x3f2   : > { %8837 = vmatprep.subr.bf16.mxu0 %v9697_v4 }
 0x3f5   : > { %8838 = vmatpush3.bf16.msra.mxu0 %v9697_v4  ;;  %v9708_v4 = vld [vmem:[%s11975_s1 + $0x540] sm:$0xff]  }
 0x3f6   : > { %8839 = vmatprep.subr.bf16.mxu0 %v9698_v50 }
 0x3f9   : > { %8840 = vmatpush3.bf16.msra.mxu0 %v9698_v50  ;;  %v3849_v50 = vld [vmem:[#allocation2 + $0x19] sm:$0xff] }
 0x3fa   : > { %8841 = vmatprep.subr.bf16.mxu0 %v9699_v26 }
 0x3fd   : > { %8842 = vmatpush3.bf16.msra.mxu0 %v9699_v26  ;;  %v3850_v26 = vld [vmem:[#allocation2 + $0x21] sm:$0xff] }
 0x3fe   : > { %8851 = vmatprep.subr.bf16.mxu0 %v9700_v36  ;;  %v11329_v24 = vpack.c.bf16 %v3850_v26, %v3849_v50  ;;  %v9719_v26 = vld [vmem:[%s11975_s1 + $0x598] sm:$0xff]  }
 0x400   : > { %8844 = vmatmul.mubr.msk.bf16.vlgmr.msra.gmra.mrb[8].mxu0 %vm12226_vm3, %v7326_v59  ;;  %vm12260_vm3 = vnez %v12134_v30 }
 0x401   : > { %8847 = vmatprep.mubr.msk.bf16.mxu0 %vm12227_vm10, %v11294_v42  ;;  %8852 = vmatpush3.bf16.msra.mxu0 %v9700_v36  ;;  %vm12251_vm10 = vnez %v12096_v14  ;;  %v3852_v36 = vld [vmem:[#allocation2 + $0x31] sm:$0xff] }
 0x402   : > { %8853 = vmatprep.subr.bf16.mxu0 %v9701_v47  ;;  %v11334_v61 = vpack.c.bf16 %v3852_v36, %v3851_v7  ;;  %v9720_v36 = vld [vmem:[%s11975_s1 + $0x5a0] sm:$0xff]   ;;  %v9722_v7 = vld [vmem:[%s11975_s1 + $0x5b0] sm:$0xff]  }
 0x405   : > { %8854 = vmatpush3.bf16.msra.mxu0 %v9701_v47  ;;  %v9710_v47 = vld [vmem:[%s11975_s1 + $0x550] sm:$0xff]  }
 0x406   : > { %8855 = vmatprep.subr.bf16.mxu0 %v9702_v10 }
 0x408   : > { %8848 = vmatmul.mubr.msk.bf16.gmra.mrb[12].mxu0 %vm12228_vm9, %v11304_v12  ;;  %vm12253_vm9 = vnez %v12100_v25 }
 0x409   : > { %8856 = vmatpush3.bf16.msra.mxu0 %v9702_v10  ;;  %8867 = vmatprep.mubr.msk.bf16.mxu0 %vm12251_vm10, %v7359_v51  ;;  %vm12252_vm10 = vnez %v12098_v20  ;;  %v3853_v10 = vld [vmem:[#allocation2 + $0x39] sm:$0xff]  ;;  %v9714_v51 = vld [vmem:[%s11975_s1 + $0x570] sm:$0xff]  }
 0x40a   : > { %8857 = vmatprep.subr.bf16.mxu0 %v9703_v49  ;;  %v11345_v34 = vpack.c.bf16 %v3854_v13, %v3853_v10  ;;  %v9726_v10 = vld [vmem:[%s11975_s1 + $0x5d0] sm:$0xff]   ;;  %v9727_v13 = vld [vmem:[%s11975_s1 + $0x5d8] sm:$0xff]  }
 0x40d   : > { %8858 = vmatpush3.bf16.msra.mxu0 %v9703_v49  ;;  %v9713_v49 = vld [vmem:[%s11975_s1 + $0x568] sm:$0xff]  }
 0x40e   : > { %8859 = vmatprep.subr.bf16.mxu0 %v9704_v16 }
 0x411   : > { %8860 = vmatpush3.bf16.msra.mxu0 %v9704_v16  ;;  %v9716_v16 = vld [vmem:[%s11975_s1 + $0x580] sm:$0xff]  }
 0x412   : > { %8861 = vmatprep.subr.bf16.mxu0 %v9705_v18 }
 0x415   : > { %8862 = vmatpush3.bf16.msra.mxu0 %v9705_v18  ;;  %v9717_v18 = vld [vmem:[%s11975_s1 + $0x588] sm:$0xff]  }
 0x416   : > { %8863 = vmatprep.subr.bf16.mxu0 %v9706_v15 }
 0x419   : > { %8864 = vmatpush3.bf16.msra.mxu0 %v9706_v15  ;;  %v9718_v15 = vld [vmem:[%s11975_s1 + $0x590] sm:$0xff]  }
 0x41a   : > { %8865 = vmatprep.subr.bf16.mxu0 %v9707_v46 }
 0x41d   : > { %8866 = vmatpush3.bf16.msra.mxu0 %v9707_v46  ;;  %v4011_v46 = vld [vmem:[#allocation2 + $0x47] sm:$0xff] }
 0x41e   : > { %8875 = vmatprep.subr.bf16.mxu0 %v9708_v4 }
 0x420   : > { %8868 = vmatmul.mubr.msk.bf16.vlgmr.msra.gmra.mrb[8].mxu0 %vm12252_vm10, %v11329_v24  ;;  %vm12254_vm10 = vnez %v12107_v38 }
 0x421   : > { %8871 = vmatprep.mubr.msk.bf16.mxu0 %vm12253_vm9, %v11334_v61  ;;  %8876 = vmatpush3.bf16.msra.mxu0 %v9708_v4  ;;  %vm12255_vm9 = vnez %v12109_v44  ;;  %v4012_v4 = vld [vmem:[#allocation2 + $0x4f] sm:$0xff] }
 0x422   : > { %8877 = vmatprep.subr.bf16.mxu0 %v9709_v60  ;;  %v11382_v50 = vpack.c.bf16 %v4012_v4, %v4011_v46  ;;  %v9733_v46 = vld [vmem:[%s11975_s1 + $0x608] sm:$0xff]   ;;  %v9734_v4 = vld [vmem:[%s11975_s1 + $0x610] sm:$0xff]  }
 0x425   : > { %8878 = vmatpush3.bf16.msra.mxu0 %v9709_v60  ;;  %v9724_v60 = vld [vmem:[%s11975_s1 + $0x5c0] sm:$0xff]  }
 0x426   : > { %8879 = vmatprep.subr.bf16.mxu0 %v9710_v47 }
 0x428   : > { %8872 = vmatmul.mubr.msk.bf16.gmra.mrb[12].mxu0 %vm12254_vm10, %v11345_v34  ;;  %vm12257_vm10 = vnez %v12130_v37 }
 0x429   : > { %8880 = vmatpush3.bf16.msra.mxu0 %v9710_v47  ;;  %8891 = vmatprep.mubr.msk.bf16.mxu0 %vm12255_vm9, %v7326_v59  ;;  %v9715_v59 = vld [vmem:[%s11975_s1 + $0x578] sm:$0xff]   ;;  %vm12256_vm9 = vnez %v12128_v5  ;;  %v9725_v47 = vld [vmem:[%s11975_s1 + $0x5c8] sm:$0xff]  }
 0x42a   : > { %8881 = vmatprep.subr.bf16.mxu0 %v9711_v43 }
 0x42d   : > { %8882 = vmatpush3.bf16.msra.mxu0 %v9711_v43  ;;  %v9756_v43 = vld [vmem:[%s11975_s1 + $0x700] sm:$0xff]  }
 0x42e   : > { %8883 = vmatprep.subr.bf16.mxu0 %v9712_v21  ;;  %9019 = vmatprep.subr.bf16.mxu1 %v9756_v43 }
 0x42f   : > { %9020 = vmatpush3.bf16.msra.mxu1 %v9756_v43  ;;  %v9742_v43 = vld [vmem:[%s11975_s1 + $0x650] sm:$0xff]  }
 0x431   : > { %8884 = vmatpush3.bf16.msra.mxu0 %v9712_v21  ;;  %v9757_v21 = vld [vmem:[%s11975_s1 + $0x708] sm:$0xff]  }
 0x432   : > { %8885 = vmatprep.subr.bf16.mxu0 %v9713_v49  ;;  %9021 = vmatprep.subr.bf16.mxu1 %v9757_v21 }
 0x433   : > { %9022 = vmatpush3.bf16.msra.mxu1 %v9757_v21  ;;  %v4485_v21 = vld [vmem:[#allocation2 + $0x57] sm:$0xff] }
 0x435   : > { %8886 = vmatpush3.bf16.msra.mxu0 %v9713_v49  ;;  %v9728_v49 = vld [vmem:[%s11975_s1 + $0x5e0] sm:$0xff]  }
 0x436   : > { %8887 = vmatprep.subr.bf16.mxu0 %v9714_v51 }
 0x439   : > { %8888 = vmatpush3.bf16.msra.mxu0 %v9714_v51  ;;  %v9758_v51 = vld [vmem:[%s11975_s1 + $0x710] sm:$0xff]  }
 0x43a   : > { %8889 = vmatprep.subr.bf16.mxu0 %v9715_v59  ;;  %9023 = vmatprep.subr.bf16.mxu1 %v9758_v51 }
 0x43b   : > { %9024 = vmatpush3.bf16.msra.mxu1 %v9758_v51 }
 0x43d   : > { %8890 = vmatpush3.bf16.msra.mxu0 %v9715_v59  ;;  %v9729_v59 = vld [vmem:[%s11975_s1 + $0x5e8] sm:$0xff]  }
 0x43e   : > { %8899 = vmatprep.subr.bf16.mxu0 %v9716_v16 }
 0x440   : > { %8892 = vmatmul.mubr.msk.bf16.vlgmr.msra.gmra.mrb[8].mxu0 %vm12256_vm9, %v11294_v42  ;;  %vm12258_vm9 = vnez %v12066_v19  ;;  %v9721_v19 = vld [vmem:[%s11975_s1 + $0x5a8] sm:$0xff]  }
 0x441   : > { %8895 = vmatprep.mubr.msk.bf16.mxu0 %vm12257_vm10, %v11304_v12  ;;  %8900 = vmatpush3.bf16.msra.mxu0 %v9716_v16  ;;  %vm12259_vm10 = vnez %v12132_v11  ;;  %v9730_v16 = vld [vmem:[%s11975_s1 + $0x5f0] sm:$0xff]  }
 0x442   : > { %8901 = vmatprep.subr.bf16.mxu0 %v9717_v18  ;;  %9035 = vmatprep.mubr.msk.bf16.mxu1 %vm12258_vm9, %v11037_v56  ;;  %vm12261_vm9 = vnez %v12139_v22  ;;  %v9794_v11 = vld [vmem:[%s11975_s1 + $0x7f0] sm:$0xff]  }
 0x445   : > { %8902 = vmatpush3.bf16.msra.mxu0 %v9717_v18  ;;  %v9731_v18 = vld [vmem:[%s11975_s1 + $0x5f8] sm:$0xff]  }
 0x446   : > { %8903 = vmatprep.subr.bf16.mxu0 %v9718_v15 }
 0x448   : > { %8896 = vmatmul.mubr.msk.bf16.gmra.mrb[12].mxu0 %vm12259_vm10, %v11382_v50 }
 0x449   : > { %8904 = vmatpush3.bf16.msra.mxu0 %v9718_v15  ;;  %8915 = vmatprep.mubr.msk.bf16.mxu0 %vm12260_vm3, %v11250_v32  ;;  %v9723_v32 = vld [vmem:[%s11975_s1 + $0x5b8] sm:$0xff]   ;;  %vm12262_vm3 = vnez %v12142_v17  ;;  %v9732_v15 = vld [vmem:[%s11975_s1 + $0x600] sm:$0xff]  }
 0x44a   : > { %8905 = vmatprep.subr.bf16.mxu0 %v9719_v26 }
 0x44d   : > { %8906 = vmatpush3.bf16.msra.mxu0 %v9719_v26  ;;  %v4327_v26 = vld [vmem:[#allocation2 + $0x49] sm:$0xff] }
 0x44e   : > { %8907 = vmatprep.subr.bf16.mxu0 %v9720_v36 }
 0x451   : > { %8908 = vmatpush3.bf16.msra.mxu0 %v9720_v36  ;;  %v4328_v36 = vld [vmem:[#allocation2 + $0x51] sm:$0xff] }
 0x452   : > { %8909 = vmatprep.subr.bf16.mxu0 %v9721_v19 }
 0x455   : > { %8910 = vmatpush3.bf16.msra.mxu0 %v9721_v19  ;;  %v11471_v19 = vpack.c.bf16 %v4328_v36, %v4327_v26  ;;  %v4802_v26 = vld [vmem:[#allocation2 + $0x61] sm:$0xff] }
 0x456   : > { %8911 = vmatprep.subr.bf16.mxu0 %v9722_v7 }
 0x459   : > { %8912 = vmatpush3.bf16.msra.mxu0 %v9722_v7  ;;  %v9735_v7 = vld [vmem:[%s11975_s1 + $0x618] sm:$0xff]  }
 0x45a   : > { %8913 = vmatprep.subr.bf16.mxu0 %v9723_v32 }
 0x45d   : > { %8914 = vmatpush3.bf16.msra.mxu0 %v9723_v32  ;;  %v9736_v32 = vld [vmem:[%s11975_s1 + $0x620] sm:$0xff]  }
 0x45e   : > { %8923 = vmatprep.subr.bf16.mxu0 %v9724_v60 }
 0x460   : > { %8916 = vmatmul.mubr.msk.bf16.vlgmr.msra.gmra.mrb[8].mxu0 %vm12238_vm5, %v11248_v23 }
 0x461   : > { %8919 = vmatprep.mubr.msk.bf16.mxu0 %vm12261_vm9, %v11266_v27  ;;  %8924 = vmatpush3.bf16.msra.mxu0 %v9724_v60  ;;  %vm12263_vm9 = vnez %v12144_v8  ;;  %v9737_v60 = vld [vmem:[%s11975_s1 + $0x628] sm:$0xff]  }
 0x462   : > { %8925 = vmatprep.subr.bf16.mxu0 %v9725_v47 }
 0x465   : > { %8926 = vmatpush3.bf16.msra.mxu0 %v9725_v47  ;;  %v9738_v47 = vld [vmem:[%s11975_s1 + $0x630] sm:$0xff]  }
 0x466   : > { %8927 = vmatprep.subr.bf16.mxu0 %v9726_v10 }
 0x468   : > { %8920 = vmatmul.mubr.msk.bf16.gmra.mrb[12].mxu0 %vm12262_vm3, %v11264_v54  ;;  %vm12265_vm3 = vnez %v12167_v45  ;;  %v9808_v45 = vld [vmem:[%s11975_s1 + $0x860] sm:$0xff]  }
 0x469   : > { %8928 = vmatpush3.bf16.msra.mxu0 %v9726_v10  ;;  %8939 = vmatprep.mubr.msk.bf16.mxu0 %vm12263_vm9, %v11329_v24  ;;  %v9759_v24 = vld [vmem:[%s11975_s1 + $0x718] sm:$0xff]   ;;  %vm12264_vm9 = vnez %v12165_v52  ;;  %v9740_v10 = vld [vmem:[%s11975_s1 + $0x640] sm:$0xff]  }
 0x46a   : > { %8929 = vmatprep.subr.bf16.mxu0 %v9727_v13  ;;  %9025 = vmatprep.subr.bf16.mxu1 %v9759_v24  ;;  %v9807_v52 = vld [vmem:[%s11975_s1 + $0x858] sm:$0xff]  }
 0x46b   : > { %9026 = vmatpush3.bf16.msra.mxu1 %v9759_v24  ;;  %v9746_v24 = vld [vmem:[%s11975_s1 + $0x670] sm:$0xff]  }
 0x46d   : > { %8930 = vmatpush3.bf16.msra.mxu0 %v9727_v13  ;;  %v9741_v13 = vld [vmem:[%s11975_s1 + $0x648] sm:$0xff]  }
 0x46e   : > { %8931 = vmatprep.subr.bf16.mxu0 %v9728_v49 }
 0x471   : > { %8932 = vmatpush3.bf16.msra.mxu0 %v9728_v49  ;;  %v4486_v49 = vld [vmem:[#allocation2 + $0x5f] sm:$0xff] }
 0x472   : > { %8933 = vmatprep.subr.bf16.mxu0 %v9729_v59  ;;  %v7512_v51 = vpack.c.bf16 %v4486_v49, %v4485_v21 }
 0x475   : > { %8934 = vmatpush3.bf16.msra.mxu0 %v9729_v59  ;;  %v9743_v59 = vld [vmem:[%s11975_s1 + $0x658] sm:$0xff]  }
 0x476   : > { %8935 = vmatprep.subr.bf16.mxu0 %v9730_v16 }
 0x479   : > { %8936 = vmatpush3.bf16.msra.mxu0 %v9730_v16  ;;  %v9748_v16 = vld [vmem:[%s11975_s1 + $0x680] sm:$0xff]  }
 0x47a   : > { %8937 = vmatprep.subr.bf16.mxu0 %v9731_v18 }
 0x47d   : > { %8938 = vmatpush3.bf16.msra.mxu0 %v9731_v18  ;;  %v9749_v18 = vld [vmem:[%s11975_s1 + $0x688] sm:$0xff]  }
 0x47e   : > { %8947 = vmatprep.subr.bf16.mxu0 %v9732_v15 }
 0x480   : > { %8940 = vmatmul.mubr.msk.bf16.vlgmr.msra.gmra.mrb[8].mxu0 %vm12264_vm9, %v11334_v61 }
 0x481   : > { %8943 = vmatprep.mubr.msk.bf16.mxu0 %vm12265_vm3, %v11345_v34  ;;  %8948 = vmatpush3.bf16.msra.mxu0 %v9732_v15  ;;  %v9750_v15 = vld [vmem:[%s11975_s1 + $0x690] sm:$0xff]  }
 0x482   : > { %8949 = vmatprep.subr.bf16.mxu0 %v9733_v46 }
 0x485   : > { %8950 = vmatpush3.bf16.msra.mxu0 %v9733_v46  ;;  %v9751_v46 = vld [vmem:[%s11975_s1 + $0x698] sm:$0xff]  }
 0x486   : > { %8951 = vmatprep.subr.bf16.mxu0 %v9734_v4 }
 0x488   : > { %8944 = vmatmul.mubr.msk.bf16.gmra.mrb[12].mxu0 %vm12244_vm14, %v11471_v19  ;;  %vm12267_vm14 = vnez %v12199_v29 }
 0x489   : > { %8952 = vmatpush3.bf16.msra.mxu0 %v9734_v4  ;;  %8963 = vmatprep.mubr.msk.bf16.mxu0 %vm12245_vm8, %v11294_v42  ;;  %v9739_v42 = vld [vmem:[%s11975_s1 + $0x638] sm:$0xff]   ;;  %vm12266_vm8 = vnez %v12197_v41 }
 0x48a   : > { %8953 = vmatprep.subr.bf16.mxu0 %v9735_v7  ;;  %v4801_v4 = vld [vmem:[#allocation2 + $0x59] sm:$0xff] }
 0x48b   : > { %v7584_v36 = vpack.c.bf16 %v4802_v26, %v4801_v4 }
 0x48d   : > { %8954 = vmatpush3.bf16.msra.mxu0 %v9735_v7  ;;  %v9760_v7 = vld [vmem:[%s11975_s1 + $0x720] sm:$0xff]  }
 0x48e   : > { %8955 = vmatprep.subr.bf16.mxu0 %v9736_v32  ;;  %9027 = vmatprep.subr.bf16.mxu1 %v9760_v7 }
 0x48f   : > { %9028 = vmatpush3.bf16.msra.mxu1 %v9760_v7 }
 0x491   : > { %8956 = vmatpush3.bf16.msra.mxu0 %v9736_v32  ;;  %v9763_v32 = vld [vmem:[%s11975_s1 + $0x738] sm:$0xff]  }
 0x492   : > { %8957 = vmatprep.subr.bf16.mxu0 %v9737_v60 }
 0x495   : > { %8958 = vmatpush3.bf16.msra.mxu0 %v9737_v60  ;;  %v9764_v60 = vld [vmem:[%s11975_s1 + $0x6c0] sm:$0xff]  }
 0x496   : > { %8959 = vmatprep.subr.bf16.mxu0 %v9738_v47 }
 0x499   : > { %8960 = vmatpush3.bf16.msra.mxu0 %v9738_v47  ;;  %v7587_v47 = vld [vmem:[%s11976_s2 + $0x2] ss:$0 sm:$0xff] }
 0x49a   : > { %8961 = vmatprep.subr.bf16.mxu0 %v9739_v42 }
 0x49d   : > { %8962 = vmatpush3.bf16.msra.mxu0 %v9739_v42 }
 0x49e   : > { %8971 = vmatprep.subr.bf16.mxu0 %v9740_v10 }
 0x4a0   : > { %8964 = vmatmul.mubr.msk.bf16.vlgmr.msra.gmra.mrb[8].mxu0 %vm12266_vm8, %v11304_v12  ;;  %vm12268_vm8 = vnez %v12201_v2  ;;  %v9744_v12 = vld [vmem:[%s11975_s1 + $0x660] sm:$0xff]   ;;  %v9818_v2 = vld [vmem:[%s11975_s1 + $0x8b0] sm:$0xff]  }
 0x4a1   : > { %8967 = vmatprep.mubr.msk.bf16.mxu0 %vm12267_vm14, %v11382_v50  ;;  %8972 = vmatpush3.bf16.msra.mxu0 %v9740_v10  ;;  %vm12269_vm14 = vnez %v12203_v58  ;;  %v9745_v50 = vld [vmem:[%s11975_s1 + $0x668] sm:$0xff]  }
 0x4a2   : > { %8973 = vmatprep.subr.bf16.mxu0 %v9741_v13 }
 0x4a5   : > { %8974 = vmatpush3.bf16.msra.mxu0 %v9741_v13 }
 0x4a6   : > { %8975 = vmatprep.subr.bf16.mxu0 %v9742_v43 }
 0x4a8   : > { %8968 = vmatmul.mubr.msk.bf16.gmra.mrb[12].mxu0 %vm12268_vm8, %v7512_v51 }
 0x4a9   : > { %8976 = vmatpush3.bf16.msra.mxu0 %v9742_v43  ;;  %8987 = vmatprep.mubr.msk.bf16.mxu0 %vm12269_vm14, %v11248_v23  ;;  %v9747_v23 = vld [vmem:[%s11975_s1 + $0x678] sm:$0xff]   ;;  %vm12270_vm14 = vnez %v12208_v33  ;;  %v9825_v33 = vld [vmem:[%s11975_s1 + $0x8e8] sm:$0xff]  }
 0x4aa   : > { %8977 = vmatprep.subr.bf16.mxu0 %v9743_v59 }
 0x4ad   : > { %8978 = vmatpush3.bf16.msra.mxu0 %v9743_v59 }
 0x4ae   : > { %8979 = vmatprep.subr.bf16.mxu0 %v9744_v12 }
 0x4b1   : > { %8980 = vmatpush3.bf16.msra.mxu0 %v9744_v12 }
 0x4b2   : > { %8981 = vmatprep.subr.bf16.mxu0 %v9745_v50 }
 0x4b5   : > { %8982 = vmatpush3.bf16.msra.mxu0 %v9745_v50 }
 0x4b6   : > { %8983 = vmatprep.subr.bf16.mxu0 %v9746_v24 }
 0x4b9   : > { %8984 = vmatpush3.bf16.msra.mxu0 %v9746_v24 }
 0x4ba   : > { %8985 = vmatprep.subr.bf16.mxu0 %v9747_v23 }
 0x4bd   : > { %8986 = vmatpush3.bf16.msra.mxu0 %v9747_v23 }
 0x4be   : > { %8995 = vmatprep.subr.bf16.mxu0 %v9748_v16 }
 0x4c0   : > { %8988 = vmatmul.mubr.msk.bf16.vlgmr.msra.gmra.mrb[8].mxu0 %vm12247_vm11, %v11266_v27  ;;  %v9753_v27 = vld [vmem:[%s11975_s1 + $0x6a8] sm:$0xff]  }
 0x4c1   : > { %8991 = vmatprep.mubr.msk.bf16.mxu0 %vm12270_vm14, %v11264_v54  ;;  %8996 = vmatpush3.bf16.msra.mxu0 %v9748_v16  ;;  %v9752_v54 = vld [vmem:[%s11975_s1 + $0x6a0] sm:$0xff]  }
 0x4c2   : > { %8997 = vmatprep.subr.bf16.mxu0 %v9749_v18 }
 0x4c5   : > { %8998 = vmatpush3.bf16.msra.mxu0 %v9749_v18 }
 0x4c6   : > { %8999 = vmatprep.subr.bf16.mxu0 %v9750_v15 }
 0x4c8   : > { %8992 = vmatmul.mubr.msk.bf16.gmra.mrb[12].mxu0 %vm12249_vm7, %v11037_v56  ;;  %v9754_v56 = vld [vmem:[%s11975_s1 + $0x6b0] sm:$0xff]  }
 0x4c9   : > { %9000 = vmatpush3.bf16.msra.mxu0 %v9750_v15  ;;  %9011 = vmatprep.mubr.msk.bf16.mxu0 %vm12250_vm4, %v11334_v61  ;;  %v9755_v61 = vld [vmem:[%s11975_s1 + $0x6b8] sm:$0xff]  }
 0x4ca   : > { %9001 = vmatprep.subr.bf16.mxu0 %v9751_v46 }
 0x4cd   : > { %9002 = vmatpush3.bf16.msra.mxu0 %v9751_v46  ;;  %v9765_v46 = vld [vmem:[%s11975_s1 + $0x6c8] sm:$0xff]  }
 0x4ce   : > { %9003 = vmatprep.subr.bf16.mxu0 %v9752_v54 }
 0x4d1   : > { %9004 = vmatpush3.bf16.msra.mxu0 %v9752_v54 }
 0x4d2   : > { %9005 = vmatprep.subr.bf16.mxu0 %v9753_v27 }
 0x4d5   : > { %9006 = vmatpush3.bf16.msra.mxu0 %v9753_v27 }
 0x4d6   : > { %9007 = vmatprep.subr.bf16.mxu0 %v9754_v56 }
 0x4d9   : > { %9008 = vmatpush3.bf16.msra.mxu0 %v9754_v56 }
 0x4da   : > { %9009 = vmatprep.subr.bf16.mxu0 %v9755_v61 }
 0x4dd   : > { %9010 = vmatpush3.bf16.msra.mxu0 %v9755_v61 }
 0x4de   : > { %9235 = vmatprep.subr.bf16.mxu0 %v11772_v3 }
 0x4e0   : > { %9012 = vmatmul.mubr.msk.bf16.vlgmr.msra.gmra.mrb[8].mxu0 %vm10857_vm12, %v11345_v34  ;;  %v9761_v34 = vld [vmem:[%s11975_s1 + $0x728] sm:$0xff]  }
 0x4e1   : > { %9015 = vmatprep.mubr.msk.bf16.mxu0 %vm10863_vm13, %v11471_v19  ;;  %9029 = vmatprep.subr.bf16.mxu1 %v9761_v34  ;;  %v9762_v19 = vld [vmem:[%s11975_s1 + $0x730] sm:$0xff]  }
 0x4e2   : > { %9030 = vmatpush3.bf16.msra.mxu1 %v9761_v34  ;;  %9236 = vmatpush3.bf16.msra.mxu0 %v11772_v3 }
 0x4e3   : > { %9031 = vmatprep.subr.bf16.mxu1 %v9762_v19 }
 0x4e6   : > { %9032 = vmatpush3.bf16.msra.mxu1 %v9762_v19  ;;  %v9766_v19 = vld [vmem:[%s11975_s1 + $0x6d0] sm:$0xff]  }
 0x4e7   : > { %9033 = vmatprep.subr.bf16.mxu1 %v9763_v32 }
 0x4e8   : > { %9016 = vmatmul.mubr.msk.bf16.gmra.mrb[12].mxu0 %vm10879_vm0, %v7584_v36 }
 0x4ea   : > { %9034 = vmatpush3.bf16.msra.mxu1 %v9763_v32  ;;  %v4985_v32 = vld [vmem:[#allocation2 + $0x7] sm:$0xff] }
 0x4eb   : > { %9043 = vmatprep.subr.bf16.mxu1 %v9764_v60 }
 0x5b3   : > { %v9013_v42 = vpop.f32.mrb[8].mxu0 }
 0x5b4   : > { %v4963_v10 = vadd.f32 %v9013_v42, %v7587_v47  ;;  %v4914_v13 = vpop.f32.mrb[9].mxu0  ;;  %v4986_v42 = vld [vmem:[#allocation2 + $0xf] sm:$0xff] }
 0x5b5   : > { %v4961_v43 = vadd.f32 %v7587_v47, %v4914_v13  ;;  %v9014_v21 = vpop.f32.mrb[10].mxu0 }
 0x5b6   : > { %v4971_v49 = vmax.f32 %v4963_v10, 0.0  ;;  %v4964_v51 = vadd.f32 %v9014_v21, %v7587_v47  ;;  %v4917_v59 = vpop.f32.mrb[11].mxu0  ;;  %v9769_v21 = vld [vmem:[%s11975_s1 + $0x6e8] sm:$0xff]  }
 0x5b7   : > { %v4969_v12 = vmax.f32 %v4961_v43, 0.0  ;;  %v4962_v50 = vadd.f32 %v7587_v47, %v4917_v59  ;;  %v9768_v43 = vld [vmem:[%s11975_s1 + $0x6e0] sm:$0xff]  }
 0x5b8   : > { %4979 = vst [vmem:[#allocation2 + $0x28] sm:$0xff] %v4971_v49  ;;  %v4972_v24 = vmax.f32 %v4964_v51, 0.0 }
 0x5b9   : > { %4977 = vst [vmem:[#allocation2 + $0x18] sm:$0xff] %v4969_v12  ;;  %v4970_v23 = vmax.f32 %v4962_v50, 0.0 }
 0x5ba   : > { %4980 = vst [vmem:[#allocation2 + $0x30] sm:$0xff] %v4972_v24  ;;  %v11591_v16 = vpack.c.bf16 %v4972_v24, %v4971_v49  ;;  %v9772_v49 = vld [vmem:[%s11975_s1 + $0x740] sm:$0xff]  }
 0x5bb   : > { %4978 = vst [vmem:[#allocation2 + $0x20] sm:$0xff] %v4970_v23  ;;  %v9017_v18 = vpop.f32.mrb[12].mxu0  ;;  %v11593_v15 = vpack.c.bf16 %v4970_v23, %v4969_v12  ;;  %v9773_v23 = vld [vmem:[%s11975_s1 + $0x748] sm:$0xff]  }
 0x5bc   : > { %v4967_v54 = vadd.f32 %v9017_v18, %v7587_v47  ;;  %v4930_v27 = vpop.f32.mrb[13].mxu0 }
 0x5bd   : > { %v4965_v56 = vadd.f32 %v7587_v47, %v4930_v27  ;;  %v9018_v61 = vpop.f32.mrb[14].mxu0  ;;  %9036 = vmatmul.mubr.msk.bf16.vlgmr.msra.gmra.mrb[8].mxu1 %vm12222_vm6, %v11593_v15  ;;  %vm12271_vm6 = vnez %v12090_v35  ;;  %v5285_v27 = vld [vmem:[#allocation2 + $0x9] sm:$0xff]  ;;  %v9775_v35 = vld [vmem:[%s11975_s1 + $0x758] sm:$0xff]  }
 0x5be   : > { %v4975_v4 = vmax.f32 %v4967_v54, 0.0  ;;  %v4968_v26 = vadd.f32 %v9018_v61, %v7587_v47  ;;  %v4933_v36 = vpop.f32.mrb[15].mxu0  ;;  %9044 = vmatpush3.bf16.msra.mxu1 %v9764_v60  ;;  %9039 = vmatprep.mubr.msk.bf16.mxu1 %vm12223_vm15, %v11591_v16  ;;  %v7649_v60 = vpack.c.bf16 %v4986_v42, %v4985_v32  ;;  %vm12272_vm15 = vnez %v12092_v39 }
 0x5bf   : > { %v4973_v7 = vmax.f32 %v4965_v56, 0.0  ;;  %v4966_v34 = vadd.f32 %v7587_v47, %v4933_v36  ;;  %9045 = vmatprep.subr.bf16.mxu1 %v9765_v46  ;;  %v9767_v47 = vld [vmem:[%s11975_s1 + $0x6d8] sm:$0xff]   ;;  %v9777_v36 = vld [vmem:[%s11975_s1 + $0x768] sm:$0xff]  }
 0x5c0   : > { %4983 = vst [vmem:[#allocation2 + $0x48] sm:$0xff] %v4975_v4  ;;  %v4976_v53 = vmax.f32 %v4968_v26, 0.0  ;;  %v4987_v50 = vld [vmem:[#allocation2 + $0x17] sm:$0xff]  ;;  %v9776_v26 = vld [vmem:[%s11975_s1 + $0x760] sm:$0xff]  }
 0x5c1   : > { %4981 = vst [vmem:[#allocation2 + $0x38] sm:$0xff] %v4973_v7  ;;  %v4974_v10 = vmax.f32 %v4966_v34, 0.0  ;;  %v4990_v12 = vld [vmem:[#allocation2 + $0x2f] sm:$0xff] }
 0x5c2   : > { %4984 = vst [vmem:[#allocation2 + $0x50] sm:$0xff] %v4976_v53  ;;  %9046 = vmatpush3.bf16.msra.mxu1 %v9765_v46  ;;  %v11607_v13 = vpack.c.bf16 %v4976_v53, %v4975_v4  ;;  %v4988_v51 = vld [vmem:[#allocation2 + $0x1f] sm:$0xff]  ;;  %v4989_v59 = vld [vmem:[#allocation2 + $0x27] sm:$0xff]  ;;  %v9774_v46 = vld [vmem:[%s11975_s1 + $0x750] sm:$0xff]  }
 0x5c3   : > { %4982 = vst [vmem:[#allocation2 + $0x40] sm:$0xff] %v4974_v10  ;;  %9047 = vmatprep.subr.bf16.mxu1 %v9766_v19  ;;  %v11609_v55 = vpack.c.bf16 %v4974_v10, %v4973_v7  ;;  %v7652_v24 = vpack.c.bf16 %v4988_v51, %v4987_v50  ;;  %v11637_v18 = vpack.c.bf16 %v4990_v12, %v4989_v59  ;;  %v5286_v56 = vld [vmem:[#allocation2 + $0x11] sm:$0xff]  ;;  %v9780_v7 = vld [vmem:[%s11975_s1 + $0x780] sm:$0xff]   ;;  %v5289_v53 = vld [vmem:[#allocation2 + $0x29] sm:$0xff] }
 0x5c4   : > { %v7685_v39 = vpack.c.bf16 %v5286_v56, %v5285_v27  ;;  %v5287_v34 = vld [vmem:[#allocation2 + $0x19] sm:$0xff]  ;;  %v9781_v10 = vld [vmem:[%s11975_s1 + $0x788] sm:$0xff]   ;;  %v9790_v59 = vld [vmem:[%s11975_s1 + $0x7d0] sm:$0xff]  }
 0x5c5   : > { %9040 = vmatmul.mubr.msk.bf16.gmra.mrb[12].mxu1 %vm12224_vm2, %v11609_v55  ;;  %vm12273_vm2 = vnez %v12094_v63  ;;  %v9778_v63 = vld [vmem:[%s11975_s1 + $0x770] sm:$0xff]   ;;  %v9789_v51 = vld [vmem:[%s11975_s1 + $0x7c8] sm:$0xff]   ;;  %v9799_v27 = vld [vmem:[%s11975_s1 + $0x818] sm:$0xff]  }
 0x5c6   : > { %9048 = vmatpush3.bf16.msra.mxu1 %v9766_v19  ;;  %9059 = vmatprep.mubr.msk.bf16.mxu1 %vm12225_vm1, %v7649_v60  ;;  %vm12274_vm1 = vnez %v12096_v14  ;;  %v9779_v14 = vld [vmem:[%s11975_s1 + $0x778] sm:$0xff]   ;;  %v5288_v19 = vld [vmem:[#allocation2 + $0x21] sm:$0xff]  ;;  %v11791_v56 = vld [vmem:[%s11977_s3 + $0x10] sm:$0xff]  }
 0x5c7   : > { %9049 = vmatprep.subr.bf16.mxu1 %v9767_v47  ;;  %v11672_v42 = vpack.c.bf16 %v5288_v19, %v5287_v34 }
 0x5c8   : > { %v4991_v61 = vld [vmem:[#allocation2 + $0x37] sm:$0xff] }
 0x5c9   : > { %v5290_v32 = vld [vmem:[#allocation2 + $0x31] sm:$0xff]  ;;  %v5765_v34 = vld [vmem:[#allocation2 + $0x49] sm:$0xff] }
 0x5ca   : > { %9050 = vmatpush3.bf16.msra.mxu1 %v9767_v47  ;;  %v4992_v54 = vld [vmem:[#allocation2 + $0x3f] sm:$0xff]  ;;  %v11677_v60 = vpack.c.bf16 %v5290_v32, %v5289_v53  ;;  %v9782_v47 = vld [vmem:[%s11975_s1 + $0x790] sm:$0xff]   ;;  %v5449_v12 = vld [vmem:[#allocation2 + $0x47] sm:$0xff] }
 0x5cb   : > { %9051 = vmatprep.subr.bf16.mxu1 %v9768_v43  ;;  %v11647_v4 = vpack.c.bf16 %v4992_v54, %v4991_v61  ;;  %v5450_v50 = vld [vmem:[#allocation2 + $0x4f] sm:$0xff]  ;;  %v11801_v61 = vld [vmem:[%s11977_s3 + $0x18] sm:$0xff]  }
 0x5cc   : > { %v9798_v54 = vld [vmem:[%s11975_s1 + $0x810] sm:$0xff]   ;;  %v9813_v53 = vld [vmem:[%s11975_s1 + $0x888] sm:$0xff]  }
 0x5cd   : > { %v5766_v19 = vld [vmem:[#allocation2 + $0x51] sm:$0xff] }
 0x5ce   : > { %9052 = vmatpush3.bf16.msra.mxu1 %v9768_v43  ;;  %v5291_v43 = vld [vmem:[#allocation2 + $0x39] sm:$0xff]  ;;  %v11841_v32 = vpack.c.bf16 %v5766_v19, %v5765_v34 }
 0x5cf   : > { %9053 = vmatprep.subr.bf16.mxu1 %v9769_v21 }
 0x5d2   : > { %9054 = vmatpush3.bf16.msra.mxu1 %v9769_v21  ;;  %v5292_v21 = vld [vmem:[#allocation2 + $0x41] sm:$0xff] }
 0x5d3   : > { %9055 = vmatprep.subr.bf16.mxu1 %v9770_v62 }
 0x5d6   : > { %9056 = vmatpush3.bf16.msra.mxu1 %v9770_v62  ;;  %v11688_v62 = vpack.c.bf16 %v5292_v21, %v5291_v43  ;;  %v5924_v43 = vld [vmem:[#allocation2 + $0x5f] sm:$0xff] }
 0x5d7   : > { %9057 = vmatprep.subr.bf16.mxu1 %v9771_v1 }
 0x5da   : > { %9058 = vmatpush3.bf16.msra.mxu1 %v9771_v1  ;;  %v9785_v1 = vld [vmem:[%s11975_s1 + $0x7a8] sm:$0xff]  }
 0x5db   : > { %9067 = vmatprep.subr.bf16.mxu1 %v9772_v49 }
 0x5dd   : > { %9060 = vmatmul.mubr.msk.bf16.vlgmr.msra.gmra.mrb[8].mxu1 %vm12271_vm6, %v7652_v24  ;;  %vm12275_vm6 = vnez %v12098_v20  ;;  %v9783_v20 = vld [vmem:[%s11975_s1 + $0x798] sm:$0xff]  }
 0x5de   : > { %9063 = vmatprep.mubr.msk.bf16.mxu1 %vm12272_vm15, %v11637_v18  ;;  %9068 = vmatpush3.bf16.msra.mxu1 %v9772_v49  ;;  %vm12276_vm15 = vnez %v12100_v25  ;;  %v9784_v25 = vld [vmem:[%s11975_s1 + $0x7a0] sm:$0xff]  }
 0x5df   : > { %9069 = vmatprep.subr.bf16.mxu1 %v9773_v23  ;;  %v9788_v49 = vld [vmem:[%s11975_s1 + $0x7c0] sm:$0xff]  }
 0x5e2   : > { %9070 = vmatpush3.bf16.msra.mxu1 %v9773_v23  ;;  %v9793_v23 = vld [vmem:[%s11975_s1 + $0x7e8] sm:$0xff]  }
 0x5e3   : > { %9071 = vmatprep.subr.bf16.mxu1 %v9774_v46 }
 0x5e5   : > { %9064 = vmatmul.mubr.msk.bf16.gmra.mrb[12].mxu1 %vm12273_vm2, %v11647_v4  ;;  %vm12277_vm2 = vnez %v12107_v38  ;;  %v9786_v38 = vld [vmem:[%s11975_s1 + $0x7b0] sm:$0xff]  }
 0x5e6   : > { %9072 = vmatpush3.bf16.msra.mxu1 %v9774_v46  ;;  %9083 = vmatprep.mubr.msk.bf16.mxu1 %vm12274_vm1, %v7685_v39  ;;  %vm12278_vm1 = vnez %v12109_v44  ;;  %v9787_v44 = vld [vmem:[%s11975_s1 + $0x7b8] sm:$0xff]   ;;  %v9797_v46 = vld [vmem:[%s11975_s1 + $0x808] sm:$0xff]   ;;  %v11811_v39 = vld [vmem:[%s11977_s3 + $0x20] sm:$0xff]  }
 0x5e7   : > { %9073 = vmatprep.subr.bf16.mxu1 %v9775_v35 }
 0x5ea   : > { %9074 = vmatpush3.bf16.msra.mxu1 %v9775_v35  ;;  %v9802_v35 = vld [vmem:[%s11975_s1 + $0x830] sm:$0xff]  }
 0x5eb   : > { %9075 = vmatprep.subr.bf16.mxu1 %v9776_v26 }
 0x5ee   : > { %9076 = vmatpush3.bf16.msra.mxu1 %v9776_v26  ;;  %v9803_v26 = vld [vmem:[%s11975_s1 + $0x838] sm:$0xff]  }
 0x5ef   : > { %9077 = vmatprep.subr.bf16.mxu1 %v9777_v36 }
 0x5f2   : > { %9078 = vmatpush3.bf16.msra.mxu1 %v9777_v36  ;;  %v11821_v36 = vld [vmem:[%s11977_s3 + $0x28] sm:$0xff]  }
 0x5f3   : > { %9079 = vmatprep.subr.bf16.mxu1 %v9778_v63 }
 0x5f6   : > { %9080 = vmatpush3.bf16.msra.mxu1 %v9778_v63  ;;  %v9804_v63 = vld [vmem:[%s11975_s1 + $0x840] sm:$0xff]  }
 0x5f7   : > { %9081 = vmatprep.subr.bf16.mxu1 %v9779_v14 }
 0x5fa   : > { %9082 = vmatpush3.bf16.msra.mxu1 %v9779_v14  ;;  %v9805_v14 = vld [vmem:[%s11975_s1 + $0x848] sm:$0xff]  }
 0x5fb   : > { %9091 = vmatprep.subr.bf16.mxu1 %v9780_v7 }
 0x5fd   : > { %9084 = vmatmul.mubr.msk.bf16.vlgmr.msra.gmra.mrb[8].mxu1 %vm12275_vm6, %v11672_v42  ;;  %vm12279_vm6 = vnez %v12128_v5  ;;  %v9791_v5 = vld [vmem:[%s11975_s1 + $0x7d8] sm:$0xff]  }
 0x5fe   : > { %9087 = vmatprep.mubr.msk.bf16.mxu1 %vm12276_vm15, %v11677_v60  ;;  %9092 = vmatpush3.bf16.msra.mxu1 %v9780_v7  ;;  %vm12280_vm15 = vnez %v12130_v37  ;;  %v9792_v37 = vld [vmem:[%s11975_s1 + $0x7e0] sm:$0xff]   ;;  %v9806_v7 = vld [vmem:[%s11975_s1 + $0x850] sm:$0xff]  }
 0x5ff   : > { %9093 = vmatprep.subr.bf16.mxu1 %v9781_v10 }
 0x602   : > { %9094 = vmatpush3.bf16.msra.mxu1 %v9781_v10  ;;  %v9814_v10 = vld [vmem:[%s11975_s1 + $0x890] sm:$0xff]  }
 0x603   : > { %9095 = vmatprep.subr.bf16.mxu1 %v9782_v47 }
 0x605   : > { %9088 = vmatmul.mubr.msk.bf16.gmra.mrb[12].mxu1 %vm12277_vm2, %v11688_v62  ;;  %vm12281_vm2 = vnez %v12134_v30  ;;  %v9795_v30 = vld [vmem:[%s11975_s1 + $0x7f8] sm:$0xff]  }
 0x606   : > { %9096 = vmatpush3.bf16.msra.mxu1 %v9782_v47  ;;  %9107 = vmatprep.mubr.msk.bf16.mxu1 %vm12278_vm1, %v7652_v24  ;;  %v11725_v24 = vpack.c.bf16 %v5450_v50, %v5449_v12  ;;  %vm12283_vm1 = vnez %v12142_v17  ;;  %v9800_v17 = vld [vmem:[%s11975_s1 + $0x820] sm:$0xff]   ;;  %v5923_v47 = vld [vmem:[#allocation2 + $0x57] sm:$0xff] }
 0x607   : > { %9097 = vmatprep.subr.bf16.mxu1 %v9783_v20  ;;  %v7838_v21 = vpack.c.bf16 %v5924_v43, %v5923_v47 }
 0x60a   : > { %9098 = vmatpush3.bf16.msra.mxu1 %v9783_v20  ;;  %v9821_v20 = vld [vmem:[%s11975_s1 + $0x8c8] sm:$0xff]  }
 0x60b   : > { %9099 = vmatprep.subr.bf16.mxu1 %v9784_v25 }
 0x60e   : > { %9100 = vmatpush3.bf16.msra.mxu1 %v9784_v25  ;;  %v9822_v25 = vld [vmem:[%s11975_s1 + $0x8d0] sm:$0xff]  }
 0x60f   : > { %9101 = vmatprep.subr.bf16.mxu1 %v9785_v1 }
 0x612   : > { %9102 = vmatpush3.bf16.msra.mxu1 %v9785_v1  ;;  %v9838_v1 = vld [vmem:[#allocation2 + $0x8] sm:$0xff] }
 0x613   : > { %9103 = vmatprep.subr.bf16.mxu1 %v9786_v38 }
 0x616   : > { %9104 = vmatpush3.bf16.msra.mxu1 %v9786_v38  ;;  %v7874_v38 = vpack.c.bf16 %v9838_v1, %v9838_v1 }
 0x617   : > { %9105 = vmatprep.subr.bf16.mxu1 %v9787_v44 }
 0x61a   : > { %9106 = vmatpush3.bf16.msra.mxu1 %v9787_v44  ;;  %v9823_v44 = vld [vmem:[%s11975_s1 + $0x8d8] sm:$0xff]  }
 0x61b   : > { %9115 = vmatprep.subr.bf16.mxu1 %v9788_v49 }
 0x61d   : > { %9108 = vmatmul.mubr.msk.bf16.vlgmr.msra.gmra.mrb[8].mxu1 %vm12279_vm6, %v11637_v18  ;;  %vm12287_vm6 = vnez %v12197_v41  ;;  %v9815_v41 = vld [vmem:[%s11975_s1 + $0x898] sm:$0xff]  }
 0x61e   : > { %9111 = vmatprep.mubr.msk.bf16.mxu1 %vm12280_vm15, %v11647_v4  ;;  %9116 = vmatpush3.bf16.msra.mxu1 %v9788_v49  ;;  %vm12288_vm15 = vnez %v12199_v29  ;;  %v9816_v29 = vld [vmem:[%s11975_s1 + $0x8a0] sm:$0xff]  }
 0x61f   : > { %9117 = vmatprep.subr.bf16.mxu1 %v9789_v51 }
 0x622   : > { %9118 = vmatpush3.bf16.msra.mxu1 %v9789_v51 }
 0x623   : > { %9119 = vmatprep.subr.bf16.mxu1 %v9790_v59 }
 0x625   : > { %9112 = vmatmul.mubr.msk.bf16.gmra.mrb[12].mxu1 %vm12259_vm10, %v11725_v24  ;;  %vm12282_vm10 = vnez %v12139_v22  ;;  %v11777_v22 = vld [vmem:[%s11977_s3 + $0x8] sm:$0xff]  }
 0x626   : > { %9120 = vmatpush3.bf16.msra.mxu1 %v9790_v59  ;;  %9131 = vmatprep.mubr.msk.bf16.mxu1 %vm12281_vm2, %v11593_v15  ;;  %v9796_v15 = vld [vmem:[%s11975_s1 + $0x800] sm:$0xff]   ;;  %vm12289_vm2 = vnez %v12203_v58  ;;  %v9819_v58 = vld [vmem:[%s11975_s1 + $0x8b8] sm:$0xff]  }
 0x627   : > { %9121 = vmatprep.subr.bf16.mxu1 %v9791_v5  ;;  %9237 = vmatprep.subr.bf16.mxu0 %v11777_v22 }
 0x628   : > { %9238 = vmatpush3.bf16.msra.mxu0 %v11777_v22 }
 0x629   : > { %9239 = vmatprep.subr.bf16.mxu0 %v11791_v56 }
 0x62a   : > { %9122 = vmatpush3.bf16.msra.mxu1 %v9791_v5 }
 0x62b   : > { %9123 = vmatprep.subr.bf16.mxu1 %v9792_v37 }
 0x62c   : > { %9240 = vmatpush3.bf16.msra.mxu0 %v11791_v56 }
 0x62d   : > { %9241 = vmatprep.subr.bf16.mxu0 %v11801_v61 }
 0x62e   : > { %9124 = vmatpush3.bf16.msra.mxu1 %v9792_v37 }
 0x62f   : > { %9125 = vmatprep.subr.bf16.mxu1 %v9793_v23 }
 0x630   : > { %9242 = vmatpush3.bf16.msra.mxu0 %v11801_v61 }
 0x631   : > { %9243 = vmatprep.subr.bf16.mxu0 %v11811_v39 }
 0x632   : > { %9126 = vmatpush3.bf16.msra.mxu1 %v9793_v23 }
 0x633   : > { %9127 = vmatprep.subr.bf16.mxu1 %v9794_v11 }
 0x634   : > { %9244 = vmatpush3.bf16.msra.mxu0 %v11811_v39 }
 0x635   : > { %9245 = vmatprep.subr.bf16.mxu0 %v11821_v36 }
 0x636   : > { %9128 = vmatpush3.bf16.msra.mxu1 %v9794_v11 }
 0x637   : > { %9129 = vmatprep.subr.bf16.mxu1 %v9795_v30 }
 0x638   : > { %9246 = vmatpush3.bf16.msra.mxu0 %v11821_v36 }
 0x639   : > { %9247 = vmatprep.subr.bf16.mxu0 %v9834_v6 }
 0x63a   : > { %9130 = vmatpush3.bf16.msra.mxu1 %v9795_v30 }
 0x63b   : > { %9139 = vmatprep.subr.bf16.mxu1 %v9796_v15 }
 0x63c   : > { %9248 = vmatpush3.bf16.msra.mxu0 %v9834_v6 }
 0x63d   : > { %9132 = vmatmul.mubr.msk.bf16.vlgmr.msra.gmra.mrb[8].mxu1 %vm12238_vm5, %v11591_v16  ;;  %vm12284_vm5 = vnez %v12144_v8  ;;  %v9801_v8 = vld [vmem:[%s11975_s1 + $0x828] sm:$0xff]   ;;  %9249 = vmatprep.subr.bf16.mxu0 %v9835_v28 }
 0x63e   : > { %9135 = vmatprep.mubr.msk.bf16.mxu1 %vm12282_vm10, %v11609_v55  ;;  %9140 = vmatpush3.bf16.msra.mxu1 %v9796_v15 }
 0x63f   : > { %9141 = vmatprep.subr.bf16.mxu1 %v9797_v46 }
 0x640   : > { %9250 = vmatpush3.bf16.msra.mxu0 %v9835_v28 }
 0x642   : > { %9142 = vmatpush3.bf16.msra.mxu1 %v9797_v46 }
 0x643   : > { %9143 = vmatprep.subr.bf16.mxu1 %v9798_v54 }
 0x645   : > { %9136 = vmatmul.mubr.msk.bf16.gmra.mrb[12].mxu1 %vm12283_vm1, %v11607_v13 }
 0x646   : > { %9144 = vmatpush3.bf16.msra.mxu1 %v9798_v54  ;;  %9155 = vmatprep.mubr.msk.bf16.mxu1 %vm12284_vm5, %v11672_v42  ;;  %v9809_v42 = vld [vmem:[%s11975_s1 + $0x868] sm:$0xff]  }
 0x647   : > { %9145 = vmatprep.subr.bf16.mxu1 %v9799_v27 }
 0x64a   : > { %9146 = vmatpush3.bf16.msra.mxu1 %v9799_v27 }
 0x64b   : > { %9147 = vmatprep.subr.bf16.mxu1 %v9800_v17 }
 0x64e   : > { %9148 = vmatpush3.bf16.msra.mxu1 %v9800_v17 }
 0x64f   : > { %9149 = vmatprep.subr.bf16.mxu1 %v9801_v8 }
 0x652   : > { %9150 = vmatpush3.bf16.msra.mxu1 %v9801_v8 }
 0x653   : > { %9151 = vmatprep.subr.bf16.mxu1 %v9802_v35 }
 0x656   : > { %9152 = vmatpush3.bf16.msra.mxu1 %v9802_v35 }
 0x657   : > { %9153 = vmatprep.subr.bf16.mxu1 %v9803_v26 }
 0x65a   : > { %9154 = vmatpush3.bf16.msra.mxu1 %v9803_v26 }
 0x65b   : > { %9163 = vmatprep.subr.bf16.mxu1 %v9804_v63 }
 0x65d   : > { %9156 = vmatmul.mubr.msk.bf16.vlgmr.msra.gmra.mrb[8].mxu1 %vm12264_vm9, %v11677_v60  ;;  %vm12285_vm9 = vnez %v12169_v0  ;;  %v9810_v0 = vld [vmem:[%s11975_s1 + $0x870] sm:$0xff]  }
 0x65e   : > { %9159 = vmatprep.mubr.msk.bf16.mxu1 %vm12265_vm3, %v11688_v62  ;;  %9164 = vmatpush3.bf16.msra.mxu1 %v9804_v63  ;;  %vm12286_vm3 = vnez %v12171_v31  ;;  %v9811_v31 = vld [vmem:[%s11975_s1 + $0x878] sm:$0xff]  }
 0x65f   : > { %9165 = vmatprep.subr.bf16.mxu1 %v9805_v14 }
 0x662   : > { %9166 = vmatpush3.bf16.msra.mxu1 %v9805_v14 }
 0x663   : > { %9167 = vmatprep.subr.bf16.mxu1 %v9806_v7 }
 0x665   : > { %9160 = vmatmul.mubr.msk.bf16.gmra.mrb[12].mxu1 %vm12285_vm9, %v11841_v32 }
 0x666   : > { %9168 = vmatpush3.bf16.msra.mxu1 %v9806_v7  ;;  %9179 = vmatprep.mubr.msk.bf16.mxu1 %vm12286_vm3, %v11637_v18  ;;  %v9812_v18 = vld [vmem:[%s11975_s1 + $0x880] sm:$0xff]  }
 0x667   : > { %9169 = vmatprep.subr.bf16.mxu1 %v9807_v52  ;;  %v7914_v7 = vld [vmem:[%s11978_s4] ss:$0 sm:$0xff] }
 0x66a   : > { %9170 = vmatpush3.bf16.msra.mxu1 %v9807_v52 }
 0x66b   : > { %9171 = vmatprep.subr.bf16.mxu1 %v9808_v45 }
 0x66e   : > { %9172 = vmatpush3.bf16.msra.mxu1 %v9808_v45 }
 0x66f   : > { %9173 = vmatprep.subr.bf16.mxu1 %v9809_v42 }
 0x672   : > { %9174 = vmatpush3.bf16.msra.mxu1 %v9809_v42 }
 0x673   : > { %9175 = vmatprep.subr.bf16.mxu1 %v9810_v0 }
 0x676   : > { %9176 = vmatpush3.bf16.msra.mxu1 %v9810_v0 }
 0x677   : > { %9177 = vmatprep.subr.bf16.mxu1 %v9811_v31 }
 0x67a   : > { %9178 = vmatpush3.bf16.msra.mxu1 %v9811_v31 }
 0x67b   : > { %9187 = vmatprep.subr.bf16.mxu1 %v9812_v18 }
 0x67d   : > { %9180 = vmatmul.mubr.msk.bf16.vlgmr.msra.gmra.mrb[8].mxu1 %vm12287_vm6, %v11647_v4  ;;  %v9817_v4 = vld [vmem:[%s11975_s1 + $0x8a8] sm:$0xff]  }
 0x67e   : > { %9183 = vmatprep.mubr.msk.bf16.mxu1 %vm12288_vm15, %v11725_v24  ;;  %9188 = vmatpush3.bf16.msra.mxu1 %v9812_v18 }
 0x67f   : > { %9189 = vmatprep.subr.bf16.mxu1 %v9813_v53 }
 0x682   : > { %9190 = vmatpush3.bf16.msra.mxu1 %v9813_v53 }
 0x683   : > { %9191 = vmatprep.subr.bf16.mxu1 %v9814_v10 }
 0x685   : > { %9184 = vmatmul.mubr.msk.bf16.gmra.mrb[12].mxu1 %vm12268_vm8, %v7838_v21 }
 0x686   : > { %9192 = vmatpush3.bf16.msra.mxu1 %v9814_v10  ;;  %9203 = vmatprep.mubr.msk.bf16.mxu1 %vm12289_vm2, %v11591_v16  ;;  %v9820_v16 = vld [vmem:[%s11975_s1 + $0x8c0] sm:$0xff]  }
 0x687   : > { %9193 = vmatprep.subr.bf16.mxu1 %v9815_v41 }
 0x68a   : > { %9194 = vmatpush3.bf16.msra.mxu1 %v9815_v41 }
 0x68b   : > { %9195 = vmatprep.subr.bf16.mxu1 %v9816_v29 }
 0x68e   : > { %9196 = vmatpush3.bf16.msra.mxu1 %v9816_v29 }
 0x68f   : > { %9197 = vmatprep.subr.bf16.mxu1 %v9817_v4 }
 0x692   : > { %9198 = vmatpush3.bf16.msra.mxu1 %v9817_v4 }
 0x693   : > { %9199 = vmatprep.subr.bf16.mxu1 %v9818_v2 }
 0x696   : > { %9200 = vmatpush3.bf16.msra.mxu1 %v9818_v2 }
 0x697   : > { %9201 = vmatprep.subr.bf16.mxu1 %v9819_v58 }
 0x69a   : > { %9202 = vmatpush3.bf16.msra.mxu1 %v9819_v58 }
 0x69b   : > { %9211 = vmatprep.subr.bf16.mxu1 %v9820_v16 }
 0x69d   : > { %9204 = vmatmul.mubr.msk.bf16.vlgmr.msra.gmra.mrb[8].mxu1 %vm12247_vm11, %v11609_v55  ;;  %v6240_v55 = vld [vmem:[#allocation2 + $0x61] sm:$0xff] }
 0x69e   : > { %9207 = vmatprep.mubr.msk.bf16.mxu1 %vm12270_vm14, %v11607_v13  ;;  %9212 = vmatpush3.bf16.msra.mxu1 %v9820_v16  ;;  %v6239_v13 = vld [vmem:[#allocation2 + $0x59] sm:$0xff] }
 0x69f   : > { %9213 = vmatprep.subr.bf16.mxu1 %v9821_v20 }
 0x6a2   : > { %9214 = vmatpush3.bf16.msra.mxu1 %v9821_v20 }
 0x6a3   : > { %9215 = vmatprep.subr.bf16.mxu1 %v9822_v25 }
 0x6a5   : > { %9208 = vmatmul.mubr.msk.bf16.gmra.mrb[12].mxu1 %vm12249_vm7, %v7874_v38 }
 0x6a6   : > { %9216 = vmatpush3.bf16.msra.mxu1 %v9822_v25  ;;  %9227 = vmatprep.mubr.msk.bf16.mxu1 %vm12250_vm4, %v11677_v60  ;;  %v7910_v60 = vpack.c.bf16 %v6240_v55, %v6239_v13 }
 0x6a7   : > { %9217 = vmatprep.subr.bf16.mxu1 %v9823_v44 }
 0x6aa   : > { %9218 = vmatpush3.bf16.msra.mxu1 %v9823_v44 }
 0x6ab   : > { %9219 = vmatprep.subr.bf16.mxu1 %v9824_v57 }
 0x6ae   : > { %9220 = vmatpush3.bf16.msra.mxu1 %v9824_v57 }
 0x6af   : > { %9221 = vmatprep.subr.bf16.mxu1 %v9825_v33 }
 0x6b2   : > { %9222 = vmatpush3.bf16.msra.mxu1 %v9825_v33 }
 0x6b3   : > { %9223 = vmatprep.subr.bf16.mxu1 %v9826_v40 }
 0x6b6   : > { %9224 = vmatpush3.bf16.msra.mxu1 %v9826_v40 }
 0x6b7   : > { %9225 = vmatprep.subr.bf16.mxu1 %v9827_v9 }
 0x6ba   : > { %9226 = vmatpush3.bf16.msra.mxu1 %v9827_v9 }
 0x6bb   : > { %9259 = vmatprep.subr.bf16.mxu1 %v11772_v3 }
 0x6bd   : > { %9228 = vmatmul.mubr.msk.bf16.vlgmr.msra.gmra.mrb[8].mxu1 %vm10857_vm12, %v11688_v62 }
 0x6be   : > { %9231 = vmatprep.mubr.msk.bf16.mxu1 %vm10863_vm13, %v11841_v32  ;;  %9267 = vmatpush3.bf16.msra.mxu1 %v11772_v3 }
 0x6bf   : > { %9260 = vmatprep.subr.bf16.mxu1 %v11777_v22 }
 0x6c2   : > { %9268 = vmatpush3.bf16.msra.mxu1 %v11777_v22 }
 0x6c3   : > { %9261 = vmatprep.subr.bf16.mxu1 %v11791_v56 }
 0x6c5   : > { %9232 = vmatmul.mubr.msk.bf16.gmra.mrb[12].mxu1 %vm10879_vm0, %v7910_v60 }
 0x6c6   : > { %9269 = vmatpush3.bf16.msra.mxu1 %v11791_v56 }
 0x6c7   : > { %9262 = vmatprep.subr.bf16.mxu1 %v11801_v61 }
 0x6ca   : > { %9270 = vmatpush3.bf16.msra.mxu1 %v11801_v61 }
 0x6cb   : > { %9263 = vmatprep.subr.bf16.mxu1 %v11811_v39 }
 0x6ce   : > { %9271 = vmatpush3.bf16.msra.mxu1 %v11811_v39 }
 0x6cf   : > { %9264 = vmatprep.subr.bf16.mxu1 %v11821_v36 }
 0x6d2   : > { %9272 = vmatpush3.bf16.msra.mxu1 %v11821_v36 }
 0x6d3   : > { %9265 = vmatprep.subr.bf16.mxu1 %v9834_v6 }
 0x6d6   : > { %9273 = vmatpush3.bf16.msra.mxu1 %v9834_v6 }
 0x6d7   : > { %9266 = vmatprep.subr.bf16.mxu1 %v9835_v28 }
 0x6da   : > { %9274 = vmatpush3.bf16.msra.mxu1 %v9835_v28 }
 0x790   : > { %v9229_v62 = vpop.f32.mrb[8].mxu1 }
 0x791   : > { %v6401_v49 = vadd.f32 %v9229_v62, %v7913_v48  ;;  %v6352_v51 = vpop.f32.mrb[9].mxu1 }
 0x792   : > { %v6399_v59 = vadd.f32 %v7913_v48, %v6352_v51  ;;  %v9230_v12 = vpop.f32.mrb[10].mxu1 }
 0x793   : > { %v6402_v50 = vadd.f32 %v9230_v12, %v7913_v48  ;;  %v6355_v24 = vpop.f32.mrb[11].mxu1  ;;  %v6409_v37 = vmax.f32 %v6401_v49, 0.0 }
 0x794   : > { %v6400_v5 = vadd.f32 %v7913_v48, %v6355_v24  ;;  %v6407_v11 = vmax.f32 %v6399_v59, 0.0 }
 0x795   : > { %v6410_v23 = vmax.f32 %v6402_v50, 0.0 }
 0x796   : > { %v6408_v30 = vmax.f32 %v6400_v5, 0.0 }
 0x797   : > { %v6416_v15 = vpack.c.bf16 %v6410_v23, %v6409_v37 }
 0x798   : > { %v6415_v46 = vpack.c.bf16 %v6408_v30, %v6407_v11  ;;  %v9233_v54 = vpop.f32.mrb[12].mxu1 }
 0x799   : > { %v6405_v27 = vadd.f32 %v9233_v54, %v7913_v48  ;;  %v6368_v3 = vpop.f32.mrb[13].mxu1 }
 0x79a   : > { %v6403_v22 = vadd.f32 %v7913_v48, %v6368_v3  ;;  %v9234_v17 = vpop.f32.mrb[14].mxu1  ;;  %9251 = vmatprep.mubr.bf16.mxu0 %v6415_v46 }
 0x79b   : > { %v6406_v56 = vadd.f32 %v9234_v17, %v7913_v48  ;;  %v6371_v8 = vpop.f32.mrb[15].mxu1  ;;  %9252 = vmatmul.mubr.bf16.vlgmr.msra.gmra.mrb[16].mxu0 %v6416_v15  ;;  %v6413_v35 = vmax.f32 %v6405_v27, 0.0 }
 0x79c   : > { %v6404_v61 = vadd.f32 %v7913_v48, %v6371_v8  ;;  %v6411_v26 = vmax.f32 %v6403_v22, 0.0 }
 0x79d   : > { %v6414_v39 = vmax.f32 %v6406_v56, 0.0 }
 0x79e   : > { %v6412_v36 = vmax.f32 %v6404_v61, 0.0 }
 0x79f   : > { %v6418_v63 = vpack.c.bf16 %v6414_v39, %v6413_v35 }
 0x7a0   : > { %v6417_v14 = vpack.c.bf16 %v6412_v36, %v6411_v26 }
 0x7a2   : > { %9255 = vmatprep.mubr.bf16.mxu1 %v6417_v14 }
 0x7a3   : > { %9256 = vmatmul.mubr.bf16.vlgmr.msra.gmra.mrb[16].mxu1 %v6418_v63 }
 0x86e   : > { %v9253_v34 = vpop.f32.mrb[16].mxu0 }
 0x86f   : > { %v6533_v19 = vadd.f32 %v9253_v34, %v7914_v7  ;;  %v6524_v32 = vpop.f32.mrb[17].mxu0 }
 0x870   : > { %v6525_v52 = vadd.f32 %v7914_v7, %v6524_v32  ;;  %v9254_v45 = vpop.f32.mrb[18].mxu0 }
 0x871   : > { %6557 = vst [vmem:[%s224_s10 + $0x10] sm:$0xff] %v6533_v19  ;;  %v6536_v42 = vadd.f32 %v9254_v45, %v7914_v7  ;;  %v6527_v0 = vpop.f32.mrb[19].mxu0 }
 0x872   : > { %6555 = vst [vmem:[%s224_s10] sm:$0xff] %v6525_v52  ;;  %v6528_v31 = vadd.f32 %v7914_v7, %v6527_v0 }
 0x873   : > { %6558 = vst [vmem:[%s224_s10 + $0x18] sm:$0xff] %v6536_v42 }
 0x874   : > { %6556 = vst [vmem:[%s224_s10 + $0x8] sm:$0xff] %v6528_v31 }
 0x876   : > { %v9257_v18 = vpop.f32.mrb[16].mxu1 }
 0x877   : > { %v6549_v53 = vadd.f32 %v9257_v18, %v7914_v7  ;;  %v6540_v10 = vpop.f32.mrb[17].mxu1 }
 0x878   : > { %v6541_v47 = vadd.f32 %v7914_v7, %v6540_v10  ;;  %v9258_v43 = vpop.f32.mrb[18].mxu1 }
 0x879   : > { %6561 = vst [vmem:[%s224_s10 + $0x30] sm:$0xff] %v6549_v53  ;;  %v6552_v21 = vadd.f32 %v9258_v43, %v7914_v7  ;;  %v6543_v41 = vpop.f32.mrb[19].mxu1 }
 0x87a   : > { %6559 = vst [vmem:[%s224_s10 + $0x20] sm:$0xff] %v6541_v47  ;;  %v6544_v29 = vadd.f32 %v7914_v7, %v6543_v41 }
 0x87b   : > { %6562 = vst [vmem:[%s224_s10 + $0x38] sm:$0xff] %v6552_v21 }
 0x87c   : > { %6560 = vst [vmem:[%s224_s10 + $0x28] sm:$0xff] %v6544_v29 }
 0x87d PF: > { %s15_s18 = sadd.s32 1, %s9845_s18  }
 0x87e   : > { %p12_p4 = scmp.ge.s32.totalorder %s15_s18, 4  }
 0x880   :  { %14 = sbr.rel (!%p12_p4) target bundleno = 1 (0x1), region = 108 }

// kernel: spa_temp_pixelcnn_vp_forward.3
= control target key start
LH: loop header
LB: loop body
LE: loop exit
PB: predicated region body
PF: predicated region fallthrough
CT: control target
= control target key end

     0   :  { %s8815_s15 = smov 0   ;;  %s8817_s16 = smov 0   ;;  %s11600_s0 = inlined_call_operand.vmem [shape: f32[2,4,32,256], index: 0, kind: input, shape index: {}]   ;;  %s11601_s1 = inlined_call_operand.vmem [shape: bf16[3,256,1024], index: 1, kind: input, shape index: {}]   ;;  %s11602_s2 = inlined_call_operand.vmem [shape: bf16[3,256,1024], index: 2, kind: input, shape index: {}]   ;;  %s11603_s3 = inlined_call_operand.vmem [shape: f32[1,1024], index: 3, kind: input, shape index: {}]   ;;  %s11604_s4 = inlined_call_operand.vmem [shape: f32[2,4,32,256], index: 4, kind: output, shape index: {}]  }
   0x1   :  { %s8819_s17 = smov 0   ;;  %s8821_s18 = smov 0  }
   0x2   :  { %s8823_s19 = smov 0  }
   0x3 LB: > { %s23_s20 = sadd.s32 1, %s8778_s17  ;;  %s26_s21 = sadd.s32 1, %s8782_s18  ;;  %s8786_s19 = sphi %s8823_s19, %s14_s19   ;;  %s8782_s18 = sphi %s8821_s18, %s11612_s18   ;;  %s8778_s17 = sphi %s8819_s17, %s11611_s17   ;;  %s8774_s16 = sphi %s8817_s16, %s11610_s16   ;;  %s8770_s15 = sphi %s8815_s15, %s11609_s15  }
   0x4   : > { %p24_p0 = scmp.ge.s32.totalorder %s23_s20, 4  ;;  %p6994_p1 = scmp.ge.s32.totalorder %s8786_s19, 1 }
   0x5   : > { %p182_p2 = scmp.lt.s32.totalorder %s8786_s19, 9 }
   0x6   : > { %s11614_s20 = smov (%p24_p0, %s23_s20), 0  ;;  %s11616_s21 = smov (!%p24_p0, %s26_s21), %s8782_s18 }
   0x7   : > { %p183_p3 = pnand %p6994_p1, %p182_p2  ;;  %p28_p4 = scmp.ge.s32.totalorder %s11616_s21, 2 }
   0x8   : > { %p216_p5 = scmp.lt.s32.totalorder (!%p183_p3), %s8774_s16, 1  ;;  %p218_p6 = scmp.lt.s32.totalorder (!%p183_p3), %s8770_s15, 3 }
   0x9   : > { %s11618_s21 = smov (%p28_p4, %s11616_s21), 0  ;;  %186 = sbr.rel (%p183_p3) target bundleno = 1080 (0x438), region = 36 }
   0xa   : > { %p7001_p7 = scmp.ne.s32.totalorder (!%p183_p3), %s8770_s15, 0 }
  0x10   : > { %s11620_s16 = smov (!%p216_p5, %s8774_s16), 1  ;;  %237 = sbr.rel (%p7001_p7) target bundleno = 35 (0x23), region = 40 }
  0x11   : > { %s219_s22 = scalar_select %p218_p6, %s8770_s15, 3 }
  0x12   : > { %s6996_s23 = sshll.u32 %s11620_s16, 5  ;;  %v8788_v0 = vmov (!%p7001_p7), 0.0  }
  0x13   : > { %s6995_s24 = sshll.u32 %s219_s22, 3  ;;  %238 = vst [vmem:[#allocation2] sm:$0xff] (!%p7001_p7), %v8788_v0  ;;  %239 = vst [vmem:[#allocation2 + $0x8] sm:$0xff] (!%p7001_p7), %v8788_v0 }
  0x14   : > { %s222_s25 = sadd.s32 %s6996_s23, %s6995_s24  ;;  %240 = vst [vmem:[#allocation2 + $0x10] sm:$0xff] (!%p7001_p7), %v8788_v0  ;;  %241 = vst [vmem:[#allocation2 + $0x18] sm:$0xff] (!%p7001_p7), %v8788_v0 }
  0x15   : > { %s6997_s26 = sshll.u32 %s222_s25, 3  ;;  %242 = vst [vmem:[#allocation2 + $0x20] sm:$0xff] (!%p7001_p7), %v8788_v0  ;;  %243 = vst [vmem:[#allocation2 + $0x28] sm:$0xff] (!%p7001_p7), %v8788_v0 }
  0x16   : > { %s8848_s29 = scalar_lea.vmem %s11600_s0, %s6997_s26  ;;  %s8853_s6 = scalar_lea.vmem %s11604_s4, %s6997_s26  ;;  %244 = vst [vmem:[#allocation2 + $0x30] sm:$0xff] (!%p7001_p7), %v8788_v0  ;;  %245 = vst [vmem:[#allocation2 + $0x38] sm:$0xff] (!%p7001_p7), %v8788_v0 }
  0x17   : > { %246 = vst [vmem:[#allocation2 + $0x40] sm:$0xff] %v8788_v0  ;;  %247 = vst [vmem:[#allocation2 + $0x48] sm:$0xff] %v8788_v0 }
  0x18   : > { %248 = vst [vmem:[#allocation2 + $0x50] sm:$0xff] %v8788_v0  ;;  %249 = vst [vmem:[#allocation2 + $0x58] sm:$0xff] %v8788_v0 }
  0x19   : > { %250 = vst [vmem:[#allocation3] sm:$0xff] %v8788_v0  ;;  %251 = vst [vmem:[#allocation3 + $0x8] sm:$0xff] %v8788_v0 }
  0x1a   : > { %252 = vst [vmem:[#allocation3 + $0x10] sm:$0xff] %v8788_v0  ;;  %253 = vst [vmem:[#allocation3 + $0x18] sm:$0xff] %v8788_v0 }
  0x1b   : > { %254 = vst [vmem:[#allocation3 + $0x20] sm:$0xff] %v8788_v0  ;;  %255 = vst [vmem:[#allocation3 + $0x28] sm:$0xff] %v8788_v0 }
  0x1c   : > { %256 = vst [vmem:[#allocation3 + $0x30] sm:$0xff] %v8788_v0  ;;  %257 = vst [vmem:[#allocation3 + $0x38] sm:$0xff] %v8788_v0 }
  0x1d   : > { %258 = vst [vmem:[#allocation3 + $0x40] sm:$0xff] %v8788_v0  ;;  %259 = vst [vmem:[#allocation3 + $0x48] sm:$0xff] %v8788_v0 }
  0x1e   : > { %260 = vst [vmem:[#allocation3 + $0x50] sm:$0xff] %v8788_v0  ;;  %261 = vst [vmem:[#allocation3 + $0x58] sm:$0xff] %v8788_v0 }
  0x1f   : > { %262 = vst [vmem:[#allocation4] sm:$0xff] %v8788_v0  ;;  %263 = vst [vmem:[#allocation4 + $0x8] sm:$0xff] %v8788_v0 }
  0x20   : > { %264 = vst [vmem:[#allocation4 + $0x10] sm:$0xff] %v8788_v0  ;;  %265 = vst [vmem:[#allocation4 + $0x18] sm:$0xff] %v8788_v0 }
  0x21   : > { %266 = vst [vmem:[#allocation4 + $0x20] sm:$0xff] %v8788_v0  ;;  %267 = vst [vmem:[#allocation4 + $0x28] sm:$0xff] %v8788_v0 }
  0x22   : > { %268 = vst [vmem:[#allocation4 + $0x30] sm:$0xff] %v8788_v0  ;;  %269 = vst [vmem:[#allocation4 + $0x38] sm:$0xff] %v8788_v0 }
  0x23 PF: > { %v560_v1 = vld [vmem:[%s11602_s2] sm:$0xff]  ;;  %v561_v3 = vld [vmem:[%s11602_s2 + $0x8] sm:$0xff]  ;;  %v286_v33 = vlaneseq  ;;  %v304_v58 = vld [vmem:[#allocation3 + $0x18] sm:$0xff]  ;;  %vm345_vm0 = vcmask 1040384   ;;  %vm8789_vm2 = vmmov 1   ;;  %vm4484_vm4 = vcmask 1046528  }
  0x24   : > { %v564_v2 = vld [vmem:[%s11602_s2 + $0x20] sm:$0xff]  ;;  %v565_v5 = vld [vmem:[%s11602_s2 + $0x28] sm:$0xff]  ;;  %v394_v0 = vrot.slane %v304_v58, 7 }
  0x25   : > { %v7003_v4 = vcombine.high %v560_v1, %v564_v2  ;;  %v7002_v6 = vcombine.low %v560_v1, %v564_v2  ;;  %v568_v7 = vld [vmem:[%s11602_s2 + $0x40] sm:$0xff]  ;;  %v7005_v9 = vcombine.high %v561_v3, %v565_v5  ;;  %v7004_v10 = vcombine.low %v561_v3, %v565_v5  ;;  %v569_v12 = vld [vmem:[%s11602_s2 + $0x48] sm:$0xff] }
  0x26   : > { %v572_v8 = vld [vmem:[%s11602_s2 + $0x60] sm:$0xff]  ;;  %v573_v13 = vld [vmem:[%s11602_s2 + $0x68] sm:$0xff]  ;;  %v8921_v42 = vshrl.u32 %v286_v33, 7 }
  0x27   : > { %v7011_v11 = vcombine.high %v568_v7, %v572_v8  ;;  %v576_v14 = vld [vmem:[%s11602_s2 + $0x80] sm:$0xff]  ;;  %1328 = vmatprep.subr.bf16.mxu0 %v7003_v4  ;;  %v7013_v15 = vcombine.high %v569_v12, %v573_v13  ;;  %v577_v17 = vld [vmem:[%s11602_s2 + $0x88] sm:$0xff]  ;;  %1381 = vmatprep.subr.bf16.mxu1 %v7005_v9  ;;  %v7010_v19 = vcombine.low %v568_v7, %v572_v8 }
  0x28   : > { %v580_v16 = vld [vmem:[%s11602_s2 + $0xa0] sm:$0xff]  ;;  %v581_v18 = vld [vmem:[%s11602_s2 + $0xa8] sm:$0xff]  ;;  %1329 = vmatpush1.bf16.msra.mxu0 %v7002_v6  ;;  %1382 = vmatpush1.bf16.msra.mxu1 %v7004_v10  ;;  %v7012_v20 = vcombine.low %v569_v12, %v573_v13  ;;  %v311_v51 = vadd.s32 4294967295, %v8921_v42 }
  0x29   : > { %1330 = vmatprep.subr.bf16.mxu0 %v7011_v11  ;;  %v7019_v21 = vcombine.high %v576_v14, %v580_v16  ;;  %1383 = vmatprep.subr.bf16.mxu1 %v7013_v15  ;;  %v7021_v22 = vcombine.high %v577_v17, %v581_v18  ;;  %v584_v23 = vld [vmem:[%s11602_s2 + $0xc0] sm:$0xff]  ;;  %v585_v25 = vld [vmem:[%s11602_s2 + $0xc8] sm:$0xff]  ;;  %v7018_v27 = vcombine.low %v576_v14, %v580_v16 }
  0x2a   : > { %v588_v24 = vld [vmem:[%s11602_s2 + $0xe0] sm:$0xff]  ;;  %v589_v26 = vld [vmem:[%s11602_s2 + $0xe8] sm:$0xff]  ;;  %v7020_v28 = vcombine.low %v577_v17, %v581_v18  ;;  %vm315_vm1 = vcmp.ge.s32.totalorder %v311_v51, 0 }
  0x2b   : > { %v7027_v29 = vcombine.high %v584_v23, %v588_v24  ;;  %v7029_v30 = vcombine.high %v585_v25, %v589_v26  ;;  %v592_v31 = vld [vmem:[%s11602_s2 + $0x100] sm:$0xff]  ;;  %v593_v34 = vld [vmem:[%s11602_s2 + $0x108] sm:$0xff]  ;;  %v7026_v36 = vcombine.low %v584_v23, %v588_v24  ;;  %v7028_v37 = vcombine.low %v585_v25, %v589_v26  ;;  %vm8963_vm3 = vmpackc.low %vm8789_vm2, %vm315_vm1 }
  0x2c   : > { %1331 = vmatpush1.bf16.msra.mxu0 %v7010_v19  ;;  %1384 = vmatpush1.bf16.msra.mxu1 %v7012_v20  ;;  %v596_v32 = vld [vmem:[%s11602_s2 + $0x120] sm:$0xff]  ;;  %v597_v35 = vld [vmem:[%s11602_s2 + $0x128] sm:$0xff] }
  0x2d   : > { %1332 = vmatprep.subr.bf16.mxu0 %v7019_v21  ;;  %1385 = vmatprep.subr.bf16.mxu1 %v7021_v22  ;;  %v7035_v38 = vcombine.high %v592_v31, %v596_v32  ;;  %v7037_v39 = vcombine.high %v593_v34, %v597_v35  ;;  %v600_v40 = vld [vmem:[%s11602_s2 + $0x140] sm:$0xff]  ;;  %v601_v43 = vld [vmem:[%s11602_s2 + $0x148] sm:$0xff]  ;;  %v7034_v45 = vcombine.low %v592_v31, %v596_v32 }
  0x2e   : > { %v604_v41 = vld [vmem:[%s11602_s2 + $0x160] sm:$0xff]  ;;  %v605_v44 = vld [vmem:[%s11602_s2 + $0x168] sm:$0xff]  ;;  %v7036_v46 = vcombine.low %v593_v34, %v597_v35 }
  0x2f   : > { %v7043_v47 = vcombine.high %v600_v40, %v604_v41  ;;  %v7045_v48 = vcombine.high %v601_v43, %v605_v44  ;;  %v608_v49 = vld [vmem:[%s11602_s2 + $0x180] sm:$0xff]  ;;  %v609_v52 = vld [vmem:[%s11602_s2 + $0x188] sm:$0xff]  ;;  %v7042_v54 = vcombine.low %v600_v40, %v604_v41  ;;  %v7044_v55 = vcombine.low %v601_v43, %v605_v44 }
  0x30   : > { %1333 = vmatpush1.bf16.msra.mxu0 %v7018_v27  ;;  %1386 = vmatpush1.bf16.msra.mxu1 %v7020_v28  ;;  %v612_v50 = vld [vmem:[%s11602_s2 + $0x1a0] sm:$0xff]  ;;  %v613_v53 = vld [vmem:[%s11602_s2 + $0x1a8] sm:$0xff] }
  0x31   : > { %1334 = vmatprep.subr.bf16.mxu0 %v7027_v29  ;;  %1387 = vmatprep.subr.bf16.mxu1 %v7029_v30  ;;  %v7051_v56 = vcombine.high %v608_v49, %v612_v50  ;;  %v302_v57 = vld [vmem:[#allocation3 + $0x8] sm:$0x80]  ;;  %v7053_v59 = vcombine.high %v609_v52, %v613_v53  ;;  %v616_v60 = vld [vmem:[%s11602_s2 + $0x1c0] sm:$0xff]  ;;  %v7050_v4 = vcombine.low %v608_v49, %v612_v50 }
  0x32   : > { %v620_v61 = vld [vmem:[%s11602_s2 + $0x1e0] sm:$0xff]  ;;  %v8948_v62 = vld [vmem:[#allocation3 + $0x28] sm:$0xff]  ;;  %v393_v63 = vrot.slane %v302_v57, 7  ;;  %v7052_v6 = vcombine.low %v609_v52, %v613_v53 }
  0x33   : > { %v617_v1 = vld [vmem:[%s11602_s2 + $0x1c8] sm:$0xff]  ;;  %v398_v3 = vrot.slane %v8948_v62, 7  ;;  %v7059_v7 = vcombine.high %v616_v60, %v620_v61  ;;  %v624_v11 = vld [vmem:[%s11602_s2 + $0x200] sm:$0xff]  ;;  %v7058_v16 = vcombine.low %v616_v60, %v620_v61  ;;  %v578_v62 = vld [vmem:[%s11602_s2 + $0x90] sm:$0xff] }
  0x34   : > { %1335 = vmatpush1.bf16.msra.mxu0 %v7026_v36  ;;  %1388 = vmatpush1.bf16.msra.mxu1 %v7028_v37  ;;  %v621_v2 = vld [vmem:[%s11602_s2 + $0x1e8] sm:$0xff]  ;;  %v395_v5 = vsel %vm345_vm0, %v393_v63, %v394_v0  ;;  %v628_v12 = vld [vmem:[%s11602_s2 + $0x220] sm:$0xff] }
  0x35   : > { %1336 = vmatprep.subr.bf16.mxu0 %v7035_v38  ;;  %1389 = vmatprep.subr.bf16.mxu1 %v7037_v39  ;;  %v399_v8 = vsel %vm345_vm0, %v394_v0, %v398_v3  ;;  %v7061_v10 = vcombine.high %v617_v1, %v621_v2  ;;  %v625_v14 = vld [vmem:[%s11602_s2 + $0x208] sm:$0xff]  ;;  %v7060_v17 = vcombine.low %v617_v1, %v621_v2  ;;  %v632_v20 = vld [vmem:[%s11602_s2 + $0x240] sm:$0xff] }
  0x36   : > { %v8973_v13 = vpack.c.bf16 %v399_v8, %v395_v5  ;;  %v629_v15 = vld [vmem:[%s11602_s2 + $0x228] sm:$0xff]  ;;  %v7067_v18 = vcombine.high %v624_v11, %v628_v12  ;;  %v636_v21 = vld [vmem:[%s11602_s2 + $0x260] sm:$0xff]  ;;  %v7066_v24 = vcombine.low %v624_v11, %v628_v12 }
  0x37   : > { %v7069_v19 = vcombine.high %v625_v14, %v629_v15  ;;  %v633_v22 = vld [vmem:[%s11602_s2 + $0x248] sm:$0xff]  ;;  %v7068_v25 = vcombine.low %v625_v14, %v629_v15  ;;  %v7075_v26 = vcombine.high %v632_v20, %v636_v21  ;;  %v640_v28 = vld [vmem:[%s11602_s2 + $0x280] sm:$0xff]  ;;  %v7074_v32 = vcombine.low %v632_v20, %v636_v21  ;;  %v308_v20 = vld [vmem:[#allocation3 + $0x38] sm:$0xff] }
  0x38   : > { %1337 = vmatpush1.bf16.msra.mxu0 %v7034_v45  ;;  %1390 = vmatpush1.bf16.msra.mxu1 %v7036_v46  ;;  %v637_v23 = vld [vmem:[%s11602_s2 + $0x268] sm:$0xff]  ;;  %v644_v29 = vld [vmem:[%s11602_s2 + $0x2a0] sm:$0xff] }
  0x39   : > { %1338 = vmatprep.subr.bf16.mxu0 %v7043_v47  ;;  %1391 = vmatprep.subr.bf16.mxu1 %v7045_v48  ;;  %v7077_v27 = vcombine.high %v633_v22, %v637_v23  ;;  %v641_v30 = vld [vmem:[%s11602_s2 + $0x288] sm:$0xff]  ;;  %v7076_v33 = vcombine.low %v633_v22, %v637_v23  ;;  %v7083_v34 = vcombine.high %v640_v28, %v644_v29  ;;  %v648_v36 = vld [vmem:[%s11602_s2 + $0x2c0] sm:$0xff] }
  0x3a   : > { %7132 = vmatprep.mubr.msk.bf16.mxu0 %vm8963_vm3, %v8973_v13  ;;  %7138 = vmatprep.mubr.msk.bf16.mxu1 %vm8963_vm3, %v8973_v13  ;;  %v645_v31 = vld [vmem:[%s11602_s2 + $0x2a8] sm:$0xff]  ;;  %v652_v37 = vld [vmem:[%s11602_s2 + $0x2e0] sm:$0xff]  ;;  %v7082_v40 = vcombine.low %v640_v28, %v644_v29  ;;  %v567_v28 = vld [vmem:[%s11602_s2 + $0x38] sm:$0xff]  ;;  %v402_v29 = vrot.slane %v308_v20, 7 }
  0x3b   : > { %v7085_v35 = vcombine.high %v641_v30, %v645_v31  ;;  %v649_v38 = vld [vmem:[%s11602_s2 + $0x2c8] sm:$0xff]  ;;  %v7084_v41 = vcombine.low %v641_v30, %v645_v31  ;;  %v7091_v43 = vcombine.high %v648_v36, %v652_v37  ;;  %v656_v45 = vld [vmem:[%s11602_s2 + $0x300] sm:$0xff]  ;;  %v7090_v49 = vcombine.low %v648_v36, %v652_v37  ;;  %v307_v36 = vld [vmem:[#allocation3 + $0x30] sm:$0xff] }
  0x3c   : > { %1339 = vmatpush1.bf16.msra.mxu0 %v7042_v54  ;;  %1392 = vmatpush1.bf16.msra.mxu1 %v7044_v55  ;;  %v653_v39 = vld [vmem:[%s11602_s2 + $0x2e8] sm:$0xff]  ;;  %v660_v46 = vld [vmem:[%s11602_s2 + $0x320] sm:$0xff] }
  0x3d   : > { %1340 = vmatprep.subr.bf16.mxu0 %v7051_v56  ;;  %1393 = vmatprep.subr.bf16.mxu1 %v7053_v59  ;;  %v7093_v44 = vcombine.high %v649_v38, %v653_v39  ;;  %v657_v47 = vld [vmem:[%s11602_s2 + $0x308] sm:$0xff]  ;;  %v7092_v50 = vcombine.low %v649_v38, %v653_v39  ;;  %v7099_v51 = vcombine.high %v656_v45, %v660_v46  ;;  %v664_v53 = vld [vmem:[%s11602_s2 + $0x340] sm:$0xff]  ;;  %v570_v39 = vld [vmem:[%s11602_s2 + $0x50] sm:$0xff] }
  0x3e   : > { %v661_v48 = vld [vmem:[%s11602_s2 + $0x328] sm:$0xff]  ;;  %v668_v54 = vld [vmem:[%s11602_s2 + $0x360] sm:$0xff]  ;;  %v7098_v57 = vcombine.low %v656_v45, %v660_v46  ;;  %v403_v45 = vsel %vm345_vm0, %v398_v3, %v402_v29  ;;  %v582_v3 = vld [vmem:[%s11602_s2 + $0xb0] sm:$0xff] }
  0x3f   : > { %v7101_v52 = vcombine.high %v657_v47, %v661_v48  ;;  %v665_v55 = vld [vmem:[%s11602_s2 + $0x348] sm:$0xff]  ;;  %v7100_v58 = vcombine.low %v657_v47, %v661_v48  ;;  %v7107_v59 = vcombine.high %v664_v53, %v668_v54  ;;  %v672_v61 = vld [vmem:[%s11602_s2 + $0x380] sm:$0xff]  ;;  %v7106_v2 = vcombine.low %v664_v53, %v668_v54  ;;  %v579_v54 = vld [vmem:[%s11602_s2 + $0x98] sm:$0xff] }
  0x40   : > { %1341 = vmatpush1.bf16.msra.mxu0 %v7050_v4  ;;  %1394 = vmatpush1.bf16.msra.mxu1 %v7052_v6  ;;  %v669_v56 = vld [vmem:[%s11602_s2 + $0x368] sm:$0xff]  ;;  %v676_v63 = vld [vmem:[%s11602_s2 + $0x3a0] sm:$0xff]  ;;  %v400_v48 = vrot.slane %v307_v36, 7 }
  0x41   : > { %1342 = vmatprep.subr.bf16.mxu0 %v7059_v7  ;;  %1395 = vmatprep.subr.bf16.mxu1 %v7061_v10  ;;  %v7109_v60 = vcombine.high %v665_v55, %v669_v56  ;;  %v673_v0 = vld [vmem:[%s11602_s2 + $0x388] sm:$0xff]  ;;  %v7108_v4 = vcombine.low %v665_v55, %v669_v56  ;;  %v7115_v5 = vcombine.high %v672_v61, %v676_v63  ;;  %v301_v6 = vld [vmem:[#allocation3] sm:$0x80]  ;;  %v303_v7 = vld [vmem:[#allocation3 + $0x10] sm:$0xff] }
  0x42   : > { %v677_v1 = vld [vmem:[%s11602_s2 + $0x3a8] sm:$0xff]  ;;  %v9059_v8 = vld [vmem:[#allocation3 + $0x20] sm:$0xff]  ;;  %v583_v55 = vld [vmem:[%s11602_s2 + $0xb8] sm:$0xff] }
  0x43   : > { %v7117_v10 = vcombine.high %v673_v0, %v677_v1  ;;  %v680_v11 = vld [vmem:[%s11602_s2 + $0x3c0] sm:$0xff]  ;;  %v681_v14 = vld [vmem:[%s11602_s2 + $0x3c8] sm:$0xff]  ;;  %v7116_v22 = vcombine.low %v673_v0, %v677_v1  ;;  %v586_v0 = vld [vmem:[%s11602_s2 + $0xd0] sm:$0xff]  ;;  %v7025_v1 = vcombine.high %v579_v54, %v583_v55 }
  0x44   : > { %1343 = vmatpush1.bf16.msra.mxu0 %v7058_v16  ;;  %1396 = vmatpush1.bf16.msra.mxu1 %v7060_v17  ;;  %v684_v12 = vld [vmem:[%s11602_s2 + $0x3e0] sm:$0xff]  ;;  %v685_v15 = vld [vmem:[%s11602_s2 + $0x3e8] sm:$0xff]  ;;  %v7114_v16 = vcombine.low %v672_v61, %v676_v63  ;;  %v390_v17 = vrot.slane %v301_v6, 7  ;;  %v7023_v63 = vcombine.high %v578_v62, %v582_v3  ;;  %v587_v6 = vld [vmem:[%s11602_s2 + $0xd8] sm:$0xff] }
  0x45   : > { %1344 = vmatprep.subr.bf16.mxu0 %v7067_v18  ;;  %1397 = vmatprep.subr.bf16.mxu1 %v7069_v19  ;;  %v391_v18 = vrot.slane %v303_v7, 7  ;;  %v396_v19 = vrot.slane %v9059_v8, 7  ;;  %v310_v21 = vld [vmem:[#allocation3 + $0x48] sm:$0x7f]  ;;  %v7123_v23 = vcombine.high %v680_v11, %v684_v12  ;;  %v7122_v31 = vcombine.low %v680_v11, %v684_v12  ;;  %v309_v37 = vld [vmem:[#allocation3 + $0x40] sm:$0x7f] }
  0x46   : > { %v406_v30 = vrot.slane %v310_v21, 7  ;;  %v9124_v56 = vld [vmem:[%s8848_s29 + $0x8] sm:$0xff]  ;;  %v591_v7 = vld [vmem:[%s11602_s2 + $0xf8] sm:$0xff]  ;;  %v7024_v11 = vcombine.low %v579_v54, %v583_v55  ;;  %v634_v55 = vld [vmem:[%s11602_s2 + $0x250] sm:$0xff] }
  0x47   : > { %279 = vst [vmem:[#allocation2 + $0x18] sm:$0xff] %v9124_v56  ;;  %v7032_v20 = vcombine.low %v587_v6, %v591_v7  ;;  %v7331_v9 = vld [vmem:[%s11601_s1 + $0x4c8] sm:$0xff] }
  0x48   : > { %1345 = vmatpush1.bf16.msra.mxu0 %v7066_v24  ;;  %1398 = vmatpush1.bf16.msra.mxu1 %v7068_v25  ;;  %v7125_v24 = vcombine.high %v681_v14, %v685_v15  ;;  %v562_v25 = vld [vmem:[%s11602_s2 + $0x10] sm:$0xff]  ;;  %v407_v46 = vsel %vm345_vm0, %v402_v29, %v406_v30 }
  0x49   : > { %1346 = vmatprep.subr.bf16.mxu0 %v7075_v26  ;;  %1399 = vmatprep.subr.bf16.mxu1 %v7077_v27  ;;  %v566_v26 = vld [vmem:[%s11602_s2 + $0x30] sm:$0xff]  ;;  %v563_v27 = vld [vmem:[%s11602_s2 + $0x18] sm:$0xff]  ;;  %v9112_v53 = vpack.c.bf16 %v407_v46, %v403_v45 }
  0x4a   : > { %v7009_v38 = vcombine.high %v563_v27, %v567_v28  ;;  %v7006_v47 = vcombine.low %v562_v25, %v566_v26 }
  0x4c   : > { %1347 = vmatpush1.bf16.msra.mxu0 %v7074_v32  ;;  %1400 = vmatpush1.bf16.msra.mxu1 %v7076_v33  ;;  %v392_v32 = vsel %vm345_vm0, %v390_v17, %v391_v18  ;;  %v397_v33 = vsel %vm345_vm0, %v391_v18, %v396_v19  ;;  %v595_v17 = vld [vmem:[%s11602_s2 + $0x118] sm:$0xff] }
  0x4d   : > { %1348 = vmatprep.subr.bf16.mxu0 %v7083_v34  ;;  %1401 = vmatprep.subr.bf16.mxu1 %v7085_v35  ;;  %v7124_v34 = vcombine.low %v681_v14, %v685_v15  ;;  %v7007_v35 = vcombine.high %v562_v25, %v566_v26  ;;  %v7033_v14 = vcombine.high %v587_v6, %v591_v7  ;;  %v594_v15 = vld [vmem:[%s11602_s2 + $0x110] sm:$0xff]  ;;  %v599_v18 = vld [vmem:[%s11602_s2 + $0x138] sm:$0xff] }
  0x4e   : > { %v603_v25 = vld [vmem:[%s11602_s2 + $0x158] sm:$0xff]  ;;  %v646_v6 = vld [vmem:[%s11602_s2 + $0x2b0] sm:$0xff] }
  0x4f   : > { %v607_v26 = vld [vmem:[%s11602_s2 + $0x178] sm:$0xff] }
  0x50   : > { %1349 = vmatpush1.bf16.msra.mxu0 %v7082_v40  ;;  %1402 = vmatpush1.bf16.msra.mxu1 %v7084_v41  ;;  %v574_v40 = vld [vmem:[%s11602_s2 + $0x70] sm:$0xff]  ;;  %v9094_v41 = vpack.c.bf16 %v397_v33, %v392_v32  ;;  %v7049_v30 = vcombine.high %v603_v25, %v607_v26  ;;  %v615_v33 = vld [vmem:[%s11602_s2 + $0x1b8] sm:$0xff] }
  0x51   : > { %1350 = vmatprep.subr.bf16.mxu0 %v7091_v43  ;;  %1403 = vmatprep.subr.bf16.mxu1 %v7093_v44  ;;  %v571_v43 = vld [vmem:[%s11602_s2 + $0x58] sm:$0xff]  ;;  %v614_v32 = vld [vmem:[%s11602_s2 + $0x1b0] sm:$0xff] }
  0x52   : > { %v575_v44 = vld [vmem:[%s11602_s2 + $0x78] sm:$0xff] }
  0x53   : > { %v7016_v61 = vcombine.low %v571_v43, %v575_v44  ;;  %v643_v7 = vld [vmem:[%s11602_s2 + $0x298] sm:$0xff] }
  0x54   : > { %1351 = vmatpush1.bf16.msra.mxu0 %v7090_v49  ;;  %1404 = vmatpush1.bf16.msra.mxu1 %v7092_v50  ;;  %v404_v49 = vrot.slane %v309_v37, 7  ;;  %v7008_v50 = vcombine.low %v563_v27, %v567_v28  ;;  %v7040_v28 = vcombine.low %v595_v17, %v599_v18 }
  0x55   : > { %1352 = vmatprep.subr.bf16.mxu0 %v7099_v51  ;;  %1405 = vmatprep.subr.bf16.mxu1 %v7101_v52  ;;  %v7015_v51 = vcombine.high %v570_v39, %v574_v40  ;;  %v7017_v52 = vcombine.high %v571_v43, %v575_v44  ;;  %v623_v43 = vld [vmem:[%s11602_s2 + $0x1f8] sm:$0xff] }
  0x58   : > { %1353 = vmatpush1.bf16.msra.mxu0 %v7098_v57  ;;  %1406 = vmatpush1.bf16.msra.mxu1 %v7100_v58  ;;  %v7014_v57 = vcombine.low %v570_v39, %v574_v40  ;;  %v401_v58 = vsel %vm345_vm0, %v396_v19, %v400_v48  ;;  %v622_v39 = vld [vmem:[%s11602_s2 + $0x1f0] sm:$0xff]  ;;  %v619_v40 = vld [vmem:[%s11602_s2 + $0x1d8] sm:$0xff] }
  0x59   : > { %1354 = vmatprep.subr.bf16.mxu0 %v7107_v59  ;;  %1407 = vmatprep.subr.bf16.mxu1 %v7109_v60  ;;  %v405_v59 = vsel %vm345_vm0, %v400_v48, %v404_v49  ;;  %v9132_v60 = vld [vmem:[%s8848_s29 + $0x18] sm:$0xff]  ;;  %v626_v48 = vld [vmem:[%s11602_s2 + $0x210] sm:$0xff] }
  0x5a   : > { %281 = vst [vmem:[#allocation2 + $0x28] sm:$0xff] %v9132_v60  ;;  %v9156_v8 = vpack.c.bf16 %v405_v59, %v401_v58  ;;  %v630_v49 = vld [vmem:[%s11602_s2 + $0x230] sm:$0xff]  ;;  %v635_v58 = vld [vmem:[%s11602_s2 + $0x258] sm:$0xff] }
  0x5b   : > { %v639_v59 = vld [vmem:[%s11602_s2 + $0x278] sm:$0xff] }
  0x5c   : > { %1355 = vmatpush1.bf16.msra.mxu0 %v7106_v2  ;;  %1408 = vmatpush1.bf16.msra.mxu1 %v7108_v4  ;;  %v590_v2 = vld [vmem:[%s11602_s2 + $0xf0] sm:$0xff]  ;;  %v9144_v4 = vld [vmem:[%s8848_s29] sm:$0xff] }
  0x5d   : > { %1356 = vmatprep.subr.bf16.mxu0 %v7115_v5  ;;  %1409 = vmatprep.subr.bf16.mxu1 %v7117_v10  ;;  %v9147_v5 = vld [vmem:[%s8848_s29 + $0x10] sm:$0xff]  ;;  %278 = vst [vmem:[#allocation2 + $0x10] sm:$0xff] %v9144_v4  ;;  %v7022_v10 = vcombine.low %v578_v62, %v582_v3  ;;  %v7031_v12 = vcombine.high %v586_v0, %v590_v2 }
  0x5e   : > { %280 = vst [vmem:[#allocation2 + $0x20] sm:$0xff] %v9147_v5  ;;  %v7030_v19 = vcombine.low %v586_v0, %v590_v2  ;;  %v7064_v62 = vcombine.low %v619_v40, %v623_v43  ;;  %v7071_v3 = vcombine.high %v626_v48, %v630_v49  ;;  %v642_v2 = vld [vmem:[%s11602_s2 + $0x290] sm:$0xff] }
  0x60   : > { %1357 = vmatpush1.bf16.msra.mxu0 %v7114_v16  ;;  %1410 = vmatpush1.bf16.msra.mxu1 %v7116_v22  ;;  %v598_v16 = vld [vmem:[%s11602_s2 + $0x130] sm:$0xff]  ;;  %v7041_v22 = vcombine.high %v595_v17, %v599_v18  ;;  %v651_v18 = vld [vmem:[%s11602_s2 + $0x2d8] sm:$0xff] }
  0x61   : > { %1358 = vmatprep.subr.bf16.mxu0 %v7123_v23  ;;  %1411 = vmatprep.subr.bf16.mxu1 %v7125_v24  ;;  %v7039_v21 = vcombine.high %v594_v15, %v598_v16  ;;  %v602_v23 = vld [vmem:[%s11602_s2 + $0x150] sm:$0xff]  ;;  %v7038_v27 = vcombine.low %v594_v15, %v598_v16 }
  0x62   : > { %v606_v24 = vld [vmem:[%s11602_s2 + $0x170] sm:$0xff] }
  0x63   : > { %v7047_v29 = vcombine.high %v602_v23, %v606_v24  ;;  %v650_v16 = vld [vmem:[%s11602_s2 + $0x2d0] sm:$0xff] }
  0x64   : > { %1359 = vmatpush1.bf16.msra.mxu0 %v7122_v31  ;;  %1412 = vmatpush1.bf16.msra.mxu1 %v7124_v34  ;;  %v610_v31 = vld [vmem:[%s11602_s2 + $0x190] sm:$0xff]  ;;  %v7046_v34 = vcombine.low %v602_v23, %v606_v24 }
  0x65   : > { %1434 = vmatprep.subr.bf16.mxu0 %v7007_v35  ;;  %1487 = vmatprep.subr.bf16.mxu1 %v7009_v38  ;;  %v7048_v35 = vcombine.low %v603_v25, %v607_v26  ;;  %v7055_v36 = vcombine.high %v610_v31, %v614_v32  ;;  %v618_v38 = vld [vmem:[%s11602_s2 + $0x1d0] sm:$0xff]  ;;  %v7054_v44 = vcombine.low %v610_v31, %v614_v32  ;;  %v659_v26 = vld [vmem:[%s11602_s2 + $0x318] sm:$0xff] }
  0x66   : > { %v7063_v46 = vcombine.high %v618_v38, %v622_v39  ;;  %v654_v17 = vld [vmem:[%s11602_s2 + $0x2f0] sm:$0xff] }
  0x67   : > { %7135 = vmatmul.mubr.msk.bf16.vlgmr.msra.gmra.mrb[0].mxu0 %vm8963_vm3, %v9094_v41  ;;  %7141 = vmatmul.mubr.msk.bf16.vlgmr.msra.gmra.mrb[0].mxu1 %vm8963_vm3, %v9094_v41  ;;  %v658_v24 = vld [vmem:[%s11602_s2 + $0x310] sm:$0xff] }
  0x68   : > { %1435 = vmatpush1.bf16.msra.mxu0 %v7006_v47  ;;  %1488 = vmatpush1.bf16.msra.mxu1 %v7008_v50  ;;  %v7065_v47 = vcombine.high %v619_v40, %v623_v43  ;;  %v627_v50 = vld [vmem:[%s11602_s2 + $0x218] sm:$0xff]  ;;  %v662_v25 = vld [vmem:[%s11602_s2 + $0x330] sm:$0xff] }
  0x69   : > { %1436 = vmatprep.subr.bf16.mxu0 %v7015_v51  ;;  %1489 = vmatprep.subr.bf16.mxu1 %v7017_v52  ;;  %v631_v51 = vld [vmem:[%s11602_s2 + $0x238] sm:$0xff]  ;;  %v7062_v52 = vcombine.low %v618_v38, %v622_v39  ;;  %v666_v32 = vld [vmem:[%s11602_s2 + $0x350] sm:$0xff] }
  0x6a   : > { %1370 = vmatprep.mubr.bf16.mxu0 %v9112_v53  ;;  %1423 = vmatprep.mubr.bf16.mxu1 %v9112_v53  ;;  %v7073_v54 = vcombine.high %v627_v50, %v631_v51  ;;  %v674_v43 = vld [vmem:[%s11602_s2 + $0x390] sm:$0xff] }
  0x6c   : > { %1437 = vmatpush1.bf16.msra.mxu0 %v7014_v57  ;;  %1490 = vmatpush1.bf16.msra.mxu1 %v7016_v61  ;;  %v638_v57 = vld [vmem:[%s11602_s2 + $0x270] sm:$0xff]  ;;  %v7070_v61 = vcombine.low %v626_v48, %v630_v49 }
  0x6d   : > { %1438 = vmatprep.subr.bf16.mxu0 %v7023_v63  ;;  %1491 = vmatprep.subr.bf16.mxu1 %v7025_v1  ;;  %v7072_v63 = vcombine.low %v627_v50, %v631_v51  ;;  %v7079_v0 = vcombine.high %v634_v55, %v638_v57  ;;  %v7081_v1 = vcombine.high %v635_v58, %v639_v59  ;;  %v682_v51 = vld [vmem:[%s11602_s2 + $0x3d0] sm:$0xff] }
  0x6f   : > { %1371 = vmatmul.mubr.bf16.gmra.mrb[4].mxu0 %v9156_v8  ;;  %1424 = vmatmul.mubr.bf16.gmra.mrb[4].mxu1 %v9156_v8 }
  0x70   : > { %1439 = vmatpush1.bf16.msra.mxu0 %v7022_v10  ;;  %1492 = vmatpush1.bf16.msra.mxu1 %v7024_v11  ;;  %v647_v10 = vld [vmem:[%s11602_s2 + $0x2b8] sm:$0xff]  ;;  %v7078_v11 = vcombine.low %v634_v55, %v638_v57  ;;  %v9319_v55 = vld [vmem:[%s8848_s29 + $0x20] sm:$0xff] }
  0x71   : > { %1440 = vmatprep.subr.bf16.mxu0 %v7031_v12  ;;  %1493 = vmatprep.subr.bf16.mxu1 %v7033_v14  ;;  %v7080_v12 = vcombine.low %v635_v58, %v639_v59  ;;  %v7087_v14 = vcombine.high %v642_v2, %v646_v6  ;;  %v7089_v15 = vcombine.high %v643_v7, %v647_v10 }
  0x72   : > { %7144 = vmatprep.mubr.msk.bf16.mxu0 %vm8963_vm3, %v8973_v13  ;;  %7150 = vmatprep.mubr.msk.bf16.mxu1 %vm8963_vm3, %v8973_v13  ;;  %v611_v13 = vld [vmem:[%s11602_s2 + $0x198] sm:$0xff]  ;;  %282 = vst [vmem:[#allocation2 + $0x30] sm:$0xff] %v9319_v55 }
  0x73   : > { %v7057_v37 = vcombine.high %v611_v13, %v615_v33  ;;  %v7056_v45 = vcombine.low %v611_v13, %v615_v33  ;;  %v670_v13 = vld [vmem:[%s11602_s2 + $0x370] sm:$0xff]  ;;  %v277_v33 = vld [vmem:[%s8848_s29 + $0x38] sm:$0xff] }
  0x74   : > { %1441 = vmatpush1.bf16.msra.mxu0 %v7030_v19  ;;  %1494 = vmatpush1.bf16.msra.mxu1 %v7032_v20  ;;  %v655_v19 = vld [vmem:[%s11602_s2 + $0x2f8] sm:$0xff]  ;;  %v7086_v20 = vcombine.low %v642_v2, %v646_v6  ;;  %285 = vst [vmem:[#allocation2 + $0x48] sm:$0xff] %v277_v33  ;;  %v7111_v39 = vcombine.high %v666_v32, %v670_v13  ;;  %v433_v2 = vld [vmem:[%s11601_s1 + $0x28] sm:$0xff] }
  0x75   : > { %1442 = vmatprep.subr.bf16.mxu0 %v7039_v21  ;;  %1495 = vmatprep.subr.bf16.mxu1 %v7041_v22  ;;  %v7088_v21 = vcombine.low %v643_v7, %v647_v10  ;;  %v7095_v22 = vcombine.high %v650_v16, %v654_v17  ;;  %v7097_v23 = vcombine.high %v651_v18, %v655_v19  ;;  %v457_v33 = vld [vmem:[%s11601_s1 + $0xe8] sm:$0xff] }
  0x78   : > { %1443 = vmatpush1.bf16.msra.mxu0 %v7038_v27  ;;  %1496 = vmatpush1.bf16.msra.mxu1 %v7040_v28  ;;  %v663_v27 = vld [vmem:[%s11602_s2 + $0x338] sm:$0xff]  ;;  %v7094_v28 = vcombine.low %v650_v16, %v654_v17  ;;  %v441_v16 = vld [vmem:[%s11601_s1 + $0x68] sm:$0xff] }
  0x79   : > { %1444 = vmatprep.subr.bf16.mxu0 %v7047_v29  ;;  %1497 = vmatprep.subr.bf16.mxu1 %v7049_v30  ;;  %v7096_v29 = vcombine.low %v651_v18, %v655_v19  ;;  %v7103_v30 = vcombine.high %v658_v24, %v662_v25  ;;  %v7105_v31 = vcombine.high %v659_v26, %v663_v27  ;;  %v292_v18 = vld [vmem:[#allocation2 + $0x8] sm:$0x80] }
  0x7a   : > { %v7104_v38 = vcombine.low %v659_v26, %v663_v27  ;;  %v349_v26 = vrot.slane %v292_v18, 7  ;;  %v350_v27 = vrot.slane %v9124_v56, 7  ;;  %v456_v56 = vld [vmem:[%s11601_s1 + $0xe0] sm:$0xff] }
  0x7c   : > { %1445 = vmatpush1.bf16.msra.mxu0 %v7046_v34  ;;  %1498 = vmatpush1.bf16.msra.mxu1 %v7048_v35  ;;  %v667_v34 = vld [vmem:[%s11602_s2 + $0x358] sm:$0xff] }
  0x7d   : > { %1446 = vmatprep.subr.bf16.mxu0 %v7055_v36  ;;  %1499 = vmatprep.subr.bf16.mxu1 %v7057_v37  ;;  %v671_v35 = vld [vmem:[%s11602_s2 + $0x378] sm:$0xff]  ;;  %v276_v36 = vld [vmem:[%s8848_s29 + $0x30] sm:$0xff]  ;;  %v7102_v37 = vcombine.low %v658_v24, %v662_v25  ;;  %v445_v24 = vld [vmem:[%s11601_s1 + $0x88] sm:$0xff] }
  0x7e   : > { %284 = vst [vmem:[#allocation2 + $0x40] sm:$0xff] %v276_v36  ;;  %v7113_v40 = vcombine.high %v667_v34, %v671_v35  ;;  %v7112_v48 = vcombine.low %v667_v34, %v671_v35  ;;  %v449_v25 = vld [vmem:[%s11601_s1 + $0xa8] sm:$0xff]  ;;  %v351_v34 = vsel %vm345_vm0, %v349_v26, %v350_v27 }
  0x80   : > { %1447 = vmatpush1.bf16.msra.mxu0 %v7054_v44  ;;  %1500 = vmatpush1.bf16.msra.mxu1 %v7056_v45  ;;  %v678_v44 = vld [vmem:[%s11602_s2 + $0x3b0] sm:$0xff]  ;;  %v675_v45 = vld [vmem:[%s11602_s2 + $0x398] sm:$0xff] }
  0x81   : > { %1448 = vmatprep.subr.bf16.mxu0 %v7063_v46  ;;  %1501 = vmatprep.subr.bf16.mxu1 %v7065_v47  ;;  %v679_v46 = vld [vmem:[%s11602_s2 + $0x3b8] sm:$0xff]  ;;  %v7110_v47 = vcombine.low %v666_v32, %v670_v13  ;;  %v7119_v49 = vcombine.high %v674_v43, %v678_v44  ;;  %v7118_v57 = vcombine.low %v674_v43, %v678_v44  ;;  %v452_v13 = vld [vmem:[%s11601_s1 + $0xc0] sm:$0xff]  ;;  %v461_v44 = vld [vmem:[%s11601_s1 + $0x108] sm:$0xff] }
  0x82   : > { %v7121_v50 = vcombine.high %v675_v45, %v679_v46  ;;  %v7120_v58 = vcombine.low %v675_v45, %v679_v46  ;;  %v7173_v32 = vcombine.high %v445_v24, %v449_v25  ;;  %v465_v45 = vld [vmem:[%s11601_s1 + $0x128] sm:$0xff]  ;;  %v7178_v46 = vcombine.low %v452_v13, %v456_v56 }
  0x84   : > { %1449 = vmatpush1.bf16.msra.mxu0 %v7062_v52  ;;  %1502 = vmatpush1.bf16.msra.mxu1 %v7064_v62  ;;  %v686_v52 = vld [vmem:[%s11602_s2 + $0x3f0] sm:$0xff]  ;;  %v9309_v62 = vld [vmem:[%s8848_s29 + $0x28] sm:$0xff] }
  0x85   : > { %1450 = vmatprep.subr.bf16.mxu0 %v7071_v3  ;;  %1503 = vmatprep.subr.bf16.mxu1 %v7073_v54  ;;  %v683_v3 = vld [vmem:[%s11602_s2 + $0x3d8] sm:$0xff]  ;;  %283 = vst [vmem:[#allocation2 + $0x38] sm:$0xff] %v9309_v62  ;;  %v7127_v59 = vcombine.high %v682_v51, %v686_v52  ;;  %v7126_v6 = vcombine.low %v682_v51, %v686_v52  ;;  %v472_v51 = vld [vmem:[%s11601_s1 + $0x160] sm:$0xff]  ;;  %v473_v52 = vld [vmem:[%s11601_s1 + $0x168] sm:$0xff] }
  0x86   : > { %v687_v54 = vld [vmem:[%s11602_s2 + $0x3f8] sm:$0xff] }
  0x87   : > { %v7128_v7 = vcombine.low %v683_v3, %v687_v54 }
  0x88   : > { %1451 = vmatpush1.bf16.msra.mxu0 %v7070_v61  ;;  %1504 = vmatpush1.bf16.msra.mxu1 %v7072_v63  ;;  %v7129_v61 = vcombine.high %v683_v3, %v687_v54  ;;  %v428_v63 = vld [vmem:[%s11601_s1] sm:$0xff]  ;;  %v7188_v54 = vcombine.low %v461_v44, %v465_v45 }
  0x89   : > { %1452 = vmatprep.subr.bf16.mxu0 %v7079_v0  ;;  %1505 = vmatprep.subr.bf16.mxu1 %v7081_v1  ;;  %v432_v0 = vld [vmem:[%s11601_s1 + $0x20] sm:$0xff]  ;;  %v429_v1 = vld [vmem:[%s11601_s1 + $0x8] sm:$0xff] }
  0x8a   : > { %v7155_v10 = vcombine.high %v428_v63, %v432_v0  ;;  %v7154_v17 = vcombine.low %v428_v63, %v432_v0  ;;  %v7156_v19 = vcombine.low %v429_v1, %v433_v2  ;;  %v477_v63 = vld [vmem:[%s11601_s1 + $0x188] sm:$0xff] }
  0x8b   : > { %v481_v0 = vld [vmem:[%s11601_s1 + $0x1a8] sm:$0xff] }
  0x8c   : > { %1453 = vmatpush1.bf16.msra.mxu0 %v7078_v11  ;;  %1506 = vmatpush1.bf16.msra.mxu1 %v7080_v12  ;;  %v7157_v11 = vcombine.high %v429_v1, %v433_v2  ;;  %v436_v12 = vld [vmem:[%s11601_s1 + $0x40] sm:$0xff] }
  0x8d   : > { %1454 = vmatprep.subr.bf16.mxu0 %v7087_v14  ;;  %1507 = vmatprep.subr.bf16.mxu1 %v7089_v15  ;;  %v440_v14 = vld [vmem:[%s11601_s1 + $0x60] sm:$0xff]  ;;  %v437_v15 = vld [vmem:[%s11601_s1 + $0x48] sm:$0xff] }
  0x90   : > { %1455 = vmatpush1.bf16.msra.mxu0 %v7086_v20  ;;  %1508 = vmatpush1.bf16.msra.mxu1 %v7088_v21  ;;  %v7163_v20 = vcombine.high %v436_v12, %v440_v14  ;;  %v7165_v21 = vcombine.high %v437_v15, %v441_v16 }
  0x91   : > { %1456 = vmatprep.subr.bf16.mxu0 %v7095_v22  ;;  %1509 = vmatprep.subr.bf16.mxu1 %v7097_v23  ;;  %v444_v22 = vld [vmem:[%s11601_s1 + $0x80] sm:$0xff] }
  0x92   : > { %v448_v23 = vld [vmem:[%s11601_s1 + $0xa0] sm:$0xff] }
  0x93   : > { %v7170_v36 = vcombine.low %v444_v22, %v448_v23 }
  0x94   : > { %1457 = vmatpush1.bf16.msra.mxu0 %v7094_v28  ;;  %1510 = vmatpush1.bf16.msra.mxu1 %v7096_v29  ;;  %v354_v28 = vrot.slane %v9132_v60, 7  ;;  %v7162_v29 = vcombine.low %v436_v12, %v440_v14  ;;  %v485_v12 = vld [vmem:[%s11601_s1 + $0x1c8] sm:$0xff]  ;;  %v450_v60 = vld [vmem:[%s11601_s1 + $0xb0] sm:$0xff] }
  0x95   : > { %1458 = vmatprep.subr.bf16.mxu0 %v7103_v30  ;;  %1511 = vmatprep.subr.bf16.mxu1 %v7105_v31  ;;  %v7164_v30 = vcombine.low %v437_v15, %v441_v16  ;;  %v7171_v31 = vcombine.high %v444_v22, %v448_v23  ;;  %v489_v14 = vld [vmem:[%s11601_s1 + $0x1e8] sm:$0xff]  ;;  %v7204_v16 = vcombine.low %v477_v63, %v481_v0 }
  0x96   : > { %v355_v35 = vsel %vm345_vm0, %v350_v27, %v354_v28  ;;  %v7213_v18 = vcombine.high %v485_v12, %v489_v14  ;;  %v497_v22 = vld [vmem:[%s11601_s1 + $0x228] sm:$0xff]  ;;  %v500_v27 = vld [vmem:[%s11601_s1 + $0x240] sm:$0xff] }
  0x97   : > { %v9390_v43 = vpack.c.bf16 %v355_v35, %v351_v34  ;;  %v512_v34 = vld [vmem:[%s11601_s1 + $0x2a0] sm:$0xff]  ;;  %v509_v35 = vld [vmem:[%s11601_s1 + $0x288] sm:$0xff] }
  0x98   : > { %1459 = vmatpush1.bf16.msra.mxu0 %v7102_v37  ;;  %1512 = vmatpush1.bf16.msra.mxu1 %v7104_v38  ;;  %v7172_v37 = vcombine.low %v445_v24, %v449_v25  ;;  %v7179_v38 = vcombine.high %v452_v13, %v456_v56  ;;  %v7212_v24 = vcombine.low %v485_v12, %v489_v14  ;;  %v544_v12 = vld [vmem:[%s11601_s1 + $0x3a0] sm:$0xff]  ;;  %v541_v14 = vld [vmem:[%s11601_s1 + $0x388] sm:$0xff] }
  0x99   : > { %1460 = vmatprep.subr.bf16.mxu0 %v7111_v39  ;;  %1513 = vmatprep.subr.bf16.mxu1 %v7113_v40  ;;  %v460_v40 = vld [vmem:[%s11601_s1 + $0x100] sm:$0xff] }
  0x9c   : > { %1461 = vmatpush1.bf16.msra.mxu0 %v7110_v47  ;;  %1514 = vmatpush1.bf16.msra.mxu1 %v7112_v48 }
  0x9d   : > { %1462 = vmatprep.subr.bf16.mxu0 %v7119_v49  ;;  %1515 = vmatprep.subr.bf16.mxu1 %v7121_v50  ;;  %v7189_v49 = vcombine.high %v461_v44, %v465_v45  ;;  %v468_v50 = vld [vmem:[%s11601_s1 + $0x140] sm:$0xff]  ;;  %v517_v45 = vld [vmem:[%s11601_s1 + $0x2c8] sm:$0xff] }
  0x9e   : > { %v7194_v1 = vcombine.low %v468_v50, %v472_v51  ;;  %v520_v44 = vld [vmem:[%s11601_s1 + $0x2e0] sm:$0xff] }
  0xa0   : > { %1463 = vmatpush1.bf16.msra.mxu0 %v7118_v57  ;;  %1516 = vmatpush1.bf16.msra.mxu1 %v7120_v58  ;;  %v7195_v57 = vcombine.high %v468_v50, %v472_v51  ;;  %v524_v51 = vld [vmem:[%s11601_s1 + $0x300] sm:$0xff] }
  0xa1   : > { %1464 = vmatprep.subr.bf16.mxu0 %v7127_v59  ;;  %1517 = vmatprep.subr.bf16.mxu1 %v7129_v61  ;;  %v476_v59 = vld [vmem:[%s11601_s1 + $0x180] sm:$0xff] }
  0xa2   : > { %v480_v61 = vld [vmem:[%s11601_s1 + $0x1a0] sm:$0xff] }
  0xa3   : > { %v7202_v15 = vcombine.low %v476_v59, %v480_v61 }
  0xa4   : > { %1465 = vmatpush1.bf16.msra.mxu0 %v7126_v6  ;;  %1518 = vmatpush1.bf16.msra.mxu1 %v7128_v7  ;;  %v7203_v6 = vcombine.high %v476_v59, %v480_v61  ;;  %v7205_v7 = vcombine.high %v477_v63, %v481_v0  ;;  %v532_v61 = vld [vmem:[%s11601_s1 + $0x340] sm:$0xff]  ;;  %v533_v0 = vld [vmem:[%s11601_s1 + $0x348] sm:$0xff] }
  0xa5   : > { %2180 = vmatprep.subr.bf16.mxu0 %v7155_v10  ;;  %2233 = vmatprep.subr.bf16.mxu1 %v7157_v11  ;;  %v484_v10 = vld [vmem:[%s11601_s1 + $0x1c0] sm:$0xff] }
  0xa6   : > { %v488_v11 = vld [vmem:[%s11601_s1 + $0x1e0] sm:$0xff] }
  0xa7   : > { %7147 = vmatmul.mubr.msk.bf16.vlgmr.msra.gmra.mrb[8].mxu0 %vm8963_vm3, %v9094_v41  ;;  %7153 = vmatmul.mubr.msk.bf16.vlgmr.msra.gmra.mrb[8].mxu1 %vm8963_vm3, %v9094_v41  ;;  %v453_v41 = vld [vmem:[%s11601_s1 + $0xc8] sm:$0xff]  ;;  %v7210_v23 = vcombine.low %v484_v10, %v488_v11  ;;  %v536_v63 = vld [vmem:[%s11601_s1 + $0x360] sm:$0xff] }
  0xa8   : > { %2181 = vmatpush1.bf16.msra.mxu0 %v7154_v17  ;;  %2234 = vmatpush1.bf16.msra.mxu1 %v7156_v19  ;;  %v7181_v39 = vcombine.high %v453_v41, %v457_v33  ;;  %v7180_v47 = vcombine.low %v453_v41, %v457_v33  ;;  %v7211_v17 = vcombine.high %v484_v10, %v488_v11  ;;  %v492_v19 = vld [vmem:[%s11601_s1 + $0x200] sm:$0xff] }
  0xa9   : > { %2182 = vmatprep.subr.bf16.mxu0 %v7163_v20  ;;  %2235 = vmatprep.subr.bf16.mxu1 %v7165_v21  ;;  %v496_v20 = vld [vmem:[%s11601_s1 + $0x220] sm:$0xff]  ;;  %v493_v21 = vld [vmem:[%s11601_s1 + $0x208] sm:$0xff] }
  0xaa   : > { %1476 = vmatprep.mubr.bf16.mxu0 %v9112_v53  ;;  %1529 = vmatprep.mubr.bf16.mxu1 %v9112_v53  ;;  %v464_v53 = vld [vmem:[%s11601_s1 + $0x120] sm:$0xff]  ;;  %v7219_v25 = vcombine.high %v492_v19, %v496_v20  ;;  %v7221_v26 = vcombine.high %v493_v21, %v497_v22  ;;  %v7220_v13 = vcombine.low %v493_v21, %v497_v22 }
  0xab   : > { %v7187_v48 = vcombine.high %v460_v40, %v464_v53  ;;  %v7186_v3 = vcombine.low %v460_v40, %v464_v53  ;;  %v508_v33 = vld [vmem:[%s11601_s1 + $0x280] sm:$0xff] }
  0xac   : > { %2183 = vmatpush1.bf16.msra.mxu0 %v7162_v29  ;;  %2236 = vmatpush1.bf16.msra.mxu1 %v7164_v30  ;;  %v504_v29 = vld [vmem:[%s11601_s1 + $0x260] sm:$0xff]  ;;  %v501_v30 = vld [vmem:[%s11601_s1 + $0x248] sm:$0xff] }
  0xad   : > { %2184 = vmatprep.subr.bf16.mxu0 %v7171_v31  ;;  %2237 = vmatprep.subr.bf16.mxu1 %v7173_v32  ;;  %v505_v31 = vld [vmem:[%s11601_s1 + $0x268] sm:$0xff]  ;;  %v7218_v32 = vcombine.low %v492_v19, %v496_v20  ;;  %v7227_v56 = vcombine.high %v500_v27, %v504_v29  ;;  %v516_v53 = vld [vmem:[%s11601_s1 + $0x2c0] sm:$0xff] }
  0xae   : > { %v7229_v41 = vcombine.high %v501_v30, %v505_v31  ;;  %v540_v11 = vld [vmem:[%s11601_s1 + $0x380] sm:$0xff] }
  0xaf   : > { %1477 = vmatmul.mubr.bf16.gmra.mrb[12].mxu0 %v9156_v8  ;;  %1530 = vmatmul.mubr.bf16.gmra.mrb[12].mxu1 %v9156_v8  ;;  %v469_v8 = vld [vmem:[%s11601_s1 + $0x148] sm:$0xff]  ;;  %v291_v19 = vld [vmem:[#allocation2] sm:$0x80] }
  0xb0   : > { %2185 = vmatpush1.bf16.msra.mxu0 %v7170_v36  ;;  %2238 = vmatpush1.bf16.msra.mxu1 %v7172_v37  ;;  %v7197_v58 = vcombine.high %v469_v8, %v473_v52  ;;  %v7196_v2 = vcombine.low %v469_v8, %v473_v52  ;;  %v513_v36 = vld [vmem:[%s11601_s1 + $0x2a8] sm:$0xff]  ;;  %v7226_v37 = vcombine.low %v500_v27, %v504_v29  ;;  %v528_v8 = vld [vmem:[%s11601_s1 + $0x320] sm:$0xff]  ;;  %v347_v27 = vrot.slane %v9144_v4, 7  ;;  %v431_v4 = vld [vmem:[%s11601_s1 + $0x18] sm:$0xff] }
  0xb1   : > { %2186 = vmatprep.subr.bf16.mxu0 %v7179_v38  ;;  %2239 = vmatprep.subr.bf16.mxu1 %v7181_v39  ;;  %v7228_v38 = vcombine.low %v501_v30, %v505_v31  ;;  %v7235_v39 = vcombine.high %v508_v33, %v512_v34  ;;  %v7237_v40 = vcombine.high %v509_v35, %v513_v36  ;;  %v525_v52 = vld [vmem:[%s11601_s1 + $0x308] sm:$0xff]  ;;  %v548_v21 = vld [vmem:[%s11601_s1 + $0x3c0] sm:$0xff]  ;;  %v352_v29 = vrot.slane %v9147_v5, 7  ;;  %v435_v5 = vld [vmem:[%s11601_s1 + $0x38] sm:$0xff] }
  0xb2   : > { %7284 = vmatprep.mubr.msk.bf16.mxu0 %vm8963_vm3, %v9390_v43  ;;  %7290 = vmatprep.mubr.msk.bf16.mxu1 %vm8963_vm3, %v9390_v43  ;;  %v552_v22 = vld [vmem:[%s11601_s1 + $0x3e0] sm:$0xff]  ;;  %v300_v30 = vld [vmem:[#allocation2 + $0x48] sm:$0x7f] }
  0xb4   : > { %2187 = vmatpush1.bf16.msra.mxu0 %v7178_v46  ;;  %2240 = vmatpush1.bf16.msra.mxu1 %v7180_v47  ;;  %v521_v46 = vld [vmem:[%s11601_s1 + $0x2e8] sm:$0xff]  ;;  %v7234_v47 = vcombine.low %v508_v33, %v512_v34  ;;  %v358_v33 = vrot.slane %v9309_v62, 7  ;;  %v362_v34 = vrot.slane %v300_v30, 7  ;;  %v442_v62 = vld [vmem:[%s11601_s1 + $0x70] sm:$0xff]  ;;  %v475_v30 = vld [vmem:[%s11601_s1 + $0x178] sm:$0xff] }
  0xb5   : > { %2188 = vmatprep.subr.bf16.mxu0 %v7187_v48  ;;  %2241 = vmatprep.subr.bf16.mxu1 %v7189_v49  ;;  %v7236_v48 = vcombine.low %v509_v35, %v513_v36  ;;  %v7243_v49 = vcombine.high %v516_v53, %v520_v44  ;;  %v7245_v50 = vcombine.high %v517_v45, %v521_v46 }
  0xb6   : > { %v7274_v35 = vcombine.low %v548_v21, %v552_v22 }
  0xb8   : > { %2189 = vmatpush1.bf16.msra.mxu0 %v7186_v3  ;;  %2242 = vmatpush1.bf16.msra.mxu1 %v7188_v54  ;;  %v529_v3 = vld [vmem:[%s11601_s1 + $0x328] sm:$0xff]  ;;  %v7242_v54 = vcombine.low %v516_v53, %v520_v44  ;;  %v7161_v53 = vcombine.high %v431_v4, %v435_v5  ;;  %v438_v44 = vld [vmem:[%s11601_s1 + $0x50] sm:$0xff] }
  0xb9   : > { %2190 = vmatprep.subr.bf16.mxu0 %v7195_v57  ;;  %2243 = vmatprep.subr.bf16.mxu1 %v7197_v58  ;;  %v7244_v57 = vcombine.low %v517_v45, %v521_v46  ;;  %v7251_v58 = vcombine.high %v524_v51, %v528_v8  ;;  %v7253_v59 = vcombine.high %v525_v52, %v529_v3  ;;  %v439_v46 = vld [vmem:[%s11601_s1 + $0x58] sm:$0xff] }
  0xbc   : > { %2191 = vmatpush1.bf16.msra.mxu0 %v7194_v1  ;;  %2244 = vmatpush1.bf16.msra.mxu1 %v7196_v2  ;;  %v537_v1 = vld [vmem:[%s11601_s1 + $0x368] sm:$0xff]  ;;  %v7250_v2 = vcombine.low %v524_v51, %v528_v8  ;;  %v356_v51 = vrot.slane %v9319_v55, 7  ;;  %v447_v55 = vld [vmem:[%s11601_s1 + $0x98] sm:$0xff] }
  0xbd   : > { %2192 = vmatprep.subr.bf16.mxu0 %v7203_v6  ;;  %2245 = vmatprep.subr.bf16.mxu1 %v7205_v7  ;;  %v7252_v6 = vcombine.low %v525_v52, %v529_v3  ;;  %v7259_v7 = vcombine.high %v532_v61, %v536_v63  ;;  %v7261_v10 = vcombine.high %v533_v0, %v537_v1 }
  0xbe   : > { %v7160_v52 = vcombine.low %v431_v4, %v435_v5  ;;  %v7167_v3 = vcombine.high %v438_v44, %v442_v62  ;;  %v482_v4 = vld [vmem:[%s11601_s1 + $0x1b0] sm:$0xff]  ;;  %v483_v5 = vld [vmem:[%s11601_s1 + $0x1b8] sm:$0xff] }
  0xc0   : > { %2193 = vmatpush1.bf16.msra.mxu0 %v7202_v15  ;;  %2246 = vmatpush1.bf16.msra.mxu1 %v7204_v16  ;;  %v545_v15 = vld [vmem:[%s11601_s1 + $0x3a8] sm:$0xff]  ;;  %v7258_v16 = vcombine.low %v532_v61, %v536_v63  ;;  %v357_v61 = vsel %vm345_vm0, %v352_v29, %v356_v51 }
  0xc1   : > { %2194 = vmatprep.subr.bf16.mxu0 %v7211_v17  ;;  %2247 = vmatprep.subr.bf16.mxu1 %v7213_v18  ;;  %v7260_v17 = vcombine.low %v533_v0, %v537_v1  ;;  %v7267_v18 = vcombine.high %v540_v11, %v544_v12  ;;  %v7269_v20 = vcombine.high %v541_v14, %v545_v15 }
  0xc2   : > { %v7268_v31 = vcombine.low %v541_v14, %v545_v15 }
  0xc4   : > { %2195 = vmatpush1.bf16.msra.mxu0 %v7210_v23  ;;  %2248 = vmatpush1.bf16.msra.mxu1 %v7212_v24  ;;  %v549_v23 = vld [vmem:[%s11601_s1 + $0x3c8] sm:$0xff] }
  0xc5   : > { %2196 = vmatprep.subr.bf16.mxu0 %v7219_v25  ;;  %2249 = vmatprep.subr.bf16.mxu1 %v7221_v26  ;;  %v553_v24 = vld [vmem:[%s11601_s1 + $0x3e8] sm:$0xff]  ;;  %v7266_v25 = vcombine.low %v540_v11, %v544_v12  ;;  %v346_v26 = vrot.slane %v291_v19, 7  ;;  %v459_v11 = vld [vmem:[%s11601_s1 + $0xf8] sm:$0xff]  ;;  %v466_v19 = vld [vmem:[%s11601_s1 + $0x130] sm:$0xff] }
  0xc7   : > { %v348_v36 = vsel %vm345_vm0, %v346_v26, %v347_v27  ;;  %v470_v26 = vld [vmem:[%s11601_s1 + $0x150] sm:$0xff] }
  0xc8   : > { %2197 = vmatpush1.bf16.msra.mxu0 %v7218_v32  ;;  %2250 = vmatpush1.bf16.msra.mxu1 %v7220_v13  ;;  %v7275_v32 = vcombine.high %v548_v21, %v552_v22  ;;  %v7277_v13 = vcombine.high %v549_v23, %v553_v24  ;;  %v467_v21 = vld [vmem:[%s11601_s1 + $0x138] sm:$0xff] }
  0xc9   : > { %2198 = vmatprep.subr.bf16.mxu0 %v7227_v56  ;;  %2251 = vmatprep.subr.bf16.mxu1 %v7229_v41  ;;  %v430_v56 = vld [vmem:[%s11601_s1 + $0x10] sm:$0xff] }
  0xca   : > { %v434_v41 = vld [vmem:[%s11601_s1 + $0x30] sm:$0xff] }
  0xcc   : > { %2199 = vmatpush1.bf16.msra.mxu0 %v7226_v37  ;;  %2252 = vmatpush1.bf16.msra.mxu1 %v7228_v38  ;;  %v353_v37 = vsel %vm345_vm0, %v347_v27, %v352_v29  ;;  %v7276_v38 = vcombine.low %v549_v23, %v553_v24  ;;  %v474_v27 = vld [vmem:[%s11601_s1 + $0x170] sm:$0xff]  ;;  %v471_v29 = vld [vmem:[%s11601_s1 + $0x158] sm:$0xff] }
  0xcd   : > { %2200 = vmatprep.subr.bf16.mxu0 %v7235_v39  ;;  %2253 = vmatprep.subr.bf16.mxu1 %v7237_v40  ;;  %v7159_v39 = vcombine.high %v430_v56, %v434_v41  ;;  %v299_v40 = vld [vmem:[#allocation2 + $0x40] sm:$0x7f]  ;;  %v9561_v45 = vpack.c.bf16 %v353_v37, %v348_v36  ;;  %v486_v37 = vld [vmem:[%s11601_s1 + $0x1d0] sm:$0xff] }
  0xce   : > { %v360_v8 = vrot.slane %v299_v40, 7  ;;  %v491_v40 = vld [vmem:[%s11601_s1 + $0x1f8] sm:$0xff] }
  0xd0   : > { %2201 = vmatpush1.bf16.msra.mxu0 %v7234_v47  ;;  %2254 = vmatpush1.bf16.msra.mxu1 %v7236_v48  ;;  %v443_v47 = vld [vmem:[%s11601_s1 + $0x78] sm:$0xff]  ;;  %v359_v48 = vsel %vm345_vm0, %v354_v28, %v358_v33  ;;  %v361_v63 = vsel %vm345_vm0, %v356_v51, %v360_v8 }
  0xd1   : > { %2202 = vmatprep.subr.bf16.mxu0 %v7243_v49  ;;  %2255 = vmatprep.subr.bf16.mxu1 %v7245_v50  ;;  %v363_v49 = vsel %vm345_vm0, %v358_v33, %v362_v34  ;;  %v7158_v50 = vcombine.low %v430_v56, %v434_v41  ;;  %v7168_v0 = vcombine.low %v439_v46, %v443_v47  ;;  %v478_v41 = vld [vmem:[%s11601_s1 + $0x190] sm:$0xff] }
  0xd2   : > { %v9580_v28 = vpack.c.bf16 %v363_v49, %v359_v48  ;;  %v9610_v12 = vpack.c.bf16 %v361_v63, %v357_v61  ;;  %v7201_v56 = vcombine.high %v471_v29, %v475_v30  ;;  %v7198_v33 = vcombine.low %v470_v26, %v474_v27  ;;  %v498_v48 = vld [vmem:[%s11601_s1 + $0x230] sm:$0xff]  ;;  %v495_v49 = vld [vmem:[%s11601_s1 + $0x218] sm:$0xff] }
  0xd3   : > { %v7200_v34 = vcombine.low %v471_v29, %v475_v30 }
  0xd4   : > { %2203 = vmatpush1.bf16.msra.mxu0 %v7242_v54  ;;  %2256 = vmatpush1.bf16.msra.mxu1 %v7244_v57  ;;  %v7169_v54 = vcombine.high %v439_v46, %v443_v47  ;;  %v446_v57 = vld [vmem:[%s11601_s1 + $0x90] sm:$0xff] }
  0xd5   : > { %2204 = vmatprep.subr.bf16.mxu0 %v7251_v58  ;;  %2257 = vmatprep.subr.bf16.mxu1 %v7253_v59  ;;  %v451_v58 = vld [vmem:[%s11601_s1 + $0xb8] sm:$0xff]  ;;  %v7166_v59 = vcombine.low %v438_v44, %v442_v62  ;;  %v7175_v1 = vcombine.high %v446_v57, %v450_v60  ;;  %v7174_v14 = vcombine.low %v446_v57, %v450_v60  ;;  %v494_v47 = vld [vmem:[%s11601_s1 + $0x210] sm:$0xff] }
  0xd6   : > { %v7176_v15 = vcombine.low %v447_v55, %v451_v58  ;;  %v506_v57 = vld [vmem:[%s11601_s1 + $0x270] sm:$0xff]  ;;  %v503_v60 = vld [vmem:[%s11601_s1 + $0x258] sm:$0xff] }
  0xd8   : > { %2205 = vmatpush1.bf16.msra.mxu0 %v7250_v2  ;;  %2258 = vmatpush1.bf16.msra.mxu1 %v7252_v6  ;;  %v7177_v2 = vcombine.high %v447_v55, %v451_v58  ;;  %v454_v6 = vld [vmem:[%s11601_s1 + $0xd0] sm:$0xff]  ;;  %v507_v55 = vld [vmem:[%s11601_s1 + $0x278] sm:$0xff]  ;;  %v7222_v58 = vcombine.low %v494_v47, %v498_v48 }
  0xd9   : > { %2206 = vmatprep.subr.bf16.mxu0 %v7259_v7  ;;  %2259 = vmatprep.subr.bf16.mxu1 %v7261_v10  ;;  %v458_v7 = vld [vmem:[%s11601_s1 + $0xf0] sm:$0xff]  ;;  %v455_v10 = vld [vmem:[%s11601_s1 + $0xd8] sm:$0xff]  ;;  %v7233_v63 = vcombine.high %v503_v60, %v507_v55 }
  0xda   : > { %v7182_v22 = vcombine.low %v454_v6, %v458_v7  ;;  %v7184_v23 = vcombine.low %v455_v10, %v459_v11 }
  0xdc   : > { %2207 = vmatpush1.bf16.msra.mxu0 %v7258_v16  ;;  %2260 = vmatpush1.bf16.msra.mxu1 %v7260_v17  ;;  %v7183_v16 = vcombine.high %v454_v6, %v458_v7  ;;  %v7185_v17 = vcombine.high %v455_v10, %v459_v11  ;;  %v515_v6 = vld [vmem:[%s11601_s1 + $0x2b8] sm:$0xff]  ;;  %v7232_v10 = vcombine.low %v503_v60, %v507_v55 }
  0xdd   : > { %2208 = vmatprep.subr.bf16.mxu0 %v7267_v18  ;;  %2261 = vmatprep.subr.bf16.mxu1 %v7269_v20  ;;  %v462_v18 = vld [vmem:[%s11601_s1 + $0x110] sm:$0xff]  ;;  %v463_v20 = vld [vmem:[%s11601_s1 + $0x118] sm:$0xff] }
  0xde   : > { %v7191_v24 = vcombine.high %v462_v18, %v466_v19 }
  0xe0   : > { %2209 = vmatpush1.bf16.msra.mxu0 %v7266_v25  ;;  %2262 = vmatpush1.bf16.msra.mxu1 %v7268_v31  ;;  %v7193_v25 = vcombine.high %v463_v20, %v467_v21  ;;  %v7190_v31 = vcombine.low %v462_v18, %v466_v19  ;;  %v523_v18 = vld [vmem:[%s11601_s1 + $0x2f8] sm:$0xff] }
  0xe1   : > { %2210 = vmatprep.subr.bf16.mxu0 %v7275_v32  ;;  %2263 = vmatprep.subr.bf16.mxu1 %v7277_v13  ;;  %v7192_v32 = vcombine.low %v463_v20, %v467_v21  ;;  %v7199_v13 = vcombine.high %v470_v26, %v474_v27  ;;  %v531_v26 = vld [vmem:[%s11601_s1 + $0x338] sm:$0xff] }
  0xe4   : > { %2211 = vmatpush1.bf16.msra.mxu0 %v7274_v35  ;;  %2264 = vmatpush1.bf16.msra.mxu1 %v7276_v38  ;;  %v7207_v35 = vcombine.high %v478_v41, %v482_v4  ;;  %v490_v38 = vld [vmem:[%s11601_s1 + $0x1f0] sm:$0xff] }
  0xe5   : > { %2286 = vmatprep.subr.bf16.mxu0 %v7159_v39  ;;  %2339 = vmatprep.subr.bf16.mxu1 %v7161_v53  ;;  %v487_v39 = vld [vmem:[%s11601_s1 + $0x1d8] sm:$0xff]  ;;  %v7206_v53 = vcombine.low %v478_v41, %v482_v4  ;;  %v7215_v62 = vcombine.high %v486_v37, %v490_v38  ;;  %v7214_v51 = vcombine.low %v486_v37, %v490_v38 }
  0xe6   : > { %v7217_v46 = vcombine.high %v487_v39, %v491_v40  ;;  %v7216_v8 = vcombine.low %v487_v39, %v491_v40  ;;  %v539_v41 = vld [vmem:[%s11601_s1 + $0x378] sm:$0xff] }
  0xe7   : > { %7287 = vmatmul.mubr.msk.bf16.vlgmr.msra.gmra.mrb[0].mxu0 %vm8963_vm3, %v9561_v45  ;;  %7293 = vmatmul.mubr.msk.bf16.vlgmr.msra.gmra.mrb[0].mxu1 %vm8963_vm3, %v9561_v45  ;;  %v547_v37 = vld [vmem:[%s11601_s1 + $0x3b8] sm:$0xff] }
  0xe8   : > { %2287 = vmatpush1.bf16.msra.mxu0 %v7158_v50  ;;  %2340 = vmatpush1.bf16.msra.mxu1 %v7160_v52  ;;  %v499_v50 = vld [vmem:[%s11601_s1 + $0x238] sm:$0xff]  ;;  %v7223_v52 = vcombine.high %v494_v47, %v498_v48 }
  0xe9   : > { %2288 = vmatprep.subr.bf16.mxu0 %v7167_v3  ;;  %2341 = vmatprep.subr.bf16.mxu1 %v7169_v54  ;;  %v7225_v3 = vcombine.high %v495_v49, %v499_v50  ;;  %v502_v54 = vld [vmem:[%s11601_s1 + $0x250] sm:$0xff]  ;;  %v555_v47 = vld [vmem:[%s11601_s1 + $0x3f8] sm:$0xff] }
  0xea   : > { %2222 = vmatprep.mubr.bf16.mxu0 %v9580_v28  ;;  %2275 = vmatprep.mubr.bf16.mxu1 %v9580_v28  ;;  %v7231_v61 = vcombine.high %v502_v54, %v506_v57  ;;  %v7230_v7 = vcombine.low %v502_v54, %v506_v57  ;;  %v7311_v54 = vld [vmem:[%s11601_s1 + $0x428] sm:$0xff] }
  0xec   : > { %2289 = vmatpush1.bf16.msra.mxu0 %v7166_v59  ;;  %2342 = vmatpush1.bf16.msra.mxu1 %v7168_v0  ;;  %v7224_v59 = vcombine.low %v495_v49, %v499_v50  ;;  %v510_v0 = vld [vmem:[%s11601_s1 + $0x290] sm:$0xff] }
  0xed   : > { %2290 = vmatprep.subr.bf16.mxu0 %v7175_v1  ;;  %2343 = vmatprep.subr.bf16.mxu1 %v7177_v2  ;;  %v514_v1 = vld [vmem:[%s11601_s1 + $0x2b0] sm:$0xff]  ;;  %v511_v2 = vld [vmem:[%s11601_s1 + $0x298] sm:$0xff] }
  0xee   : > { %v7239_v11 = vcombine.high %v510_v0, %v514_v1  ;;  %v7238_v19 = vcombine.low %v510_v0, %v514_v1  ;;  %v7240_v20 = vcombine.low %v511_v2, %v515_v6  ;;  %v7319_v0 = vld [vmem:[%s11601_s1 + $0x468] sm:$0xff] }
  0xef   : > { %2223 = vmatmul.mubr.bf16.gmra.mrb[4].mxu0 %v9610_v12  ;;  %2276 = vmatmul.mubr.bf16.gmra.mrb[4].mxu1 %v9610_v12 }
  0xf0   : > { %2291 = vmatpush1.bf16.msra.mxu0 %v7174_v14  ;;  %2344 = vmatpush1.bf16.msra.mxu1 %v7176_v15  ;;  %v7241_v14 = vcombine.high %v511_v2, %v515_v6  ;;  %v518_v15 = vld [vmem:[%s11601_s1 + $0x2d0] sm:$0xff] }
  0xf1   : > { %2292 = vmatprep.subr.bf16.mxu0 %v7183_v16  ;;  %2345 = vmatprep.subr.bf16.mxu1 %v7185_v17  ;;  %v522_v16 = vld [vmem:[%s11601_s1 + $0x2f0] sm:$0xff]  ;;  %v519_v17 = vld [vmem:[%s11601_s1 + $0x2d8] sm:$0xff] }
  0xf2   : > { %7296 = vmatprep.mubr.msk.bf16.mxu0 %vm8963_vm3, %v9390_v43  ;;  %7302 = vmatprep.mubr.msk.bf16.mxu1 %vm8963_vm3, %v9390_v43  ;;  %v479_v43 = vld [vmem:[%s11601_s1 + $0x198] sm:$0xff]  ;;  %v7247_v21 = vcombine.high %v518_v15, %v522_v16  ;;  %v7246_v27 = vcombine.low %v518_v15, %v522_v16  ;;  %v7248_v29 = vcombine.low %v519_v17, %v523_v18  ;;  %v7327_v15 = vld [vmem:[%s11601_s1 + $0x4a8] sm:$0xff] }
  0xf3   : > { %v7209_v36 = vcombine.high %v479_v43, %v483_v5  ;;  %v7208_v44 = vcombine.low %v479_v43, %v483_v5 }
  0xf4   : > { %2293 = vmatpush1.bf16.msra.mxu0 %v7182_v22  ;;  %2346 = vmatpush1.bf16.msra.mxu1 %v7184_v23  ;;  %v7249_v22 = vcombine.high %v519_v17, %v523_v18  ;;  %v526_v23 = vld [vmem:[%s11601_s1 + $0x310] sm:$0xff] }
  0xf5   : > { %2294 = vmatprep.subr.bf16.mxu0 %v7191_v24  ;;  %2347 = vmatprep.subr.bf16.mxu1 %v7193_v25  ;;  %v530_v24 = vld [vmem:[%s11601_s1 + $0x330] sm:$0xff]  ;;  %v527_v25 = vld [vmem:[%s11601_s1 + $0x318] sm:$0xff] }
  0xf6   : > { %v7255_v30 = vcombine.high %v526_v23, %v530_v24  ;;  %v7254_v4 = vcombine.low %v526_v23, %v530_v24  ;;  %v7256_v43 = vcombine.low %v527_v25, %v531_v26 }
  0xf8   : > { %2295 = vmatpush1.bf16.msra.mxu0 %v7190_v31  ;;  %2348 = vmatpush1.bf16.msra.mxu1 %v7192_v32  ;;  %v7257_v31 = vcombine.high %v527_v25, %v531_v26  ;;  %v534_v32 = vld [vmem:[%s11601_s1 + $0x350] sm:$0xff]  ;;  %v7338_v26 = vld [vmem:[%s11601_s1 + $0x500] sm:$0xff] }
  0xf9   : > { %2296 = vmatprep.subr.bf16.mxu0 %v7199_v13  ;;  %2349 = vmatprep.subr.bf16.mxu1 %v7201_v56  ;;  %v538_v13 = vld [vmem:[%s11601_s1 + $0x370] sm:$0xff]  ;;  %v535_v56 = vld [vmem:[%s11601_s1 + $0x358] sm:$0xff] }
  0xfa   : > { %v7263_v5 = vcombine.high %v534_v32, %v538_v13  ;;  %v7262_v38 = vcombine.low %v534_v32, %v538_v13  ;;  %v7264_v39 = vcombine.low %v535_v56, %v539_v41  ;;  %v7343_v32 = vld [vmem:[%s11601_s1 + $0x528] sm:$0xff] }
  0xfc   : > { %2297 = vmatpush1.bf16.msra.mxu0 %v7198_v33  ;;  %2350 = vmatpush1.bf16.msra.mxu1 %v7200_v34  ;;  %v7265_v33 = vcombine.high %v535_v56, %v539_v41  ;;  %v542_v34 = vld [vmem:[%s11601_s1 + $0x390] sm:$0xff] }
  0xfd   : > { %2298 = vmatprep.subr.bf16.mxu0 %v7207_v35  ;;  %2351 = vmatprep.subr.bf16.mxu1 %v7209_v36  ;;  %v546_v35 = vld [vmem:[%s11601_s1 + $0x3b0] sm:$0xff]  ;;  %v543_v36 = vld [vmem:[%s11601_s1 + $0x398] sm:$0xff] }
  0xfe   : > { %v7271_v40 = vcombine.high %v542_v34, %v546_v35  ;;  %v7270_v48 = vcombine.low %v542_v34, %v546_v35  ;;  %v7272_v49 = vcombine.low %v543_v36, %v547_v37 }
 0x100   : > { %2299 = vmatpush1.bf16.msra.mxu0 %v7206_v53  ;;  %2352 = vmatpush1.bf16.msra.mxu1 %v7208_v44  ;;  %v7273_v53 = vcombine.high %v543_v36, %v547_v37  ;;  %v550_v44 = vld [vmem:[%s11601_s1 + $0x3d0] sm:$0xff] }
 0x101   : > { %2300 = vmatprep.subr.bf16.mxu0 %v7215_v62  ;;  %2353 = vmatprep.subr.bf16.mxu1 %v7217_v46  ;;  %v554_v62 = vld [vmem:[%s11601_s1 + $0x3f0] sm:$0xff]  ;;  %v551_v46 = vld [vmem:[%s11601_s1 + $0x3d8] sm:$0xff] }
 0x102   : > { %v7279_v50 = vcombine.high %v550_v44, %v554_v62  ;;  %v7278_v57 = vcombine.low %v550_v44, %v554_v62  ;;  %v7280_v60 = vcombine.low %v551_v46, %v555_v47 }
 0x104   : > { %2301 = vmatpush1.bf16.msra.mxu0 %v7214_v51  ;;  %2354 = vmatpush1.bf16.msra.mxu1 %v7216_v8  ;;  %v7281_v51 = vcombine.high %v551_v46, %v555_v47  ;;  %v7306_v8 = vld [vmem:[%s11601_s1 + $0x400] sm:$0xff] }
 0x105   : > { %2302 = vmatprep.subr.bf16.mxu0 %v7223_v52  ;;  %2355 = vmatprep.subr.bf16.mxu1 %v7225_v3  ;;  %v7310_v52 = vld [vmem:[%s11601_s1 + $0x420] sm:$0xff]  ;;  %v7307_v3 = vld [vmem:[%s11601_s1 + $0x408] sm:$0xff] }
 0x106   : > { %v7435_v55 = vcombine.high %v7306_v8, %v7310_v52  ;;  %v7434_v1 = vcombine.low %v7306_v8, %v7310_v52  ;;  %v7436_v2 = vcombine.low %v7307_v3, %v7311_v54 }
 0x108   : > { %2303 = vmatpush1.bf16.msra.mxu0 %v7222_v58  ;;  %2356 = vmatpush1.bf16.msra.mxu1 %v7224_v59  ;;  %v7437_v58 = vcombine.high %v7307_v3, %v7311_v54  ;;  %v7314_v59 = vld [vmem:[%s11601_s1 + $0x440] sm:$0xff] }
 0x109   : > { %2304 = vmatprep.subr.bf16.mxu0 %v7231_v61  ;;  %2357 = vmatprep.subr.bf16.mxu1 %v7233_v63  ;;  %v7318_v61 = vld [vmem:[%s11601_s1 + $0x460] sm:$0xff]  ;;  %v7315_v63 = vld [vmem:[%s11601_s1 + $0x448] sm:$0xff] }
 0x10a   : > { %v7443_v6 = vcombine.high %v7314_v59, %v7318_v61  ;;  %v7442_v16 = vcombine.low %v7314_v59, %v7318_v61  ;;  %v7444_v17 = vcombine.low %v7315_v63, %v7319_v0 }
 0x10c   : > { %2305 = vmatpush1.bf16.msra.mxu0 %v7230_v7  ;;  %2358 = vmatpush1.bf16.msra.mxu1 %v7232_v10  ;;  %v7445_v7 = vcombine.high %v7315_v63, %v7319_v0  ;;  %v7322_v10 = vld [vmem:[%s11601_s1 + $0x480] sm:$0xff] }
 0x10d   : > { %2306 = vmatprep.subr.bf16.mxu0 %v7239_v11  ;;  %2359 = vmatprep.subr.bf16.mxu1 %v7241_v14  ;;  %v7326_v11 = vld [vmem:[%s11601_s1 + $0x4a0] sm:$0xff]  ;;  %v7323_v14 = vld [vmem:[%s11601_s1 + $0x488] sm:$0xff] }
 0x10e   : > { %v7451_v18 = vcombine.high %v7322_v10, %v7326_v11  ;;  %v7452_v23 = vcombine.low %v7323_v14, %v7327_v15 }
 0x110   : > { %2307 = vmatpush1.bf16.msra.mxu0 %v7238_v19  ;;  %2360 = vmatpush1.bf16.msra.mxu1 %v7240_v20  ;;  %v7453_v19 = vcombine.high %v7323_v14, %v7327_v15  ;;  %v7330_v20 = vld [vmem:[%s11601_s1 + $0x4c0] sm:$0xff] }
 0x111   : > { %2308 = vmatprep.subr.bf16.mxu0 %v7247_v21  ;;  %2361 = vmatprep.subr.bf16.mxu1 %v7249_v22  ;;  %v7334_v21 = vld [vmem:[%s11601_s1 + $0x4e0] sm:$0xff]  ;;  %v7450_v22 = vcombine.low %v7322_v10, %v7326_v11 }
 0x112   : > { %v7459_v24 = vcombine.high %v7330_v20, %v7334_v21  ;;  %v7458_v13 = vcombine.low %v7330_v20, %v7334_v21 }
 0x114   : > { %2309 = vmatpush1.bf16.msra.mxu0 %v7246_v27  ;;  %2362 = vmatpush1.bf16.msra.mxu1 %v7248_v29  ;;  %v7342_v27 = vld [vmem:[%s11601_s1 + $0x520] sm:$0xff]  ;;  %v8734_v29 = vld [vmem:[#allocation2 + $0x18] sm:$0xff] }
 0x115   : > { %2310 = vmatprep.subr.bf16.mxu0 %v7255_v30  ;;  %2363 = vmatprep.subr.bf16.mxu1 %v7257_v31  ;;  %v8735_v30 = vld [vmem:[#allocation2 + $0x28] sm:$0xff]  ;;  %v7467_v41 = vcombine.high %v7338_v26, %v7342_v27  ;;  %v7466_v34 = vcombine.low %v7338_v26, %v7342_v27 }
 0x116   : > { %v9826_v31 = vpack.c.bf16 %v8735_v30, %v8734_v29 }
 0x118   : > { %2311 = vmatpush1.bf16.msra.mxu0 %v7254_v4  ;;  %2364 = vmatpush1.bf16.msra.mxu1 %v7256_v43  ;;  %v7346_v43 = vld [vmem:[%s11601_s1 + $0x540] sm:$0xff] }
 0x119   : > { %2312 = vmatprep.subr.bf16.mxu0 %v7263_v5  ;;  %2365 = vmatprep.subr.bf16.mxu1 %v7265_v33  ;;  %v7350_v5 = vld [vmem:[%s11601_s1 + $0x560] sm:$0xff]  ;;  %v7351_v33 = vld [vmem:[%s11601_s1 + $0x568] sm:$0xff] }
 0x11a   : > { %v7475_v36 = vcombine.high %v7346_v43, %v7350_v5  ;;  %v7474_v44 = vcombine.low %v7346_v43, %v7350_v5 }
 0x11c   : > { %2313 = vmatpush1.bf16.msra.mxu0 %v7262_v38  ;;  %2366 = vmatpush1.bf16.msra.mxu1 %v7264_v39  ;;  %v7354_v38 = vld [vmem:[%s11601_s1 + $0x580] sm:$0xff] }
 0x11d   : > { %2314 = vmatprep.subr.bf16.mxu0 %v7271_v40  ;;  %2367 = vmatprep.subr.bf16.mxu1 %v7273_v53  ;;  %v7358_v39 = vld [vmem:[%s11601_s1 + $0x5a0] sm:$0xff]  ;;  %v7355_v40 = vld [vmem:[%s11601_s1 + $0x588] sm:$0xff] }
 0x11e   : > { %v7359_v53 = vld [vmem:[%s11601_s1 + $0x5a8] sm:$0xff]  ;;  %v7483_v46 = vcombine.high %v7354_v38, %v7358_v39  ;;  %v7482_v8 = vcombine.low %v7354_v38, %v7358_v39 }
 0x11f   : > { %v7485_v47 = vcombine.high %v7355_v40, %v7359_v53  ;;  %v7484_v52 = vcombine.low %v7355_v40, %v7359_v53  ;;  %v7418_v40 = vld [vmem:[%s11601_s1 + $0x780] sm:$0xff] }
 0x120   : > { %2315 = vmatpush1.bf16.msra.mxu0 %v7270_v48  ;;  %2368 = vmatpush1.bf16.msra.mxu1 %v7272_v49  ;;  %v7362_v48 = vld [vmem:[%s11601_s1 + $0x5c0] sm:$0xff] }
 0x121   : > { %2316 = vmatprep.subr.bf16.mxu0 %v7279_v50  ;;  %2369 = vmatprep.subr.bf16.mxu1 %v7281_v51  ;;  %v7366_v49 = vld [vmem:[%s11601_s1 + $0x5e0] sm:$0xff]  ;;  %v7363_v50 = vld [vmem:[%s11601_s1 + $0x5c8] sm:$0xff] }
 0x122   : > { %v7367_v51 = vld [vmem:[%s11601_s1 + $0x5e8] sm:$0xff]  ;;  %v7491_v3 = vcombine.high %v7362_v48, %v7366_v49  ;;  %v7490_v59 = vcombine.low %v7362_v48, %v7366_v49  ;;  %v7422_v53 = vld [vmem:[%s11601_s1 + $0x7a0] sm:$0xff] }
 0x123   : > { %v7493_v54 = vcombine.high %v7363_v50, %v7367_v51  ;;  %v7492_v61 = vcombine.low %v7363_v50, %v7367_v51  ;;  %v7547_v48 = vcombine.high %v7418_v40, %v7422_v53  ;;  %v7426_v50 = vld [vmem:[%s11601_s1 + $0x7c0] sm:$0xff] }
 0x124   : > { %2317 = vmatpush1.bf16.msra.mxu0 %v7278_v57  ;;  %2370 = vmatpush1.bf16.msra.mxu1 %v7280_v60  ;;  %v7370_v57 = vld [vmem:[%s11601_s1 + $0x600] sm:$0xff] }
 0x125   : > { %3169 = vmatprep.subr.bf16.mxu0 %v7435_v55  ;;  %3222 = vmatprep.subr.bf16.mxu1 %v7437_v58  ;;  %v7374_v60 = vld [vmem:[%s11601_s1 + $0x620] sm:$0xff]  ;;  %v7371_v55 = vld [vmem:[%s11601_s1 + $0x608] sm:$0xff] }
 0x126   : > { %v7375_v58 = vld [vmem:[%s11601_s1 + $0x628] sm:$0xff]  ;;  %v7499_v63 = vcombine.high %v7370_v57, %v7374_v60  ;;  %v7498_v10 = vcombine.low %v7370_v57, %v7374_v60  ;;  %v7430_v51 = vld [vmem:[%s11601_s1 + $0x7e0] sm:$0xff] }
 0x127   : > { %7299 = vmatmul.mubr.msk.bf16.vlgmr.msra.gmra.mrb[8].mxu0 %vm8963_vm3, %v9561_v45  ;;  %7305 = vmatmul.mubr.msk.bf16.vlgmr.msra.gmra.mrb[8].mxu1 %vm8963_vm3, %v9561_v45  ;;  %v7335_v45 = vld [vmem:[%s11601_s1 + $0x4e8] sm:$0xff]  ;;  %v7501_v0 = vcombine.high %v7371_v55, %v7375_v58  ;;  %v7500_v11 = vcombine.low %v7371_v55, %v7375_v58  ;;  %v7555_v57 = vcombine.high %v7426_v50, %v7430_v51  ;;  %v7308_v55 = vld [vmem:[%s11601_s1 + $0x410] sm:$0xff] }
 0x128   : > { %3170 = vmatpush1.bf16.msra.mxu0 %v7434_v1  ;;  %3223 = vmatpush1.bf16.msra.mxu1 %v7436_v2  ;;  %v7461_v25 = vcombine.high %v7331_v9, %v7335_v45  ;;  %v7460_v56 = vcombine.low %v7331_v9, %v7335_v45  ;;  %v7378_v1 = vld [vmem:[%s11601_s1 + $0x640] sm:$0xff]  ;;  %v7312_v58 = vld [vmem:[%s11601_s1 + $0x430] sm:$0xff] }
 0x129   : > { %3171 = vmatprep.subr.bf16.mxu0 %v7443_v6  ;;  %3224 = vmatprep.subr.bf16.mxu1 %v7445_v7  ;;  %v7382_v2 = vld [vmem:[%s11601_s1 + $0x660] sm:$0xff]  ;;  %v7379_v6 = vld [vmem:[%s11601_s1 + $0x648] sm:$0xff] }
 0x12a   : > { %2328 = vmatprep.mubr.bf16.mxu0 %v9580_v28  ;;  %2381 = vmatprep.mubr.bf16.mxu1 %v9580_v28  ;;  %v7339_v28 = vld [vmem:[%s11601_s1 + $0x508] sm:$0xff]  ;;  %v7507_v14 = vcombine.high %v7378_v1, %v7382_v2  ;;  %v7506_v20 = vcombine.low %v7378_v1, %v7382_v2  ;;  %v7439_v1 = vcombine.high %v7308_v55, %v7312_v58 }
 0x12b   : > { %v7469_v4 = vcombine.high %v7339_v28, %v7343_v32  ;;  %v7468_v35 = vcombine.low %v7339_v28, %v7343_v32  ;;  %v7383_v7 = vld [vmem:[%s11601_s1 + $0x668] sm:$0xff]  ;;  %v7402_v28 = vld [vmem:[%s11601_s1 + $0x700] sm:$0xff] }
 0x12c   : > { %3172 = vmatpush1.bf16.msra.mxu0 %v7442_v16  ;;  %3225 = vmatpush1.bf16.msra.mxu1 %v7444_v17  ;;  %v7509_v15 = vcombine.high %v7379_v6, %v7383_v7  ;;  %v7386_v16 = vld [vmem:[%s11601_s1 + $0x680] sm:$0xff]  ;;  %v7508_v21 = vcombine.low %v7379_v6, %v7383_v7  ;;  %v7316_v6 = vld [vmem:[%s11601_s1 + $0x450] sm:$0xff] }
 0x12d   : > { %3173 = vmatprep.subr.bf16.mxu0 %v7451_v18  ;;  %3226 = vmatprep.subr.bf16.mxu1 %v7453_v19  ;;  %v7390_v17 = vld [vmem:[%s11601_s1 + $0x6a0] sm:$0xff]  ;;  %v7387_v18 = vld [vmem:[%s11601_s1 + $0x688] sm:$0xff]  ;;  %v7320_v7 = vld [vmem:[%s11601_s1 + $0x470] sm:$0xff] }
 0x12e   : > { %v7391_v19 = vld [vmem:[%s11601_s1 + $0x6a8] sm:$0xff]  ;;  %v7515_v9 = vcombine.high %v7386_v16, %v7390_v17  ;;  %v7514_v26 = vcombine.low %v7386_v16, %v7390_v17  ;;  %v7406_v32 = vld [vmem:[%s11601_s1 + $0x720] sm:$0xff]  ;;  %v7321_v16 = vld [vmem:[%s11601_s1 + $0x478] sm:$0xff]  ;;  %v7438_v17 = vcombine.low %v7308_v55, %v7312_v58 }
 0x12f   : > { %2329 = vmatmul.mubr.bf16.gmra.mrb[12].mxu0 %v9610_v12  ;;  %2382 = vmatmul.mubr.bf16.gmra.mrb[12].mxu1 %v9610_v12  ;;  %v7347_v12 = vld [vmem:[%s11601_s1 + $0x548] sm:$0xff]  ;;  %v7517_v45 = vcombine.high %v7387_v18, %v7391_v19  ;;  %v7516_v27 = vcombine.low %v7387_v18, %v7391_v19  ;;  %v7531_v43 = vcombine.high %v7402_v28, %v7406_v32 }
 0x130   : > { %3174 = vmatpush1.bf16.msra.mxu0 %v7450_v22  ;;  %3227 = vmatpush1.bf16.msra.mxu1 %v7452_v23  ;;  %v7477_v37 = vcombine.high %v7347_v12, %v7351_v33  ;;  %v7476_v62 = vcombine.low %v7347_v12, %v7351_v33  ;;  %v7394_v22 = vld [vmem:[%s11601_s1 + $0x6c0] sm:$0xff]  ;;  %v7447_v19 = vcombine.high %v7316_v6, %v7320_v7 }
 0x131   : > { %3175 = vmatprep.subr.bf16.mxu0 %v7459_v24  ;;  %3228 = vmatprep.subr.bf16.mxu1 %v7461_v25  ;;  %v7398_v23 = vld [vmem:[%s11601_s1 + $0x6e0] sm:$0xff]  ;;  %v7395_v24 = vld [vmem:[%s11601_s1 + $0x6c8] sm:$0xff] }
 0x132   : > { %3201 = vmatprep.mubr.bf16.mxu0 %v9826_v31  ;;  %3254 = vmatprep.mubr.bf16.mxu1 %v9826_v31  ;;  %v7399_v25 = vld [vmem:[%s11601_s1 + $0x6e8] sm:$0xff]  ;;  %v7523_v29 = vcombine.high %v7394_v22, %v7398_v23  ;;  %v7410_v12 = vld [vmem:[%s11601_s1 + $0x740] sm:$0xff] }
 0x133   : > { %v7525_v30 = vcombine.high %v7395_v24, %v7399_v25  ;;  %v7414_v33 = vld [vmem:[%s11601_s1 + $0x760] sm:$0xff] }
 0x134   : > { %3176 = vmatpush1.bf16.msra.mxu0 %v7458_v13  ;;  %3229 = vmatpush1.bf16.msra.mxu1 %v7460_v56  ;;  %v7403_v13 = vld [vmem:[%s11601_s1 + $0x708] sm:$0xff]  ;;  %v7539_v38 = vcombine.high %v7410_v12, %v7414_v33 }
 0x135   : > { %3177 = vmatprep.subr.bf16.mxu0 %v7467_v41  ;;  %3230 = vmatprep.subr.bf16.mxu1 %v7469_v4  ;;  %v7407_v56 = vld [vmem:[%s11601_s1 + $0x728] sm:$0xff]  ;;  %v7522_v41 = vcombine.low %v7394_v22, %v7398_v23  ;;  %v7524_v4 = vcombine.low %v7395_v24, %v7399_v25  ;;  %v8739_v22 = vld [vmem:[#allocation2 + $0x38] sm:$0xff] }
 0x136   : > { %v7533_v5 = vcombine.high %v7403_v13, %v7407_v56  ;;  %v7325_v24 = vld [vmem:[%s11601_s1 + $0x498] sm:$0xff] }
 0x137   : > { %v7329_v25 = vld [vmem:[%s11601_s1 + $0x4b8] sm:$0xff] }
 0x138   : > { %3178 = vmatpush1.bf16.msra.mxu0 %v7466_v34  ;;  %3231 = vmatpush1.bf16.msra.mxu1 %v7468_v35  ;;  %v7411_v34 = vld [vmem:[%s11601_s1 + $0x748] sm:$0xff] }
 0x139   : > { %3179 = vmatprep.subr.bf16.mxu0 %v7475_v36  ;;  %3232 = vmatprep.subr.bf16.mxu1 %v7477_v37  ;;  %v7415_v35 = vld [vmem:[%s11601_s1 + $0x768] sm:$0xff]  ;;  %v7530_v36 = vcombine.low %v7402_v28, %v7406_v32  ;;  %v7532_v37 = vcombine.low %v7403_v13, %v7407_v56  ;;  %v7332_v28 = vld [vmem:[%s11601_s1 + $0x4d0] sm:$0xff]  ;;  %v7333_v13 = vld [vmem:[%s11601_s1 + $0x4d8] sm:$0xff] }
 0x13a   : > { %v7541_v39 = vcombine.high %v7411_v34, %v7415_v35  ;;  %v7336_v32 = vld [vmem:[%s11601_s1 + $0x4f0] sm:$0xff]  ;;  %v7337_v56 = vld [vmem:[%s11601_s1 + $0x4f8] sm:$0xff] }
 0x13c   : > { %3180 = vmatpush1.bf16.msra.mxu0 %v7474_v44  ;;  %3233 = vmatpush1.bf16.msra.mxu1 %v7476_v62  ;;  %v7419_v44 = vld [vmem:[%s11601_s1 + $0x788] sm:$0xff] }
 0x13d   : > { %3181 = vmatprep.subr.bf16.mxu0 %v7483_v46  ;;  %3234 = vmatprep.subr.bf16.mxu1 %v7485_v47  ;;  %v7423_v62 = vld [vmem:[%s11601_s1 + $0x7a8] sm:$0xff]  ;;  %v7538_v46 = vcombine.low %v7410_v12, %v7414_v33  ;;  %v7540_v47 = vcombine.low %v7411_v34, %v7415_v35  ;;  %v7456_v12 = vcombine.low %v7325_v24, %v7329_v25  ;;  %v7340_v35 = vld [vmem:[%s11601_s1 + $0x510] sm:$0xff] }
 0x13e   : > { %v7549_v49 = vcombine.high %v7419_v44, %v7423_v62  ;;  %v7463_v33 = vcombine.high %v7332_v28, %v7336_v32  ;;  %v7465_v34 = vcombine.high %v7333_v13, %v7337_v56 }
 0x140   : > { %3182 = vmatpush1.bf16.msra.mxu0 %v7482_v8  ;;  %3235 = vmatpush1.bf16.msra.mxu1 %v7484_v52  ;;  %v7427_v8 = vld [vmem:[%s11601_s1 + $0x7c8] sm:$0xff] }
 0x141   : > { %3183 = vmatprep.subr.bf16.mxu0 %v7491_v3  ;;  %3236 = vmatprep.subr.bf16.mxu1 %v7493_v54  ;;  %v7431_v52 = vld [vmem:[%s11601_s1 + $0x7e8] sm:$0xff]  ;;  %v7546_v3 = vcombine.low %v7418_v40, %v7422_v53  ;;  %v7548_v54 = vcombine.low %v7419_v44, %v7423_v62  ;;  %v7464_v40 = vcombine.low %v7333_v13, %v7337_v56  ;;  %v7348_v62 = vld [vmem:[%s11601_s1 + $0x550] sm:$0xff] }
 0x142   : > { %v7557_v60 = vcombine.high %v7427_v8, %v7431_v52 }
 0x144   : > { %3184 = vmatpush1.bf16.msra.mxu0 %v7490_v59  ;;  %3237 = vmatpush1.bf16.msra.mxu1 %v7492_v61  ;;  %v7309_v59 = vld [vmem:[%s11601_s1 + $0x418] sm:$0xff] }
 0x145   : > { %3185 = vmatprep.subr.bf16.mxu0 %v7499_v63  ;;  %3238 = vmatprep.subr.bf16.mxu1 %v7501_v0  ;;  %v7313_v61 = vld [vmem:[%s11601_s1 + $0x438] sm:$0xff]  ;;  %v7554_v63 = vcombine.low %v7426_v50, %v7430_v51  ;;  %v7556_v0 = vcombine.low %v7427_v8, %v7431_v52  ;;  %v7356_v52 = vld [vmem:[%s11601_s1 + $0x590] sm:$0xff] }
 0x146   : > { %v7441_v2 = vcombine.high %v7309_v59, %v7313_v61  ;;  %v7440_v18 = vcombine.low %v7309_v59, %v7313_v61  ;;  %v7364_v59 = vld [vmem:[%s11601_s1 + $0x5d0] sm:$0xff] }
 0x147   : > { %v7368_v61 = vld [vmem:[%s11601_s1 + $0x5f0] sm:$0xff] }
 0x148   : > { %3186 = vmatpush1.bf16.msra.mxu0 %v7498_v10  ;;  %3239 = vmatpush1.bf16.msra.mxu1 %v7500_v11  ;;  %v8736_v10 = vld [vmem:[#allocation2 + $0x10] sm:$0xff]  ;;  %v8737_v11 = vld [vmem:[#allocation2 + $0x20] sm:$0xff] }
 0x149   : > { %3187 = vmatprep.subr.bf16.mxu0 %v7507_v14  ;;  %3240 = vmatprep.subr.bf16.mxu1 %v7509_v15  ;;  %v9988_v14 = vpack.c.bf16 %v8737_v11, %v8736_v10  ;;  %v7317_v15 = vld [vmem:[%s11601_s1 + $0x458] sm:$0xff]  ;;  %v7372_v10 = vld [vmem:[%s11601_s1 + $0x610] sm:$0xff] }
 0x14a   : > { %v7376_v11 = vld [vmem:[%s11601_s1 + $0x630] sm:$0xff] }
 0x14c   : > { %3188 = vmatpush1.bf16.msra.mxu0 %v7506_v20  ;;  %3241 = vmatpush1.bf16.msra.mxu1 %v7508_v21  ;;  %v7449_v20 = vcombine.high %v7317_v15, %v7321_v16  ;;  %v7324_v21 = vld [vmem:[%s11601_s1 + $0x490] sm:$0xff] }
 0x14d   : > { %3189 = vmatprep.subr.bf16.mxu0 %v7515_v9  ;;  %3242 = vmatprep.subr.bf16.mxu1 %v7517_v45  ;;  %v7328_v9 = vld [vmem:[%s11601_s1 + $0x4b0] sm:$0xff]  ;;  %v8738_v45 = vld [vmem:[#allocation2 + $0x48] sm:$0xff] }
 0x14e   : > { %v10002_v23 = vpack.c.bf16 %v8738_v45, %v8739_v22  ;;  %v7381_v45 = vld [vmem:[%s11601_s1 + $0x658] sm:$0xff] }
 0x14f   : > { %v7385_v22 = vld [vmem:[%s11601_s1 + $0x678] sm:$0xff] }
 0x150   : > { %3190 = vmatpush1.bf16.msra.mxu0 %v7514_v26  ;;  %3243 = vmatpush1.bf16.msra.mxu1 %v7516_v27  ;;  %v7446_v26 = vcombine.low %v7316_v6, %v7320_v7  ;;  %v7448_v27 = vcombine.low %v7317_v15, %v7321_v16  ;;  %v7495_v6 = vcombine.high %v7364_v59, %v7368_v61  ;;  %v7373_v15 = vld [vmem:[%s11601_s1 + $0x618] sm:$0xff] }
 0x151   : > { %3191 = vmatprep.subr.bf16.mxu0 %v7523_v29  ;;  %3244 = vmatprep.subr.bf16.mxu1 %v7525_v30  ;;  %v7455_v29 = vcombine.high %v7324_v21, %v7328_v9  ;;  %v7457_v30 = vcombine.high %v7325_v24, %v7329_v25  ;;  %v7377_v16 = vld [vmem:[%s11601_s1 + $0x638] sm:$0xff]  ;;  %v7502_v24 = vcombine.low %v7372_v10, %v7376_v11 }
 0x152   : > { %v7504_v25 = vcombine.low %v7373_v15, %v7377_v16  ;;  %v7512_v56 = vcombine.low %v7381_v45, %v7385_v22 }
 0x154   : > { %3192 = vmatpush1.bf16.msra.mxu0 %v7522_v41  ;;  %3245 = vmatpush1.bf16.msra.mxu1 %v7524_v4  ;;  %v8740_v41 = vld [vmem:[#allocation2 + $0x40] sm:$0xff]  ;;  %v8741_v4 = vld [vmem:[#allocation2 + $0x30] sm:$0xff] }
 0x155   : > { %3193 = vmatprep.subr.bf16.mxu0 %v7531_v43  ;;  %3246 = vmatprep.subr.bf16.mxu1 %v7533_v5  ;;  %v10026_v43 = vpack.c.bf16 %v8740_v41, %v8741_v4  ;;  %v7454_v5 = vcombine.low %v7324_v21, %v7328_v9  ;;  %v7380_v21 = vld [vmem:[%s11601_s1 + $0x650] sm:$0xff] }
 0x156   : > { %v7384_v9 = vld [vmem:[%s11601_s1 + $0x670] sm:$0xff] }
 0x157   : > { %v7510_v13 = vcombine.low %v7380_v21, %v7384_v9 }
 0x158   : > { %3194 = vmatpush1.bf16.msra.mxu0 %v7530_v36  ;;  %3247 = vmatpush1.bf16.msra.mxu1 %v7532_v37  ;;  %v7344_v36 = vld [vmem:[%s11601_s1 + $0x530] sm:$0xff]  ;;  %v7341_v37 = vld [vmem:[%s11601_s1 + $0x518] sm:$0xff] }
 0x159   : > { %3195 = vmatprep.subr.bf16.mxu0 %v7539_v38  ;;  %3248 = vmatprep.subr.bf16.mxu1 %v7541_v39  ;;  %v7345_v38 = vld [vmem:[%s11601_s1 + $0x538] sm:$0xff]  ;;  %v7462_v39 = vcombine.low %v7332_v28, %v7336_v32  ;;  %v7471_v53 = vcombine.high %v7340_v35, %v7344_v36 }
 0x15a   : > { %v7473_v44 = vcombine.high %v7341_v37, %v7345_v38  ;;  %v7472_v50 = vcombine.low %v7341_v37, %v7345_v38  ;;  %v7389_v28 = vld [vmem:[%s11601_s1 + $0x698] sm:$0xff] }
 0x15b   : > { %v7393_v32 = vld [vmem:[%s11601_s1 + $0x6b8] sm:$0xff] }
 0x15c   : > { %3196 = vmatpush1.bf16.msra.mxu0 %v7538_v46  ;;  %3249 = vmatpush1.bf16.msra.mxu1 %v7540_v47  ;;  %v7352_v46 = vld [vmem:[%s11601_s1 + $0x570] sm:$0xff]  ;;  %v7349_v47 = vld [vmem:[%s11601_s1 + $0x558] sm:$0xff]  ;;  %v7521_v4 = vcombine.high %v7389_v28, %v7393_v32 }
 0x15d   : > { %3197 = vmatprep.subr.bf16.mxu0 %v7547_v48  ;;  %3250 = vmatprep.subr.bf16.mxu1 %v7549_v49  ;;  %v7353_v48 = vld [vmem:[%s11601_s1 + $0x578] sm:$0xff]  ;;  %v7470_v49 = vcombine.low %v7340_v35, %v7344_v36  ;;  %v7479_v51 = vcombine.high %v7348_v62, %v7352_v46  ;;  %v7520_v36 = vcombine.low %v7389_v28, %v7393_v32 }
 0x15e   : > { %v7481_v8 = vcombine.high %v7349_v47, %v7353_v48 }
 0x160   : > { %3198 = vmatpush1.bf16.msra.mxu0 %v7546_v3  ;;  %3251 = vmatpush1.bf16.msra.mxu1 %v7548_v54  ;;  %v7360_v3 = vld [vmem:[%s11601_s1 + $0x5b0] sm:$0xff]  ;;  %v7361_v54 = vld [vmem:[%s11601_s1 + $0x5b8] sm:$0xff] }
 0x161   : > { %3199 = vmatprep.subr.bf16.mxu0 %v7555_v57  ;;  %3252 = vmatprep.subr.bf16.mxu1 %v7557_v60  ;;  %v7478_v57 = vcombine.low %v7348_v62, %v7352_v46  ;;  %v7480_v60 = vcombine.low %v7349_v47, %v7353_v48  ;;  %v7487_v55 = vcombine.high %v7356_v52, %v7360_v3 }
 0x164   : > { %3200 = vmatpush1.bf16.msra.mxu0 %v7554_v63  ;;  %3253 = vmatpush1.bf16.msra.mxu1 %v7556_v0  ;;  %v7365_v63 = vld [vmem:[%s11601_s1 + $0x5d8] sm:$0xff] }
 0x165   : > { %3275 = vmatprep.subr.bf16.mxu0 %v7439_v1  ;;  %3328 = vmatprep.subr.bf16.mxu1 %v7441_v2  ;;  %v7369_v0 = vld [vmem:[%s11601_s1 + $0x5f8] sm:$0xff]  ;;  %v7486_v1 = vcombine.low %v7356_v52, %v7360_v3 }
 0x166   : > { %v7497_v7 = vcombine.high %v7365_v63, %v7369_v0 }
 0x167   : > { %3202 = vmatmul.mubr.bf16.vlgmr.msra.gmra.mrb[0].mxu0 %v9988_v14  ;;  %3255 = vmatmul.mubr.bf16.vlgmr.msra.gmra.mrb[0].mxu1 %v9988_v14 }
 0x168   : > { %3276 = vmatpush1.bf16.msra.mxu0 %v7438_v17  ;;  %3329 = vmatpush1.bf16.msra.mxu1 %v7440_v18  ;;  %v7494_v17 = vcombine.low %v7364_v59, %v7368_v61  ;;  %v7496_v18 = vcombine.low %v7365_v63, %v7369_v0 }
 0x169   : > { %3277 = vmatprep.subr.bf16.mxu0 %v7447_v19  ;;  %3330 = vmatprep.subr.bf16.mxu1 %v7449_v20  ;;  %v7503_v19 = vcombine.high %v7372_v10, %v7376_v11  ;;  %v7505_v20 = vcombine.high %v7373_v15, %v7377_v16 }
 0x16a   : > { %3211 = vmatprep.mubr.bf16.mxu0 %v10002_v23  ;;  %3264 = vmatprep.mubr.bf16.mxu1 %v10002_v23 }
 0x16c   : > { %3278 = vmatpush1.bf16.msra.mxu0 %v7446_v26  ;;  %3331 = vmatpush1.bf16.msra.mxu1 %v7448_v27  ;;  %v7511_v26 = vcombine.high %v7380_v21, %v7384_v9  ;;  %v7513_v27 = vcombine.high %v7381_v45, %v7385_v22 }
 0x16d   : > { %3279 = vmatprep.subr.bf16.mxu0 %v7455_v29  ;;  %3332 = vmatprep.subr.bf16.mxu1 %v7457_v30  ;;  %v7388_v29 = vld [vmem:[%s11601_s1 + $0x690] sm:$0xff] }
 0x16e   : > { %v7392_v30 = vld [vmem:[%s11601_s1 + $0x6b0] sm:$0xff] }
 0x16f   : > { %3212 = vmatmul.mubr.bf16.gmra.mrb[4].mxu0 %v10026_v43  ;;  %3265 = vmatmul.mubr.bf16.gmra.mrb[4].mxu1 %v10026_v43  ;;  %v7519_v41 = vcombine.high %v7388_v29, %v7392_v30  ;;  %v7518_v35 = vcombine.low %v7388_v29, %v7392_v30 }
 0x170   : > { %3280 = vmatpush1.bf16.msra.mxu0 %v7454_v5  ;;  %3333 = vmatpush1.bf16.msra.mxu1 %v7456_v12  ;;  %v7396_v5 = vld [vmem:[%s11601_s1 + $0x6d0] sm:$0xff] }
 0x171   : > { %3281 = vmatprep.subr.bf16.mxu0 %v7463_v33  ;;  %3334 = vmatprep.subr.bf16.mxu1 %v7465_v34  ;;  %v7400_v12 = vld [vmem:[%s11601_s1 + $0x6f0] sm:$0xff]  ;;  %v7397_v33 = vld [vmem:[%s11601_s1 + $0x6d8] sm:$0xff] }
 0x172   : > { %3307 = vmatprep.mubr.bf16.mxu0 %v9826_v31  ;;  %3360 = vmatprep.mubr.bf16.mxu1 %v9826_v31  ;;  %v7357_v31 = vld [vmem:[%s11601_s1 + $0x598] sm:$0xff]  ;;  %v7527_v37 = vcombine.high %v7396_v5, %v7400_v12  ;;  %v7526_v62 = vcombine.low %v7396_v5, %v7400_v12 }
 0x173   : > { %v7489_v58 = vcombine.high %v7357_v31, %v7361_v54  ;;  %v7488_v2 = vcombine.low %v7357_v31, %v7361_v54  ;;  %v7401_v34 = vld [vmem:[%s11601_s1 + $0x6f8] sm:$0xff] }
 0x174   : > { %3282 = vmatpush1.bf16.msra.mxu0 %v7462_v39  ;;  %3335 = vmatpush1.bf16.msra.mxu1 %v7464_v40  ;;  %v7529_v38 = vcombine.high %v7397_v33, %v7401_v34  ;;  %v7404_v39 = vld [vmem:[%s11601_s1 + $0x710] sm:$0xff]  ;;  %v7528_v46 = vcombine.low %v7397_v33, %v7401_v34 }
 0x175   : > { %3283 = vmatprep.subr.bf16.mxu0 %v7471_v53  ;;  %3336 = vmatprep.subr.bf16.mxu1 %v7473_v44  ;;  %v7408_v40 = vld [vmem:[%s11601_s1 + $0x730] sm:$0xff]  ;;  %v7405_v53 = vld [vmem:[%s11601_s1 + $0x718] sm:$0xff] }
 0x176   : > { %v7409_v44 = vld [vmem:[%s11601_s1 + $0x738] sm:$0xff]  ;;  %v7535_v47 = vcombine.high %v7404_v39, %v7408_v40  ;;  %v7534_v52 = vcombine.low %v7404_v39, %v7408_v40 }
 0x177   : > { %v7537_v48 = vcombine.high %v7405_v53, %v7409_v44  ;;  %v7536_v3 = vcombine.low %v7405_v53, %v7409_v44  ;;  %v7594_v44 = vld [vmem:[%s11602_s2 + $0x500] sm:$0xff] }
 0x178   : > { %3284 = vmatpush1.bf16.msra.mxu0 %v7470_v49  ;;  %3337 = vmatpush1.bf16.msra.mxu1 %v7472_v50  ;;  %v7412_v49 = vld [vmem:[%s11601_s1 + $0x750] sm:$0xff] }
 0x179   : > { %3285 = vmatprep.subr.bf16.mxu0 %v7479_v51  ;;  %3338 = vmatprep.subr.bf16.mxu1 %v7481_v8  ;;  %v7416_v50 = vld [vmem:[%s11601_s1 + $0x770] sm:$0xff]  ;;  %v7413_v51 = vld [vmem:[%s11601_s1 + $0x758] sm:$0xff] }
 0x17a   : > { %v7417_v8 = vld [vmem:[%s11601_s1 + $0x778] sm:$0xff]  ;;  %v7543_v31 = vcombine.high %v7412_v49, %v7416_v50  ;;  %v7542_v59 = vcombine.low %v7412_v49, %v7416_v50  ;;  %v7599_v49 = vld [vmem:[%s11602_s2 + $0x528] sm:$0xff] }
 0x17b   : > { %v7545_v54 = vcombine.high %v7413_v51, %v7417_v8  ;;  %v7544_v61 = vcombine.low %v7413_v51, %v7417_v8 }
 0x17c   : > { %3286 = vmatpush1.bf16.msra.mxu0 %v7478_v57  ;;  %3339 = vmatpush1.bf16.msra.mxu1 %v7480_v60  ;;  %v7420_v57 = vld [vmem:[%s11601_s1 + $0x790] sm:$0xff] }
 0x17d   : > { %3287 = vmatprep.subr.bf16.mxu0 %v7487_v55  ;;  %3340 = vmatprep.subr.bf16.mxu1 %v7489_v58  ;;  %v7424_v60 = vld [vmem:[%s11601_s1 + $0x7b0] sm:$0xff]  ;;  %v7421_v55 = vld [vmem:[%s11601_s1 + $0x798] sm:$0xff] }
 0x17e   : > { %v7425_v58 = vld [vmem:[%s11601_s1 + $0x7b8] sm:$0xff]  ;;  %v7551_v63 = vcombine.high %v7420_v57, %v7424_v60  ;;  %v7550_v10 = vcombine.low %v7420_v57, %v7424_v60 }
 0x17f   : > { %v7553_v0 = vcombine.high %v7421_v55, %v7425_v58  ;;  %v7552_v11 = vcombine.low %v7421_v55, %v7425_v58 }
 0x180   : > { %3288 = vmatpush1.bf16.msra.mxu0 %v7486_v1  ;;  %3341 = vmatpush1.bf16.msra.mxu1 %v7488_v2  ;;  %v7428_v1 = vld [vmem:[%s11601_s1 + $0x7d0] sm:$0xff] }
 0x181   : > { %3289 = vmatprep.subr.bf16.mxu0 %v7495_v6  ;;  %3342 = vmatprep.subr.bf16.mxu1 %v7497_v7  ;;  %v7432_v2 = vld [vmem:[%s11601_s1 + $0x7f0] sm:$0xff]  ;;  %v7429_v6 = vld [vmem:[%s11601_s1 + $0x7d8] sm:$0xff] }
 0x182   : > { %v7433_v7 = vld [vmem:[%s11601_s1 + $0x7f8] sm:$0xff]  ;;  %v7559_v15 = vcombine.high %v7428_v1, %v7432_v2  ;;  %v7558_v21 = vcombine.low %v7428_v1, %v7432_v2 }
 0x183   : > { %v7561_v16 = vcombine.high %v7429_v6, %v7433_v7  ;;  %v7560_v9 = vcombine.low %v7429_v6, %v7433_v7 }
 0x184   : > { %3290 = vmatpush1.bf16.msra.mxu0 %v7494_v17  ;;  %3343 = vmatpush1.bf16.msra.mxu1 %v7496_v18  ;;  %v7562_v17 = vld [vmem:[%s11602_s2 + $0x400] sm:$0xff] }
 0x185   : > { %3291 = vmatprep.subr.bf16.mxu0 %v7503_v19  ;;  %3344 = vmatprep.subr.bf16.mxu1 %v7505_v20  ;;  %v7566_v18 = vld [vmem:[%s11602_s2 + $0x420] sm:$0xff]  ;;  %v7563_v19 = vld [vmem:[%s11602_s2 + $0x408] sm:$0xff] }
 0x186   : > { %v7567_v20 = vld [vmem:[%s11602_s2 + $0x428] sm:$0xff]  ;;  %v7691_v45 = vcombine.high %v7562_v17, %v7566_v18  ;;  %v7690_v29 = vcombine.low %v7562_v17, %v7566_v18 }
 0x187   : > { %v7693_v22 = vcombine.high %v7563_v19, %v7567_v20  ;;  %v7692_v30 = vcombine.low %v7563_v19, %v7567_v20 }
 0x188   : > { %3292 = vmatpush1.bf16.msra.mxu0 %v7502_v24  ;;  %3345 = vmatpush1.bf16.msra.mxu1 %v7504_v25  ;;  %v7570_v24 = vld [vmem:[%s11602_s2 + $0x440] sm:$0xff] }
 0x189   : > { %3293 = vmatprep.subr.bf16.mxu0 %v7511_v26  ;;  %3346 = vmatprep.subr.bf16.mxu1 %v7513_v27  ;;  %v7574_v25 = vld [vmem:[%s11602_s2 + $0x460] sm:$0xff]  ;;  %v7571_v26 = vld [vmem:[%s11602_s2 + $0x448] sm:$0xff] }
 0x18a   : > { %v7575_v27 = vld [vmem:[%s11602_s2 + $0x468] sm:$0xff]  ;;  %v7699_v28 = vcombine.high %v7570_v24, %v7574_v25  ;;  %v7698_v5 = vcombine.low %v7570_v24, %v7574_v25 }
 0x18b   : > { %v7701_v32 = vcombine.high %v7571_v26, %v7575_v27  ;;  %v7700_v12 = vcombine.low %v7571_v26, %v7575_v27 }
 0x18c   : > { %3294 = vmatpush1.bf16.msra.mxu0 %v7510_v13  ;;  %3347 = vmatpush1.bf16.msra.mxu1 %v7512_v56  ;;  %v7578_v13 = vld [vmem:[%s11602_s2 + $0x480] sm:$0xff] }
 0x18d   : > { %3295 = vmatprep.subr.bf16.mxu0 %v7519_v41  ;;  %3348 = vmatprep.subr.bf16.mxu1 %v7521_v4  ;;  %v7582_v56 = vld [vmem:[%s11602_s2 + $0x4a0] sm:$0xff]  ;;  %v7579_v41 = vld [vmem:[%s11602_s2 + $0x488] sm:$0xff] }
 0x18e   : > { %v7583_v4 = vld [vmem:[%s11602_s2 + $0x4a8] sm:$0xff]  ;;  %v7707_v33 = vcombine.high %v7578_v13, %v7582_v56 }
 0x18f   : > { %v7709_v34 = vcombine.high %v7579_v41, %v7583_v4  ;;  %v7708_v39 = vcombine.low %v7579_v41, %v7583_v4 }
 0x190   : > { %3296 = vmatpush1.bf16.msra.mxu0 %v7518_v35  ;;  %3349 = vmatpush1.bf16.msra.mxu1 %v7520_v36  ;;  %v7586_v35 = vld [vmem:[%s11602_s2 + $0x4c0] sm:$0xff] }
 0x191   : > { %3297 = vmatprep.subr.bf16.mxu0 %v7527_v37  ;;  %3350 = vmatprep.subr.bf16.mxu1 %v7529_v38  ;;  %v7590_v36 = vld [vmem:[%s11602_s2 + $0x4e0] sm:$0xff]  ;;  %v7591_v37 = vld [vmem:[%s11602_s2 + $0x4e8] sm:$0xff]  ;;  %v7706_v38 = vcombine.low %v7578_v13, %v7582_v56 }
 0x192   : > { %v7715_v40 = vcombine.high %v7586_v35, %v7590_v36  ;;  %v7714_v50 = vcombine.low %v7586_v35, %v7590_v36 }
 0x194   : > { %3298 = vmatpush1.bf16.msra.mxu0 %v7526_v62  ;;  %3351 = vmatpush1.bf16.msra.mxu1 %v7528_v46  ;;  %v7598_v62 = vld [vmem:[%s11602_s2 + $0x520] sm:$0xff]  ;;  %v8742_v46 = vld [vmem:[#allocation3 + $0x18] sm:$0xff] }
 0x195   : > { %3299 = vmatprep.subr.bf16.mxu0 %v7535_v47  ;;  %3352 = vmatprep.subr.bf16.mxu1 %v7537_v48  ;;  %v8743_v47 = vld [vmem:[#allocation3 + $0x28] sm:$0xff]  ;;  %v7723_v8 = vcombine.high %v7594_v44, %v7598_v62  ;;  %v7722_v57 = vcombine.low %v7594_v44, %v7598_v62 }
 0x196   : > { %v10234_v48 = vpack.c.bf16 %v8743_v47, %v8742_v46 }
 0x198   : > { %3300 = vmatpush1.bf16.msra.mxu0 %v7534_v52  ;;  %3353 = vmatpush1.bf16.msra.mxu1 %v7536_v3  ;;  %v7602_v3 = vld [vmem:[%s11602_s2 + $0x540] sm:$0xff] }
 0x199   : > { %3301 = vmatprep.subr.bf16.mxu0 %v7543_v31  ;;  %3354 = vmatprep.subr.bf16.mxu1 %v7545_v54  ;;  %v7606_v31 = vld [vmem:[%s11602_s2 + $0x560] sm:$0xff]  ;;  %v7607_v54 = vld [vmem:[%s11602_s2 + $0x568] sm:$0xff] }
 0x19a   : > { %v7731_v55 = vcombine.high %v7602_v3, %v7606_v31  ;;  %v7730_v1 = vcombine.low %v7602_v3, %v7606_v31 }
 0x19c   : > { %3302 = vmatpush1.bf16.msra.mxu0 %v7542_v59  ;;  %3355 = vmatpush1.bf16.msra.mxu1 %v7544_v61  ;;  %v7610_v59 = vld [vmem:[%s11602_s2 + $0x580] sm:$0xff] }
 0x19d   : > { %3303 = vmatprep.subr.bf16.mxu0 %v7551_v63  ;;  %3356 = vmatprep.subr.bf16.mxu1 %v7553_v0  ;;  %v7614_v61 = vld [vmem:[%s11602_s2 + $0x5a0] sm:$0xff]  ;;  %v7611_v63 = vld [vmem:[%s11602_s2 + $0x588] sm:$0xff] }
 0x19e   : > { %v7615_v0 = vld [vmem:[%s11602_s2 + $0x5a8] sm:$0xff]  ;;  %v7739_v6 = vcombine.high %v7610_v59, %v7614_v61  ;;  %v7738_v17 = vcombine.low %v7610_v59, %v7614_v61 }
 0x19f   : > { %v7741_v7 = vcombine.high %v7611_v63, %v7615_v0  ;;  %v7740_v18 = vcombine.low %v7611_v63, %v7615_v0  ;;  %v7674_v63 = vld [vmem:[%s11602_s2 + $0x780] sm:$0xff] }
 0x1a0   : > { %3304 = vmatpush1.bf16.msra.mxu0 %v7550_v10  ;;  %3357 = vmatpush1.bf16.msra.mxu1 %v7552_v11  ;;  %v7618_v10 = vld [vmem:[%s11602_s2 + $0x5c0] sm:$0xff] }
 0x1a1   : > { %3305 = vmatprep.subr.bf16.mxu0 %v7559_v15  ;;  %3358 = vmatprep.subr.bf16.mxu1 %v7561_v16  ;;  %v7622_v11 = vld [vmem:[%s11602_s2 + $0x5e0] sm:$0xff]  ;;  %v7619_v15 = vld [vmem:[%s11602_s2 + $0x5c8] sm:$0xff] }
 0x1a2   : > { %v7623_v16 = vld [vmem:[%s11602_s2 + $0x5e8] sm:$0xff]  ;;  %v7747_v19 = vcombine.high %v7618_v10, %v7622_v11  ;;  %v7746_v24 = vcombine.low %v7618_v10, %v7622_v11  ;;  %v7678_v0 = vld [vmem:[%s11602_s2 + $0x7a0] sm:$0xff] }
 0x1a3   : > { %v7749_v20 = vcombine.high %v7619_v15, %v7623_v16  ;;  %v7748_v25 = vcombine.low %v7619_v15, %v7623_v16  ;;  %v7803_v10 = vcombine.high %v7674_v63, %v7678_v0  ;;  %v7682_v15 = vld [vmem:[%s11602_s2 + $0x7c0] sm:$0xff] }
 0x1a4   : > { %3306 = vmatpush1.bf16.msra.mxu0 %v7558_v21  ;;  %3359 = vmatpush1.bf16.msra.mxu1 %v7560_v9  ;;  %v7626_v21 = vld [vmem:[%s11602_s2 + $0x600] sm:$0xff] }
 0x1a5   : > { %4186 = vmatprep.subr.bf16.mxu0 %v7691_v45  ;;  %4239 = vmatprep.subr.bf16.mxu1 %v7693_v22  ;;  %v7630_v9 = vld [vmem:[%s11602_s2 + $0x620] sm:$0xff]  ;;  %v7627_v45 = vld [vmem:[%s11602_s2 + $0x608] sm:$0xff] }
 0x1a6   : > { %v7631_v22 = vld [vmem:[%s11602_s2 + $0x628] sm:$0xff]  ;;  %v7755_v26 = vcombine.high %v7626_v21, %v7630_v9  ;;  %v7754_v13 = vcombine.low %v7626_v21, %v7630_v9  ;;  %v7686_v16 = vld [vmem:[%s11602_s2 + $0x7e0] sm:$0xff] }
 0x1a7   : > { %3308 = vmatmul.mubr.bf16.vlgmr.msra.gmra.mrb[8].mxu0 %v9988_v14  ;;  %3361 = vmatmul.mubr.bf16.vlgmr.msra.gmra.mrb[8].mxu1 %v9988_v14  ;;  %v7587_v14 = vld [vmem:[%s11602_s2 + $0x4c8] sm:$0xff]  ;;  %v7757_v27 = vcombine.high %v7627_v45, %v7631_v22  ;;  %v7756_v56 = vcombine.low %v7627_v45, %v7631_v22  ;;  %v7811_v21 = vcombine.high %v7682_v15, %v7686_v16  ;;  %v7564_v45 = vld [vmem:[%s11602_s2 + $0x410] sm:$0xff] }
 0x1a8   : > { %4187 = vmatpush1.bf16.msra.mxu0 %v7690_v29  ;;  %4240 = vmatpush1.bf16.msra.mxu1 %v7692_v30  ;;  %v7717_v53 = vcombine.high %v7587_v14, %v7591_v37  ;;  %v7716_v51 = vcombine.low %v7587_v14, %v7591_v37  ;;  %v7634_v29 = vld [vmem:[%s11602_s2 + $0x640] sm:$0xff]  ;;  %v7568_v22 = vld [vmem:[%s11602_s2 + $0x430] sm:$0xff] }
 0x1a9   : > { %4188 = vmatprep.subr.bf16.mxu0 %v7699_v28  ;;  %4241 = vmatprep.subr.bf16.mxu1 %v7701_v32  ;;  %v7638_v30 = vld [vmem:[%s11602_s2 + $0x660] sm:$0xff]  ;;  %v7635_v28 = vld [vmem:[%s11602_s2 + $0x648] sm:$0xff] }
 0x1aa   : > { %3317 = vmatprep.mubr.bf16.mxu0 %v10002_v23  ;;  %3370 = vmatprep.mubr.bf16.mxu1 %v10002_v23  ;;  %v7595_v23 = vld [vmem:[%s11602_s2 + $0x508] sm:$0xff]  ;;  %v7763_v41 = vcombine.high %v7634_v29, %v7638_v30  ;;  %v7762_v35 = vcombine.low %v7634_v29, %v7638_v30  ;;  %v7695_v29 = vcombine.high %v7564_v45, %v7568_v22 }
 0x1ab   : > { %v7725_v52 = vcombine.high %v7595_v23, %v7599_v49  ;;  %v7724_v60 = vcombine.low %v7595_v23, %v7599_v49  ;;  %v7639_v32 = vld [vmem:[%s11602_s2 + $0x668] sm:$0xff]  ;;  %v7658_v23 = vld [vmem:[%s11602_s2 + $0x700] sm:$0xff] }
 0x1ac   : > { %4189 = vmatpush1.bf16.msra.mxu0 %v7698_v5  ;;  %4242 = vmatpush1.bf16.msra.mxu1 %v7700_v12  ;;  %v7765_v4 = vcombine.high %v7635_v28, %v7639_v32  ;;  %v7642_v5 = vld [vmem:[%s11602_s2 + $0x680] sm:$0xff]  ;;  %v7764_v36 = vcombine.low %v7635_v28, %v7639_v32  ;;  %v7572_v28 = vld [vmem:[%s11602_s2 + $0x450] sm:$0xff] }
 0x1ad   : > { %4190 = vmatprep.subr.bf16.mxu0 %v7707_v33  ;;  %4243 = vmatprep.subr.bf16.mxu1 %v7709_v34  ;;  %v7646_v12 = vld [vmem:[%s11602_s2 + $0x6a0] sm:$0xff]  ;;  %v7643_v33 = vld [vmem:[%s11602_s2 + $0x688] sm:$0xff]  ;;  %v7576_v32 = vld [vmem:[%s11602_s2 + $0x470] sm:$0xff] }
 0x1ae   : > { %v7647_v34 = vld [vmem:[%s11602_s2 + $0x6a8] sm:$0xff]  ;;  %v7771_v14 = vcombine.high %v7642_v5, %v7646_v12  ;;  %v7770_v44 = vcombine.low %v7642_v5, %v7646_v12  ;;  %v7662_v49 = vld [vmem:[%s11602_s2 + $0x720] sm:$0xff]  ;;  %v7577_v5 = vld [vmem:[%s11602_s2 + $0x478] sm:$0xff] }
 0x1af   : > { %3318 = vmatmul.mubr.bf16.gmra.mrb[12].mxu0 %v10026_v43  ;;  %3371 = vmatmul.mubr.bf16.gmra.mrb[12].mxu1 %v10026_v43  ;;  %v7603_v43 = vld [vmem:[%s11602_s2 + $0x548] sm:$0xff]  ;;  %v7773_v37 = vcombine.high %v7643_v33, %v7647_v34  ;;  %v7772_v62 = vcombine.low %v7643_v33, %v7647_v34  ;;  %v7787_v3 = vcombine.high %v7658_v23, %v7662_v49 }
 0x1b0   : > { %4191 = vmatpush1.bf16.msra.mxu0 %v7706_v38  ;;  %4244 = vmatpush1.bf16.msra.mxu1 %v7708_v39  ;;  %v7733_v58 = vcombine.high %v7603_v43, %v7607_v54  ;;  %v7732_v2 = vcombine.low %v7603_v43, %v7607_v54  ;;  %v7650_v38 = vld [vmem:[%s11602_s2 + $0x6c0] sm:$0xff]  ;;  %v2395_v12 = vld [vmem:[#allocation3 + $0x48] sm:$0xff]  ;;  %v7694_v33 = vcombine.low %v7564_v45, %v7568_v22 }
 0x1b1   : > { %4192 = vmatprep.subr.bf16.mxu0 %v7715_v40  ;;  %4245 = vmatprep.subr.bf16.mxu1 %v7717_v53  ;;  %v7654_v39 = vld [vmem:[%s11602_s2 + $0x6e0] sm:$0xff]  ;;  %v7651_v40 = vld [vmem:[%s11602_s2 + $0x6c8] sm:$0xff] }
 0x1b2   : > { %4218 = vmatprep.mubr.bf16.mxu0 %v10234_v48  ;;  %4271 = vmatprep.mubr.bf16.mxu1 %v10234_v48  ;;  %v7655_v53 = vld [vmem:[%s11602_s2 + $0x6e8] sm:$0xff]  ;;  %v7779_v46 = vcombine.high %v7650_v38, %v7654_v39  ;;  %v7666_v43 = vld [vmem:[%s11602_s2 + $0x740] sm:$0xff] }
 0x1b3   : > { %v7781_v47 = vcombine.high %v7651_v40, %v7655_v53  ;;  %v7670_v54 = vld [vmem:[%s11602_s2 + $0x760] sm:$0xff] }
 0x1b4   : > { %4193 = vmatpush1.bf16.msra.mxu0 %v7714_v50  ;;  %4246 = vmatpush1.bf16.msra.mxu1 %v7716_v51  ;;  %v7659_v50 = vld [vmem:[%s11602_s2 + $0x708] sm:$0xff]  ;;  %v7795_v59 = vcombine.high %v7666_v43, %v7670_v54 }
 0x1b5   : > { %4194 = vmatprep.subr.bf16.mxu0 %v7723_v8  ;;  %4247 = vmatprep.subr.bf16.mxu1 %v7725_v52  ;;  %v7663_v51 = vld [vmem:[%s11602_s2 + $0x728] sm:$0xff]  ;;  %v7778_v8 = vcombine.low %v7650_v38, %v7654_v39  ;;  %v7780_v52 = vcombine.low %v7651_v40, %v7655_v53  ;;  %v8746_v38 = vld [vmem:[#allocation3 + $0x38] sm:$0xff] }
 0x1b6   : > { %v7789_v31 = vcombine.high %v7659_v50, %v7663_v51  ;;  %v10410_v39 = vpack.c.bf16 %v2395_v12, %v8746_v38  ;;  %v7581_v40 = vld [vmem:[%s11602_s2 + $0x498] sm:$0xff] }
 0x1b7   : > { %v7585_v53 = vld [vmem:[%s11602_s2 + $0x4b8] sm:$0xff] }
 0x1b8   : > { %4195 = vmatpush1.bf16.msra.mxu0 %v7722_v57  ;;  %4248 = vmatpush1.bf16.msra.mxu1 %v7724_v60  ;;  %v7667_v57 = vld [vmem:[%s11602_s2 + $0x748] sm:$0xff]  ;;  %v7641_v38 = vld [vmem:[%s11602_s2 + $0x678] sm:$0xff] }
 0x1b9   : > { %4196 = vmatprep.subr.bf16.mxu0 %v7731_v55  ;;  %4249 = vmatprep.subr.bf16.mxu1 %v7733_v58  ;;  %v7671_v60 = vld [vmem:[%s11602_s2 + $0x768] sm:$0xff]  ;;  %v7786_v55 = vcombine.low %v7658_v23, %v7662_v49  ;;  %v7788_v58 = vcombine.low %v7659_v50, %v7663_v51  ;;  %v7713_v23 = vcombine.high %v7581_v40, %v7585_v53  ;;  %v7588_v49 = vld [vmem:[%s11602_s2 + $0x4d0] sm:$0xff]  ;;  %v7589_v51 = vld [vmem:[%s11602_s2 + $0x4d8] sm:$0xff] }
 0x1ba   : > { %v7797_v61 = vcombine.high %v7667_v57, %v7671_v60  ;;  %v7592_v50 = vld [vmem:[%s11602_s2 + $0x4f0] sm:$0xff] }
 0x1bc   : > { %4197 = vmatpush1.bf16.msra.mxu0 %v7730_v1  ;;  %4250 = vmatpush1.bf16.msra.mxu1 %v7732_v2  ;;  %v7675_v1 = vld [vmem:[%s11602_s2 + $0x788] sm:$0xff] }
 0x1bd   : > { %4198 = vmatprep.subr.bf16.mxu0 %v7739_v6  ;;  %4251 = vmatprep.subr.bf16.mxu1 %v7741_v7  ;;  %v7679_v2 = vld [vmem:[%s11602_s2 + $0x7a8] sm:$0xff]  ;;  %v7794_v6 = vcombine.low %v7666_v43, %v7670_v54  ;;  %v7796_v7 = vcombine.low %v7667_v57, %v7671_v60  ;;  %v7712_v43 = vcombine.low %v7581_v40, %v7585_v53  ;;  %v7596_v60 = vld [vmem:[%s11602_s2 + $0x510] sm:$0xff] }
 0x1be   : > { %v7805_v11 = vcombine.high %v7675_v1, %v7679_v2  ;;  %v7719_v54 = vcombine.high %v7588_v49, %v7592_v50 }
 0x1c0   : > { %4199 = vmatpush1.bf16.msra.mxu0 %v7738_v17  ;;  %4252 = vmatpush1.bf16.msra.mxu1 %v7740_v18  ;;  %v7683_v17 = vld [vmem:[%s11602_s2 + $0x7c8] sm:$0xff] }
 0x1c1   : > { %4200 = vmatprep.subr.bf16.mxu0 %v7747_v19  ;;  %4253 = vmatprep.subr.bf16.mxu1 %v7749_v20  ;;  %v7687_v18 = vld [vmem:[%s11602_s2 + $0x7e8] sm:$0xff]  ;;  %v7802_v19 = vcombine.low %v7674_v63, %v7678_v0  ;;  %v7804_v20 = vcombine.low %v7675_v1, %v7679_v2  ;;  %v7604_v2 = vld [vmem:[%s11602_s2 + $0x550] sm:$0xff] }
 0x1c2   : > { %v7813_v9 = vcombine.high %v7683_v17, %v7687_v18 }
 0x1c4   : > { %4201 = vmatpush1.bf16.msra.mxu0 %v7746_v24  ;;  %4254 = vmatpush1.bf16.msra.mxu1 %v7748_v25  ;;  %v7565_v24 = vld [vmem:[%s11602_s2 + $0x418] sm:$0xff] }
 0x1c5   : > { %4202 = vmatprep.subr.bf16.mxu0 %v7755_v26  ;;  %4255 = vmatprep.subr.bf16.mxu1 %v7757_v27  ;;  %v7569_v25 = vld [vmem:[%s11602_s2 + $0x438] sm:$0xff]  ;;  %v7810_v26 = vcombine.low %v7682_v15, %v7686_v16  ;;  %v7812_v27 = vcombine.low %v7683_v17, %v7687_v18  ;;  %v7612_v18 = vld [vmem:[%s11602_s2 + $0x590] sm:$0xff] }
 0x1c6   : > { %v7697_v30 = vcombine.high %v7565_v24, %v7569_v25  ;;  %v7696_v34 = vcombine.low %v7565_v24, %v7569_v25  ;;  %v7620_v24 = vld [vmem:[%s11602_s2 + $0x5d0] sm:$0xff] }
 0x1c7   : > { %v7624_v25 = vld [vmem:[%s11602_s2 + $0x5f0] sm:$0xff] }
 0x1c8   : > { %4203 = vmatpush1.bf16.msra.mxu0 %v7754_v13  ;;  %4256 = vmatpush1.bf16.msra.mxu1 %v7756_v56  ;;  %v8744_v13 = vld [vmem:[#allocation3 + $0x10] sm:$0xff]  ;;  %v8745_v56 = vld [vmem:[#allocation3 + $0x20] sm:$0xff]  ;;  %v7750_v12 = vcombine.low %v7620_v24, %v7624_v25 }
 0x1c9   : > { %4204 = vmatprep.subr.bf16.mxu0 %v7763_v41  ;;  %4257 = vmatprep.subr.bf16.mxu1 %v7765_v4  ;;  %v10396_v41 = vpack.c.bf16 %v8745_v56, %v8744_v13  ;;  %v7573_v4 = vld [vmem:[%s11602_s2 + $0x458] sm:$0xff]  ;;  %v7628_v13 = vld [vmem:[%s11602_s2 + $0x610] sm:$0xff] }
 0x1ca   : > { %v7632_v56 = vld [vmem:[%s11602_s2 + $0x630] sm:$0xff] }
 0x1cb   : > { %v7758_v40 = vcombine.low %v7628_v13, %v7632_v56 }
 0x1cc   : > { %4205 = vmatpush1.bf16.msra.mxu0 %v7762_v35  ;;  %4258 = vmatpush1.bf16.msra.mxu1 %v7764_v36  ;;  %v7703_v35 = vcombine.high %v7572_v28, %v7576_v32  ;;  %v7705_v36 = vcombine.high %v7573_v4, %v7577_v5 }
 0x1cd   : > { %4206 = vmatprep.subr.bf16.mxu0 %v7771_v14  ;;  %4259 = vmatprep.subr.bf16.mxu1 %v7773_v37  ;;  %v7580_v14 = vld [vmem:[%s11602_s2 + $0x490] sm:$0xff] }
 0x1ce   : > { %v7584_v37 = vld [vmem:[%s11602_s2 + $0x4b0] sm:$0xff] }
 0x1d0   : > { %4207 = vmatpush1.bf16.msra.mxu0 %v7770_v44  ;;  %4260 = vmatpush1.bf16.msra.mxu1 %v7772_v62  ;;  %v7702_v44 = vcombine.low %v7572_v28, %v7576_v32  ;;  %v2394_v62 = vld [vmem:[#allocation3 + $0x40] sm:$0xff]  ;;  %v7751_v28 = vcombine.high %v7620_v24, %v7624_v25 }
 0x1d1   : > { %4208 = vmatprep.subr.bf16.mxu0 %v7779_v46  ;;  %4261 = vmatprep.subr.bf16.mxu1 %v7781_v47  ;;  %v7704_v46 = vcombine.low %v7573_v4, %v7577_v5  ;;  %v7711_v47 = vcombine.high %v7580_v14, %v7584_v37  ;;  %v7629_v4 = vld [vmem:[%s11602_s2 + $0x618] sm:$0xff] }
 0x1d2   : > { %v7633_v5 = vld [vmem:[%s11602_s2 + $0x638] sm:$0xff] }
 0x1d3   : > { %v7760_v53 = vcombine.low %v7629_v4, %v7633_v5 }
 0x1d4   : > { %4209 = vmatpush1.bf16.msra.mxu0 %v7778_v8  ;;  %4262 = vmatpush1.bf16.msra.mxu1 %v7780_v52  ;;  %v7593_v8 = vld [vmem:[%s11602_s2 + $0x4f8] sm:$0xff]  ;;  %v8747_v52 = vld [vmem:[#allocation3 + $0x30] sm:$0xff] }
 0x1d5   : > { %4210 = vmatprep.subr.bf16.mxu0 %v7787_v3  ;;  %4263 = vmatprep.subr.bf16.mxu1 %v7789_v31  ;;  %v10434_v3 = vpack.c.bf16 %v2394_v62, %v8747_v52  ;;  %v7710_v31 = vcombine.low %v7580_v14, %v7584_v37  ;;  %v7721_v57 = vcombine.high %v7589_v51, %v7593_v8  ;;  %v7640_v14 = vld [vmem:[%s11602_s2 + $0x670] sm:$0xff]  ;;  %v7637_v37 = vld [vmem:[%s11602_s2 + $0x658] sm:$0xff] }
 0x1d6   : > { %v7720_v63 = vcombine.low %v7589_v51, %v7593_v8  ;;  %v7769_v62 = vcombine.high %v7637_v37, %v7641_v38  ;;  %v7768_v51 = vcombine.low %v7637_v37, %v7641_v38 }
 0x1d8   : > { %4211 = vmatpush1.bf16.msra.mxu0 %v7786_v55  ;;  %4264 = vmatpush1.bf16.msra.mxu1 %v7788_v58  ;;  %v7600_v55 = vld [vmem:[%s11602_s2 + $0x530] sm:$0xff]  ;;  %v7597_v58 = vld [vmem:[%s11602_s2 + $0x518] sm:$0xff] }
 0x1d9   : > { %4212 = vmatprep.subr.bf16.mxu0 %v7795_v59  ;;  %4265 = vmatprep.subr.bf16.mxu1 %v7797_v61  ;;  %v7601_v59 = vld [vmem:[%s11602_s2 + $0x538] sm:$0xff]  ;;  %v7718_v61 = vcombine.low %v7588_v49, %v7592_v50  ;;  %v7727_v0 = vcombine.high %v7596_v60, %v7600_v55 }
 0x1da   : > { %v7729_v1 = vcombine.high %v7597_v58, %v7601_v59  ;;  %v7728_v15 = vcombine.low %v7597_v58, %v7601_v59  ;;  %v7649_v49 = vld [vmem:[%s11602_s2 + $0x6b8] sm:$0xff] }
 0x1dc   : > { %4213 = vmatpush1.bf16.msra.mxu0 %v7794_v6  ;;  %4266 = vmatpush1.bf16.msra.mxu1 %v7796_v7  ;;  %v7608_v6 = vld [vmem:[%s11602_s2 + $0x570] sm:$0xff]  ;;  %v7605_v7 = vld [vmem:[%s11602_s2 + $0x558] sm:$0xff] }
 0x1dd   : > { %4214 = vmatprep.subr.bf16.mxu0 %v7803_v10  ;;  %4267 = vmatprep.subr.bf16.mxu1 %v7805_v11  ;;  %v7609_v10 = vld [vmem:[%s11602_s2 + $0x578] sm:$0xff]  ;;  %v7726_v11 = vcombine.low %v7596_v60, %v7600_v55  ;;  %v7735_v16 = vcombine.high %v7604_v2, %v7608_v6 }
 0x1de   : > { %v7737_v17 = vcombine.high %v7605_v7, %v7609_v10 }
 0x1e0   : > { %4215 = vmatpush1.bf16.msra.mxu0 %v7802_v19  ;;  %4268 = vmatpush1.bf16.msra.mxu1 %v7804_v20  ;;  %v7616_v19 = vld [vmem:[%s11602_s2 + $0x5b0] sm:$0xff]  ;;  %v7617_v20 = vld [vmem:[%s11602_s2 + $0x5b8] sm:$0xff] }
 0x1e1   : > { %4216 = vmatprep.subr.bf16.mxu0 %v7811_v21  ;;  %4269 = vmatprep.subr.bf16.mxu1 %v7813_v9  ;;  %v7734_v21 = vcombine.low %v7604_v2, %v7608_v6  ;;  %v7736_v9 = vcombine.low %v7605_v7, %v7609_v10  ;;  %v7743_v45 = vcombine.high %v7612_v18, %v7616_v19 }
 0x1e4   : > { %4217 = vmatpush1.bf16.msra.mxu0 %v7810_v26  ;;  %4270 = vmatpush1.bf16.msra.mxu1 %v7812_v27  ;;  %v7621_v26 = vld [vmem:[%s11602_s2 + $0x5d8] sm:$0xff] }
 0x1e5   : > { %4292 = vmatprep.subr.bf16.mxu0 %v7695_v29  ;;  %4345 = vmatprep.subr.bf16.mxu1 %v7697_v30  ;;  %v7625_v27 = vld [vmem:[%s11602_s2 + $0x5f8] sm:$0xff]  ;;  %v7742_v29 = vcombine.low %v7612_v18, %v7616_v19 }
 0x1e6   : > { %v7753_v32 = vcombine.high %v7621_v26, %v7625_v27 }
 0x1e7   : > { %4219 = vmatmul.mubr.bf16.vlgmr.msra.gmra.mrb[0].mxu0 %v10396_v41  ;;  %4272 = vmatmul.mubr.bf16.vlgmr.msra.gmra.mrb[0].mxu1 %v10396_v41 }
 0x1e8   : > { %4293 = vmatpush1.bf16.msra.mxu0 %v7694_v33  ;;  %4346 = vmatpush1.bf16.msra.mxu1 %v7696_v34  ;;  %v7752_v33 = vcombine.low %v7621_v26, %v7625_v27  ;;  %v7759_v34 = vcombine.high %v7628_v13, %v7632_v56 }
 0x1e9   : > { %4294 = vmatprep.subr.bf16.mxu0 %v7703_v35  ;;  %4347 = vmatprep.subr.bf16.mxu1 %v7705_v36  ;;  %v7761_v35 = vcombine.high %v7629_v4, %v7633_v5  ;;  %v7636_v36 = vld [vmem:[%s11602_s2 + $0x650] sm:$0xff] }
 0x1ea   : > { %4228 = vmatprep.mubr.bf16.mxu0 %v10410_v39  ;;  %4281 = vmatprep.mubr.bf16.mxu1 %v10410_v39  ;;  %v7766_v50 = vcombine.low %v7636_v36, %v7640_v14 }
 0x1ec   : > { %4295 = vmatpush1.bf16.msra.mxu0 %v7702_v44  ;;  %4348 = vmatpush1.bf16.msra.mxu1 %v7704_v46  ;;  %v7767_v44 = vcombine.high %v7636_v36, %v7640_v14  ;;  %v7644_v46 = vld [vmem:[%s11602_s2 + $0x690] sm:$0xff] }
 0x1ed   : > { %4296 = vmatprep.subr.bf16.mxu0 %v7711_v47  ;;  %4349 = vmatprep.subr.bf16.mxu1 %v7713_v23  ;;  %v7648_v47 = vld [vmem:[%s11602_s2 + $0x6b0] sm:$0xff]  ;;  %v7645_v23 = vld [vmem:[%s11602_s2 + $0x698] sm:$0xff] }
 0x1ee   : > { %v7775_v8 = vcombine.high %v7644_v46, %v7648_v47  ;;  %v7777_v52 = vcombine.high %v7645_v23, %v7649_v49  ;;  %v7774_v60 = vcombine.low %v7644_v46, %v7648_v47  ;;  %v7776_v55 = vcombine.low %v7645_v23, %v7649_v49  ;;  %v4431_v47 = vld [vmem:[#allocation2 + $0x18] sm:$0xfe]  ;;  %v4433_v23 = vld [vmem:[#allocation2 + $0x28] sm:$0xff] }
 0x1ef   : > { %4229 = vmatmul.mubr.bf16.gmra.mrb[4].mxu0 %v10434_v3  ;;  %4282 = vmatmul.mubr.bf16.gmra.mrb[4].mxu1 %v10434_v3  ;;  %v10608_v49 = vld [vmem:[#allocation2 + $0x38] sm:$0xff] }
 0x1f0   : > { %4297 = vmatpush1.bf16.msra.mxu0 %v7710_v31  ;;  %4350 = vmatpush1.bf16.msra.mxu1 %v7712_v43  ;;  %v7652_v31 = vld [vmem:[%s11602_s2 + $0x6d0] sm:$0xff] }
 0x1f1   : > { %4298 = vmatprep.subr.bf16.mxu0 %v7719_v54  ;;  %4351 = vmatprep.subr.bf16.mxu1 %v7721_v57  ;;  %v7656_v43 = vld [vmem:[%s11602_s2 + $0x6f0] sm:$0xff]  ;;  %v7653_v54 = vld [vmem:[%s11602_s2 + $0x6d8] sm:$0xff] }
 0x1f2   : > { %4324 = vmatprep.mubr.bf16.mxu0 %v10234_v48  ;;  %4377 = vmatprep.mubr.bf16.mxu1 %v10234_v48  ;;  %v7613_v48 = vld [vmem:[%s11602_s2 + $0x598] sm:$0xff]  ;;  %v7783_v58 = vcombine.high %v7652_v31, %v7656_v43  ;;  %v7782_v2 = vcombine.low %v7652_v31, %v7656_v43  ;;  %v7838_v31 = vld [vmem:[%s11601_s1 + $0x8a0] sm:$0xff]  ;;  %v7835_v43 = vld [vmem:[%s11601_s1 + $0x888] sm:$0xff] }
 0x1f3   : > { %v7745_v22 = vcombine.high %v7613_v48, %v7617_v20  ;;  %v7744_v30 = vcombine.low %v7613_v48, %v7617_v20  ;;  %v7657_v57 = vld [vmem:[%s11602_s2 + $0x6f8] sm:$0xff] }
 0x1f4   : > { %4299 = vmatpush1.bf16.msra.mxu0 %v7718_v61  ;;  %4352 = vmatpush1.bf16.msra.mxu1 %v7720_v63  ;;  %v7785_v59 = vcombine.high %v7653_v54, %v7657_v57  ;;  %v7660_v61 = vld [vmem:[%s11602_s2 + $0x710] sm:$0xff]  ;;  %v7784_v6 = vcombine.low %v7653_v54, %v7657_v57  ;;  %v7839_v54 = vld [vmem:[%s11601_s1 + $0x8a8] sm:$0xff]  ;;  %v4488_v57 = vrot.slane %v4431_v47, 1 }
 0x1f5   : > { %4300 = vmatprep.subr.bf16.mxu0 %v7727_v0  ;;  %4353 = vmatprep.subr.bf16.mxu1 %v7729_v1  ;;  %v7664_v63 = vld [vmem:[%s11602_s2 + $0x730] sm:$0xff]  ;;  %v7661_v0 = vld [vmem:[%s11602_s2 + $0x718] sm:$0xff]  ;;  %v7887_v47 = vld [vmem:[%s11601_s1 + $0xa28] sm:$0xff] }
 0x1f6   : > { %v7665_v1 = vld [vmem:[%s11602_s2 + $0x738] sm:$0xff]  ;;  %v7791_v7 = vcombine.high %v7660_v61, %v7664_v63  ;;  %v7790_v18 = vcombine.low %v7660_v61, %v7664_v63  ;;  %v7965_v63 = vcombine.high %v7835_v43, %v7839_v54 }
 0x1f7   : > { %v7793_v10 = vcombine.high %v7661_v0, %v7665_v1  ;;  %v7792_v19 = vcombine.low %v7661_v0, %v7665_v1  ;;  %v7842_v0 = vld [vmem:[%s11601_s1 + $0x8c0] sm:$0xff] }
 0x1f8   : > { %4301 = vmatpush1.bf16.msra.mxu0 %v7726_v11  ;;  %4354 = vmatpush1.bf16.msra.mxu1 %v7728_v15  ;;  %v7668_v11 = vld [vmem:[%s11602_s2 + $0x750] sm:$0xff]  ;;  %v7846_v1 = vld [vmem:[%s11601_s1 + $0x8e0] sm:$0xff] }
 0x1f9   : > { %4302 = vmatprep.subr.bf16.mxu0 %v7735_v16  ;;  %4355 = vmatprep.subr.bf16.mxu1 %v7737_v17  ;;  %v7672_v15 = vld [vmem:[%s11602_s2 + $0x770] sm:$0xff]  ;;  %v7669_v16 = vld [vmem:[%s11602_s2 + $0x758] sm:$0xff] }
 0x1fa   : > { %v7673_v17 = vld [vmem:[%s11602_s2 + $0x778] sm:$0xff]  ;;  %v7799_v48 = vcombine.high %v7668_v11, %v7672_v15  ;;  %v7798_v24 = vcombine.low %v7668_v11, %v7672_v15  ;;  %v7964_v11 = vcombine.low %v7835_v43, %v7839_v54  ;;  %v7971_v15 = vcombine.high %v7842_v0, %v7846_v1  ;;  %v7891_v43 = vld [vmem:[%s11601_s1 + $0xa48] sm:$0xff] }
 0x1fb   : > { %v7801_v20 = vcombine.high %v7669_v16, %v7673_v17  ;;  %v7800_v25 = vcombine.low %v7669_v16, %v7673_v17  ;;  %v7850_v17 = vld [vmem:[%s11601_s1 + $0x900] sm:$0xff]  ;;  %v7895_v54 = vld [vmem:[%s11601_s1 + $0xa68] sm:$0xff] }
 0x1fc   : > { %4303 = vmatpush1.bf16.msra.mxu0 %v7734_v21  ;;  %4356 = vmatpush1.bf16.msra.mxu1 %v7736_v9  ;;  %v7676_v21 = vld [vmem:[%s11602_s2 + $0x790] sm:$0xff] }
 0x1fd   : > { %4304 = vmatprep.subr.bf16.mxu0 %v7743_v45  ;;  %4357 = vmatprep.subr.bf16.mxu1 %v7745_v22  ;;  %v7680_v9 = vld [vmem:[%s11602_s2 + $0x7b0] sm:$0xff]  ;;  %v7677_v45 = vld [vmem:[%s11602_s2 + $0x798] sm:$0xff] }
 0x1fe   : > { %v7681_v22 = vld [vmem:[%s11602_s2 + $0x7b8] sm:$0xff]  ;;  %v7807_v26 = vcombine.high %v7676_v21, %v7680_v9  ;;  %v7806_v13 = vcombine.low %v7676_v21, %v7680_v9 }
 0x1ff   : > { %v7809_v27 = vcombine.high %v7677_v45, %v7681_v22  ;;  %v7808_v56 = vcombine.low %v7677_v45, %v7681_v22  ;;  %v7858_v22 = vld [vmem:[%s11601_s1 + $0x940] sm:$0xff] }
 0x200   : > { %4305 = vmatpush1.bf16.msra.mxu0 %v7742_v29  ;;  %4358 = vmatpush1.bf16.msra.mxu1 %v7744_v30  ;;  %v7684_v29 = vld [vmem:[%s11602_s2 + $0x7d0] sm:$0xff] }
 0x201   : > { %4306 = vmatprep.subr.bf16.mxu0 %v7751_v28  ;;  %4359 = vmatprep.subr.bf16.mxu1 %v7753_v32  ;;  %v7688_v30 = vld [vmem:[%s11602_s2 + $0x7f0] sm:$0xff]  ;;  %v7685_v28 = vld [vmem:[%s11602_s2 + $0x7d8] sm:$0xff] }
 0x202   : > { %v7689_v32 = vld [vmem:[%s11602_s2 + $0x7f8] sm:$0xff]  ;;  %v7815_v4 = vcombine.high %v7684_v29, %v7688_v30  ;;  %v7814_v36 = vcombine.low %v7684_v29, %v7688_v30 }
 0x203   : > { %v7817_v5 = vcombine.high %v7685_v28, %v7689_v32  ;;  %v7816_v14 = vcombine.low %v7685_v28, %v7689_v32  ;;  %v7866_v28 = vld [vmem:[%s11601_s1 + $0x980] sm:$0xff] }
 0x204   : > { %4307 = vmatpush1.bf16.msra.mxu0 %v7750_v12  ;;  %4360 = vmatpush1.bf16.msra.mxu1 %v7752_v33  ;;  %v7818_v12 = vld [vmem:[%s11601_s1 + $0x800] sm:$0xff] }
 0x205   : > { %4308 = vmatprep.subr.bf16.mxu0 %v7759_v34  ;;  %4361 = vmatprep.subr.bf16.mxu1 %v7761_v35  ;;  %v7822_v33 = vld [vmem:[%s11601_s1 + $0x820] sm:$0xff]  ;;  %v7819_v34 = vld [vmem:[%s11601_s1 + $0x808] sm:$0xff] }
 0x206   : > { %v7823_v35 = vld [vmem:[%s11601_s1 + $0x828] sm:$0xff]  ;;  %v7947_v37 = vcombine.high %v7818_v12, %v7822_v33  ;;  %v7946_v46 = vcombine.low %v7818_v12, %v7822_v33  ;;  %v7870_v32 = vld [vmem:[%s11601_s1 + $0x9a0] sm:$0xff] }
 0x207   : > { %v7949_v38 = vcombine.high %v7819_v34, %v7823_v35  ;;  %v7995_v12 = vcombine.high %v7866_v28, %v7870_v32 }
 0x208   : > { %4309 = vmatpush1.bf16.msra.mxu0 %v7758_v40  ;;  %4362 = vmatpush1.bf16.msra.mxu1 %v7760_v53  ;;  %v7826_v40 = vld [vmem:[%s11601_s1 + $0x840] sm:$0xff] }
 0x209   : > { %4310 = vmatprep.subr.bf16.mxu0 %v7767_v44  ;;  %4363 = vmatprep.subr.bf16.mxu1 %v7769_v62  ;;  %v7830_v53 = vld [vmem:[%s11601_s1 + $0x860] sm:$0xff]  ;;  %v7827_v44 = vld [vmem:[%s11601_s1 + $0x848] sm:$0xff] }
 0x20a   : > { %v7831_v62 = vld [vmem:[%s11601_s1 + $0x868] sm:$0xff] }
 0x20c   : > { %4311 = vmatpush1.bf16.msra.mxu0 %v7766_v50  ;;  %4364 = vmatpush1.bf16.msra.mxu1 %v7768_v51  ;;  %v7948_v50 = vcombine.low %v7819_v34, %v7823_v35  ;;  %v7955_v51 = vcombine.high %v7826_v40, %v7830_v53  ;;  %v7874_v34 = vld [vmem:[%s11601_s1 + $0x9c0] sm:$0xff] }
 0x20d   : > { %4312 = vmatprep.subr.bf16.mxu0 %v7775_v8  ;;  %4365 = vmatprep.subr.bf16.mxu1 %v7777_v52  ;;  %v7957_v8 = vcombine.high %v7827_v44, %v7831_v62  ;;  %v7834_v52 = vld [vmem:[%s11601_s1 + $0x880] sm:$0xff] }
 0x20e   : > { %v7963_v61 = vcombine.high %v7834_v52, %v7838_v31  ;;  %v7878_v35 = vld [vmem:[%s11601_s1 + $0x9e0] sm:$0xff] }
 0x210   : > { %4313 = vmatpush1.bf16.msra.mxu0 %v7774_v60  ;;  %4366 = vmatpush1.bf16.msra.mxu1 %v7776_v55  ;;  %v4489_v60 = vrot.slane %v4433_v23, 1  ;;  %v4493_v55 = vrot.slane %v10608_v49, 1  ;;  %v8002_v23 = vcombine.low %v7874_v34, %v7878_v35  ;;  %v7840_v49 = vld [vmem:[%s11601_s1 + $0x8b0] sm:$0xff] }
 0x211   : > { %4314 = vmatprep.subr.bf16.mxu0 %v7783_v58  ;;  %4367 = vmatprep.subr.bf16.mxu1 %v7785_v59  ;;  %v7954_v58 = vcombine.low %v7826_v40, %v7830_v53  ;;  %v7956_v59 = vcombine.low %v7827_v44, %v7831_v62  ;;  %v8003_v40 = vcombine.high %v7874_v34, %v7878_v35  ;;  %v7882_v44 = vld [vmem:[%s11601_s1 + $0xa00] sm:$0xff]  ;;  %v4430_v35 = vld [vmem:[#allocation2 + $0x10] sm:$0xfe] }
 0x212   : > { %v7886_v62 = vld [vmem:[%s11601_s1 + $0xa20] sm:$0xff] }
 0x214   : > { %4315 = vmatpush1.bf16.msra.mxu0 %v7782_v2  ;;  %4368 = vmatpush1.bf16.msra.mxu1 %v7784_v6  ;;  %v7847_v2 = vld [vmem:[%s11601_s1 + $0x8e8] sm:$0xff]  ;;  %v4490_v6 = vsel %vm4484_vm4, %v4488_v57, %v4489_v60  ;;  %v8010_v57 = vcombine.low %v7882_v44, %v7886_v62 }
 0x215   : > { %4316 = vmatprep.subr.bf16.mxu0 %v7791_v7  ;;  %4369 = vmatprep.subr.bf16.mxu1 %v7793_v10  ;;  %v4494_v7 = vsel %vm4484_vm4, %v4489_v60, %v4493_v55  ;;  %v7962_v10 = vcombine.low %v7834_v52, %v7838_v31  ;;  %v7890_v52 = vld [vmem:[%s11601_s1 + $0xa40] sm:$0xff] }
 0x216   : > { %v7894_v31 = vld [vmem:[%s11601_s1 + $0xa60] sm:$0xff] }
 0x218   : > { %4317 = vmatpush1.bf16.msra.mxu0 %v7790_v18  ;;  %4370 = vmatpush1.bf16.msra.mxu1 %v7792_v19  ;;  %v10649_v18 = vpack.c.bf16 %v4494_v7, %v4490_v6  ;;  %v7851_v19 = vld [vmem:[%s11601_s1 + $0x908] sm:$0xff] }
 0x219   : > { %4318 = vmatprep.subr.bf16.mxu0 %v7799_v48  ;;  %4371 = vmatprep.subr.bf16.mxu1 %v7801_v20  ;;  %v7855_v48 = vld [vmem:[%s11601_s1 + $0x928] sm:$0xff]  ;;  %v7970_v20 = vcombine.low %v7842_v0, %v7846_v1 }
 0x21a   : > { %v7981_v45 = vcombine.high %v7851_v19, %v7855_v48  ;;  %v7899_v0 = vld [vmem:[%s11601_s1 + $0xa88] sm:$0xff] }
 0x21b   : > { %v7903_v1 = vld [vmem:[%s11601_s1 + $0xaa8] sm:$0xff] }
 0x21c   : > { %4319 = vmatpush1.bf16.msra.mxu0 %v7798_v24  ;;  %4372 = vmatpush1.bf16.msra.mxu1 %v7800_v25  ;;  %v7862_v24 = vld [vmem:[%s11601_s1 + $0x960] sm:$0xff]  ;;  %v7863_v25 = vld [vmem:[%s11601_s1 + $0x968] sm:$0xff]  ;;  %v8029_v7 = vcombine.high %v7899_v0, %v7903_v1 }
 0x21d   : > { %4320 = vmatprep.subr.bf16.mxu0 %v7807_v26  ;;  %4373 = vmatprep.subr.bf16.mxu1 %v7809_v27  ;;  %v7980_v27 = vcombine.low %v7851_v19, %v7855_v48  ;;  %v7987_v29 = vcombine.high %v7858_v22, %v7862_v24 }
 0x220   : > { %4321 = vmatpush1.bf16.msra.mxu0 %v7806_v13  ;;  %4374 = vmatpush1.bf16.msra.mxu1 %v7808_v56  ;;  %v7867_v13 = vld [vmem:[%s11601_s1 + $0x988] sm:$0xff] }
 0x221   : > { %4322 = vmatprep.subr.bf16.mxu0 %v7815_v4  ;;  %4375 = vmatprep.subr.bf16.mxu1 %v7817_v5  ;;  %v7871_v56 = vld [vmem:[%s11601_s1 + $0x9a8] sm:$0xff]  ;;  %v7986_v4 = vcombine.low %v7858_v22, %v7862_v24 }
 0x222   : > { %v7997_v33 = vcombine.high %v7867_v13, %v7871_v56 }
 0x224   : > { %4323 = vmatpush1.bf16.msra.mxu0 %v7814_v36  ;;  %4376 = vmatpush1.bf16.msra.mxu1 %v7816_v14  ;;  %v7875_v36 = vld [vmem:[%s11601_s1 + $0x9c8] sm:$0xff] }
 0x225   : > { %5336 = vmatprep.subr.bf16.mxu0 %v7947_v37  ;;  %5389 = vmatprep.subr.bf16.mxu1 %v7949_v38  ;;  %v7879_v14 = vld [vmem:[%s11601_s1 + $0x9e8] sm:$0xff]  ;;  %v7994_v37 = vcombine.low %v7866_v28, %v7870_v32  ;;  %v7996_v38 = vcombine.low %v7867_v13, %v7871_v56 }
 0x226   : > { %v8005_v53 = vcombine.high %v7875_v36, %v7879_v14 }
 0x227   : > { %4325 = vmatmul.mubr.bf16.vlgmr.msra.gmra.mrb[8].mxu0 %v10396_v41  ;;  %4378 = vmatmul.mubr.bf16.vlgmr.msra.gmra.mrb[8].mxu1 %v10396_v41  ;;  %v7843_v41 = vld [vmem:[%s11601_s1 + $0x8c8] sm:$0xff] }
 0x228   : > { %5337 = vmatpush1.bf16.msra.mxu0 %v7946_v46  ;;  %5390 = vmatpush1.bf16.msra.mxu1 %v7948_v50  ;;  %v7973_v16 = vcombine.high %v7843_v41, %v7847_v2  ;;  %v7972_v21 = vcombine.low %v7843_v41, %v7847_v2  ;;  %v7883_v46 = vld [vmem:[%s11601_s1 + $0xa08] sm:$0xff]  ;;  %v8004_v50 = vcombine.low %v7875_v36, %v7879_v14 }
 0x229   : > { %5338 = vmatprep.subr.bf16.mxu0 %v7955_v51  ;;  %5391 = vmatprep.subr.bf16.mxu1 %v7957_v8  ;;  %v8011_v51 = vcombine.high %v7882_v44, %v7886_v62  ;;  %v8013_v8 = vcombine.high %v7883_v46, %v7887_v47  ;;  %v8012_v60 = vcombine.low %v7883_v46, %v7887_v47  ;;  %v7942_v44 = vld [vmem:[%s11601_s1 + $0xbe0] sm:$0xff]  ;;  %v7939_v62 = vld [vmem:[%s11601_s1 + $0xbc8] sm:$0xff]  ;;  %v4485_v47 = vrot.slane %v4430_v35, 1  ;;  %v7845_v35 = vld [vmem:[%s11601_s1 + $0x8d8] sm:$0xff] }
 0x22a   : > { %4334 = vmatprep.mubr.bf16.mxu0 %v10410_v39  ;;  %4387 = vmatprep.mubr.bf16.mxu1 %v10410_v39  ;;  %v7854_v39 = vld [vmem:[%s11601_s1 + $0x920] sm:$0xff]  ;;  %v8018_v41 = vcombine.low %v7890_v52, %v7894_v31  ;;  %v8020_v2 = vcombine.low %v7891_v43, %v7895_v54  ;;  %v7943_v46 = vld [vmem:[%s11601_s1 + $0xbe8] sm:$0xff] }
 0x22b   : > { %v7979_v9 = vcombine.high %v7850_v17, %v7854_v39  ;;  %v7978_v26 = vcombine.low %v7850_v17, %v7854_v39  ;;  %v8028_v39 = vcombine.low %v7899_v0, %v7903_v1 }
 0x22c   : > { %5339 = vmatpush1.bf16.msra.mxu0 %v7954_v58  ;;  %5392 = vmatpush1.bf16.msra.mxu1 %v7956_v59  ;;  %v8019_v58 = vcombine.high %v7890_v52, %v7894_v31  ;;  %v8021_v59 = vcombine.high %v7891_v43, %v7895_v54  ;;  %v4437_v52 = vld [vmem:[#allocation2 + $0x48] sm:$0xff]  ;;  %v4439_v31 = vld [vmem:[#allocation2 + $0x58] sm:$0x1] }
 0x22d   : > { %5340 = vmatprep.subr.bf16.mxu0 %v7963_v61  ;;  %5393 = vmatprep.subr.bf16.mxu1 %v7965_v63  ;;  %v7898_v61 = vld [vmem:[%s11601_s1 + $0xa80] sm:$0xff]  ;;  %v4501_v0 = vrot.slane %v4439_v31, 1  ;;  %v7864_v31 = vld [vmem:[%s11601_s1 + $0x970] sm:$0xff] }
 0x22e   : > { %v7902_v63 = vld [vmem:[%s11601_s1 + $0xaa0] sm:$0xff] }
 0x22f   : > { %4335 = vmatmul.mubr.bf16.gmra.mrb[12].mxu0 %v10434_v3  ;;  %4388 = vmatmul.mubr.bf16.gmra.mrb[12].mxu1 %v10434_v3  ;;  %v7859_v3 = vld [vmem:[%s11601_s1 + $0x948] sm:$0xff]  ;;  %v8027_v6 = vcombine.high %v7898_v61, %v7902_v63  ;;  %v8026_v17 = vcombine.low %v7898_v61, %v7902_v63  ;;  %v7825_v61 = vld [vmem:[%s11601_s1 + $0x838] sm:$0xff]  ;;  %v4497_v63 = vrot.slane %v4437_v52, 1  ;;  %v7860_v52 = vld [vmem:[%s11601_s1 + $0x950] sm:$0xff] }
 0x230   : > { %5341 = vmatpush1.bf16.msra.mxu0 %v7962_v10  ;;  %5394 = vmatpush1.bf16.msra.mxu1 %v7964_v11  ;;  %v7989_v30 = vcombine.high %v7859_v3, %v7863_v25  ;;  %v7988_v5 = vcombine.low %v7859_v3, %v7863_v25  ;;  %v7906_v10 = vld [vmem:[%s11601_s1 + $0xac0] sm:$0xff] }
 0x231   : > { %5342 = vmatprep.subr.bf16.mxu0 %v7971_v15  ;;  %5395 = vmatprep.subr.bf16.mxu1 %v7973_v16  ;;  %v7910_v11 = vld [vmem:[%s11601_s1 + $0xae0] sm:$0xff]  ;;  %v7907_v15 = vld [vmem:[%s11601_s1 + $0xac8] sm:$0xff] }
 0x232   : > { %5368 = vmatprep.mubr.bf16.mxu0 %v10649_v18  ;;  %5421 = vmatprep.mubr.bf16.mxu1 %v10649_v18  ;;  %v7911_v16 = vld [vmem:[%s11601_s1 + $0xae8] sm:$0xff]  ;;  %v8035_v19 = vcombine.high %v7906_v10, %v7910_v11  ;;  %v8034_v22 = vcombine.low %v7906_v10, %v7910_v11  ;;  %v4436_v11 = vld [vmem:[#allocation2 + $0x40] sm:$0xff] }
 0x233   : > { %v8037_v48 = vcombine.high %v7907_v15, %v7911_v16  ;;  %v8036_v24 = vcombine.low %v7907_v15, %v7911_v16  ;;  %v4438_v15 = vld [vmem:[#allocation2 + $0x50] sm:$0x1] }
 0x234   : > { %5343 = vmatpush1.bf16.msra.mxu0 %v7970_v20  ;;  %5396 = vmatpush1.bf16.msra.mxu1 %v7972_v21  ;;  %v7914_v20 = vld [vmem:[%s11601_s1 + $0xb00] sm:$0xff] }
 0x235   : > { %5344 = vmatprep.subr.bf16.mxu0 %v7979_v9  ;;  %5397 = vmatprep.subr.bf16.mxu1 %v7981_v45  ;;  %v7918_v21 = vld [vmem:[%s11601_s1 + $0xb20] sm:$0xff]  ;;  %v7915_v9 = vld [vmem:[%s11601_s1 + $0xb08] sm:$0xff] }
 0x236   : > { %v7919_v45 = vld [vmem:[%s11601_s1 + $0xb28] sm:$0xff]  ;;  %v8043_v3 = vcombine.high %v7914_v20, %v7918_v21  ;;  %v8042_v28 = vcombine.low %v7914_v20, %v7918_v21  ;;  %v7833_v20 = vld [vmem:[%s11601_s1 + $0x878] sm:$0xff]  ;;  %v4498_v21 = vsel %vm4484_vm4, %v4493_v55, %v4497_v63 }
 0x237   : > { %v8045_v25 = vcombine.high %v7915_v9, %v7919_v45  ;;  %v8044_v32 = vcombine.low %v7915_v9, %v7919_v45  ;;  %v4502_v9 = vsel %vm4484_vm4, %v4497_v63, %v4501_v0  ;;  %v7872_v63 = vld [vmem:[%s11601_s1 + $0x9b0] sm:$0xff]  ;;  %v7873_v0 = vld [vmem:[%s11601_s1 + $0x9b8] sm:$0xff] }
 0x238   : > { %5345 = vmatpush1.bf16.msra.mxu0 %v7978_v26  ;;  %5398 = vmatpush1.bf16.msra.mxu1 %v7980_v27  ;;  %v7922_v26 = vld [vmem:[%s11601_s1 + $0xb40] sm:$0xff]  ;;  %v10835_v55 = vpack.c.bf16 %v4502_v9, %v4498_v21  ;;  %v7888_v21 = vld [vmem:[%s11601_s1 + $0xa30] sm:$0xff]  ;;  %v7885_v9 = vld [vmem:[%s11601_s1 + $0xa18] sm:$0xff] }
 0x239   : > { %5346 = vmatprep.subr.bf16.mxu0 %v7987_v29  ;;  %5399 = vmatprep.subr.bf16.mxu1 %v7989_v30  ;;  %v7926_v27 = vld [vmem:[%s11601_s1 + $0xb60] sm:$0xff]  ;;  %v7923_v29 = vld [vmem:[%s11601_s1 + $0xb48] sm:$0xff] }
 0x23a   : > { %v7927_v30 = vld [vmem:[%s11601_s1 + $0xb68] sm:$0xff]  ;;  %v8051_v13 = vcombine.high %v7922_v26, %v7926_v27  ;;  %v8050_v34 = vcombine.low %v7922_v26, %v7926_v27  ;;  %v7836_v27 = vld [vmem:[%s11601_s1 + $0x890] sm:$0xff] }
 0x23b   : > { %v8053_v56 = vcombine.high %v7923_v29, %v7927_v30  ;;  %v8052_v36 = vcombine.low %v7923_v29, %v7927_v30  ;;  %v7837_v29 = vld [vmem:[%s11601_s1 + $0x898] sm:$0xff] }
 0x23c   : > { %5347 = vmatpush1.bf16.msra.mxu0 %v7986_v4  ;;  %5400 = vmatpush1.bf16.msra.mxu1 %v7988_v5  ;;  %v7930_v4 = vld [vmem:[%s11601_s1 + $0xb80] sm:$0xff]  ;;  %v7841_v30 = vld [vmem:[%s11601_s1 + $0x8b8] sm:$0xff] }
 0x23d   : > { %5348 = vmatprep.subr.bf16.mxu0 %v7995_v12  ;;  %5401 = vmatprep.subr.bf16.mxu1 %v7997_v33  ;;  %v7934_v5 = vld [vmem:[%s11601_s1 + $0xba0] sm:$0xff]  ;;  %v7931_v12 = vld [vmem:[%s11601_s1 + $0xb88] sm:$0xff] }
 0x23e   : > { %v7935_v33 = vld [vmem:[%s11601_s1 + $0xba8] sm:$0xff]  ;;  %v8059_v14 = vcombine.high %v7930_v4, %v7934_v5 }
 0x23f   : > { %v8060_v43 = vcombine.low %v7931_v12, %v7935_v33 }
 0x240   : > { %5349 = vmatpush1.bf16.msra.mxu0 %v7994_v37  ;;  %5402 = vmatpush1.bf16.msra.mxu1 %v7996_v38  ;;  %v4432_v37 = vld [vmem:[#allocation2 + $0x20] sm:$0xff]  ;;  %v10781_v38 = vld [vmem:[#allocation2 + $0x30] sm:$0xff] }
 0x241   : > { %5350 = vmatprep.subr.bf16.mxu0 %v8003_v40  ;;  %5403 = vmatprep.subr.bf16.mxu1 %v8005_v53  ;;  %v8061_v40 = vcombine.high %v7931_v12, %v7935_v33  ;;  %v7938_v53 = vld [vmem:[%s11601_s1 + $0xbc0] sm:$0xff]  ;;  %v7969_v12 = vcombine.high %v7837_v29, %v7841_v30  ;;  %v7844_v33 = vld [vmem:[%s11601_s1 + $0x8d0] sm:$0xff] }
 0x242   : > { %v8067_v54 = vcombine.high %v7938_v53, %v7942_v44  ;;  %v8066_v1 = vcombine.low %v7938_v53, %v7942_v44  ;;  %v7852_v44 = vld [vmem:[%s11601_s1 + $0x910] sm:$0xff] }
 0x244   : > { %5351 = vmatpush1.bf16.msra.mxu0 %v8002_v23  ;;  %5404 = vmatpush1.bf16.msra.mxu1 %v8004_v50  ;;  %v8058_v23 = vcombine.low %v7930_v4, %v7934_v5  ;;  %v4486_v50 = vrot.slane %v4432_v37, 1  ;;  %v7967_v5 = vcombine.high %v7836_v27, %v7840_v49  ;;  %v7966_v37 = vcombine.low %v7836_v27, %v7840_v49  ;;  %v7896_v27 = vld [vmem:[%s11601_s1 + $0xa70] sm:$0xff]  ;;  %v7893_v49 = vld [vmem:[%s11601_s1 + $0xa58] sm:$0xff] }
 0x245   : > { %5352 = vmatprep.subr.bf16.mxu0 %v8011_v51  ;;  %5405 = vmatprep.subr.bf16.mxu1 %v8013_v8  ;;  %v4491_v51 = vrot.slane %v10781_v38, 1  ;;  %v290_v8 = vadd.s32 24, %v8921_v42  ;;  %v7968_v38 = vcombine.low %v7837_v29, %v7841_v30  ;;  %v7897_v29 = vld [vmem:[%s11601_s1 + $0xa78] sm:$0xff] }
 0x248   : > { %5353 = vmatpush1.bf16.msra.mxu0 %v8010_v57  ;;  %5406 = vmatpush1.bf16.msra.mxu1 %v8012_v60  ;;  %v8069_v57 = vcombine.high %v7939_v62, %v7943_v46  ;;  %v7820_v60 = vld [vmem:[%s11601_s1 + $0x810] sm:$0xff] }
 0x249   : > { %5354 = vmatprep.subr.bf16.mxu0 %v8019_v58  ;;  %5407 = vmatprep.subr.bf16.mxu1 %v8021_v59  ;;  %v7824_v58 = vld [vmem:[%s11601_s1 + $0x830] sm:$0xff]  ;;  %v7821_v59 = vld [vmem:[%s11601_s1 + $0x818] sm:$0xff] }
 0x24a   : > { %v7951_v10 = vcombine.high %v7820_v60, %v7824_v58  ;;  %v7953_v16 = vcombine.high %v7821_v59, %v7825_v61  ;;  %v7950_v45 = vcombine.low %v7820_v60, %v7824_v58  ;;  %v7991_v58 = vcombine.high %v7860_v52, %v7864_v31 }
 0x24c   : > { %5355 = vmatpush1.bf16.msra.mxu0 %v8018_v41  ;;  %5408 = vmatpush1.bf16.msra.mxu1 %v8020_v2  ;;  %v4487_v41 = vsel %vm4484_vm4, %v4485_v47, %v4486_v50  ;;  %v4492_v2 = vsel %vm4484_vm4, %v4486_v50, %v4491_v51  ;;  %v7857_v47 = vld [vmem:[%s11601_s1 + $0x938] sm:$0xff] }
 0x24d   : > { %5356 = vmatprep.subr.bf16.mxu0 %v8027_v6  ;;  %5409 = vmatprep.subr.bf16.mxu1 %v8029_v7  ;;  %v4453_v6 = vadd.s32 1, %v290_v8  ;;  %v8068_v7 = vcombine.low %v7939_v62, %v7943_v46  ;;  %v7856_v62 = vld [vmem:[%s11601_s1 + $0x930] sm:$0xff]  ;;  %v7853_v46 = vld [vmem:[%s11601_s1 + $0x918] sm:$0xff] }
 0x24e   : > { %v7985_v8 = vcombine.high %v7853_v46, %v7857_v47  ;;  %v7984_v60 = vcombine.low %v7853_v46, %v7857_v47 }
 0x24f   : > { %vm4461_vm5 = vcmp.le.s32.totalorder %v4453_v6, 31 }
 0x250   : > { %5357 = vmatpush1.bf16.msra.mxu0 %v8026_v17  ;;  %5410 = vmatpush1.bf16.msra.mxu1 %v8028_v39  ;;  %v7828_v17 = vld [vmem:[%s11601_s1 + $0x850] sm:$0xff]  ;;  %vm10846_vm6 = vmpackc.low %vm4461_vm5, %vm8789_vm2 }
 0x251   : > { %5358 = vmatprep.subr.bf16.mxu0 %v8035_v19  ;;  %5411 = vmatprep.subr.bf16.mxu1 %v8037_v48  ;;  %v7832_v39 = vld [vmem:[%s11601_s1 + $0x870] sm:$0xff]  ;;  %v10817_v19 = vpack.c.bf16 %v4492_v2, %v4487_v41  ;;  %v7829_v48 = vld [vmem:[%s11601_s1 + $0x858] sm:$0xff] }
 0x252   : > { %v7961_v26 = vcombine.high %v7829_v48, %v7833_v20  ;;  %v7960_v4 = vcombine.low %v7829_v48, %v7833_v20  ;;  %v7884_v20 = vld [vmem:[%s11601_s1 + $0xa10] sm:$0xff] }
 0x253   : > { %v8014_v30 = vcombine.low %v7884_v20, %v7888_v21 }
 0x254   : > { %5359 = vmatpush1.bf16.msra.mxu0 %v8034_v22  ;;  %5412 = vmatpush1.bf16.msra.mxu1 %v8036_v24  ;;  %v4495_v22 = vrot.slane %v4436_v11, 1  ;;  %v4499_v24 = vrot.slane %v4438_v15, 1  ;;  %v7877_v11 = vld [vmem:[%s11601_s1 + $0x9d8] sm:$0xff] }
 0x255   : > { %5360 = vmatprep.subr.bf16.mxu0 %v8043_v3  ;;  %5413 = vmatprep.subr.bf16.mxu1 %v8045_v25  ;;  %v7952_v3 = vcombine.low %v7821_v59, %v7825_v61  ;;  %v7959_v25 = vcombine.high %v7828_v17, %v7832_v39  ;;  %v7868_v61 = vld [vmem:[%s11601_s1 + $0x990] sm:$0xff]  ;;  %v7881_v15 = vld [vmem:[%s11601_s1 + $0x9f8] sm:$0xff] }
 0x256   : > { %v7999_v2 = vcombine.high %v7868_v61, %v7872_v63  ;;  %v8009_v48 = vcombine.high %v7877_v11, %v7881_v15 }
 0x258   : > { %5361 = vmatpush1.bf16.msra.mxu0 %v8042_v28  ;;  %5414 = vmatpush1.bf16.msra.mxu1 %v8044_v32  ;;  %v7958_v32 = vcombine.low %v7828_v17, %v7832_v39  ;;  %v11485_v28 = vld [vmem:[%s11603_s3] sm:$0xff] }
 0x259   : > { %5362 = vmatprep.subr.bf16.mxu0 %v8051_v13  ;;  %5415 = vmatprep.subr.bf16.mxu1 %v8053_v56  ;;  %v4496_v13 = vsel %vm4484_vm4, %v4491_v51, %v4495_v22  ;;  %v4500_v56 = vsel %vm4484_vm4, %v4495_v22, %v4499_v24  ;;  %v7983_v51 = vcombine.high %v7852_v44, %v7856_v62 }
 0x25a   : > { %v8008_v24 = vcombine.low %v7877_v11, %v7881_v15 }
 0x25c   : > { %5363 = vmatpush1.bf16.msra.mxu0 %v8050_v34  ;;  %5416 = vmatpush1.bf16.msra.mxu1 %v8052_v36  ;;  %v7848_v34 = vld [vmem:[%s11601_s1 + $0x8f0] sm:$0xff]  ;;  %v7849_v36 = vld [vmem:[%s11601_s1 + $0x8f8] sm:$0xff] }
 0x25d   : > { %5364 = vmatprep.subr.bf16.mxu0 %v8059_v14  ;;  %5417 = vmatprep.subr.bf16.mxu1 %v8061_v40  ;;  %v10871_v14 = vpack.c.bf16 %v4500_v56, %v4496_v13  ;;  %v7975_v40 = vcombine.high %v7844_v33, %v7848_v34  ;;  %v7977_v53 = vcombine.high %v7845_v35, %v7849_v36 }
 0x25e   : > { %v7976_v50 = vcombine.low %v7845_v35, %v7849_v36  ;;  %v8025_v56 = vcombine.high %v7893_v49, %v7897_v29  ;;  %v8024_v35 = vcombine.low %v7893_v49, %v7897_v29 }
 0x260   : > { %5365 = vmatpush1.bf16.msra.mxu0 %v8058_v23  ;;  %5418 = vmatpush1.bf16.msra.mxu1 %v8060_v43  ;;  %v7974_v23 = vcombine.low %v7844_v33, %v7848_v34  ;;  %v7861_v43 = vld [vmem:[%s11601_s1 + $0x958] sm:$0xff] }
 0x261   : > { %5366 = vmatprep.subr.bf16.mxu0 %v8067_v54  ;;  %5419 = vmatprep.subr.bf16.mxu1 %v8069_v57  ;;  %v7865_v54 = vld [vmem:[%s11601_s1 + $0x978] sm:$0xff]  ;;  %v7982_v57 = vcombine.low %v7852_v44, %v7856_v62 }
 0x262   : > { %v7993_v59 = vcombine.high %v7861_v43, %v7865_v54  ;;  %v7992_v41 = vcombine.low %v7861_v43, %v7865_v54  ;;  %v7905_v33 = vld [vmem:[%s11601_s1 + $0xab8] sm:$0xff] }
 0x263   : > { %v7913_v44 = vld [vmem:[%s11601_s1 + $0xaf8] sm:$0xff] }
 0x264   : > { %5367 = vmatpush1.bf16.msra.mxu0 %v8066_v1  ;;  %5420 = vmatpush1.bf16.msra.mxu1 %v8068_v7  ;;  %v7990_v1 = vcombine.low %v7860_v52, %v7864_v31  ;;  %v7876_v7 = vld [vmem:[%s11601_s1 + $0x9d0] sm:$0xff]  ;;  %v7921_v52 = vld [vmem:[%s11601_s1 + $0xb38] sm:$0xff] }
 0x265   : > { %5442 = vmatprep.subr.bf16.mxu0 %v7951_v10  ;;  %5495 = vmatprep.subr.bf16.mxu1 %v7953_v16  ;;  %v7880_v10 = vld [vmem:[%s11601_s1 + $0x9f0] sm:$0xff]  ;;  %v7998_v16 = vcombine.low %v7868_v61, %v7872_v63  ;;  %v7929_v61 = vld [vmem:[%s11601_s1 + $0xb78] sm:$0xff] }
 0x266   : > { %v8007_v39 = vcombine.high %v7876_v7, %v7880_v10  ;;  %v8006_v22 = vcombine.low %v7876_v7, %v7880_v10  ;;  %v7937_v7 = vld [vmem:[%s11601_s1 + $0xbb8] sm:$0xff] }
 0x267   : > { %5369 = vmatmul.mubr.bf16.vlgmr.msra.gmra.mrb[0].mxu0 %v10817_v19  ;;  %5422 = vmatmul.mubr.bf16.vlgmr.msra.gmra.mrb[0].mxu1 %v10817_v19 }
 0x268   : > { %5443 = vmatpush1.bf16.msra.mxu0 %v7950_v45  ;;  %5496 = vmatpush1.bf16.msra.mxu1 %v7952_v3  ;;  %v7889_v45 = vld [vmem:[%s11601_s1 + $0xa38] sm:$0xff]  ;;  %v8015_v3 = vcombine.high %v7884_v20, %v7888_v21 }
 0x269   : > { %5444 = vmatprep.subr.bf16.mxu0 %v7959_v25  ;;  %5497 = vmatprep.subr.bf16.mxu1 %v7961_v26  ;;  %v8017_v25 = vcombine.high %v7885_v9, %v7889_v45  ;;  %v7892_v26 = vld [vmem:[%s11601_s1 + $0xa50] sm:$0xff]  ;;  %v7945_v20 = vld [vmem:[%s11601_s1 + $0xbf8] sm:$0xff] }
 0x26a   : > { %8076 = vmatprep.mubr.msk.bf16.mxu0 %vm10846_vm6, %v10835_v55  ;;  %8082 = vmatprep.mubr.msk.bf16.mxu1 %vm10846_vm6, %v10835_v55  ;;  %v8023_v13 = vcombine.high %v7892_v26, %v7896_v27  ;;  %v8022_v34 = vcombine.low %v7892_v26, %v7896_v27  ;;  %v8103_v26 = vld [vmem:[%s11602_s2 + $0x828] sm:$0xff] }
 0x26c   : > { %5445 = vmatpush1.bf16.msra.mxu0 %v7958_v32  ;;  %5498 = vmatpush1.bf16.msra.mxu1 %v7960_v4  ;;  %v8016_v32 = vcombine.low %v7885_v9, %v7889_v45  ;;  %v7900_v4 = vld [vmem:[%s11601_s1 + $0xa90] sm:$0xff] }
 0x26d   : > { %5446 = vmatprep.subr.bf16.mxu0 %v7967_v5  ;;  %5499 = vmatprep.subr.bf16.mxu1 %v7969_v12  ;;  %v7904_v5 = vld [vmem:[%s11601_s1 + $0xab0] sm:$0xff]  ;;  %v7901_v12 = vld [vmem:[%s11601_s1 + $0xa98] sm:$0xff] }
 0x26e   : > { %v8031_v36 = vcombine.high %v7900_v4, %v7904_v5  ;;  %v8030_v62 = vcombine.low %v7900_v4, %v7904_v5  ;;  %v8032_v46 = vcombine.low %v7901_v12, %v7905_v33  ;;  %v8111_v4 = vld [vmem:[%s11602_s2 + $0x868] sm:$0xff] }
 0x26f   : > { %8079 = vmatmul.mubr.msk.bf16.gmra.mrb[4].mxu0 %vm10846_vm6, %v10871_v14  ;;  %8085 = vmatmul.mubr.msk.bf16.gmra.mrb[4].mxu1 %vm10846_vm6, %v10871_v14 }
 0x270   : > { %5447 = vmatpush1.bf16.msra.mxu0 %v7966_v37  ;;  %5500 = vmatpush1.bf16.msra.mxu1 %v7968_v38  ;;  %v8033_v37 = vcombine.high %v7901_v12, %v7905_v33  ;;  %v7908_v38 = vld [vmem:[%s11601_s1 + $0xad0] sm:$0xff]  ;;  %v4441_v12 = vld [vmem:[#allocation3 + $0x18] sm:$0xfe]  ;;  %v4443_v33 = vld [vmem:[#allocation3 + $0x28] sm:$0xff] }
 0x271   : > { %5448 = vmatprep.subr.bf16.mxu0 %v7975_v40  ;;  %5501 = vmatprep.subr.bf16.mxu1 %v7977_v53  ;;  %v7912_v40 = vld [vmem:[%s11601_s1 + $0xaf0] sm:$0xff]  ;;  %v7909_v53 = vld [vmem:[%s11601_s1 + $0xad8] sm:$0xff] }
 0x272   : > { %5474 = vmatprep.mubr.bf16.mxu0 %v10649_v18  ;;  %5527 = vmatprep.mubr.bf16.mxu1 %v10649_v18  ;;  %v7869_v18 = vld [vmem:[%s11601_s1 + $0x998] sm:$0xff]  ;;  %v8039_v47 = vcombine.high %v7908_v38, %v7912_v40  ;;  %v8038_v31 = vcombine.low %v7908_v38, %v7912_v40  ;;  %v8040_v43 = vcombine.low %v7909_v53, %v7913_v44  ;;  %v8114_v38 = vld [vmem:[%s11602_s2 + $0x880] sm:$0xff] }
 0x273   : > { %v8001_v6 = vcombine.high %v7869_v18, %v7873_v0  ;;  %v8000_v17 = vcombine.low %v7869_v18, %v7873_v0  ;;  %v8118_v40 = vld [vmem:[%s11602_s2 + $0x8a0] sm:$0xff] }
 0x274   : > { %5449 = vmatpush1.bf16.msra.mxu0 %v7974_v23  ;;  %5502 = vmatpush1.bf16.msra.mxu1 %v7976_v50  ;;  %v8041_v23 = vcombine.high %v7909_v53, %v7913_v44  ;;  %v7916_v50 = vld [vmem:[%s11601_s1 + $0xb10] sm:$0xff]  ;;  %v8115_v53 = vld [vmem:[%s11602_s2 + $0x888] sm:$0xff] }
 0x275   : > { %5450 = vmatprep.subr.bf16.mxu0 %v7983_v51  ;;  %5503 = vmatprep.subr.bf16.mxu1 %v7985_v8  ;;  %v7920_v51 = vld [vmem:[%s11601_s1 + $0xb30] sm:$0xff]  ;;  %v7917_v8 = vld [vmem:[%s11601_s1 + $0xb18] sm:$0xff]  ;;  %v8119_v44 = vld [vmem:[%s11602_s2 + $0x8a8] sm:$0xff] }
 0x276   : > { %v8047_v54 = vcombine.high %v7916_v50, %v7920_v51  ;;  %v8046_v63 = vcombine.low %v7916_v50, %v7920_v51  ;;  %v8048_v18 = vcombine.low %v7917_v8, %v7921_v52  ;;  %v8243_v51 = vcombine.high %v8114_v38, %v8118_v40 }
 0x278   : > { %5451 = vmatpush1.bf16.msra.mxu0 %v7982_v57  ;;  %5504 = vmatpush1.bf16.msra.mxu1 %v7984_v60  ;;  %v8049_v57 = vcombine.high %v7917_v8, %v7921_v52  ;;  %v7924_v60 = vld [vmem:[%s11601_s1 + $0xb50] sm:$0xff]  ;;  %v8245_v8 = vcombine.high %v8115_v53, %v8119_v44  ;;  %v8122_v52 = vld [vmem:[%s11602_s2 + $0x8c0] sm:$0xff] }
 0x279   : > { %5452 = vmatprep.subr.bf16.mxu0 %v7991_v58  ;;  %5505 = vmatprep.subr.bf16.mxu1 %v7993_v59  ;;  %v7928_v58 = vld [vmem:[%s11601_s1 + $0xb70] sm:$0xff]  ;;  %v7925_v59 = vld [vmem:[%s11601_s1 + $0xb58] sm:$0xff] }
 0x27a   : > { %v8055_v0 = vcombine.high %v7924_v60, %v7928_v58  ;;  %v8054_v10 = vcombine.low %v7924_v60, %v7928_v58  ;;  %v8056_v11 = vcombine.low %v7925_v59, %v7929_v61  ;;  %v8242_v60 = vcombine.low %v8114_v38, %v8118_v40  ;;  %v8170_v40 = vld [vmem:[%s11602_s2 + $0xa40] sm:$0xff] }
 0x27b   : > { %v8244_v58 = vcombine.low %v8115_v53, %v8119_v44  ;;  %v8174_v53 = vld [vmem:[%s11602_s2 + $0xa60] sm:$0xff]  ;;  %v8171_v44 = vld [vmem:[%s11602_s2 + $0xa48] sm:$0xff] }
 0x27c   : > { %5453 = vmatpush1.bf16.msra.mxu0 %v7990_v1  ;;  %5506 = vmatpush1.bf16.msra.mxu1 %v7992_v41  ;;  %v8057_v1 = vcombine.high %v7925_v59, %v7929_v61  ;;  %v7932_v41 = vld [vmem:[%s11601_s1 + $0xb90] sm:$0xff] }
 0x27d   : > { %5454 = vmatprep.subr.bf16.mxu0 %v7999_v2  ;;  %5507 = vmatprep.subr.bf16.mxu1 %v8001_v6  ;;  %v7936_v2 = vld [vmem:[%s11601_s1 + $0xbb0] sm:$0xff]  ;;  %v7933_v6 = vld [vmem:[%s11601_s1 + $0xb98] sm:$0xff] }
 0x27e   : > { %v8063_v15 = vcombine.high %v7932_v41, %v7936_v2  ;;  %v8062_v21 = vcombine.low %v7932_v41, %v7936_v2  ;;  %v8064_v9 = vcombine.low %v7933_v6, %v7937_v7 }
 0x280   : > { %5455 = vmatpush1.bf16.msra.mxu0 %v7998_v16  ;;  %5508 = vmatpush1.bf16.msra.mxu1 %v8000_v17  ;;  %v8065_v16 = vcombine.high %v7933_v6, %v7937_v7  ;;  %v7940_v17 = vld [vmem:[%s11601_s1 + $0xbd0] sm:$0xff] }
 0x281   : > { %5456 = vmatprep.subr.bf16.mxu0 %v8007_v39  ;;  %5509 = vmatprep.subr.bf16.mxu1 %v8009_v48  ;;  %v7944_v39 = vld [vmem:[%s11601_s1 + $0xbf0] sm:$0xff]  ;;  %v7941_v48 = vld [vmem:[%s11601_s1 + $0xbd8] sm:$0xff] }
 0x282   : > { %v8071_v45 = vcombine.high %v7940_v17, %v7944_v39  ;;  %v8070_v27 = vcombine.low %v7940_v17, %v7944_v39  ;;  %v8072_v49 = vcombine.low %v7941_v48, %v7945_v20 }
 0x284   : > { %5457 = vmatpush1.bf16.msra.mxu0 %v8006_v22  ;;  %5510 = vmatpush1.bf16.msra.mxu1 %v8008_v24  ;;  %v8073_v22 = vcombine.high %v7941_v48, %v7945_v20  ;;  %v8098_v24 = vld [vmem:[%s11602_s2 + $0x800] sm:$0xff] }
 0x285   : > { %5458 = vmatprep.subr.bf16.mxu0 %v8015_v3  ;;  %5511 = vmatprep.subr.bf16.mxu1 %v8017_v25  ;;  %v8102_v3 = vld [vmem:[%s11602_s2 + $0x820] sm:$0xff]  ;;  %v8099_v25 = vld [vmem:[%s11602_s2 + $0x808] sm:$0xff] }
 0x286   : > { %v8227_v29 = vcombine.high %v8098_v24, %v8102_v3  ;;  %v8226_v5 = vcombine.low %v8098_v24, %v8102_v3  ;;  %v8146_v20 = vld [vmem:[%s11602_s2 + $0x980] sm:$0xff] }
 0x288   : > { %5459 = vmatpush1.bf16.msra.mxu0 %v8014_v30  ;;  %5512 = vmatpush1.bf16.msra.mxu1 %v8016_v32  ;;  %v8229_v30 = vcombine.high %v8099_v25, %v8103_v26  ;;  %v8106_v32 = vld [vmem:[%s11602_s2 + $0x840] sm:$0xff] }
 0x289   : > { %5460 = vmatprep.subr.bf16.mxu0 %v8023_v13  ;;  %5513 = vmatprep.subr.bf16.mxu1 %v8025_v56  ;;  %v8110_v13 = vld [vmem:[%s11602_s2 + $0x860] sm:$0xff]  ;;  %v8107_v56 = vld [vmem:[%s11602_s2 + $0x848] sm:$0xff] }
 0x28a   : > { %v8236_v50 = vcombine.low %v8107_v56, %v8111_v4 }
 0x28c   : > { %5461 = vmatpush1.bf16.msra.mxu0 %v8022_v34  ;;  %5514 = vmatpush1.bf16.msra.mxu1 %v8024_v35  ;;  %v11049_v34 = vld [vmem:[#allocation3 + $0x38] sm:$0xff]  ;;  %v8228_v35 = vcombine.low %v8099_v25, %v8103_v26  ;;  %v8154_v26 = vld [vmem:[%s11602_s2 + $0x9c0] sm:$0xff] }
 0x28d   : > { %5462 = vmatprep.subr.bf16.mxu0 %v8031_v36  ;;  %5515 = vmatprep.subr.bf16.mxu1 %v8033_v37  ;;  %v8235_v36 = vcombine.high %v8106_v32, %v8110_v13  ;;  %v8237_v37 = vcombine.high %v8107_v56, %v8111_v4  ;;  %v8162_v4 = vld [vmem:[%s11602_s2 + $0xa00] sm:$0xff] }
 0x290   : > { %5463 = vmatpush1.bf16.msra.mxu0 %v8030_v62  ;;  %5516 = vmatpush1.bf16.msra.mxu1 %v8032_v46  ;;  %v4532_v62 = vrot.slane %v4441_v12, 1  ;;  %v4533_v46 = vrot.slane %v4443_v33, 1  ;;  %v8163_v12 = vld [vmem:[%s11602_s2 + $0xa08] sm:$0xff] }
 0x291   : > { %5464 = vmatprep.subr.bf16.mxu0 %v8039_v47  ;;  %5517 = vmatprep.subr.bf16.mxu1 %v8041_v23  ;;  %v4537_v47 = vrot.slane %v11049_v34, 1  ;;  %v8234_v23 = vcombine.low %v8106_v32, %v8110_v13  ;;  %v8167_v33 = vld [vmem:[%s11602_s2 + $0xa28] sm:$0xff]  ;;  %v8116_v34 = vld [vmem:[%s11602_s2 + $0x890] sm:$0xff] }
 0x292   : > { %v8293_v38 = vcombine.high %v8163_v12, %v8167_v33 }
 0x294   : > { %5465 = vmatpush1.bf16.msra.mxu0 %v8038_v31  ;;  %5518 = vmatpush1.bf16.msra.mxu1 %v8040_v43  ;;  %v8126_v31 = vld [vmem:[%s11602_s2 + $0x8e0] sm:$0xff]  ;;  %v8127_v43 = vld [vmem:[%s11602_s2 + $0x8e8] sm:$0xff] }
 0x295   : > { %5466 = vmatprep.subr.bf16.mxu0 %v8047_v54  ;;  %5519 = vmatprep.subr.bf16.mxu1 %v8049_v57  ;;  %v4534_v54 = vsel %vm4484_vm4, %v4532_v62, %v4533_v46  ;;  %v4538_v57 = vsel %vm4484_vm4, %v4533_v46, %v4537_v47  ;;  %v8251_v59 = vcombine.high %v8122_v52, %v8126_v31  ;;  %v8175_v62 = vld [vmem:[%s11602_s2 + $0xa68] sm:$0xff] }
 0x296   : > { %v8250_v41 = vcombine.low %v8122_v52, %v8126_v31  ;;  %v8182_v52 = vld [vmem:[%s11602_s2 + $0xaa0] sm:$0xff]  ;;  %v8179_v31 = vld [vmem:[%s11602_s2 + $0xa88] sm:$0xff] }
 0x298   : > { %5467 = vmatpush1.bf16.msra.mxu0 %v8046_v63  ;;  %5520 = vmatpush1.bf16.msra.mxu1 %v8048_v18  ;;  %v8130_v63 = vld [vmem:[%s11602_s2 + $0x900] sm:$0xff]  ;;  %v11094_v18 = vpack.c.bf16 %v4538_v57, %v4534_v54  ;;  %v8300_v54 = vcombine.low %v8171_v44, %v8175_v62 }
 0x299   : > { %5468 = vmatprep.subr.bf16.mxu0 %v8055_v0  ;;  %5521 = vmatprep.subr.bf16.mxu1 %v8057_v1  ;;  %v8131_v0 = vld [vmem:[%s11602_s2 + $0x908] sm:$0xff] }
 0x29a   : > { %v8135_v1 = vld [vmem:[%s11602_s2 + $0x928] sm:$0xff] }
 0x29b   : > { %v8261_v7 = vcombine.high %v8131_v0, %v8135_v1  ;;  %v8260_v17 = vcombine.low %v8131_v0, %v8135_v1 }
 0x29c   : > { %5469 = vmatpush1.bf16.msra.mxu0 %v8054_v10  ;;  %5522 = vmatpush1.bf16.msra.mxu1 %v8056_v11  ;;  %v8138_v10 = vld [vmem:[%s11602_s2 + $0x940] sm:$0xff] }
 0x29d   : > { %5470 = vmatprep.subr.bf16.mxu0 %v8063_v15  ;;  %5523 = vmatprep.subr.bf16.mxu1 %v8065_v16  ;;  %v8142_v11 = vld [vmem:[%s11602_s2 + $0x960] sm:$0xff]  ;;  %v8143_v15 = vld [vmem:[%s11602_s2 + $0x968] sm:$0xff] }
 0x29e   : > { %v8267_v39 = vcombine.high %v8138_v10, %v8142_v11 }
 0x2a0   : > { %5471 = vmatpush1.bf16.msra.mxu0 %v8062_v21  ;;  %5524 = vmatpush1.bf16.msra.mxu1 %v8064_v9  ;;  %v8150_v21 = vld [vmem:[%s11602_s2 + $0x9a0] sm:$0xff]  ;;  %v8147_v9 = vld [vmem:[%s11602_s2 + $0x988] sm:$0xff] }
 0x2a1   : > { %5472 = vmatprep.subr.bf16.mxu0 %v8071_v45  ;;  %5525 = vmatprep.subr.bf16.mxu1 %v8073_v22  ;;  %v8151_v45 = vld [vmem:[%s11602_s2 + $0x9a8] sm:$0xff]  ;;  %v8266_v22 = vcombine.low %v8138_v10, %v8142_v11  ;;  %v8275_v3 = vcombine.high %v8146_v20, %v8150_v21 }
 0x2a2   : > { %v8277_v25 = vcombine.high %v8147_v9, %v8151_v45  ;;  %v8276_v32 = vcombine.low %v8147_v9, %v8151_v45  ;;  %v8199_v10 = vld [vmem:[%s11602_s2 + $0xb28] sm:$0xff] }
 0x2a4   : > { %5473 = vmatpush1.bf16.msra.mxu0 %v8070_v27  ;;  %5526 = vmatpush1.bf16.msra.mxu1 %v8072_v49  ;;  %v8158_v27 = vld [vmem:[%s11602_s2 + $0x9e0] sm:$0xff]  ;;  %v8155_v49 = vld [vmem:[%s11602_s2 + $0x9c8] sm:$0xff] }
 0x2a5   : > { %6353 = vmatprep.subr.bf16.mxu0 %v8227_v29  ;;  %6406 = vmatprep.subr.bf16.mxu1 %v8229_v30  ;;  %v8159_v29 = vld [vmem:[%s11602_s2 + $0x9e8] sm:$0xff]  ;;  %v8274_v30 = vcombine.low %v8146_v20, %v8150_v21  ;;  %v8283_v13 = vcombine.high %v8154_v26, %v8158_v27 }
 0x2a6   : > { %v8285_v56 = vcombine.high %v8155_v49, %v8159_v29  ;;  %v8207_v20 = vld [vmem:[%s11602_s2 + $0xb68] sm:$0xff] }
 0x2a7   : > { %5475 = vmatmul.mubr.bf16.vlgmr.msra.gmra.mrb[8].mxu0 %v10817_v19  ;;  %5528 = vmatmul.mubr.bf16.vlgmr.msra.gmra.mrb[8].mxu1 %v10817_v19  ;;  %v8123_v19 = vld [vmem:[%s11602_s2 + $0x8c8] sm:$0xff] }
 0x2a8   : > { %6354 = vmatpush1.bf16.msra.mxu0 %v8226_v5  ;;  %6407 = vmatpush1.bf16.msra.mxu1 %v8228_v35  ;;  %v8253_v61 = vcombine.high %v8123_v19, %v8127_v43  ;;  %v8252_v2 = vcombine.low %v8123_v19, %v8127_v43  ;;  %v8166_v5 = vld [vmem:[%s11602_s2 + $0xa20] sm:$0xff]  ;;  %v8282_v35 = vcombine.low %v8154_v26, %v8158_v27  ;;  %v8183_v19 = vld [vmem:[%s11602_s2 + $0xaa8] sm:$0xff] }
 0x2a9   : > { %6355 = vmatprep.subr.bf16.mxu0 %v8235_v36  ;;  %6408 = vmatprep.subr.bf16.mxu1 %v8237_v37  ;;  %v8284_v36 = vcombine.low %v8155_v49, %v8159_v29  ;;  %v8291_v37 = vcombine.high %v8162_v4, %v8166_v5  ;;  %v8290_v46 = vcombine.low %v8162_v4, %v8166_v5  ;;  %v8215_v26 = vld [vmem:[%s11602_s2 + $0xba8] sm:$0xff]  ;;  %v8218_v4 = vld [vmem:[%s11602_s2 + $0xbc0] sm:$0xff] }
 0x2aa   : > { %8088 = vmatprep.mubr.msk.bf16.mxu0 %vm10846_vm6, %v10835_v55  ;;  %8094 = vmatprep.mubr.msk.bf16.mxu1 %vm10846_vm6, %v10835_v55  ;;  %v8134_v55 = vld [vmem:[%s11602_s2 + $0x920] sm:$0xff]  ;;  %v8298_v43 = vcombine.low %v8170_v40, %v8174_v53  ;;  %v8308_v0 = vcombine.low %v8179_v31, %v8183_v19 }
 0x2ab   : > { %v8259_v6 = vcombine.high %v8130_v63, %v8134_v55  ;;  %v8258_v16 = vcombine.low %v8130_v63, %v8134_v55  ;;  %v8191_v63 = vld [vmem:[%s11602_s2 + $0xae8] sm:$0xff]  ;;  %v8222_v5 = vld [vmem:[%s11602_s2 + $0xbe0] sm:$0xff] }
 0x2ac   : > { %6356 = vmatpush1.bf16.msra.mxu0 %v8234_v23  ;;  %6409 = vmatpush1.bf16.msra.mxu1 %v8236_v50  ;;  %v8292_v23 = vcombine.low %v8163_v12, %v8167_v33  ;;  %v8299_v50 = vcombine.high %v8170_v40, %v8174_v53  ;;  %v8219_v12 = vld [vmem:[%s11602_s2 + $0xbc8] sm:$0xff]  ;;  %v4449_v53 = vld [vmem:[#allocation3 + $0x58] sm:$0x1] }
 0x2ad   : > { %6357 = vmatprep.subr.bf16.mxu0 %v8243_v51  ;;  %6410 = vmatprep.subr.bf16.mxu1 %v8245_v8  ;;  %v8301_v51 = vcombine.high %v8171_v44, %v8175_v62  ;;  %v8178_v8 = vld [vmem:[%s11602_s2 + $0xa80] sm:$0xff]  ;;  %v8223_v33 = vld [vmem:[%s11602_s2 + $0xbe8] sm:$0xff]  ;;  %v8347_v62 = vcombine.high %v8218_v4, %v8222_v5 }
 0x2ae   : > { %v8307_v57 = vcombine.high %v8178_v8, %v8182_v52  ;;  %v8306_v55 = vcombine.low %v8178_v8, %v8182_v52  ;;  %v4447_v40 = vld [vmem:[#allocation3 + $0x48] sm:$0xff]  ;;  %v8105_v8 = vld [vmem:[%s11602_s2 + $0x838] sm:$0xff] }
 0x2af   : > { %8091 = vmatmul.mubr.msk.bf16.gmra.mrb[12].mxu0 %vm10846_vm6, %v10871_v14  ;;  %8097 = vmatmul.mubr.msk.bf16.gmra.mrb[12].mxu1 %vm10846_vm6, %v10871_v14  ;;  %v8139_v14 = vld [vmem:[%s11602_s2 + $0x948] sm:$0xff]  ;;  %v4541_v52 = vrot.slane %v4447_v40, 1  ;;  %v8144_v40 = vld [vmem:[%s11602_s2 + $0x970] sm:$0xff] }
 0x2b0   : > { %6358 = vmatpush1.bf16.msra.mxu0 %v8242_v60  ;;  %6411 = vmatpush1.bf16.msra.mxu1 %v8244_v58  ;;  %v8269_v48 = vcombine.high %v8139_v14, %v8143_v15  ;;  %v8268_v24 = vcombine.low %v8139_v14, %v8143_v15  ;;  %v8309_v60 = vcombine.high %v8179_v31, %v8183_v19  ;;  %v8186_v58 = vld [vmem:[%s11602_s2 + $0xac0] sm:$0xff]  ;;  %v4545_v31 = vrot.slane %v4449_v53, 1  ;;  %v8141_v53 = vld [vmem:[%s11602_s2 + $0x958] sm:$0xff] }
 0x2b1   : > { %6359 = vmatprep.subr.bf16.mxu0 %v8251_v59  ;;  %6412 = vmatprep.subr.bf16.mxu1 %v8253_v61  ;;  %v8190_v59 = vld [vmem:[%s11602_s2 + $0xae0] sm:$0xff]  ;;  %v8187_v61 = vld [vmem:[%s11602_s2 + $0xac8] sm:$0xff]  ;;  %v8346_v19 = vcombine.low %v8218_v4, %v8222_v5  ;;  %v8136_v4 = vld [vmem:[%s11602_s2 + $0x930] sm:$0xff] }
 0x2b2   : > { %6385 = vmatprep.mubr.bf16.mxu0 %v11094_v18  ;;  %6438 = vmatprep.mubr.bf16.mxu1 %v11094_v18  ;;  %v8315_v1 = vcombine.high %v8186_v58, %v8190_v59  ;;  %v8314_v11 = vcombine.low %v8186_v58, %v8190_v59  ;;  %v8316_v14 = vcombine.low %v8187_v61, %v8191_v63  ;;  %v4446_v58 = vld [vmem:[#allocation3 + $0x40] sm:$0xff]  ;;  %v4448_v59 = vld [vmem:[#allocation3 + $0x50] sm:$0x1]  ;;  %v8133_v5 = vld [vmem:[%s11602_s2 + $0x918] sm:$0xff] }
 0x2b4   : > { %6360 = vmatpush1.bf16.msra.mxu0 %v8250_v41  ;;  %6413 = vmatpush1.bf16.msra.mxu1 %v8252_v2  ;;  %v8317_v41 = vcombine.high %v8187_v61, %v8191_v63  ;;  %v8194_v2 = vld [vmem:[%s11602_s2 + $0xb00] sm:$0xff]  ;;  %v8108_v63 = vld [vmem:[%s11602_s2 + $0x850] sm:$0xff] }
 0x2b5   : > { %6361 = vmatprep.subr.bf16.mxu0 %v8259_v6  ;;  %6414 = vmatprep.subr.bf16.mxu1 %v8261_v7  ;;  %v8198_v6 = vld [vmem:[%s11602_s2 + $0xb20] sm:$0xff]  ;;  %v8195_v7 = vld [vmem:[%s11602_s2 + $0xb08] sm:$0xff] }
 0x2b6   : > { %v8323_v15 = vcombine.high %v8194_v2, %v8198_v6  ;;  %v8322_v21 = vcombine.low %v8194_v2, %v8198_v6  ;;  %v8324_v9 = vcombine.low %v8195_v7, %v8199_v10  ;;  %v4542_v2 = vsel %vm4484_vm4, %v4537_v47, %v4541_v52  ;;  %v8120_v47 = vld [vmem:[%s11602_s2 + $0x8b0] sm:$0xff] }
 0x2b7   : > { %v4546_v6 = vsel %vm4484_vm4, %v4541_v52, %v4545_v31  ;;  %v8153_v52 = vld [vmem:[%s11602_s2 + $0x9b8] sm:$0xff] }
 0x2b8   : > { %6362 = vmatpush1.bf16.msra.mxu0 %v8258_v16  ;;  %6415 = vmatpush1.bf16.msra.mxu1 %v8260_v17  ;;  %v8325_v16 = vcombine.high %v8195_v7, %v8199_v10  ;;  %v8202_v17 = vld [vmem:[%s11602_s2 + $0xb40] sm:$0xff]  ;;  %v4539_v10 = vrot.slane %v4446_v58, 1  ;;  %v8157_v58 = vld [vmem:[%s11602_s2 + $0x9d8] sm:$0xff] }
 0x2b9   : > { %6363 = vmatprep.subr.bf16.mxu0 %v8267_v39  ;;  %6416 = vmatprep.subr.bf16.mxu1 %v8269_v48  ;;  %v8206_v39 = vld [vmem:[%s11602_s2 + $0xb60] sm:$0xff]  ;;  %v8203_v48 = vld [vmem:[%s11602_s2 + $0xb48] sm:$0xff] }
 0x2ba   : > { %v8331_v45 = vcombine.high %v8202_v17, %v8206_v39  ;;  %v8330_v27 = vcombine.low %v8202_v17, %v8206_v39  ;;  %v8332_v49 = vcombine.low %v8203_v48, %v8207_v20  ;;  %v11277_v17 = vpack.c.bf16 %v4546_v6, %v4542_v2  ;;  %v8117_v39 = vld [vmem:[%s11602_s2 + $0x898] sm:$0xff]  ;;  %v8168_v2 = vld [vmem:[%s11602_s2 + $0xa30] sm:$0xff] }
 0x2bb   : > { %v8165_v6 = vld [vmem:[%s11602_s2 + $0xa18] sm:$0xff] }
 0x2bc   : > { %6364 = vmatpush1.bf16.msra.mxu0 %v8266_v22  ;;  %6417 = vmatpush1.bf16.msra.mxu1 %v8268_v24  ;;  %v8333_v22 = vcombine.high %v8203_v48, %v8207_v20  ;;  %v8210_v24 = vld [vmem:[%s11602_s2 + $0xb80] sm:$0xff]  ;;  %v8121_v48 = vld [vmem:[%s11602_s2 + $0x8b8] sm:$0xff] }
 0x2bd   : > { %6365 = vmatprep.subr.bf16.mxu0 %v8275_v3  ;;  %6418 = vmatprep.subr.bf16.mxu1 %v8277_v25  ;;  %v8214_v3 = vld [vmem:[%s11602_s2 + $0xba0] sm:$0xff]  ;;  %v8211_v25 = vld [vmem:[%s11602_s2 + $0xb88] sm:$0xff] }
 0x2be   : > { %v8339_v29 = vcombine.high %v8210_v24, %v8214_v3  ;;  %v8340_v44 = vcombine.low %v8211_v25, %v8215_v26 }
 0x2c0   : > { %6366 = vmatpush1.bf16.msra.mxu0 %v8274_v30  ;;  %6419 = vmatpush1.bf16.msra.mxu1 %v8276_v32  ;;  %v4440_v30 = vld [vmem:[#allocation3 + $0x10] sm:$0xfe]  ;;  %v4442_v32 = vld [vmem:[#allocation3 + $0x20] sm:$0xff] }
 0x2c1   : > { %6367 = vmatprep.subr.bf16.mxu0 %v8283_v13  ;;  %6420 = vmatprep.subr.bf16.mxu1 %v8285_v56  ;;  %v11230_v13 = vld [vmem:[#allocation3 + $0x30] sm:$0xff]  ;;  %v8341_v56 = vcombine.high %v8211_v25, %v8215_v26 }
 0x2c2   : > { %v8128_v25 = vld [vmem:[%s11602_s2 + $0x8f0] sm:$0xff] }
 0x2c4   : > { %6368 = vmatpush1.bf16.msra.mxu0 %v8282_v35  ;;  %6421 = vmatpush1.bf16.msra.mxu1 %v8284_v36  ;;  %v8338_v35 = vcombine.low %v8210_v24, %v8214_v3  ;;  %v4529_v36 = vrot.slane %v4440_v30, 1  ;;  %v8249_v24 = vcombine.high %v8117_v39, %v8121_v48  ;;  %v8124_v3 = vld [vmem:[%s11602_s2 + $0x8d0] sm:$0xff]  ;;  %v8248_v30 = vcombine.low %v8117_v39, %v8121_v48  ;;  %v8177_v39 = vld [vmem:[%s11602_s2 + $0xa78] sm:$0xff] }
 0x2c5   : > { %6369 = vmatprep.subr.bf16.mxu0 %v8291_v37  ;;  %6422 = vmatprep.subr.bf16.mxu1 %v8293_v38  ;;  %v4530_v37 = vrot.slane %v4442_v32, 1  ;;  %v4535_v38 = vrot.slane %v11230_v13, 1  ;;  %v8255_v32 = vcombine.high %v8124_v3, %v8128_v25 }
 0x2c8   : > { %6370 = vmatpush1.bf16.msra.mxu0 %v8290_v46  ;;  %6423 = vmatpush1.bf16.msra.mxu1 %v8292_v23  ;;  %v8349_v46 = vcombine.high %v8219_v12, %v8223_v33  ;;  %v8100_v23 = vld [vmem:[%s11602_s2 + $0x810] sm:$0xff] }
 0x2c9   : > { %6371 = vmatprep.subr.bf16.mxu0 %v8299_v50  ;;  %6424 = vmatprep.subr.bf16.mxu1 %v8301_v51  ;;  %v8104_v50 = vld [vmem:[%s11602_s2 + $0x830] sm:$0xff]  ;;  %v8101_v51 = vld [vmem:[%s11602_s2 + $0x818] sm:$0xff] }
 0x2ca   : > { %v8233_v61 = vcombine.high %v8101_v51, %v8105_v8  ;;  %v8230_v7 = vcombine.low %v8100_v23, %v8104_v50 }
 0x2cc   : > { %6372 = vmatpush1.bf16.msra.mxu0 %v8298_v43  ;;  %6425 = vmatpush1.bf16.msra.mxu1 %v8300_v54  ;;  %v4531_v43 = vsel %vm4484_vm4, %v4529_v36, %v4530_v37  ;;  %v4536_v54 = vsel %vm4484_vm4, %v4530_v37, %v4535_v38 }
 0x2cd   : > { %6373 = vmatprep.subr.bf16.mxu0 %v8307_v57  ;;  %6426 = vmatprep.subr.bf16.mxu1 %v8309_v60  ;;  %v8348_v57 = vcombine.low %v8219_v12, %v8223_v33  ;;  %v8231_v60 = vcombine.high %v8100_v23, %v8104_v50  ;;  %v8137_v12 = vld [vmem:[%s11602_s2 + $0x938] sm:$0xff]  ;;  %v8254_v33 = vcombine.low %v8124_v3, %v8128_v25 }
 0x2ce   : > { %v8265_v37 = vcombine.high %v8133_v5, %v8137_v12  ;;  %v8185_v3 = vld [vmem:[%s11602_s2 + $0xab8] sm:$0xff] }
 0x2d0   : > { %6374 = vmatpush1.bf16.msra.mxu0 %v8306_v55  ;;  %6427 = vmatpush1.bf16.msra.mxu1 %v8308_v0  ;;  %v8112_v55 = vld [vmem:[%s11602_s2 + $0x870] sm:$0xff]  ;;  %v11265_v0 = vpack.c.bf16 %v4536_v54, %v4531_v43 }
 0x2d1   : > { %6375 = vmatprep.subr.bf16.mxu0 %v8315_v1  ;;  %6428 = vmatprep.subr.bf16.mxu1 %v8317_v41  ;;  %v8109_v1 = vld [vmem:[%s11602_s2 + $0x858] sm:$0xff]  ;;  %v8238_v20 = vcombine.low %v8108_v63, %v8112_v55 }
 0x2d2   : > { %v8113_v41 = vld [vmem:[%s11602_s2 + $0x878] sm:$0xff] }
 0x2d4   : > { %6376 = vmatpush1.bf16.msra.mxu0 %v8314_v11  ;;  %6429 = vmatpush1.bf16.msra.mxu1 %v8316_v14  ;;  %v4543_v11 = vrot.slane %v4448_v59, 1  ;;  %v8232_v14 = vcombine.low %v8101_v51, %v8105_v8  ;;  %v8148_v51 = vld [vmem:[%s11602_s2 + $0x990] sm:$0xff]  ;;  %v8161_v59 = vld [vmem:[%s11602_s2 + $0x9f8] sm:$0xff] }
 0x2d5   : > { %6377 = vmatprep.subr.bf16.mxu0 %v8323_v15  ;;  %6430 = vmatprep.subr.bf16.mxu1 %v8325_v16  ;;  %v8239_v15 = vcombine.high %v8108_v63, %v8112_v55  ;;  %v8241_v16 = vcombine.high %v8109_v1, %v8113_v41  ;;  %v8152_v8 = vld [vmem:[%s11602_s2 + $0x9b0] sm:$0xff] }
 0x2d6   : > { %v8279_v43 = vcombine.high %v8148_v51, %v8152_v8 }
 0x2d8   : > { %6378 = vmatpush1.bf16.msra.mxu0 %v8322_v21  ;;  %6431 = vmatpush1.bf16.msra.mxu1 %v8324_v9  ;;  %v4540_v21 = vsel %vm4484_vm4, %v4535_v38, %v4539_v10  ;;  %v4544_v9 = vsel %vm4484_vm4, %v4539_v10, %v4543_v11  ;;  %v8140_v38 = vld [vmem:[%s11602_s2 + $0x950] sm:$0xff]  ;;  %v8288_v11 = vcombine.low %v8157_v58, %v8161_v59 }
 0x2d9   : > { %6379 = vmatprep.subr.bf16.mxu0 %v8331_v45  ;;  %6432 = vmatprep.subr.bf16.mxu1 %v8333_v22  ;;  %v8240_v45 = vcombine.low %v8109_v1, %v8113_v41  ;;  %v8247_v22 = vcombine.high %v8116_v34, %v8120_v47  ;;  %v11307_v26 = vpack.c.bf16 %v4544_v9, %v4540_v21  ;;  %v8164_v41 = vld [vmem:[%s11602_s2 + $0xa10] sm:$0xff] }
 0x2da   : > { %v8271_v23 = vcombine.high %v8140_v38, %v8144_v40  ;;  %v8270_v31 = vcombine.low %v8140_v38, %v8144_v40  ;;  %v8289_v1 = vcombine.high %v8157_v58, %v8161_v59  ;;  %v8294_v48 = vcombine.low %v8164_v41, %v8168_v2  ;;  %v8201_v38 = vld [vmem:[%s11602_s2 + $0xb38] sm:$0xff] }
 0x2dc   : > { %6380 = vmatpush1.bf16.msra.mxu0 %v8330_v27  ;;  %6433 = vmatpush1.bf16.msra.mxu1 %v8332_v49  ;;  %v8125_v27 = vld [vmem:[%s11602_s2 + $0x8d8] sm:$0xff] }
 0x2dd   : > { %6381 = vmatprep.subr.bf16.mxu0 %v8339_v29  ;;  %6434 = vmatprep.subr.bf16.mxu1 %v8341_v56  ;;  %v8129_v49 = vld [vmem:[%s11602_s2 + $0x8f8] sm:$0xff]  ;;  %v8246_v29 = vcombine.low %v8116_v34, %v8120_v47  ;;  %v8132_v56 = vld [vmem:[%s11602_s2 + $0x910] sm:$0xff] }
 0x2de   : > { %v8257_v13 = vcombine.high %v8125_v27, %v8129_v49  ;;  %v8263_v36 = vcombine.high %v8132_v56, %v8136_v4  ;;  %v8176_v34 = vld [vmem:[%s11602_s2 + $0xa70] sm:$0xff]  ;;  %v8173_v47 = vld [vmem:[%s11602_s2 + $0xa58] sm:$0xff] }
 0x2df   : > { %v8305_v9 = vcombine.high %v8173_v47, %v8177_v39 }
 0x2e0   : > { %6382 = vmatpush1.bf16.msra.mxu0 %v8338_v35  ;;  %6435 = vmatpush1.bf16.msra.mxu1 %v8340_v44  ;;  %v8256_v35 = vcombine.low %v8125_v27, %v8129_v49  ;;  %v8145_v44 = vld [vmem:[%s11602_s2 + $0x978] sm:$0xff]  ;;  %v8304_v27 = vcombine.low %v8173_v47, %v8177_v39 }
 0x2e1   : > { %6383 = vmatprep.subr.bf16.mxu0 %v8347_v62  ;;  %6436 = vmatprep.subr.bf16.mxu1 %v8349_v46  ;;  %v8262_v62 = vcombine.low %v8132_v56, %v8136_v4  ;;  %v8264_v46 = vcombine.low %v8133_v5, %v8137_v12  ;;  %v8273_v50 = vcombine.high %v8141_v53, %v8145_v44  ;;  %v8193_v56 = vld [vmem:[%s11602_s2 + $0xaf8] sm:$0xff] }
 0x2e4   : > { %6384 = vmatpush1.bf16.msra.mxu0 %v8346_v19  ;;  %6437 = vmatpush1.bf16.msra.mxu1 %v8348_v57  ;;  %v8272_v19 = vcombine.low %v8141_v53, %v8145_v44  ;;  %v8156_v57 = vld [vmem:[%s11602_s2 + $0x9d0] sm:$0xff] }
 0x2e5   : > { %6459 = vmatprep.subr.bf16.mxu0 %v8231_v60  ;;  %6512 = vmatprep.subr.bf16.mxu1 %v8233_v61  ;;  %v8160_v60 = vld [vmem:[%s11602_s2 + $0x9f0] sm:$0xff]  ;;  %v8278_v61 = vcombine.low %v8148_v51, %v8152_v8  ;;  %v8209_v51 = vld [vmem:[%s11602_s2 + $0xb78] sm:$0xff] }
 0x2e6   : > { %v8287_v55 = vcombine.high %v8156_v57, %v8160_v60  ;;  %v8286_v10 = vcombine.low %v8156_v57, %v8160_v60  ;;  %v8217_v57 = vld [vmem:[%s11602_s2 + $0xbb8] sm:$0xff] }
 0x2e7   : > { %6386 = vmatmul.mubr.bf16.vlgmr.msra.gmra.mrb[0].mxu0 %v11265_v0  ;;  %6439 = vmatmul.mubr.bf16.vlgmr.msra.gmra.mrb[0].mxu1 %v11265_v0 }
 0x2e8   : > { %6460 = vmatpush1.bf16.msra.mxu0 %v8230_v7  ;;  %6513 = vmatpush1.bf16.msra.mxu1 %v8232_v14  ;;  %v8169_v7 = vld [vmem:[%s11602_s2 + $0xa38] sm:$0xff]  ;;  %v8295_v14 = vcombine.high %v8164_v41, %v8168_v2 }
 0x2e9   : > { %6461 = vmatprep.subr.bf16.mxu0 %v8239_v15  ;;  %6514 = vmatprep.subr.bf16.mxu1 %v8241_v16  ;;  %v8297_v15 = vcombine.high %v8165_v6, %v8169_v7  ;;  %v8172_v16 = vld [vmem:[%s11602_s2 + $0xa50] sm:$0xff]  ;;  %v8225_v41 = vld [vmem:[%s11602_s2 + $0xbf8] sm:$0xff] }
 0x2ea   : > { %8356 = vmatprep.mubr.msk.bf16.mxu0 %vm10846_vm6, %v11277_v17  ;;  %8362 = vmatprep.mubr.msk.bf16.mxu1 %vm10846_vm6, %v11277_v17  ;;  %v8303_v21 = vcombine.high %v8172_v16, %v8176_v34  ;;  %v8302_v25 = vcombine.low %v8172_v16, %v8176_v34 }
 0x2ec   : > { %6462 = vmatpush1.bf16.msra.mxu0 %v8238_v20  ;;  %6515 = vmatpush1.bf16.msra.mxu1 %v8240_v45  ;;  %v8296_v20 = vcombine.low %v8165_v6, %v8169_v7  ;;  %v8180_v45 = vld [vmem:[%s11602_s2 + $0xa90] sm:$0xff] }
 0x2ed   : > { %6463 = vmatprep.subr.bf16.mxu0 %v8247_v22  ;;  %6516 = vmatprep.subr.bf16.mxu1 %v8249_v24  ;;  %v8184_v22 = vld [vmem:[%s11602_s2 + $0xab0] sm:$0xff]  ;;  %v8181_v24 = vld [vmem:[%s11602_s2 + $0xa98] sm:$0xff] }
 0x2ee   : > { %v8311_v49 = vcombine.high %v8180_v45, %v8184_v22  ;;  %v8310_v4 = vcombine.low %v8180_v45, %v8184_v22  ;;  %v8312_v5 = vcombine.low %v8181_v24, %v8185_v3 }
 0x2ef   : > { %8359 = vmatmul.mubr.msk.bf16.gmra.mrb[4].mxu0 %vm10846_vm6, %v11307_v26  ;;  %8365 = vmatmul.mubr.msk.bf16.gmra.mrb[4].mxu1 %vm10846_vm6, %v11307_v26 }
 0x2f0   : > { %6464 = vmatpush1.bf16.msra.mxu0 %v8246_v29  ;;  %6517 = vmatpush1.bf16.msra.mxu1 %v8248_v30  ;;  %v8313_v29 = vcombine.high %v8181_v24, %v8185_v3  ;;  %v8188_v30 = vld [vmem:[%s11602_s2 + $0xad0] sm:$0xff] }
 0x2f1   : > { %6465 = vmatprep.subr.bf16.mxu0 %v8255_v32  ;;  %6518 = vmatprep.subr.bf16.mxu1 %v8257_v13  ;;  %v8192_v32 = vld [vmem:[%s11602_s2 + $0xaf0] sm:$0xff]  ;;  %v8189_v13 = vld [vmem:[%s11602_s2 + $0xad8] sm:$0xff] }
 0x2f2   : > { %6491 = vmatprep.mubr.bf16.mxu0 %v11094_v18  ;;  %6544 = vmatprep.mubr.bf16.mxu1 %v11094_v18  ;;  %v8149_v18 = vld [vmem:[%s11602_s2 + $0x998] sm:$0xff]  ;;  %v8319_v12 = vcombine.high %v8188_v30, %v8192_v32  ;;  %v8318_v40 = vcombine.low %v8188_v30, %v8192_v32  ;;  %v8320_v53 = vcombine.low %v8189_v13, %v8193_v56 }
 0x2f3   : > { %v8281_v54 = vcombine.high %v8149_v18, %v8153_v52  ;;  %v8280_v63 = vcombine.low %v8149_v18, %v8153_v52 }
 0x2f4   : > { %6466 = vmatpush1.bf16.msra.mxu0 %v8254_v33  ;;  %6519 = vmatpush1.bf16.msra.mxu1 %v8256_v35  ;;  %v8321_v33 = vcombine.high %v8189_v13, %v8193_v56  ;;  %v8196_v35 = vld [vmem:[%s11602_s2 + $0xb10] sm:$0xff] }
 0x2f5   : > { %6467 = vmatprep.subr.bf16.mxu0 %v8263_v36  ;;  %6520 = vmatprep.subr.bf16.mxu1 %v8265_v37  ;;  %v8200_v36 = vld [vmem:[%s11602_s2 + $0xb30] sm:$0xff]  ;;  %v8197_v37 = vld [vmem:[%s11602_s2 + $0xb18] sm:$0xff] }
 0x2f6   : > { %v8327_v44 = vcombine.high %v8196_v35, %v8200_v36  ;;  %v8326_v8 = vcombine.low %v8196_v35, %v8200_v36  ;;  %v8328_v18 = vcombine.low %v8197_v37, %v8201_v38 }
 0x2f8   : > { %6468 = vmatpush1.bf16.msra.mxu0 %v8262_v62  ;;  %6521 = vmatpush1.bf16.msra.mxu1 %v8264_v46  ;;  %v8329_v62 = vcombine.high %v8197_v37, %v8201_v38  ;;  %v8204_v46 = vld [vmem:[%s11602_s2 + $0xb50] sm:$0xff] }
 0x2f9   : > { %6469 = vmatprep.subr.bf16.mxu0 %v8271_v23  ;;  %6522 = vmatprep.subr.bf16.mxu1 %v8273_v50  ;;  %v8208_v23 = vld [vmem:[%s11602_s2 + $0xb70] sm:$0xff]  ;;  %v8205_v50 = vld [vmem:[%s11602_s2 + $0xb58] sm:$0xff] }
 0x2fa   : > { %v8335_v52 = vcombine.high %v8204_v46, %v8208_v23  ;;  %v8334_v60 = vcombine.low %v8204_v46, %v8208_v23  ;;  %v8336_v58 = vcombine.low %v8205_v50, %v8209_v51 }
 0x2fc   : > { %6470 = vmatpush1.bf16.msra.mxu0 %v8270_v31  ;;  %6523 = vmatpush1.bf16.msra.mxu1 %v8272_v19  ;;  %v8337_v31 = vcombine.high %v8205_v50, %v8209_v51  ;;  %v8212_v19 = vld [vmem:[%s11602_s2 + $0xb90] sm:$0xff] }
 0x2fd   : > { %6471 = vmatprep.subr.bf16.mxu0 %v8279_v43  ;;  %6524 = vmatprep.subr.bf16.mxu1 %v8281_v54  ;;  %v8216_v43 = vld [vmem:[%s11602_s2 + $0xbb0] sm:$0xff]  ;;  %v8213_v54 = vld [vmem:[%s11602_s2 + $0xb98] sm:$0xff] }
 0x2fe   : > { %v8343_v59 = vcombine.high %v8212_v19, %v8216_v43  ;;  %v8342_v2 = vcombine.low %v8212_v19, %v8216_v43  ;;  %v8344_v6 = vcombine.low %v8213_v54, %v8217_v57 }
 0x300   : > { %6472 = vmatpush1.bf16.msra.mxu0 %v8278_v61  ;;  %6525 = vmatpush1.bf16.msra.mxu1 %v8280_v63  ;;  %v8345_v61 = vcombine.high %v8213_v54, %v8217_v57  ;;  %v8220_v63 = vld [vmem:[%s11602_s2 + $0xbd0] sm:$0xff] }
 0x301   : > { %6473 = vmatprep.subr.bf16.mxu0 %v8287_v55  ;;  %6526 = vmatprep.subr.bf16.mxu1 %v8289_v1  ;;  %v8224_v55 = vld [vmem:[%s11602_s2 + $0xbf0] sm:$0xff]  ;;  %v8221_v1 = vld [vmem:[%s11602_s2 + $0xbd8] sm:$0xff] }
 0x302   : > { %v8351_v7 = vcombine.high %v8220_v63, %v8224_v55 }
 0x304   : > { %6474 = vmatpush1.bf16.msra.mxu0 %v8286_v10  ;;  %6527 = vmatpush1.bf16.msra.mxu1 %v8288_v11  ;;  %v8353_v10 = vcombine.high %v8221_v1, %v8225_v41  ;;  %v8350_v11 = vcombine.low %v8220_v63, %v8224_v55 }
 0x305   : > { %6475 = vmatprep.subr.bf16.mxu0 %v8295_v14  ;;  %6528 = vmatprep.subr.bf16.mxu1 %v8297_v15  ;;  %v8352_v14 = vcombine.low %v8221_v1, %v8225_v41 }
 0x308   : > { %6476 = vmatpush1.bf16.msra.mxu0 %v8294_v48  ;;  %6529 = vmatpush1.bf16.msra.mxu1 %v8296_v20 }
 0x309   : > { %6477 = vmatprep.subr.bf16.mxu0 %v8303_v21  ;;  %6530 = vmatprep.subr.bf16.mxu1 %v8305_v9 }
 0x30c   : > { %6478 = vmatpush1.bf16.msra.mxu0 %v8302_v25  ;;  %6531 = vmatpush1.bf16.msra.mxu1 %v8304_v27  ;;  %v6601_v27 = vsub.s32 0, %v8921_v42 }
 0x30d   : > { %6479 = vmatprep.subr.bf16.mxu0 %v8311_v49  ;;  %6532 = vmatprep.subr.bf16.mxu1 %v8313_v29  ;;  %v6605_v49 = vsub.s32 1, %v8921_v42  ;;  %v6613_v29 = vsub.s32 3, %v8921_v42 }
 0x30e   : > { %v6602_v30 = vrot.slane %v11485_v28, %v6601_v27 }
 0x30f   : > { %v6606_v13 = vrot.slane %v11485_v28, %v6605_v49  ;;  %v6614_v56 = vrot.slane %v11485_v28, %v6613_v29 }
 0x310   : > { %6480 = vmatpush1.bf16.msra.mxu0 %v8310_v4  ;;  %6533 = vmatpush1.bf16.msra.mxu1 %v8312_v5 }
 0x311   : > { %6481 = vmatprep.subr.bf16.mxu0 %v8319_v12  ;;  %6534 = vmatprep.subr.bf16.mxu1 %v8321_v33 }
 0x314   : > { %6482 = vmatpush1.bf16.msra.mxu0 %v8318_v40  ;;  %6535 = vmatpush1.bf16.msra.mxu1 %v8320_v53 }
 0x315   : > { %6483 = vmatprep.subr.bf16.mxu0 %v8327_v44  ;;  %6536 = vmatprep.subr.bf16.mxu1 %v8329_v62 }
 0x318   : > { %6484 = vmatpush1.bf16.msra.mxu0 %v8326_v8  ;;  %6537 = vmatpush1.bf16.msra.mxu1 %v8328_v18 }
 0x319   : > { %6485 = vmatprep.subr.bf16.mxu0 %v8335_v52  ;;  %6538 = vmatprep.subr.bf16.mxu1 %v8337_v31 }
 0x31c   : > { %6486 = vmatpush1.bf16.msra.mxu0 %v8334_v60  ;;  %6539 = vmatpush1.bf16.msra.mxu1 %v8336_v58 }
 0x31d   : > { %6487 = vmatprep.subr.bf16.mxu0 %v8343_v59  ;;  %6540 = vmatprep.subr.bf16.mxu1 %v8345_v61 }
 0x320   : > { %6488 = vmatpush1.bf16.msra.mxu0 %v8342_v2  ;;  %6541 = vmatpush1.bf16.msra.mxu1 %v8344_v6 }
 0x321   : > { %6489 = vmatprep.subr.bf16.mxu0 %v8351_v7  ;;  %6542 = vmatprep.subr.bf16.mxu1 %v8353_v10 }
 0x324   : > { %6490 = vmatpush1.bf16.msra.mxu0 %v8350_v11  ;;  %6543 = vmatpush1.bf16.msra.mxu1 %v8352_v14 }
 0x327   : > { %6492 = vmatmul.mubr.bf16.vlgmr.msra.gmra.mrb[8].mxu0 %v11265_v0  ;;  %6545 = vmatmul.mubr.bf16.vlgmr.msra.gmra.mrb[8].mxu1 %v11265_v0 }
 0x328   : > { %8368 = vmatprep.mubr.msk.bf16.mxu0 %vm10846_vm6, %v11277_v17  ;;  %8374 = vmatprep.mubr.msk.bf16.mxu1 %vm10846_vm6, %v11277_v17 }
 0x32f   : > { %8371 = vmatmul.mubr.msk.bf16.gmra.mrb[12].mxu0 %vm10846_vm6, %v11307_v26  ;;  %8377 = vmatmul.mubr.msk.bf16.gmra.mrb[12].mxu1 %vm10846_vm6, %v11307_v26  ;;  %v6609_v26 = vsub.s32 2, %v8921_v42 }
 0x331   : > { %v6610_v32 = vrot.slane %v11485_v28, %v6609_v26  ;;  %v6617_v26 = vsub.s32 4, %v8921_v42 }
 0x3ba   : > { %v6387_v15 = vpop.f32.mrb[0].mxu0  ;;  %v6440_v16 = vpop.f32.mrb[0].mxu1 }
 0x3bb   : > { %v6389_v34 = vpop.f32.mrb[1].mxu0  ;;  %v6442_v0 = vpop.f32.mrb[1].mxu1  ;;  %v6639_v4 = vadd.f32 %v6602_v30, %v6387_v15  ;;  %v6641_v5 = vadd.f32 %v6610_v32, %v6440_v16 }
 0x3bc   : > { %v6391_v47 = vpop.f32.mrb[2].mxu0  ;;  %v6444_v39 = vpop.f32.mrb[2].mxu1  ;;  %v6640_v12 = vadd.f32 %v6606_v13, %v6389_v34  ;;  %v6642_v33 = vadd.f32 %v6614_v56, %v6442_v0 }
 0x3bd   : > { %v6393_v48 = vpop.f32.mrb[3].mxu0  ;;  %v6446_v20 = vpop.f32.mrb[3].mxu1  ;;  %v8378_v35 = vmul.f32 -1.442695, %v6639_v4  ;;  %v6647_v36 = vadd.f32 %v6602_v30, %v6391_v47  ;;  %v8386_v37 = vmul.f32 -1.442695, %v6641_v5  ;;  %v6649_v38 = vadd.f32 %v6610_v32, %v6444_v39 }
 0x3be   : > { %v8379_v40 = vmul.f32 -1.442695, %v6640_v12  ;;  %v6648_v53 = vadd.f32 %v6606_v13, %v6393_v48  ;;  %v8387_v44 = vmul.f32 -1.442695, %v6642_v33  ;;  %v6650_v62 = vadd.f32 %v6614_v56, %v6446_v20 }
 0x3bf   : > { %8606 = vpow2.f32 %v8378_v35  ;;  %v8380_v46 = vmul.f32 -1.442695, %v6647_v36  ;;  %v8388_v50 = vmul.f32 -1.442695, %v6649_v38  ;;  %v6629_v4 = vsub.s32 7, %v8921_v42 }
 0x3c0   : > { %8608 = vpow2.f32 %v8386_v37  ;;  %v8381_v8 = vmul.f32 -1.442695, %v6648_v53  ;;  %v8389_v52 = vmul.f32 -1.442695, %v6650_v62  ;;  %v11499_v35 = vrot.slane %v11485_v28, %v6617_v26 }
 0x3c1   : > { %8610 = vpow2.f32 %v8379_v40 }
 0x3c2   : > { %v6397_v21 = vpop.f32.mrb[4].mxu0  ;;  %v6450_v9 = vpop.f32.mrb[4].mxu1  ;;  %8612 = vpow2.f32 %v8387_v44  ;;  %v11512_v44 = vrot.slane %v11485_v28, %v6629_v4 }
 0x3c3   : > { %v6399_v45 = vpop.f32.mrb[5].mxu0  ;;  %v6452_v17 = vpop.f32.mrb[5].mxu1  ;;  %v6655_v23 = vadd.f32 %v6602_v30, %v6397_v21  ;;  %v6657_v51 = vadd.f32 %v6610_v32, %v6450_v9  ;;  %8614 = vpow2.f32 %v8380_v46 }
 0x3c4   : > { %v6401_v22 = vpop.f32.mrb[6].mxu0  ;;  %v6454_v24 = vpop.f32.mrb[6].mxu1  ;;  %v6656_v18 = vadd.f32 %v6606_v13, %v6399_v45  ;;  %v6658_v31 = vadd.f32 %v6614_v56, %v6452_v17  ;;  %8616 = vpow2.f32 %v8388_v50 }
 0x3c5   : > { %v6403_v3 = vpop.f32.mrb[7].mxu0  ;;  %v6456_v25 = vpop.f32.mrb[7].mxu1  ;;  %v8382_v19 = vmul.f32 -1.442695, %v6655_v23  ;;  %v6663_v43 = vadd.f32 %v6602_v30, %v6401_v22  ;;  %v8390_v54 = vmul.f32 -1.442695, %v6657_v51  ;;  %v6665_v57 = vadd.f32 %v6610_v32, %v6454_v24 }
 0x3c6   : > { %8618 = vpow2.f32 %v8381_v8  ;;  %v8383_v60 = vmul.f32 -1.442695, %v6656_v18  ;;  %v6664_v58 = vadd.f32 %v6606_v13, %v6403_v3  ;;  %v8391_v59 = vmul.f32 -1.442695, %v6658_v31 }
 0x3c7   : > { %8620 = vpow2.f32 %v8389_v52  ;;  %v6666_v61 = vadd.f32 %v6614_v56, %v6456_v25  ;;  %v8384_v63 = vmul.f32 -1.442695, %v6663_v43  ;;  %v8392_v55 = vmul.f32 -1.442695, %v6665_v57 }
 0x3c8   : > { %8622 = vpow2.f32 %v8382_v19  ;;  %v8385_v41 = vmul.f32 -1.442695, %v6664_v58  ;;  %v6625_v30 = vsub.s32 6, %v8921_v42  ;;  %v6621_v32 = vsub.s32 5, %v8921_v42 }
 0x3c9   : > { %8624 = vpow2.f32 %v8390_v54  ;;  %v8607_v1 = vpop.eup %8606  ;;  %v8393_v6 = vmul.f32 -1.442695, %v6666_v61 }
 0x3ca   : > { %8626 = vpow2.f32 %v8383_v60  ;;  %v8609_v2 = vpop.eup %8608  ;;  %v6695_v11 = vadd.f32 1.0, %v8607_v1  ;;  %v11504_v38 = vrot.slane %v11485_v28, %v6625_v30  ;;  %v11507_v40 = vrot.slane %v11485_v28, %v6621_v32 }
 0x3cb   : > { %8628 = vpow2.f32 %v8391_v59  ;;  %v8611_v7 = vpop.eup %8610  ;;  %v6743_v15 = vadd.f32 1.0, %v8609_v2 }
 0x3cc   : > { %8630 = vpow2.f32 %v8384_v63  ;;  %v8613_v10 = vpop.eup %8612  ;;  %v6696_v34 = vadd.f32 1.0, %v8611_v7 }
 0x3cd   : > { %8632 = vpow2.f32 %v8392_v55  ;;  %v8615_v14 = vpop.eup %8614  ;;  %v6744_v47 = vadd.f32 1.0, %v8613_v10 }
 0x3ce   : > { %8634 = vpow2.f32 %v8385_v41  ;;  %v8617_v16 = vpop.eup %8616  ;;  %v6697_v48 = vadd.f32 1.0, %v8615_v14 }
 0x3cf   : > { %8636 = vpow2.f32 %v8393_v6  ;;  %v6745_v21 = vadd.f32 1.0, %v8617_v16 }
 0x3d0   : > { %v8619_v0 = vpop.eup %8618  ;;  %8638 = vrcp.f32 %v6695_v11 }
 0x3d1   : > { %v8621_v39 = vpop.eup %8620  ;;  %8640 = vrcp.f32 %v6743_v15  ;;  %v6698_v45 = vadd.f32 1.0, %v8619_v0 }
 0x3d2   : > { %v8623_v20 = vpop.eup %8622  ;;  %8642 = vrcp.f32 %v6696_v34  ;;  %v6746_v22 = vadd.f32 1.0, %v8621_v39 }
 0x3d3   : > { %v8625_v9 = vpop.eup %8624  ;;  %8644 = vrcp.f32 %v6744_v47  ;;  %v6699_v3 = vadd.f32 1.0, %v8623_v20 }
 0x3d4   : > { %v8627_v17 = vpop.eup %8626  ;;  %8646 = vrcp.f32 %v6697_v48  ;;  %v6747_v27 = vadd.f32 1.0, %v8625_v9 }
 0x3d5   : > { %v8629_v24 = vpop.eup %8628  ;;  %8648 = vrcp.f32 %v6745_v21  ;;  %v6700_v29 = vadd.f32 1.0, %v8627_v17 }
 0x3d6   : > { %v8631_v25 = vpop.eup %8630  ;;  %8650 = vrcp.f32 %v6698_v45  ;;  %v6748_v56 = vadd.f32 1.0, %v8629_v24 }
 0x3d7   : > { %v8633_v49 = vpop.eup %8632  ;;  %8652 = vrcp.f32 %v6746_v22  ;;  %v6701_v12 = vadd.f32 1.0, %v8631_v25 }
 0x3d8   : > { %v8635_v13 = vpop.eup %8634  ;;  %8654 = vrcp.f32 %v6699_v3  ;;  %v6749_v33 = vadd.f32 1.0, %v8633_v49  ;;  %v6823_v49 = vld [vmem:[#allocation4] sm:$0xff] }
 0x3d9   : > { %v8637_v5 = vpop.eup %8636  ;;  %8656 = vrcp.f32 %v6747_v27  ;;  %v6702_v37 = vadd.f32 1.0, %v8635_v13 }
 0x3da   : > { %v11501_v36 = vpop.eup %8638  ;;  %8658 = vrcp.f32 %v6700_v29  ;;  %v6750_v42 = vadd.f32 1.0, %v8637_v5 }
 0x3db   : > { %v11509_v53 = vpop.eup %8640  ;;  %8660 = vrcp.f32 %v6748_v56 }
 0x3dc   : > { %v11514_v62 = vpop.eup %8642  ;;  %8662 = vrcp.f32 %v6701_v12  ;;  %v6831_v12 = vmul.f32 %v11509_v53, %v6823_v49 }
 0x3dd   : > { %v11516_v23 = vpop.eup %8644  ;;  %8664 = vrcp.f32 %v6749_v33  ;;  %v6824_v33 = vld [vmem:[#allocation4 + $0x8] sm:$0xff] }
 0x3de   : > { %v11519_v18 = vpop.eup %8646  ;;  %8666 = vrcp.f32 %v6702_v37 }
 0x3df   : > { %v11523_v43 = vpop.eup %8648  ;;  %8668 = vrcp.f32 %v6750_v42 }
 0x3e0   : > { %v11527_v61 = vpop.eup %8650 }
 0x3e1   : > { %v11530_v41 = vpop.eup %8652 }
 0x3e2   : > { %v11533_v7 = vpop.eup %8654 }
 0x3e3   : > { %v11535_v11 = vpop.eup %8656 }
 0x3e4   : > { %v11538_v15 = vpop.eup %8658 }
 0x3e5   : > { %v11540_v34 = vpop.eup %8660 }
 0x3e6   : > { %v11543_v48 = vpop.eup %8662 }
 0x3e7   : > { %v11547_v17 = vpop.eup %8664 }
 0x3e8   : > { %v11551_v26 = vpop.eup %8666 }
 0x3e9   : > { %v11555_v32 = vpop.eup %8668 }
 0x3fa   : > { %v6493_v46 = vpop.f32.mrb[8].mxu0  ;;  %v6546_v51 = vpop.f32.mrb[8].mxu1 }
 0x3fb   : > { %v6643_v50 = vadd.f32 %v11499_v35, %v6493_v46  ;;  %v6495_v8 = vpop.f32.mrb[9].mxu0  ;;  %v6645_v52 = vadd.f32 %v11504_v38, %v6546_v51  ;;  %v6548_v28 = vpop.f32.mrb[9].mxu1 }
 0x3fc   : > { %v6644_v31 = vadd.f32 %v11507_v40, %v6495_v8  ;;  %v6497_v19 = vpop.f32.mrb[10].mxu0  ;;  %v6646_v57 = vadd.f32 %v11512_v44, %v6548_v28  ;;  %v6550_v58 = vpop.f32.mrb[10].mxu1 }
 0x3fd   : > { %v8394_v54 = vmul.f32 -1.442695, %v6643_v50  ;;  %v6651_v60 = vadd.f32 %v11499_v35, %v6497_v19  ;;  %v6499_v59 = vpop.f32.mrb[11].mxu0  ;;  %8670 = vtanh.f32 %v6645_v52  ;;  %v6552_v1 = vpop.f32.mrb[11].mxu1  ;;  %v6653_v6 = vadd.f32 %v11504_v38, %v6550_v58  ;;  %v6825_v50 = vld [vmem:[#allocation4 + $0x10] sm:$0xff]  ;;  %v6826_v19 = vld [vmem:[#allocation4 + $0x18] sm:$0xff] }
 0x3fe   : > { %v8395_v63 = vmul.f32 -1.442695, %v6644_v31  ;;  %v6652_v55 = vadd.f32 %v11507_v40, %v6499_v59  ;;  %v6654_v14 = vadd.f32 %v11512_v44, %v6552_v1  ;;  %v6832_v31 = vmul.f32 %v11516_v23, %v6824_v33 }
 0x3ff   : > { %8672 = vpow2.f32 %v8394_v54  ;;  %v8396_v2 = vmul.f32 -1.442695, %v6651_v60  ;;  %v6827_v60 = vld [vmem:[#allocation4 + $0x20] sm:$0xff] }
 0x400   : > { %8674 = vpow2.f32 %v8395_v63  ;;  %v8397_v10 = vmul.f32 -1.442695, %v6652_v55 }
 0x401   : > { %8676 = vtanh.f32 %v6646_v57  ;;  %v6833_v57 = vmul.f32 %v11523_v43, %v6825_v50  ;;  %v6835_v43 = vmul.f32 %v11535_v11, %v6827_v60  ;;  %v6830_v50 = vld [vmem:[#allocation4 + $0x38] sm:$0xff] }
 0x402   : > { %8678 = vpow2.f32 %v8396_v2  ;;  %v6503_v16 = vpop.f32.mrb[12].mxu0  ;;  %v6556_v47 = vpop.f32.mrb[12].mxu1 }
 0x403   : > { %8680 = vtanh.f32 %v6653_v6  ;;  %v6659_v0 = vadd.f32 %v11499_v35, %v6503_v16  ;;  %v6505_v39 = vpop.f32.mrb[13].mxu0  ;;  %v6661_v20 = vadd.f32 %v11504_v38, %v6556_v47  ;;  %v6558_v9 = vpop.f32.mrb[13].mxu1 }
 0x404   : > { %8682 = vpow2.f32 %v8397_v10  ;;  %v6660_v21 = vadd.f32 %v11507_v40, %v6505_v39  ;;  %v6507_v45 = vpop.f32.mrb[14].mxu0  ;;  %v6662_v24 = vadd.f32 %v11512_v44, %v6558_v9  ;;  %v6560_v25 = vpop.f32.mrb[14].mxu1  ;;  %v6828_v10 = vld [vmem:[#allocation4 + $0x28] sm:$0xff]  ;;  %v6829_v39 = vld [vmem:[#allocation4 + $0x30] sm:$0xff] }
 0x405   : > { %8684 = vtanh.f32 %v6654_v14  ;;  %v8398_v22 = vmul.f32 -1.442695, %v6659_v0  ;;  %v6667_v3 = vadd.f32 %v11499_v35, %v6507_v45  ;;  %v6509_v27 = vpop.f32.mrb[15].mxu0  ;;  %v11553_v30 = vpop.f32.mrb[15].mxu1  ;;  %v6669_v56 = vadd.f32 %v11504_v38, %v6560_v25 }
 0x406   : > { %8686 = vtanh.f32 %v6661_v20  ;;  %v8399_v29 = vmul.f32 -1.442695, %v6660_v21  ;;  %v6668_v52 = vadd.f32 %v11507_v40, %v6509_v27 }
 0x407   : > { %8688 = vpow2.f32 %v8398_v22  ;;  %v8400_v13 = vmul.f32 -1.442695, %v6667_v3  ;;  %v8671_v4 = vpop.eup %8670  ;;  %v6837_v22 = vmul.f32 %v11547_v17, %v6829_v39 }
 0x408   : > { %8690 = vpow2.f32 %v8399_v29  ;;  %v6839_v35 = vmul.f32 %v8671_v4, %v11501_v36  ;;  %v8401_v23 = vmul.f32 -1.442695, %v6668_v52 }
 0x409   : > { %v8673_v5 = vpop.eup %8672  ;;  %8692 = vtanh.f32 %v6662_v24 }
 0x40a   : > { %v8675_v37 = vpop.eup %8674  ;;  %v6791_v42 = vadd.f32 1.0, %v8673_v5  ;;  %8694 = vpow2.f32 %v8400_v13  ;;  %v6847_v51 = vadd.f32 %v6839_v35, %v6831_v12 }
 0x40b   : > { %v8677_v46 = vpop.eup %8676  ;;  %v6792_v8 = vadd.f32 1.0, %v8675_v37  ;;  %8696 = vtanh.f32 %v6669_v56 }
 0x40c   : > { %v8679_v38 = vpop.eup %8678  ;;  %8698 = vrcp.f32 %v6791_v42  ;;  %v6840_v53 = vmul.f32 %v8677_v46, %v11514_v62  ;;  %6871 = vst [vmem:[#allocation4] sm:$0xff] %v6847_v51  ;;  %v6834_v62 = vmul.f32 %v11530_v41, %v6826_v19 }
 0x40d   : > { %v8681_v28 = vpop.eup %8680  ;;  %8700 = vtanh.f32 %v6847_v51  ;;  %v6793_v36 = vadd.f32 1.0, %v8679_v38 }
 0x40e   : > { %v8683_v54 = vpop.eup %8682  ;;  %8702 = vrcp.f32 %v6792_v8  ;;  %v6848_v58 = vadd.f32 %v6840_v53, %v6832_v31  ;;  %v6841_v59 = vmul.f32 %v8681_v28, %v11519_v18  ;;  %v6838_v53 = vmul.f32 %v11555_v32, %v6830_v50 }
 0x40f   : > { %v8685_v40 = vpop.eup %8684  ;;  %8704 = vrcp.f32 %v6793_v36  ;;  %v6794_v63 = vadd.f32 1.0, %v8683_v54 }
 0x410   : > { %v8687_v55 = vpop.eup %8686  ;;  %8706 = vtanh.f32 %v6848_v58  ;;  %6872 = vst [vmem:[#allocation4 + $0x8] sm:$0xff] %v6848_v58  ;;  %v6849_v1 = vadd.f32 %v6841_v59, %v6833_v57  ;;  %v6842_v2 = vmul.f32 %v8685_v40, %v11527_v61  ;;  %v6836_v61 = vmul.f32 %v11540_v34, %v6828_v10 }
 0x411   : > { %v8689_v6 = vpop.eup %8688  ;;  %8708 = vrcp.f32 %v6794_v63  ;;  %v6843_v14 = vmul.f32 %v8687_v55, %v11533_v7  ;;  %v6670_v34 = vadd.f32 %v11512_v44, %v11553_v30 }
 0x412   : > { %v8691_v18 = vpop.eup %8690  ;;  %8710 = vtanh.f32 %v6849_v1  ;;  %6873 = vst [vmem:[#allocation4 + $0x10] sm:$0xff] %v6849_v1  ;;  %v6850_v16 = vadd.f32 %v6842_v2, %v6834_v62  ;;  %v6795_v0 = vadd.f32 1.0, %v8689_v6 }
 0x413   : > { %v8693_v47 = vpop.eup %8692  ;;  %v6851_v41 = vadd.f32 %v6843_v14, %v6835_v43  ;;  %v6796_v20 = vadd.f32 1.0, %v8691_v18  ;;  %8712 = vpow2.f32 %v8401_v23 }
 0x414   : > { %v8695_v21 = vpop.eup %8694  ;;  %8714 = vtanh.f32 %v6850_v16  ;;  %6874 = vst [vmem:[#allocation4 + $0x18] sm:$0xff] %v6850_v16  ;;  %v6844_v11 = vmul.f32 %v8693_v47, %v11538_v15 }
 0x415   : > { %v8697_v9 = vpop.eup %8696  ;;  %8716 = vrcp.f32 %v6795_v0  ;;  %6875 = vst [vmem:[#allocation4 + $0x20] sm:$0xff] %v6851_v41  ;;  %v6797_v7 = vadd.f32 1.0, %v8695_v21 }
 0x416   : > { %v8699_v45 = vpop.eup %8698  ;;  %8718 = vtanh.f32 %v6851_v41  ;;  %v6852_v24 = vadd.f32 %v6844_v11, %v6836_v61  ;;  %v6845_v3 = vmul.f32 %v8697_v9, %v11543_v48 }
 0x417   : > { %v8701_v25 = vpop.eup %8700  ;;  %8720 = vrcp.f32 %v6796_v20 }
 0x418   : > { %v8703_v27 = vpop.eup %8702  ;;  %v6863_v49 = vmul.f32 %v8701_v25, %v8699_v45  ;;  %8722 = vtanh.f32 %v6852_v24  ;;  %6876 = vst [vmem:[#allocation4 + $0x28] sm:$0xff] %v6852_v24  ;;  %v6853_v15 = vadd.f32 %v6845_v3, %v6837_v22 }
 0x419   : > { %v8705_v29 = vpop.eup %8704  ;;  %8724 = vrcp.f32 %v6797_v7 }
 0x41a   : > { %v8707_v13 = vpop.eup %8706  ;;  %6879 = vst [vmem:[#allocation3 + $0x10] sm:$0xff] %v6863_v49  ;;  %6887 = vst [vmem:[%s8853_s6] sm:$0xff] %v6863_v49  ;;  %8726 = vtanh.f32 %v6853_v15 }
 0x41b   : > { %6877 = vst [vmem:[#allocation4 + $0x30] sm:$0xff] %v6853_v15  ;;  %v8709_v48 = vpop.eup %8708  ;;  %v6864_v17 = vmul.f32 %v8707_v13, %v8703_v27  ;;  %8728 = vtanh.f32 %v6670_v34 }
 0x41c   : > { %v8711_v56 = vpop.eup %8710 }
 0x41d   : > { %v8713_v44 = vpop.eup %8712  ;;  %6880 = vst [vmem:[#allocation3 + $0x18] sm:$0xff] %v6864_v17  ;;  %6888 = vst [vmem:[%s8853_s6 + $0x8] sm:$0xff] %v6864_v17  ;;  %v6865_v30 = vmul.f32 %v8711_v56, %v8705_v29 }
 0x41e   : > { %v8715_v4 = vpop.eup %8714  ;;  %v6798_v52 = vadd.f32 1.0, %v8713_v44 }
 0x41f   : > { %v8717_v5 = vpop.eup %8716  ;;  %6881 = vst [vmem:[#allocation3 + $0x20] sm:$0xff] %v6865_v30  ;;  %6889 = vst [vmem:[%s8853_s6 + $0x10] sm:$0xff] %v6865_v30  ;;  %v6866_v12 = vmul.f32 %v8715_v4, %v8709_v48 }
 0x420   : > { %v8719_v33 = vpop.eup %8718  ;;  %8730 = vrcp.f32 %v6798_v52 }
 0x421   : > { %v8721_v35 = vpop.eup %8720  ;;  %6882 = vst [vmem:[#allocation3 + $0x28] sm:$0xff] %v6866_v12  ;;  %6890 = vst [vmem:[%s8853_s6 + $0x18] sm:$0xff] %v6866_v12  ;;  %v6867_v37 = vmul.f32 %v8719_v33, %v8717_v5 }
 0x422   : > { %v8723_v42 = vpop.eup %8722 }
 0x423   : > { %v8725_v46 = vpop.eup %8724  ;;  %6883 = vst [vmem:[#allocation3 + $0x30] sm:$0xff] %v6867_v37  ;;  %6891 = vst [vmem:[%s8853_s6 + $0x20] sm:$0xff] %v6867_v37  ;;  %v6868_v51 = vmul.f32 %v8723_v42, %v8721_v35 }
 0x424   : > { %v8727_v8 = vpop.eup %8726 }
 0x425   : > { %v8729_v38 = vpop.eup %8728  ;;  %6884 = vst [vmem:[#allocation3 + $0x38] sm:$0xff] %v6868_v51  ;;  %6892 = vst [vmem:[%s8853_s6 + $0x28] sm:$0xff] %v6868_v51  ;;  %v6869_v31 = vmul.f32 %v8727_v8, %v8725_v46 }
 0x426   : > { %v6846_v28 = vmul.f32 %v8729_v38, %v11551_v26 }
 0x427   : > { %6885 = vst [vmem:[#allocation3 + $0x40] sm:$0xff] %v6869_v31  ;;  %6893 = vst [vmem:[%s8853_s6 + $0x30] sm:$0xff] %v6869_v31 }
 0x428   : > { %v6854_v19 = vadd.f32 %v6846_v28, %v6838_v53 }
 0x42a   : > { %8732 = vtanh.f32 %v6854_v19  ;;  %6878 = vst [vmem:[#allocation4 + $0x38] sm:$0xff] %v6854_v19  ;;  %v8731_v36 = vpop.eup %8730 }
 0x434   : > { %v8733_v54 = vpop.eup %8732 }
 0x435   : > { %v6870_v57 = vmul.f32 %v8733_v54, %v8731_v36 }
 0x437   : > { %6886 = vst [vmem:[#allocation3 + $0x48] sm:$0xff] %v6870_v57  ;;  %6894 = vst [vmem:[%s8853_s6 + $0x38] sm:$0xff] %v6870_v57 }
 0x438 PF: > { %s14_s19 = sadd.s32 1, %s8786_s19   ;;  %s11609_s15 = smov %s8778_s17 }
 0x439   : > { %p11_p8 = scmp.ge.s32.totalorder %s14_s19, 10   ;;  %s11610_s16 = smov %s8782_s18 }
 0x43a   : > { %s11611_s17 = smov %s11614_s20  ;;  %s11612_s18 = smov %s11618_s21 }
 0x43b   :  { %13 = sbr.rel (!%p11_p8) target bundleno = 3 (0x3), region = 74 }

</bundles_post_ra>
